<compile_context>
chip_gen: v6e
topology: v6e:2x2x1
jax: 0.10.0
libtpu: 0.0.40
codegen_flags: <defaults>
</compile_context>

<pallas_src>
import math

import jax
import jax.numpy as jnp
from jax.experimental import pallas as pl
from jax.experimental.pallas import tpu as pltpu

SEQ = 50          # hardcoded by the module (reshape(-1, 50, 32))
SEQ_P = 56        # padded to a sublane multiple (8) for free in-kernel reshapes
DMODEL = 32
NHEAD = 4
DHEAD = 8
LN_EPS = 1e-5
NEG_LARGE = -1e9  # finite stand-in for -inf (avoids NaN on fully-masked rows)


def _multihead_kernel(q_ref, k_ref, v_ref, mask_ref, w_ref, b_ref, out_ref):
    # One grid step == b_tile batch elements; shapes below use padded SEQ_P.
    B, S, D = q_ref.shape           # (b_tile, 56, 32)
    BS = B * S

    w_all = w_ref[...]              # (4, 32, 32): [Wq', Wk', Wv', Wo]
    b_all = b_ref[...]              # (4, 32):     [bq', bk', bv', bo]

    def norm(x2):
        # LayerNorm without affine (gamma/beta folded into the weights).
        mean = jnp.mean(x2, axis=-1, keepdims=True)
        var = jnp.mean(jnp.square(x2 - mean), axis=-1, keepdims=True)
        return (x2 - mean) * jax.lax.rsqrt(var + LN_EPS)

    def proj(ref, idx):
        # Single flattened 2-D matmul: M = B*SEQ_P, K = N = 32.
        x2 = ref[...].reshape(BS, D)
        y = jnp.dot(norm(x2), w_all[idx], preferred_element_type=jnp.float32)
        y = y + b_all[idx:idx + 1, :]            # (1, 32) broadcast
        return y.reshape(B, S, D)

    Q = proj(q_ref, 0)              # (B, S, 32)
    K = proj(k_ref, 1)
    V = proj(v_ref, 2)

    masked = mask_ref[...] != 0     # (B, S, S) bool, nonzero => masked
    inv_sqrt_d = 1.0 / math.sqrt(DHEAD)
    wo = w_all[3]                   # (32, 32)

    acc2 = None                     # (BS, 32) accumulated out-projection
    for h in range(NHEAD):          # 4 heads, static lane slices
        lo = h * DHEAD
        qh = Q[:, :, lo:lo + DHEAD]              # (B, S, 8)
        kh = K[:, :, lo:lo + DHEAD]
        vh = V[:, :, lo:lo + DHEAD]

        # score = Q @ K^T / sqrt(d), masked, softmax over keys
        s = jnp.einsum('bqd,bkd->bqk', qh, kh,
                       preferred_element_type=jnp.float32) * inv_sqrt_d
        s = jnp.where(masked, NEG_LARGE, s)
        s = s - jnp.max(s, axis=-1, keepdims=True)
        e = jnp.exp(s)
        r = pl.reciprocal(jnp.sum(e, axis=-1, keepdims=True), approx=True)
        ho = jnp.einsum('bqk,bkd->bqd', e, vh,
                        preferred_element_type=jnp.float32) * r   # (B, S, 8)

        # Output projection per head as a flat 2-D dot (no weight broadcast).
        contrib = jnp.dot(ho.reshape(BS, DHEAD), wo[lo:lo + DHEAD, :],
                          preferred_element_type=jnp.float32)     # (BS, 32)
        acc2 = contrib if acc2 is None else acc2 + contrib

    # dropout(p=0.1) -> identity (inference); residual with pre-norm Q,
    # re-read from the ref here to keep its live range short.
    out_ref[...] = q_ref[...] + acc2.reshape(B, S, D) + b_all[3:4, :]


def _fold_params(params):
    """Fold LayerNorm affine into the projection weights; pack all params."""
    gamma = params['ln_gamma'].reshape(-1).astype(jnp.float32)   # (32,)
    beta = params['ln_beta'].reshape(-1).astype(jnp.float32)

    def fold(w, b):
        # (x_hat*gamma + beta) @ W + b == x_hat @ (gamma[:,None]*W) + (beta@W + b)
        return gamma[:, None] * w, beta @ w + b.reshape(-1)

    wq, bq = fold(params['wq'], params['bq'])
    wk, bk = fold(params['wk'], params['bk'])
    wv, bv = fold(params['wv'], params['bv'])
    wo, bo = params['wo'], params['bo'].reshape(-1)
    w_all = jnp.stack([wq, wk, wv, wo]).astype(jnp.float32)      # (4, 32, 32)
    b_all = jnp.stack([bq, bk, bv, bo]).astype(jnp.float32)      # (4, 32)
    return w_all, b_all


def multihead_forward(q, k, v, mask, params, *, b_tile=32, vmem_limit_bytes=None):
    """q,k,v: (b, 50, 32) f32; mask: (b, 1, 50, 50) (nonzero/True = masked);
    params: ln_gamma/ln_beta (1,32), wq/wk/wv/wo (32,32) stored as (in,out),
    bq/bk/bv/bo (1,32).

    b_tile = batch elements per grid step.  Padded per-element footprint is
    roughly 0.5-0.75 MB (q/k/v/out blocks pad 32->128 lanes, plus score/prob
    temporaries).  Guidance: v7x <= ~64 (64 MiB physical VMEM), v6e 128-256
    with vmem_limit_bytes ~64-96 MiB, v5e <= ~48 unless the limit is raised
    (default scoped VMEM is only 16 MiB there)."""
    b = q.shape[0]
    assert q.shape == (b, SEQ, DMODEL) and k.shape == q.shape and v.shape == q.shape

    w_all, b_all = _fold_params(params)

    # Compact int8 mask (nonzero = masked): 4x less HBM traffic than int32.
    mask_i8 = (jnp.asarray(mask).reshape(b, SEQ, SEQ) != 0).astype(jnp.int8)

    # Pad sequence 50 -> 56 so in-kernel (B,S,32)<->(B*S,32) reshapes are free.
    pad_s = SEQ_P - SEQ
    q = jnp.pad(q, ((0, 0), (0, pad_s), (0, 0)))
    k = jnp.pad(k, ((0, 0), (0, pad_s), (0, 0)))
    v = jnp.pad(v, ((0, 0), (0, pad_s), (0, 0)))
    # Padded key columns masked (excluded from softmax exactly: exp(-1e9)=0);
    # padded query rows left unmasked (their outputs are sliced off below).
    mask_i8 = jnp.pad(mask_i8, ((0, 0), (0, 0), (0, pad_s)), constant_values=1)
    mask_i8 = jnp.pad(mask_i8, ((0, 0), (0, pad_s), (0, 0)), constant_values=0)

    b_tile = max(1, min(int(b_tile), b))
    grid_n = -(-b // b_tile)
    b_pad = grid_n * b_tile
    if b_pad != b:
        n = b_pad - b
        q = jnp.pad(q, ((0, n), (0, 0), (0, 0)))
        k = jnp.pad(k, ((0, n), (0, 0), (0, 0)))
        v = jnp.pad(v, ((0, n), (0, 0), (0, 0)))
        mask_i8 = jnp.pad(mask_i8, ((0, n), (0, 0), (0, 0)))

    if vmem_limit_bytes is None:
        # ~0.75 MB of padded blocks + temporaries per batch element (heuristic),
        # clamped to stay under v7x's 64 MiB physical VMEM.
        vmem_limit_bytes = min(60 * 1024 * 1024,
                               max(32 * 1024 * 1024, b_tile * 768 * 1024))

    batched = lambda shp: pl.BlockSpec((b_tile,) + shp,
                                       lambda i: (i,) + (0,) * len(shp))
    const = lambda shp: pl.BlockSpec(shp, lambda i: (0,) * len(shp))

    grid_spec = pltpu.PrefetchScalarGridSpec(
        num_scalar_prefetch=0,
        grid=(grid_n,),
        in_specs=[
            batched((SEQ_P, DMODEL)),        # q
            batched((SEQ_P, DMODEL)),        # k
            batched((SEQ_P, DMODEL)),        # v
            batched((SEQ_P, SEQ_P)),         # mask (int8)
            const((4, DMODEL, DMODEL)),      # packed weights (4,32,32)
            const((4, DMODEL)),              # packed biases  (4,32)
        ],
        out_specs=pl.BlockSpec((b_tile, SEQ_P, DMODEL), lambda i: (i, 0, 0)),
    )

    out = pl.pallas_call(
        _multihead_kernel,
        out_shape=jax.ShapeDtypeStruct((b_pad, SEQ_P, DMODEL), jnp.float32),
        grid_spec=grid_spec,
        compiler_params=pltpu.CompilerParams(
            dimension_semantics=("parallel",),
            vmem_limit_bytes=vmem_limit_bytes),
    )(q, k, v, mask_i8, w_all, b_all)
    return out[:b, :SEQ, :]


def _reference(q, k, v, mask, params):
    """Pure-JAX reference mirroring the PyTorch forward (eval mode)."""
    gamma = params['ln_gamma'].reshape(-1)
    beta = params['ln_beta'].reshape(-1)

    def ln(x):
        m = jnp.mean(x, -1, keepdims=True)
        var = jnp.mean((x - m) ** 2, -1, keepdims=True)
        return (x - m) / jnp.sqrt(var + LN_EPS) * gamma + beta

    b = q.shape[0]
    clone_q = q
    Q = ln(q) @ params['wq'] + params['bq']
    K = ln(k) @ params['wk'] + params['bk']
    V = ln(v) @ params['wv'] + params['bv']
    Q = Q.reshape(b, SEQ, NHEAD, DHEAD).transpose(0, 2, 1, 3)
    K = K.reshape(b, SEQ, NHEAD, DHEAD).transpose(0, 2, 1, 3)
    V = V.reshape(b, SEQ, NHEAD, DHEAD).transpose(0, 2, 1, 3)
    score = jnp.einsum('bhqd,bhkd->bhqk', Q, K) / math.sqrt(DHEAD)
    score = jnp.where(jnp.asarray(mask).reshape(b, 1, SEQ, SEQ) != 0,
                      -jnp.inf, score)
    score = jax.nn.softmax(score, axis=-1)
    sv = jnp.einsum('bhqk,bhkd->bhqd', score, V)
    sv = sv.transpose(0, 2, 1, 3).reshape(b, SEQ, NHEAD * DHEAD)
    out = sv @ params['wo'] + params['bo']
    return clone_q + out


def init_params(key):
    ks = jax.random.split(key, 10)
    bound = 1.0 / math.sqrt(DMODEL)

    def lin(kw, kb):
        # stored as (in, out), i.e. transposed relative to torch's (out, in)
        w = jax.random.uniform(kw, (DMODEL, DMODEL), jnp.float32, -bound, bound)
        b_ = jax.random.uniform(kb, (1, DMODEL), jnp.float32, -bound, bound)
        return w, b_

    wq, bq = lin(ks[0], ks[1])
    wk, bk = lin(ks[2], ks[3])
    wv, bv = lin(ks[4], ks[5])
    wo, bo = lin(ks[6], ks[7])
    # non-trivial LayerNorm affine so the wrapper-side folding is exercised
    gamma = 1.0 + 0.1 * jax.random.normal(ks[8], (1, DMODEL), jnp.float32)
    beta = 0.1 * jax.random.normal(ks[9], (1, DMODEL), jnp.float32)
    return dict(ln_gamma=gamma, ln_beta=beta,
                wq=wq, bq=bq, wk=wk, bk=bk, wv=wv, bv=bv, wo=wo, bo=bo)


if __name__ == "__main__":
    key = jax.random.PRNGKey(0)
    k_params, k_q, k_k, k_v = jax.random.split(key, 4)

    batch = 6
    params = init_params(k_params)
    q = jax.random.normal(k_q, (batch, SEQ, DMODEL), jnp.float32)
    k = jax.random.normal(k_k, (batch, SEQ, DMODEL), jnp.float32)
    v = jax.random.normal(k_v, (batch, SEQ, DMODEL), jnp.float32)

    # padding-style mask: keys beyond the valid length are masked
    # (never a fully masked row)
    valid_lens = jnp.array([SEQ, 37, 50, 13, 44, 29], dtype=jnp.int32)
    key_idx = jnp.arange(SEQ)[None, None, None, :]                 # (1,1,1,SEQ)
    mask = (key_idx >= valid_lens[:, None, None, None])
    mask = jnp.broadcast_to(mask, (batch, 1, SEQ, SEQ)).astype(jnp.int8)

    # b_tile=4 -> batch padded 6->8, grid of 2 "parallel" steps.
    out = multihead_forward(q, k, v, mask, params, b_tile=4)
    out = jax.block_until_ready(out)

    ref = _reference(q, k, v, mask, params)
    assert out.shape == (batch, SEQ, DMODEL)
    # 1e-3 tolerance: approx reciprocal (EUP) + f32 reassociation vs reference.
    assert jnp.allclose(out, ref, rtol=1e-3, atol=1e-3), "mismatch vs JAX reference"

    print("KERNEL_OK")
</pallas_src>

<mosaic_0001>
module attributes {stable_mosaic.version = 11 : i64} {
  func.func @_multihead_kernel(%arg0: i32, %arg1: memref<4x56x32xf32, #tpu.memory_space<vmem>>, %arg2: memref<4x56x32xf32, #tpu.memory_space<vmem>>, %arg3: memref<4x56x32xf32, #tpu.memory_space<vmem>>, %arg4: memref<4x56x56xi8, #tpu.memory_space<vmem>>, %arg5: memref<4x32x32xf32, #tpu.memory_space<vmem>>, %arg6: memref<4x32xf32, #tpu.memory_space<vmem>>, %arg7: memref<4x56x32xf32, #tpu.memory_space<vmem>>) attributes {dimension_semantics = [#tpu.dimension_semantics<parallel>], iteration_bounds = array<i64: 2>, scalar_prefetch = 0 : i64, scratch_operands = 0 : i64, tpu.core_type = #tpu.core_type<tc>, window_params = [{transform_indices = @transform_0, window_bounds = array<i64: 4, 56, 32>}, {transform_indices = @transform_1, window_bounds = array<i64: 4, 56, 32>}, {transform_indices = @transform_2, window_bounds = array<i64: 4, 56, 32>}, {transform_indices = @transform_3, window_bounds = array<i64: 4, 56, 56>}, {pipeline_mode = #tpu.pipeline_mode<synchronous>, transform_indices = @transform_4, window_bounds = array<i64: 4, 32, 32>}, {pipeline_mode = #tpu.pipeline_mode<synchronous>, transform_indices = @transform_5, window_bounds = array<i64: 4, 32>}, {transform_indices = @transform_6, window_bounds = array<i64: 4, 56, 32>}]} {
    %c0 = arith.constant 0 : index
    %c0_0 = arith.constant 0 : index
    %c0_1 = arith.constant 0 : index
    %0 = vector.load %arg5[%c0, %c0_0, %c0_1] : memref<4x32x32xf32, #tpu.memory_space<vmem>>, vector<4x32x32xf32>
    %c0_2 = arith.constant 0 : index
    %c0_3 = arith.constant 0 : index
    %1 = vector.load %arg6[%c0_2, %c0_3] : memref<4x32xf32, #tpu.memory_space<vmem>>, vector<4x32xf32>
    %c0_4 = arith.constant 0 : index
    %c0_5 = arith.constant 0 : index
    %c0_6 = arith.constant 0 : index
    %2 = vector.load %arg1[%c0_4, %c0_5, %c0_6] : memref<4x56x32xf32, #tpu.memory_space<vmem>>, vector<4x56x32xf32>
    %3 = vector.shape_cast %2 : vector<4x56x32xf32> to vector<224x32xf32>
    %cst = arith.constant dense<0.000000e+00> : vector<224xf32>
    %4 = vector.multi_reduction <add>, %3, %cst [1] : vector<224x32xf32> to vector<224xf32>
    %5 = vector.shape_cast %4 : vector<224xf32> to vector<224x1xf32>
    %cst_7 = arith.constant 3.200000e+01 : f32
    %6 = vector.broadcast %cst_7 : f32 to vector<224x1xf32>
    %7 = arith.divf %5, %6 : vector<224x1xf32>
    %8 = vector.broadcast %7 : vector<224x1xf32> to vector<224x32xf32>
    %9 = arith.subf %3, %8 : vector<224x32xf32>
    %10 = arith.mulf %9, %9 : vector<224x32xf32>
    %cst_8 = arith.constant dense<0.000000e+00> : vector<224xf32>
    %11 = vector.multi_reduction <add>, %10, %cst_8 [1] : vector<224x32xf32> to vector<224xf32>
    %12 = vector.shape_cast %11 : vector<224xf32> to vector<224x1xf32>
    %cst_9 = arith.constant 3.200000e+01 : f32
    %13 = vector.broadcast %cst_9 : f32 to vector<224x1xf32>
    %14 = arith.divf %12, %13 : vector<224x1xf32>
    %15 = vector.broadcast %7 : vector<224x1xf32> to vector<224x32xf32>
    %16 = arith.subf %3, %15 : vector<224x32xf32>
    %cst_10 = arith.constant 9.99999974E-6 : f32
    %17 = vector.broadcast %cst_10 : f32 to vector<224x1xf32>
    %18 = arith.addf %14, %17 : vector<224x1xf32>
    %19 = math.rsqrt %18 : vector<224x1xf32>
    %20 = vector.broadcast %19 : vector<224x1xf32> to vector<224x32xf32>
    %21 = arith.mulf %16, %20 : vector<224x32xf32>
    %22 = vector.extract_strided_slice %0 {offsets = [0, 0, 0], sizes = [1, 32, 32], strides = [1, 1, 1]} : vector<4x32x32xf32> to vector<1x32x32xf32>
    %23 = vector.shape_cast %22 : vector<1x32x32xf32> to vector<32x32xf32>
    %cst_11 = arith.constant dense<0.000000e+00> : vector<224x32xf32>
    %24 = tpu.matmul %21, %23, %cst_11 {dimension_numbers = #tpu.dot_dimension_numbers<[1], [0], [0], [1], [0, 0, 1, 1], [], []>} : vector<224x32xf32>, vector<32x32xf32>, vector<224x32xf32> -> vector<224x32xf32>
    %25 = vector.extract_strided_slice %1 {offsets = [0, 0], sizes = [1, 32], strides = [1, 1]} : vector<4x32xf32> to vector<1x32xf32>
    %26 = vector.broadcast %25 : vector<1x32xf32> to vector<224x32xf32>
    %27 = arith.addf %24, %26 : vector<224x32xf32>
    %28 = vector.shape_cast %27 : vector<224x32xf32> to vector<4x56x32xf32>
    %c0_12 = arith.constant 0 : index
    %c0_13 = arith.constant 0 : index
    %c0_14 = arith.constant 0 : index
    %29 = vector.load %arg2[%c0_12, %c0_13, %c0_14] : memref<4x56x32xf32, #tpu.memory_space<vmem>>, vector<4x56x32xf32>
    %30 = vector.shape_cast %29 : vector<4x56x32xf32> to vector<224x32xf32>
    %cst_15 = arith.constant dense<0.000000e+00> : vector<224xf32>
    %31 = vector.multi_reduction <add>, %30, %cst_15 [1] : vector<224x32xf32> to vector<224xf32>
    %32 = vector.shape_cast %31 : vector<224xf32> to vector<224x1xf32>
    %cst_16 = arith.constant 3.200000e+01 : f32
    %33 = vector.broadcast %cst_16 : f32 to vector<224x1xf32>
    %34 = arith.divf %32, %33 : vector<224x1xf32>
    %35 = vector.broadcast %34 : vector<224x1xf32> to vector<224x32xf32>
    %36 = arith.subf %30, %35 : vector<224x32xf32>
    %37 = arith.mulf %36, %36 : vector<224x32xf32>
    %cst_17 = arith.constant dense<0.000000e+00> : vector<224xf32>
    %38 = vector.multi_reduction <add>, %37, %cst_17 [1] : vector<224x32xf32> to vector<224xf32>
    %39 = vector.shape_cast %38 : vector<224xf32> to vector<224x1xf32>
    %cst_18 = arith.constant 3.200000e+01 : f32
    %40 = vector.broadcast %cst_18 : f32 to vector<224x1xf32>
    %41 = arith.divf %39, %40 : vector<224x1xf32>
    %42 = vector.broadcast %34 : vector<224x1xf32> to vector<224x32xf32>
    %43 = arith.subf %30, %42 : vector<224x32xf32>
    %cst_19 = arith.constant 9.99999974E-6 : f32
    %44 = vector.broadcast %cst_19 : f32 to vector<224x1xf32>
    %45 = arith.addf %41, %44 : vector<224x1xf32>
    %46 = math.rsqrt %45 : vector<224x1xf32>
    %47 = vector.broadcast %46 : vector<224x1xf32> to vector<224x32xf32>
    %48 = arith.mulf %43, %47 : vector<224x32xf32>
    %49 = vector.extract_strided_slice %0 {offsets = [1, 0, 0], sizes = [1, 32, 32], strides = [1, 1, 1]} : vector<4x32x32xf32> to vector<1x32x32xf32>
    %50 = vector.shape_cast %49 : vector<1x32x32xf32> to vector<32x32xf32>
    %cst_20 = arith.constant dense<0.000000e+00> : vector<224x32xf32>
    %51 = tpu.matmul %48, %50, %cst_20 {dimension_numbers = #tpu.dot_dimension_numbers<[1], [0], [0], [1], [0, 0, 1, 1], [], []>} : vector<224x32xf32>, vector<32x32xf32>, vector<224x32xf32> -> vector<224x32xf32>
    %52 = vector.extract_strided_slice %1 {offsets = [1, 0], sizes = [1, 32], strides = [1, 1]} : vector<4x32xf32> to vector<1x32xf32>
    %53 = vector.broadcast %52 : vector<1x32xf32> to vector<224x32xf32>
    %54 = arith.addf %51, %53 : vector<224x32xf32>
    %55 = vector.shape_cast %54 : vector<224x32xf32> to vector<4x56x32xf32>
    %c0_21 = arith.constant 0 : index
    %c0_22 = arith.constant 0 : index
    %c0_23 = arith.constant 0 : index
    %56 = vector.load %arg3[%c0_21, %c0_22, %c0_23] : memref<4x56x32xf32, #tpu.memory_space<vmem>>, vector<4x56x32xf32>
    %57 = vector.shape_cast %56 : vector<4x56x32xf32> to vector<224x32xf32>
    %cst_24 = arith.constant dense<0.000000e+00> : vector<224xf32>
    %58 = vector.multi_reduction <add>, %57, %cst_24 [1] : vector<224x32xf32> to vector<224xf32>
    %59 = vector.shape_cast %58 : vector<224xf32> to vector<224x1xf32>
    %cst_25 = arith.constant 3.200000e+01 : f32
    %60 = vector.broadcast %cst_25 : f32 to vector<224x1xf32>
    %61 = arith.divf %59, %60 : vector<224x1xf32>
    %62 = vector.broadcast %61 : vector<224x1xf32> to vector<224x32xf32>
    %63 = arith.subf %57, %62 : vector<224x32xf32>
    %64 = arith.mulf %63, %63 : vector<224x32xf32>
    %cst_26 = arith.constant dense<0.000000e+00> : vector<224xf32>
    %65 = vector.multi_reduction <add>, %64, %cst_26 [1] : vector<224x32xf32> to vector<224xf32>
    %66 = vector.shape_cast %65 : vector<224xf32> to vector<224x1xf32>
    %cst_27 = arith.constant 3.200000e+01 : f32
    %67 = vector.broadcast %cst_27 : f32 to vector<224x1xf32>
    %68 = arith.divf %66, %67 : vector<224x1xf32>
    %69 = vector.broadcast %61 : vector<224x1xf32> to vector<224x32xf32>
    %70 = arith.subf %57, %69 : vector<224x32xf32>
    %cst_28 = arith.constant 9.99999974E-6 : f32
    %71 = vector.broadcast %cst_28 : f32 to vector<224x1xf32>
    %72 = arith.addf %68, %71 : vector<224x1xf32>
    %73 = math.rsqrt %72 : vector<224x1xf32>
    %74 = vector.broadcast %73 : vector<224x1xf32> to vector<224x32xf32>
    %75 = arith.mulf %70, %74 : vector<224x32xf32>
    %76 = vector.extract_strided_slice %0 {offsets = [2, 0, 0], sizes = [1, 32, 32], strides = [1, 1, 1]} : vector<4x32x32xf32> to vector<1x32x32xf32>
    %77 = vector.shape_cast %76 : vector<1x32x32xf32> to vector<32x32xf32>
    %cst_29 = arith.constant dense<0.000000e+00> : vector<224x32xf32>
    %78 = tpu.matmul %75, %77, %cst_29 {dimension_numbers = #tpu.dot_dimension_numbers<[1], [0], [0], [1], [0, 0, 1, 1], [], []>} : vector<224x32xf32>, vector<32x32xf32>, vector<224x32xf32> -> vector<224x32xf32>
    %79 = vector.extract_strided_slice %1 {offsets = [2, 0], sizes = [1, 32], strides = [1, 1]} : vector<4x32xf32> to vector<1x32xf32>
    %80 = vector.broadcast %79 : vector<1x32xf32> to vector<224x32xf32>
    %81 = arith.addf %78, %80 : vector<224x32xf32>
    %82 = vector.shape_cast %81 : vector<224x32xf32> to vector<4x56x32xf32>
    %c0_30 = arith.constant 0 : index
    %c0_31 = arith.constant 0 : index
    %c0_32 = arith.constant 0 : index
    %83 = vector.load %arg4[%c0_30, %c0_31, %c0_32] : memref<4x56x56xi8, #tpu.memory_space<vmem>>, vector<4x56x56xi8>
    %c0_i8 = arith.constant 0 : i8
    %84 = vector.broadcast %c0_i8 : i8 to vector<4x56x56xi8>
    %85 = arith.cmpi ne, %83, %84 : vector<4x56x56xi8>
    %86 = vector.extract_strided_slice %0 {offsets = [3, 0, 0], sizes = [1, 32, 32], strides = [1, 1, 1]} : vector<4x32x32xf32> to vector<1x32x32xf32>
    %87 = vector.shape_cast %86 : vector<1x32x32xf32> to vector<32x32xf32>
    %88 = vector.extract_strided_slice %28 {offsets = [0, 0, 0], sizes = [4, 56, 8], strides = [1, 1, 1]} : vector<4x56x32xf32> to vector<4x56x8xf32>
    %89 = vector.extract_strided_slice %55 {offsets = [0, 0, 0], sizes = [4, 56, 8], strides = [1, 1, 1]} : vector<4x56x32xf32> to vector<4x56x8xf32>
    %90 = vector.extract_strided_slice %82 {offsets = [0, 0, 0], sizes = [4, 56, 8], strides = [1, 1, 1]} : vector<4x56x32xf32> to vector<4x56x8xf32>
    "tpu.trace_start"() <{level = 10 : i32, message = "bqd,bkd->bqk"}> : () -> ()
    %cst_33 = arith.constant dense<0.000000e+00> : vector<4x56x56xf32>
    %91 = tpu.matmul %88, %89, %cst_33 {dimension_numbers = #tpu.dot_dimension_numbers<[2], [2], [1], [1], [0, 0, 0, 1, 1, 1], [0], [0]>} : vector<4x56x8xf32>, vector<4x56x8xf32>, vector<4x56x56xf32> -> vector<4x56x56xf32>
    "tpu.trace_stop"() : () -> ()
    %cst_34 = arith.constant 0.353553385 : f32
    %92 = vector.broadcast %cst_34 : f32 to vector<4x56x56xf32>
    %93 = arith.mulf %91, %92 : vector<4x56x56xf32>
    %cst_35 = arith.constant -1.000000e+09 : f32
    %94 = vector.broadcast %cst_35 : f32 to vector<4x56x56xf32>
    %95 = arith.select %85, %94, %93 : vector<4x56x56xi1>, vector<4x56x56xf32>
    %cst_36 = arith.constant dense<0xFF800000> : vector<4x56xf32>
    %96 = vector.multi_reduction <maximumf>, %95, %cst_36 [2] : vector<4x56x56xf32> to vector<4x56xf32>
    %97 = vector.shape_cast %96 : vector<4x56xf32> to vector<4x56x1xf32>
    %98 = vector.broadcast %97 : vector<4x56x1xf32> to vector<4x56x56xf32>
    %99 = arith.subf %95, %98 : vector<4x56x56xf32>
    %100 = math.exp %99 : vector<4x56x56xf32>
    %cst_37 = arith.constant dense<0.000000e+00> : vector<4x56xf32>
    %101 = vector.multi_reduction <add>, %100, %cst_37 [2] : vector<4x56x56xf32> to vector<4x56xf32>
    %102 = vector.shape_cast %101 : vector<4x56xf32> to vector<4x56x1xf32>
    %103 = tpu.reciprocal %102 {approx = true} : vector<4x56x1xf32> -> vector<4x56x1xf32>
    "tpu.trace_start"() <{level = 10 : i32, message = "bqk,bkd->bqd"}> : () -> ()
    %cst_38 = arith.constant dense<0.000000e+00> : vector<4x56x8xf32>
    %104 = tpu.matmul %100, %90, %cst_38 {dimension_numbers = #tpu.dot_dimension_numbers<[2], [1], [1], [2], [0, 0, 0, 1, 1, 2], [0], [0]>} : vector<4x56x56xf32>, vector<4x56x8xf32>, vector<4x56x8xf32> -> vector<4x56x8xf32>
    "tpu.trace_stop"() : () -> ()
    %105 = vector.broadcast %103 : vector<4x56x1xf32> to vector<4x56x8xf32>
    %106 = arith.mulf %104, %105 : vector<4x56x8xf32>
    %107 = vector.shape_cast %106 : vector<4x56x8xf32> to vector<224x8xf32>
    %108 = vector.extract_strided_slice %87 {offsets = [0, 0], sizes = [8, 32], strides = [1, 1]} : vector<32x32xf32> to vector<8x32xf32>
    %cst_39 = arith.constant dense<0.000000e+00> : vector<224x32xf32>
    %109 = tpu.matmul %107, %108, %cst_39 {dimension_numbers = #tpu.dot_dimension_numbers<[1], [0], [0], [1], [0, 0, 1, 1], [], []>} : vector<224x8xf32>, vector<8x32xf32>, vector<224x32xf32> -> vector<224x32xf32>
    %110 = vector.extract_strided_slice %28 {offsets = [0, 0, 8], sizes = [4, 56, 8], strides = [1, 1, 1]} : vector<4x56x32xf32> to vector<4x56x8xf32>
    %111 = vector.extract_strided_slice %55 {offsets = [0, 0, 8], sizes = [4, 56, 8], strides = [1, 1, 1]} : vector<4x56x32xf32> to vector<4x56x8xf32>
    %112 = vector.extract_strided_slice %82 {offsets = [0, 0, 8], sizes = [4, 56, 8], strides = [1, 1, 1]} : vector<4x56x32xf32> to vector<4x56x8xf32>
    "tpu.trace_start"() <{level = 10 : i32, message = "bqd,bkd->bqk"}> : () -> ()
    %cst_40 = arith.constant dense<0.000000e+00> : vector<4x56x56xf32>
    %113 = tpu.matmul %110, %111, %cst_40 {dimension_numbers = #tpu.dot_dimension_numbers<[2], [2], [1], [1], [0, 0, 0, 1, 1, 1], [0], [0]>} : vector<4x56x8xf32>, vector<4x56x8xf32>, vector<4x56x56xf32> -> vector<4x56x56xf32>
    "tpu.trace_stop"() : () -> ()
    %cst_41 = arith.constant 0.353553385 : f32
    %114 = vector.broadcast %cst_41 : f32 to vector<4x56x56xf32>
    %115 = arith.mulf %113, %114 : vector<4x56x56xf32>
    %cst_42 = arith.constant -1.000000e+09 : f32
    %116 = vector.broadcast %cst_42 : f32 to vector<4x56x56xf32>
    %117 = arith.select %85, %116, %115 : vector<4x56x56xi1>, vector<4x56x56xf32>
    %cst_43 = arith.constant dense<0xFF800000> : vector<4x56xf32>
    %118 = vector.multi_reduction <maximumf>, %117, %cst_43 [2] : vector<4x56x56xf32> to vector<4x56xf32>
    %119 = vector.shape_cast %118 : vector<4x56xf32> to vector<4x56x1xf32>
    %120 = vector.broadcast %119 : vector<4x56x1xf32> to vector<4x56x56xf32>
    %121 = arith.subf %117, %120 : vector<4x56x56xf32>
    %122 = math.exp %121 : vector<4x56x56xf32>
    %cst_44 = arith.constant dense<0.000000e+00> : vector<4x56xf32>
    %123 = vector.multi_reduction <add>, %122, %cst_44 [2] : vector<4x56x56xf32> to vector<4x56xf32>
    %124 = vector.shape_cast %123 : vector<4x56xf32> to vector<4x56x1xf32>
    %125 = tpu.reciprocal %124 {approx = true} : vector<4x56x1xf32> -> vector<4x56x1xf32>
    "tpu.trace_start"() <{level = 10 : i32, message = "bqk,bkd->bqd"}> : () -> ()
    %cst_45 = arith.constant dense<0.000000e+00> : vector<4x56x8xf32>
    %126 = tpu.matmul %122, %112, %cst_45 {dimension_numbers = #tpu.dot_dimension_numbers<[2], [1], [1], [2], [0, 0, 0, 1, 1, 2], [0], [0]>} : vector<4x56x56xf32>, vector<4x56x8xf32>, vector<4x56x8xf32> -> vector<4x56x8xf32>
    "tpu.trace_stop"() : () -> ()
    %127 = vector.broadcast %125 : vector<4x56x1xf32> to vector<4x56x8xf32>
    %128 = arith.mulf %126, %127 : vector<4x56x8xf32>
    %129 = vector.shape_cast %128 : vector<4x56x8xf32> to vector<224x8xf32>
    %130 = vector.extract_strided_slice %87 {offsets = [8, 0], sizes = [8, 32], strides = [1, 1]} : vector<32x32xf32> to vector<8x32xf32>
    %cst_46 = arith.constant dense<0.000000e+00> : vector<224x32xf32>
    %131 = tpu.matmul %129, %130, %cst_46 {dimension_numbers = #tpu.dot_dimension_numbers<[1], [0], [0], [1], [0, 0, 1, 1], [], []>} : vector<224x8xf32>, vector<8x32xf32>, vector<224x32xf32> -> vector<224x32xf32>
    %132 = arith.addf %109, %131 : vector<224x32xf32>
    %133 = vector.extract_strided_slice %28 {offsets = [0, 0, 16], sizes = [4, 56, 8], strides = [1, 1, 1]} : vector<4x56x32xf32> to vector<4x56x8xf32>
    %134 = vector.extract_strided_slice %55 {offsets = [0, 0, 16], sizes = [4, 56, 8], strides = [1, 1, 1]} : vector<4x56x32xf32> to vector<4x56x8xf32>
    %135 = vector.extract_strided_slice %82 {offsets = [0, 0, 16], sizes = [4, 56, 8], strides = [1, 1, 1]} : vector<4x56x32xf32> to vector<4x56x8xf32>
    "tpu.trace_start"() <{level = 10 : i32, message = "bqd,bkd->bqk"}> : () -> ()
    %cst_47 = arith.constant dense<0.000000e+00> : vector<4x56x56xf32>
    %136 = tpu.matmul %133, %134, %cst_47 {dimension_numbers = #tpu.dot_dimension_numbers<[2], [2], [1], [1], [0, 0, 0, 1, 1, 1], [0], [0]>} : vector<4x56x8xf32>, vector<4x56x8xf32>, vector<4x56x56xf32> -> vector<4x56x56xf32>
    "tpu.trace_stop"() : () -> ()
    %cst_48 = arith.constant 0.353553385 : f32
    %137 = vector.broadcast %cst_48 : f32 to vector<4x56x56xf32>
    %138 = arith.mulf %136, %137 : vector<4x56x56xf32>
    %cst_49 = arith.constant -1.000000e+09 : f32
    %139 = vector.broadcast %cst_49 : f32 to vector<4x56x56xf32>
    %140 = arith.select %85, %139, %138 : vector<4x56x56xi1>, vector<4x56x56xf32>
    %cst_50 = arith.constant dense<0xFF800000> : vector<4x56xf32>
    %141 = vector.multi_reduction <maximumf>, %140, %cst_50 [2] : vector<4x56x56xf32> to vector<4x56xf32>
    %142 = vector.shape_cast %141 : vector<4x56xf32> to vector<4x56x1xf32>
    %143 = vector.broadcast %142 : vector<4x56x1xf32> to vector<4x56x56xf32>
    %144 = arith.subf %140, %143 : vector<4x56x56xf32>
    %145 = math.exp %144 : vector<4x56x56xf32>
    %cst_51 = arith.constant dense<0.000000e+00> : vector<4x56xf32>
    %146 = vector.multi_reduction <add>, %145, %cst_51 [2] : vector<4x56x56xf32> to vector<4x56xf32>
    %147 = vector.shape_cast %146 : vector<4x56xf32> to vector<4x56x1xf32>
    %148 = tpu.reciprocal %147 {approx = true} : vector<4x56x1xf32> -> vector<4x56x1xf32>
    "tpu.trace_start"() <{level = 10 : i32, message = "bqk,bkd->bqd"}> : () -> ()
    %cst_52 = arith.constant dense<0.000000e+00> : vector<4x56x8xf32>
    %149 = tpu.matmul %145, %135, %cst_52 {dimension_numbers = #tpu.dot_dimension_numbers<[2], [1], [1], [2], [0, 0, 0, 1, 1, 2], [0], [0]>} : vector<4x56x56xf32>, vector<4x56x8xf32>, vector<4x56x8xf32> -> vector<4x56x8xf32>
    "tpu.trace_stop"() : () -> ()
    %150 = vector.broadcast %148 : vector<4x56x1xf32> to vector<4x56x8xf32>
    %151 = arith.mulf %149, %150 : vector<4x56x8xf32>
    %152 = vector.shape_cast %151 : vector<4x56x8xf32> to vector<224x8xf32>
    %153 = vector.extract_strided_slice %87 {offsets = [16, 0], sizes = [8, 32], strides = [1, 1]} : vector<32x32xf32> to vector<8x32xf32>
    %cst_53 = arith.constant dense<0.000000e+00> : vector<224x32xf32>
    %154 = tpu.matmul %152, %153, %cst_53 {dimension_numbers = #tpu.dot_dimension_numbers<[1], [0], [0], [1], [0, 0, 1, 1], [], []>} : vector<224x8xf32>, vector<8x32xf32>, vector<224x32xf32> -> vector<224x32xf32>
    %155 = arith.addf %132, %154 : vector<224x32xf32>
    %156 = vector.extract_strided_slice %28 {offsets = [0, 0, 24], sizes = [4, 56, 8], strides = [1, 1, 1]} : vector<4x56x32xf32> to vector<4x56x8xf32>
    %157 = vector.extract_strided_slice %55 {offsets = [0, 0, 24], sizes = [4, 56, 8], strides = [1, 1, 1]} : vector<4x56x32xf32> to vector<4x56x8xf32>
    %158 = vector.extract_strided_slice %82 {offsets = [0, 0, 24], sizes = [4, 56, 8], strides = [1, 1, 1]} : vector<4x56x32xf32> to vector<4x56x8xf32>
    "tpu.trace_start"() <{level = 10 : i32, message = "bqd,bkd->bqk"}> : () -> ()
    %cst_54 = arith.constant dense<0.000000e+00> : vector<4x56x56xf32>
    %159 = tpu.matmul %156, %157, %cst_54 {dimension_numbers = #tpu.dot_dimension_numbers<[2], [2], [1], [1], [0, 0, 0, 1, 1, 1], [0], [0]>} : vector<4x56x8xf32>, vector<4x56x8xf32>, vector<4x56x56xf32> -> vector<4x56x56xf32>
    "tpu.trace_stop"() : () -> ()
    %cst_55 = arith.constant 0.353553385 : f32
    %160 = vector.broadcast %cst_55 : f32 to vector<4x56x56xf32>
    %161 = arith.mulf %159, %160 : vector<4x56x56xf32>
    %cst_56 = arith.constant -1.000000e+09 : f32
    %162 = vector.broadcast %cst_56 : f32 to vector<4x56x56xf32>
    %163 = arith.select %85, %162, %161 : vector<4x56x56xi1>, vector<4x56x56xf32>
    %cst_57 = arith.constant dense<0xFF800000> : vector<4x56xf32>
    %164 = vector.multi_reduction <maximumf>, %163, %cst_57 [2] : vector<4x56x56xf32> to vector<4x56xf32>
    %165 = vector.shape_cast %164 : vector<4x56xf32> to vector<4x56x1xf32>
    %166 = vector.broadcast %165 : vector<4x56x1xf32> to vector<4x56x56xf32>
    %167 = arith.subf %163, %166 : vector<4x56x56xf32>
    %168 = math.exp %167 : vector<4x56x56xf32>
    %cst_58 = arith.constant dense<0.000000e+00> : vector<4x56xf32>
    %169 = vector.multi_reduction <add>, %168, %cst_58 [2] : vector<4x56x56xf32> to vector<4x56xf32>
    %170 = vector.shape_cast %169 : vector<4x56xf32> to vector<4x56x1xf32>
    %171 = tpu.reciprocal %170 {approx = true} : vector<4x56x1xf32> -> vector<4x56x1xf32>
    "tpu.trace_start"() <{level = 10 : i32, message = "bqk,bkd->bqd"}> : () -> ()
    %cst_59 = arith.constant dense<0.000000e+00> : vector<4x56x8xf32>
    %172 = tpu.matmul %168, %158, %cst_59 {dimension_numbers = #tpu.dot_dimension_numbers<[2], [1], [1], [2], [0, 0, 0, 1, 1, 2], [0], [0]>} : vector<4x56x56xf32>, vector<4x56x8xf32>, vector<4x56x8xf32> -> vector<4x56x8xf32>
    "tpu.trace_stop"() : () -> ()
    %173 = vector.broadcast %171 : vector<4x56x1xf32> to vector<4x56x8xf32>
    %174 = arith.mulf %172, %173 : vector<4x56x8xf32>
    %175 = vector.shape_cast %174 : vector<4x56x8xf32> to vector<224x8xf32>
    %176 = vector.extract_strided_slice %87 {offsets = [24, 0], sizes = [8, 32], strides = [1, 1]} : vector<32x32xf32> to vector<8x32xf32>
    %cst_60 = arith.constant dense<0.000000e+00> : vector<224x32xf32>
    %177 = tpu.matmul %175, %176, %cst_60 {dimension_numbers = #tpu.dot_dimension_numbers<[1], [0], [0], [1], [0, 0, 1, 1], [], []>} : vector<224x8xf32>, vector<8x32xf32>, vector<224x32xf32> -> vector<224x32xf32>
    %178 = arith.addf %155, %177 : vector<224x32xf32>
    %c0_61 = arith.constant 0 : index
    %c0_62 = arith.constant 0 : index
    %c0_63 = arith.constant 0 : index
    %179 = vector.load %arg1[%c0_61, %c0_62, %c0_63] : memref<4x56x32xf32, #tpu.memory_space<vmem>>, vector<4x56x32xf32>
    %180 = vector.shape_cast %178 : vector<224x32xf32> to vector<4x56x32xf32>
    %181 = arith.addf %179, %180 : vector<4x56x32xf32>
    %182 = vector.extract_strided_slice %1 {offsets = [3, 0], sizes = [1, 32], strides = [1, 1]} : vector<4x32xf32> to vector<1x32xf32>
    %183 = vector.shape_cast %182 : vector<1x32xf32> to vector<1x1x32xf32>
    %184 = vector.broadcast %183 : vector<1x1x32xf32> to vector<4x56x32xf32>
    %185 = arith.addf %181, %184 : vector<4x56x32xf32>
    %c0_64 = arith.constant 0 : index
    %c0_65 = arith.constant 0 : index
    %c0_66 = arith.constant 0 : index
    %186 = vector.load %arg7[%c0_64, %c0_65, %c0_66] : memref<4x56x32xf32, #tpu.memory_space<vmem>>, vector<4x56x32xf32>
    tpu.vector_store %arg7[%c0_64, %c0_65, %c0_66], %185 {strides = array<i32>} : memref<4x56x32xf32, #tpu.memory_space<vmem>>, vector<4x56x32xf32>,
    return
  }
  func.func @transform_0(%arg0: i32) -> (i32, i32, i32) {
    %c0_i32 = arith.constant 0 : i32
    %c0_i32_0 = arith.constant 0 : i32
    %c0_i32_1 = arith.constant 0 : i32
    return %arg0, %c0_i32, %c0_i32_0 : i32, i32, i32
  }
  func.func @transform_1(%arg0: i32) -> (i32, i32, i32) {
    %c0_i32 = arith.constant 0 : i32
    %c0_i32_0 = arith.constant 0 : i32
    %c0_i32_1 = arith.constant 0 : i32
    return %arg0, %c0_i32, %c0_i32_0 : i32, i32, i32
  }
  func.func @transform_2(%arg0: i32) -> (i32, i32, i32) {
    %c0_i32 = arith.constant 0 : i32
    %c0_i32_0 = arith.constant 0 : i32
    %c0_i32_1 = arith.constant 0 : i32
    return %arg0, %c0_i32, %c0_i32_0 : i32, i32, i32
  }
  func.func @transform_3(%arg0: i32) -> (i32, i32, i32) {
    %c0_i32 = arith.constant 0 : i32
    %c0_i32_0 = arith.constant 0 : i32
    %c0_i32_1 = arith.constant 0 : i32
    return %arg0, %c0_i32, %c0_i32_0 : i32, i32, i32
  }
  func.func @transform_4(%arg0: i32) -> (i32, i32, i32) {
    %c0_i32 = arith.constant 0 : i32
    %c0_i32_0 = arith.constant 0 : i32
    %c0_i32_1 = arith.constant 0 : i32
    %c0_i32_2 = arith.constant 0 : i32
    return %c0_i32, %c0_i32_0, %c0_i32_1 : i32, i32, i32
  }
  func.func @transform_5(%arg0: i32) -> (i32, i32) {
    %c0_i32 = arith.constant 0 : i32
    %c0_i32_0 = arith.constant 0 : i32
    %c0_i32_1 = arith.constant 0 : i32
    return %c0_i32, %c0_i32_0 : i32, i32
  }
  func.func @transform_6(%arg0: i32) -> (i32, i32, i32) {
    %c0_i32 = arith.constant 0 : i32
    %c0_i32_0 = arith.constant 0 : i32
    %c0_i32_1 = arith.constant 0 : i32
    return %arg0, %c0_i32, %c0_i32_0 : i32, i32, i32
  }
}

</mosaic_0001>

<bundles_post_ra>
// kernel: tpu_custom_call.1
= control target key start
LH: loop header
LB: loop body
LE: loop exit
PB: predicated region body
PF: predicated region fallthrough
CT: control target
= control target key end

     0   :  { %s13451_s21 = smov 0   ;;  %s19401_s0 = inlined_call_operand.vmem [shape: f32[8,56,32], index: 0, kind: input, shape index: {}]   ;;  %s19402_s1 = inlined_call_operand.vmem [shape: f32[8,56,32], index: 1, kind: input, shape index: {}]   ;;  %s19403_s2 = inlined_call_operand.vmem [shape: f32[8,56,32], index: 2, kind: input, shape index: {}]   ;;  %s19404_s3 = inlined_call_operand.vmem [shape: s8[8,56,56], index: 3, kind: input, shape index: {}]   ;;  %s19405_s4 = inlined_call_operand.vmem [shape: f32[4,32,32], index: 4, kind: input, shape index: {}]   ;;  %s19406_s5 = inlined_call_operand.vmem [shape: f32[4,32], index: 5, kind: input, shape index: {}]   ;;  %s19407_s6 = inlined_call_operand.vmem [shape: f32[8,56,32], index: 6, kind: output, shape index: {}]  }
   0x1 LB: > { %s10087_s22 = sadd.s32 4294967295, %s13408_s21   ;;  %p10091_p0 = scmp.ge.s32.totalorder %s13408_s21, 1  ;;  %s13408_s21 = sphi %s13451_s21, %s16_s21  }
   0x2   : > { %p250_p1 = scmp.lt.s32.totalorder %s13408_s21, 3 }
   0x4   : > { %p251_p2 = pnand %p10091_p0, %p250_p1 }
   0x6   : > { %254 = sbr.rel (%p251_p2) target bundleno = 4121 (0x1019), region = 44 }
   0xb   : > { %s10092_s23 = sshll.u32 %s10087_s22, 2  ;;  %vm19600_vm0 = vcmask 261120   ;;  %vm19606_vm1 = vmmov 0   ;;  %s13412_s16 = smov 120   ;;  %vm19603_vm2 = vcmask 64512   ;;  %vm19618_vm9 = vcmask 457728  }
   0xc   : > { %p301_p3 = scmp.lt.s32.totalorder %s10092_s23, 7  ;;  %s13413_s17 = smov 112  }
   0xd   : > { %s13415_s29 = smov 104  }
   0xe   : > { %s21149_s23 = smov (!%p301_p3, %s10092_s23), 7 }
   0xf   : > { %s13462_s24 = smul.u32 56, %s21149_s23 }
  0x10   : > { %s12751_s18 = smul.u32 14, %s21149_s23 }
  0x11   : > { %s13468_s27 = scalar_lea.vmem %s19401_s0, %s13462_s24  ;;  %s13540_s30 = scalar_lea.vmem %s19402_s1, %s13462_s24 }
  0x12   : > { %v13471_v0 = vld [vmem:[%s13468_s27 + $0x70] sm:$0xff]  ;;  %v13474_v1 = vld [vmem:[%s13468_s27 + $0x80] sm:$0xff]  ;;  %v13477_v2 = vld [vmem:[%s13468_s27 + $0x78] sm:$0xff]  ;;  %s14107_s19 = scalar_lea.vmem %s19403_s2, %s13462_s24  ;;  %s15411_s22 = scalar_lea.vmem %s19404_s3, %s12751_s18 }
  0x13   : > { %v425_v3 = vsel %vm19600_vm0, %v13471_v0, 0.0  ;;  %v431_v4 = vsel %vm19600_vm0, %v13474_v1, 0.0  ;;  %v13484_v5 = vld [vmem:[%s13468_s27 + $0x88] sm:$0xff]  ;;  %v428_v6 = vsel %vm19600_vm0, %v13477_v2, 0.0  ;;  %v13491_v8 = vld [vmem:[%s13468_s27 + $0x90] sm:$0xff]  ;;  %v13494_v9 = vld [vmem:[%s13468_s27 + $0x98] sm:$0xff]  ;;  %s19234_s14 = scalar_lea.vmem %s19407_s6, %s13462_s24 }
  0x14   : > { %426 = vadd.xlane.f32.xlu0 %v425_v3  ;;  %432 = vadd.xlane.f32.xlu1 %v431_v4  ;;  %v434_v7 = vsel %vm19600_vm0, %v13484_v5, 0.0  ;;  %v437_v10 = vsel %vm19600_vm0, %v13491_v8, 0.0  ;;  %v440_v11 = vsel %vm19600_vm0, %v13494_v9, 0.0  ;;  %v13501_v12 = vld [vmem:[%s13468_s27 + $0xa0] sm:$0xff]  ;;  %v13504_v13 = vld [vmem:[%s13468_s27 + $0xa8] sm:$0xff]  ;;  %v13511_v16 = vld [vmem:[%s13468_s27 + $0xb0] sm:$0xff] }
  0x15   : > { %v443_v14 = vsel %vm19600_vm0, %v13501_v12, 0.0  ;;  %v446_v15 = vsel %vm19600_vm0, %v13504_v13, 0.0  ;;  %v13514_v17 = vld [vmem:[%s13468_s27 + $0xb8] sm:$0xff]  ;;  %v449_v18 = vsel %vm19600_vm0, %v13511_v16, 0.0  ;;  %v13521_v20 = vld [vmem:[%s13468_s27 + $0xc0] sm:$0xff]  ;;  %v13524_v21 = vld [vmem:[%s13468_s27 + $0xc8] sm:$0xff] }
  0x16   : > { %v452_v19 = vsel %vm19600_vm0, %v13514_v17, 0.0  ;;  %v455_v22 = vsel %vm19600_vm0, %v13521_v20, 0.0  ;;  %v458_v23 = vsel %vm19600_vm0, %v13524_v21, 0.0  ;;  %v13531_v24 = vld [vmem:[%s13468_s27 + $0xd0] sm:$0xff]  ;;  %v13534_v25 = vld [vmem:[%s13468_s27 + $0xd8] sm:$0xff]  ;;  %v13547_v28 = vld [vmem:[%s13540_s30] sm:$0xff] }
  0x17   : > { %v461_v26 = vsel %vm19600_vm0, %v13531_v24, 0.0  ;;  %v464_v27 = vsel %vm19600_vm0, %v13534_v25, 0.0  ;;  %v13550_v29 = vld [vmem:[%s13540_s30 + $0x8] sm:$0xff]  ;;  %v1069_v30 = vsel %vm19600_vm0, %v13547_v28, 0.0  ;;  %v13557_v32 = vld [vmem:[%s13540_s30 + $0x10] sm:$0xff]  ;;  %v13560_v33 = vld [vmem:[%s13540_s30 + $0x18] sm:$0xff] }
  0x18   : > { %429 = vadd.xlane.f32.xlu0 %v428_v6  ;;  %435 = vadd.xlane.f32.xlu1 %v434_v7  ;;  %v1072_v31 = vsel %vm19600_vm0, %v13550_v29, 0.0  ;;  %v1075_v34 = vsel %vm19600_vm0, %v13557_v32, 0.0  ;;  %v1078_v35 = vsel %vm19600_vm0, %v13560_v33, 0.0  ;;  %v13567_v36 = vld [vmem:[%s13540_s30 + $0x20] sm:$0xff]  ;;  %v13570_v37 = vld [vmem:[%s13540_s30 + $0x28] sm:$0xff]  ;;  %v13577_v40 = vld [vmem:[%s13540_s30 + $0x30] sm:$0xff] }
  0x19   : > { %v1081_v38 = vsel %vm19600_vm0, %v13567_v36, 0.0  ;;  %v1084_v39 = vsel %vm19600_vm0, %v13570_v37, 0.0  ;;  %v13580_v41 = vld [vmem:[%s13540_s30 + $0x38] sm:$0xff]  ;;  %v1087_v42 = vsel %vm19600_vm0, %v13577_v40, 0.0  ;;  %v13587_v44 = vld [vmem:[%s13540_s30 + $0x40] sm:$0xff]  ;;  %v13590_v45 = vld [vmem:[%s13540_s30 + $0x48] sm:$0xff] }
  0x1a   : > { %v1090_v43 = vsel %vm19600_vm0, %v13580_v41, 0.0  ;;  %v1093_v46 = vsel %vm19600_vm0, %v13587_v44, 0.0  ;;  %v1096_v47 = vsel %vm19600_vm0, %v13590_v45, 0.0  ;;  %v13597_v48 = vld [vmem:[%s13540_s30 + $0x50] sm:$0xff]  ;;  %v13600_v49 = vld [vmem:[%s13540_s30 + $0x58] sm:$0xff]  ;;  %v13607_v52 = vld [vmem:[%s13468_s27] sm:$0xff] }
  0x1b   : > { %v1099_v50 = vsel %vm19600_vm0, %v13597_v48, 0.0  ;;  %v1102_v51 = vsel %vm19600_vm0, %v13600_v49, 0.0  ;;  %v13610_v53 = vld [vmem:[%s13540_s30 + $0x60] sm:$0xff]  ;;  %v383_v54 = vsel %vm19600_vm0, %v13607_v52, 0.0  ;;  %v13617_v56 = vld [vmem:[%s13468_s27 + $0x8] sm:$0xff]  ;;  %v13627_v60 = vld [vmem:[%s13540_s30 + $0x70] sm:$0xff] }
  0x1c   : > { %438 = vadd.xlane.f32.xlu0 %v437_v10  ;;  %441 = vadd.xlane.f32.xlu1 %v440_v11  ;;  %v1105_v55 = vsel %vm19600_vm0, %v13610_v53, 0.0  ;;  %v13620_v57 = vld [vmem:[%s13540_s30 + $0x68] sm:$0xff]  ;;  %v386_v58 = vsel %vm19600_vm0, %v13617_v56, 0.0  ;;  %v13630_v61 = vld [vmem:[%s13540_s30 + $0x78] sm:$0xff]  ;;  %v1111_v62 = vsel %vm19600_vm0, %v13627_v60, 0.0  ;;  %v13637_v3 = vld [vmem:[%s13468_s27 + $0x10] sm:$0xff] }
  0x1d   : > { %v1108_v59 = vsel %vm19600_vm0, %v13620_v57, 0.0  ;;  %v1114_v63 = vsel %vm19600_vm0, %v13630_v61, 0.0  ;;  %v13640_v4 = vld [vmem:[%s13540_s30 + $0x80] sm:$0xff]  ;;  %v389_v6 = vsel %vm19600_vm0, %v13637_v3, 0.0  ;;  %v13647_v10 = vld [vmem:[%s13468_s27 + $0x18] sm:$0xff]  ;;  %v13650_v11 = vld [vmem:[%s13540_s30 + $0x88] sm:$0xff] }
  0x1e   : > { %v1117_v7 = vsel %vm19600_vm0, %v13640_v4, 0.0 }
  0x20   : > { %444 = vadd.xlane.f32.xlu0 %v443_v14  ;;  %447 = vadd.xlane.f32.xlu1 %v446_v15  ;;  %v392_v14 = vsel %vm19600_vm0, %v13647_v10, 0.0  ;;  %v1120_v15 = vsel %vm19600_vm0, %v13650_v11, 0.0 }
  0x24   : > { %450 = vadd.xlane.f32.xlu0 %v449_v18  ;;  %453 = vadd.xlane.f32.xlu1 %v452_v19  ;;  %v13657_v18 = vld [vmem:[%s13540_s30 + $0x90] sm:$0xff]  ;;  %v13660_v19 = vld [vmem:[%s13540_s30 + $0x98] sm:$0xff] }
  0x28   : > { %456 = vadd.xlane.f32.xlu0 %v455_v22  ;;  %459 = vadd.xlane.f32.xlu1 %v458_v23  ;;  %v1123_v22 = vsel %vm19600_vm0, %v13657_v18, 0.0  ;;  %v1126_v23 = vsel %vm19600_vm0, %v13660_v19, 0.0 }
  0x2c   : > { %462 = vadd.xlane.f32.xlu0 %v461_v26  ;;  %465 = vadd.xlane.f32.xlu1 %v464_v27  ;;  %v13667_v26 = vld [vmem:[%s13468_s27 + $0x20] sm:$0xff] }
  0x2d   : > { %v13670_v27 = vld [vmem:[%s13540_s30 + $0xa0] sm:$0xff] }
  0x30   : > { %1070 = vadd.xlane.f32.xlu0 %v1069_v30  ;;  %1073 = vadd.xlane.f32.xlu1 %v1072_v31  ;;  %v395_v30 = vsel %vm19600_vm0, %v13667_v26, 0.0  ;;  %v1129_v31 = vsel %vm19600_vm0, %v13670_v27, 0.0 }
  0x34   : > { %1076 = vadd.xlane.f32.xlu0 %v1075_v34  ;;  %1079 = vadd.xlane.f32.xlu1 %v1078_v35  ;;  %v13677_v34 = vld [vmem:[%s13468_s27 + $0x28] sm:$0xff] }
  0x35   : > { %v13680_v35 = vld [vmem:[%s13540_s30 + $0xa8] sm:$0xff] }
  0x38   : > { %1082 = vadd.xlane.f32.xlu0 %v1081_v38  ;;  %1085 = vadd.xlane.f32.xlu1 %v1084_v39  ;;  %v398_v38 = vsel %vm19600_vm0, %v13677_v34, 0.0  ;;  %v1132_v39 = vsel %vm19600_vm0, %v13680_v35, 0.0 }
  0x3c   : > { %1088 = vadd.xlane.f32.xlu0 %v1087_v42  ;;  %1091 = vadd.xlane.f32.xlu1 %v1090_v43  ;;  %v13687_v42 = vld [vmem:[%s13540_s30 + $0xb0] sm:$0xff] }
  0x3d   : > { %v13690_v43 = vld [vmem:[%s13468_s27 + $0x30] sm:$0xff] }
  0x40   : > { %1094 = vadd.xlane.f32.xlu0 %v1093_v46  ;;  %1097 = vadd.xlane.f32.xlu1 %v1096_v47  ;;  %v1135_v46 = vsel %vm19600_vm0, %v13687_v42, 0.0  ;;  %v401_v47 = vsel %vm19600_vm0, %v13690_v43, 0.0 }
  0x44   : > { %1100 = vadd.xlane.f32.xlu0 %v1099_v50  ;;  %1103 = vadd.xlane.f32.xlu1 %v1102_v51  ;;  %v13697_v50 = vld [vmem:[%s13540_s30 + $0xb8] sm:$0xff] }
  0x45   : > { %v13700_v51 = vld [vmem:[%s13468_s27 + $0x38] sm:$0xff] }
  0x48   : > { %384 = vadd.xlane.f32.xlu0 %v383_v54  ;;  %1106 = vadd.xlane.f32.xlu1 %v1105_v55  ;;  %v1138_v54 = vsel %vm19600_vm0, %v13697_v50, 0.0  ;;  %v404_v55 = vsel %vm19600_vm0, %v13700_v51, 0.0 }
  0x4c   : > { %387 = vadd.xlane.f32.xlu0 %v386_v58  ;;  %1109 = vadd.xlane.f32.xlu1 %v1108_v59  ;;  %v13707_v58 = vld [vmem:[%s13540_s30 + $0xc0] sm:$0xff]  ;;  %v13710_v59 = vld [vmem:[%s13540_s30 + $0xc8] sm:$0xff] }
  0x50   : > { %1112 = vadd.xlane.f32.xlu0 %v1111_v62  ;;  %1115 = vadd.xlane.f32.xlu1 %v1114_v63  ;;  %v1141_v62 = vsel %vm19600_vm0, %v13707_v58, 0.0  ;;  %v1144_v63 = vsel %vm19600_vm0, %v13710_v59, 0.0 }
  0x54   : > { %390 = vadd.xlane.f32.xlu0 %v389_v6  ;;  %1118 = vadd.xlane.f32.xlu1 %v1117_v7  ;;  %v13717_v6 = vld [vmem:[%s13540_s30 + $0xd0] sm:$0xff]  ;;  %v13720_v7 = vld [vmem:[%s13468_s27 + $0x40] sm:$0xff] }
  0x58   : > { %393 = vadd.xlane.f32.xlu0 %v392_v14  ;;  %1121 = vadd.xlane.f32.xlu1 %v1120_v15  ;;  %v1147_v14 = vsel %vm19600_vm0, %v13717_v6, 0.0  ;;  %v407_v15 = vsel %vm19600_vm0, %v13720_v7, 0.0 }
  0x5c   : > { %1124 = vadd.xlane.f32.xlu0 %v1123_v22  ;;  %1127 = vadd.xlane.f32.xlu1 %v1126_v23  ;;  %v13727_v22 = vld [vmem:[%s13540_s30 + $0xd8] sm:$0xff]  ;;  %v13730_v23 = vld [vmem:[%s13468_s27 + $0x48] sm:$0xff] }
  0x5d   : > { %19732 = vst [vmem:[#allocation2_spill] sm:$0xff] %v13727_v22  ;;  %19733 = vst [vmem:[#allocation3_spill] sm:$0xff] %v13730_v23 }
  0x60   : > { %396 = vadd.xlane.f32.xlu0 %v395_v30  ;;  %1130 = vadd.xlane.f32.xlu1 %v1129_v31  ;;  %v1150_v30 = vsel %vm19600_vm0, %v13727_v22, 0.0  ;;  %v410_v31 = vsel %vm19600_vm0, %v13730_v23, 0.0 }
  0x64   : > { %399 = vadd.xlane.f32.xlu0 %v398_v38  ;;  %1133 = vadd.xlane.f32.xlu1 %v1132_v39  ;;  %v13737_v38 = vld [vmem:[%s13468_s27 + $0x50] sm:$0xff]  ;;  %v13740_v39 = vld [vmem:[%s13468_s27 + $0x58] sm:$0xff] }
  0x65   : > { %19734 = vst [vmem:[#allocation4_spill] sm:$0xff] %v13737_v38  ;;  %19735 = vst [vmem:[#allocation5_spill] sm:$0xff] %v13740_v39 }
  0x68   : > { %1136 = vadd.xlane.f32.xlu0 %v1135_v46  ;;  %402 = vadd.xlane.f32.xlu1 %v401_v47  ;;  %v413_v46 = vsel %vm19600_vm0, %v13737_v38, 0.0  ;;  %v416_v47 = vsel %vm19600_vm0, %v13740_v39, 0.0 }
  0x6c   : > { %1139 = vadd.xlane.f32.xlu0 %v1138_v54  ;;  %405 = vadd.xlane.f32.xlu1 %v404_v55  ;;  %v13747_v54 = vld [vmem:[%s13468_s27 + $0x60] sm:$0xff]  ;;  %v13750_v55 = vld [vmem:[%s13468_s27 + $0x68] sm:$0xff] }
  0x6d   : > { %19736 = vst [vmem:[#allocation6_spill] sm:$0xff] %v13747_v54 }
  0x70   : > { %1142 = vadd.xlane.f32.xlu0 %v1141_v62  ;;  %1145 = vadd.xlane.f32.xlu1 %v1144_v63  ;;  %v419_v62 = vsel %vm19600_vm0, %v13747_v54, 0.0  ;;  %v422_v63 = vsel %vm19600_vm0, %v13750_v55, 0.0 }
  0x74   : > { %1148 = vadd.xlane.f32.xlu0 %v1147_v14  ;;  %408 = vadd.xlane.f32.xlu1 %v407_v15 }
  0x78   : > { %1151 = vadd.xlane.f32.xlu0 %v1150_v30  ;;  %411 = vadd.xlane.f32.xlu1 %v410_v31 }
  0x7c   : > { %414 = vadd.xlane.f32.xlu0 %v413_v46  ;;  %417 = vadd.xlane.f32.xlu1 %v416_v47 }
  0x80   : > { %420 = vadd.xlane.f32.xlu0 %v419_v62  ;;  %423 = vadd.xlane.f32.xlu1 %v422_v63 }
  0x9d   : > { %v427_v14 = vpop.xlane.xlu0 %426  ;;  %v433_v15 = vpop.xlane.xlu1 %432 }
  0x9e   : > { %v482_v30 = vmul.f32 0.03125, %v427_v14  ;;  %v484_v31 = vmul.f32 0.03125, %v433_v15 }
  0xa0   : > { %v13757_v39 = vsub.f32 %v13471_v0, %v482_v30  ;;  %v13760_v38 = vsub.f32 %v13474_v1, %v484_v31 }
  0xa1   : > { %v430_v46 = vpop.xlane.xlu0 %429  ;;  %v436_v47 = vpop.xlane.xlu1 %435 }
  0xa2   : > { %19737 = vst [vmem:[#allocation7_spill] sm:$0xff] %v13760_v38  ;;  %v483_v23 = vmul.f32 0.03125, %v430_v46  ;;  %v485_v22 = vmul.f32 0.03125, %v436_v47  ;;  %v538_v54 = vmul.f32 %v13757_v39, %v13757_v39  ;;  %v540_v62 = vmul.f32 %v13760_v38, %v13760_v38 }
  0xa4   : > { %v13767_v63 = vsub.f32 %v13477_v2, %v483_v23  ;;  %v13770_v14 = vsub.f32 %v13484_v5, %v485_v22  ;;  %v594_v0 = vsel %vm19600_vm0, %v538_v54, 0.0  ;;  %v600_v30 = vsel %vm19600_vm0, %v540_v62, 0.0 }
  0xa5   : > { %v439_v1 = vpop.xlane.xlu0 %438  ;;  %595 = vadd.xlane.f32.xlu0 %v594_v0  ;;  %v442_v15 = vpop.xlane.xlu1 %441 }
  0xa6   : > { %v486_v31 = vmul.f32 0.03125, %v439_v1  ;;  %v487_v46 = vmul.f32 0.03125, %v442_v15  ;;  %v539_v47 = vmul.f32 %v13767_v63, %v13767_v63  ;;  %v541_v38 = vmul.f32 %v13770_v14, %v13770_v14 }
  0xa8   : > { %v13779_v2 = vsub.f32 %v13491_v8, %v486_v31  ;;  %v13782_v5 = vsub.f32 %v13494_v9, %v487_v46  ;;  %v597_v22 = vsel %vm19600_vm0, %v539_v47, 0.0  ;;  %v603_v62 = vsel %vm19600_vm0, %v541_v38, 0.0 }
  0xa9   : > { %v445_v23 = vpop.xlane.xlu0 %444  ;;  %598 = vadd.xlane.f32.xlu1 %v597_v22  ;;  %601 = vadd.xlane.f32.xlu0 %v600_v30  ;;  %v448_v54 = vpop.xlane.xlu1 %447 }
  0xaa   : > { %v488_v0 = vmul.f32 0.03125, %v445_v23  ;;  %v489_v1 = vmul.f32 0.03125, %v448_v54  ;;  %v542_v15 = vmul.f32 %v13779_v2, %v13779_v2  ;;  %v543_v8 = vmul.f32 %v13782_v5, %v13782_v5 }
  0xac   : > { %v13791_v31 = vsub.f32 %v13501_v12, %v488_v0  ;;  %v13794_v9 = vsub.f32 %v13504_v13, %v489_v1  ;;  %v606_v46 = vsel %vm19600_vm0, %v542_v15, 0.0  ;;  %v609_v47 = vsel %vm19600_vm0, %v543_v8, 0.0 }
  0xad   : > { %v451_v30 = vpop.xlane.xlu0 %450  ;;  %604 = vadd.xlane.f32.xlu1 %v603_v62  ;;  %607 = vadd.xlane.f32.xlu0 %v606_v46  ;;  %v454_v38 = vpop.xlane.xlu1 %453 }
  0xae   : > { %v490_v22 = vmul.f32 0.03125, %v451_v30  ;;  %v491_v23 = vmul.f32 0.03125, %v454_v38  ;;  %v544_v54 = vmul.f32 %v13791_v31, %v13791_v31  ;;  %v545_v12 = vmul.f32 %v13794_v9, %v13794_v9 }
  0xb0   : > { %v13803_v0 = vsub.f32 %v13511_v16, %v490_v22  ;;  %v13806_v13 = vsub.f32 %v13514_v17, %v491_v23  ;;  %v612_v62 = vsel %vm19600_vm0, %v544_v54, 0.0  ;;  %v615_v8 = vsel %vm19600_vm0, %v545_v12, 0.0 }
  0xb1   : > { %v457_v1 = vpop.xlane.xlu0 %456  ;;  %610 = vadd.xlane.f32.xlu1 %v609_v47  ;;  %613 = vadd.xlane.f32.xlu0 %v612_v62  ;;  %v460_v15 = vpop.xlane.xlu1 %459 }
  0xb2   : > { %v492_v46 = vmul.f32 0.03125, %v457_v1  ;;  %v493_v30 = vmul.f32 0.03125, %v460_v15  ;;  %v546_v38 = vmul.f32 %v13803_v0, %v13803_v0  ;;  %v547_v16 = vmul.f32 %v13806_v13, %v13806_v13 }
  0xb4   : > { %v13815_v22 = vsub.f32 %v13521_v20, %v492_v46  ;;  %v13818_v17 = vsub.f32 %v13524_v21, %v493_v30  ;;  %v618_v47 = vsel %vm19600_vm0, %v546_v38, 0.0  ;;  %v621_v12 = vsel %vm19600_vm0, %v547_v16, 0.0 }
  0xb5   : > { %v463_v23 = vpop.xlane.xlu0 %462  ;;  %616 = vadd.xlane.f32.xlu1 %v615_v8  ;;  %619 = vadd.xlane.f32.xlu0 %v618_v47  ;;  %v466_v54 = vpop.xlane.xlu1 %465 }
  0xb6   : > { %v494_v62 = vmul.f32 0.03125, %v463_v23  ;;  %v495_v1 = vmul.f32 0.03125, %v466_v54  ;;  %v548_v15 = vmul.f32 %v13815_v22, %v13815_v22  ;;  %v549_v20 = vmul.f32 %v13818_v17, %v13818_v17 }
  0xb8   : > { %v13827_v46 = vsub.f32 %v13531_v24, %v494_v62  ;;  %v13830_v21 = vsub.f32 %v13534_v25, %v495_v1  ;;  %v624_v8 = vsel %vm19600_vm0, %v548_v15, 0.0  ;;  %v627_v16 = vsel %vm19600_vm0, %v549_v20, 0.0 }
  0xb9   : > { %v1071_v30 = vpop.xlane.xlu0 %1070  ;;  %622 = vadd.xlane.f32.xlu1 %v621_v12  ;;  %625 = vadd.xlane.f32.xlu0 %v624_v8  ;;  %v1074_v38 = vpop.xlane.xlu1 %1073 }
  0xba   : > { %v1153_v47 = vmul.f32 0.03125, %v1071_v30  ;;  %v1154_v23 = vmul.f32 0.03125, %v1074_v38  ;;  %v550_v54 = vmul.f32 %v13827_v46, %v13827_v46  ;;  %v551_v24 = vmul.f32 %v13830_v21, %v13830_v21 }
  0xbc   : > { %v13839_v62 = vsub.f32 %v13547_v28, %v1153_v47  ;;  %v13842_v25 = vsub.f32 %v13550_v29, %v1154_v23  ;;  %v630_v12 = vsel %vm19600_vm0, %v550_v54, 0.0  ;;  %v633_v20 = vsel %vm19600_vm0, %v551_v24, 0.0  ;;  %v340_v29 = vld [vmem:[%s19405_s4 + $0x18] sm:$0xff] }
  0xbd   : > { %v1077_v1 = vpop.xlane.xlu0 %1076  ;;  %628 = vadd.xlane.f32.xlu1 %v627_v16  ;;  %631 = vadd.xlane.f32.xlu0 %v630_v12  ;;  %v1080_v15 = vpop.xlane.xlu1 %1079 }
  0xbe   : > { %v1155_v8 = vmul.f32 0.03125, %v1077_v1  ;;  %v1156_v30 = vmul.f32 0.03125, %v1080_v15  ;;  %v1209_v38 = vmul.f32 %v13839_v62, %v13839_v62  ;;  %v1210_v28 = vmul.f32 %v13842_v25, %v13842_v25  ;;  %12742 = vmatprep.subr.mxu1 %v340_v29  ;;  %11296 = vmatprep.subr.mxu0 %v340_v29  ;;  %v339_v1 = vld [vmem:[%s19405_s4 + $0x10] sm:$0xff] }
  0xbf   : > { %12746 = vmatpush3.msra.mxu1 %v340_v29  ;;  %11297 = vmatpush3.msra.mxu0 %v340_v29 }
  0xc0   : > { %v13854_v47 = vsub.f32 %v13557_v32, %v1155_v8  ;;  %v13857_v16 = vsub.f32 %v13560_v33, %v1156_v30  ;;  %v1237_v23 = vsel %vm19600_vm0, %v1209_v38, 0.0  ;;  %v1240_v12 = vsel %vm19600_vm0, %v1210_v28, 0.0  ;;  %12743 = vmatprep.subr.mxu1 %v339_v1  ;;  %11298 = vmatprep.subr.mxu0 %v339_v1 }
  0xc1   : > { %v1083_v54 = vpop.xlane.xlu0 %1082  ;;  %634 = vadd.xlane.f32.xlu1 %v633_v20  ;;  %1238 = vadd.xlane.f32.xlu0 %v1237_v23  ;;  %v1086_v24 = vpop.xlane.xlu1 %1085  ;;  %v338_v20 = vld [vmem:[%s19405_s4 + $0x8] sm:$0xff] }
  0xc2   : > { %19738 = vst [vmem:[#allocation8_spill] sm:$0xff] %v13857_v16  ;;  %v1157_v15 = vmul.f32 0.03125, %v1083_v54  ;;  %v1158_v32 = vmul.f32 0.03125, %v1086_v24  ;;  %v1211_v33 = vmul.f32 %v13854_v47, %v13854_v47  ;;  %v1212_v8 = vmul.f32 %v13857_v16, %v13857_v16  ;;  %12747 = vmatpush3.msra.mxu1 %v339_v1  ;;  %11299 = vmatpush3.msra.mxu0 %v339_v1  ;;  %v337_v24 = vld [vmem:[%s19405_s4] sm:$0xff] }
  0xc3   : > { %12744 = vmatprep.subr.mxu1 %v338_v20  ;;  %11300 = vmatprep.subr.mxu0 %v338_v20 }
  0xc4   : > { %v13872_v30 = vsub.f32 %v13567_v36, %v1157_v15  ;;  %v13875_v38 = vsub.f32 %v13570_v37, %v1158_v32  ;;  %v1243_v28 = vsel %vm19600_vm0, %v1211_v33, 0.0  ;;  %v1246_v54 = vsel %vm19600_vm0, %v1212_v8, 0.0  ;;  %12748 = vmatpush3.msra.mxu1 %v338_v20  ;;  %11301 = vmatpush3.msra.mxu0 %v338_v20 }
  0xc5   : > { %v1089_v23 = vpop.xlane.xlu0 %1088  ;;  %1241 = vadd.xlane.f32.xlu1 %v1240_v12  ;;  %1244 = vadd.xlane.f32.xlu0 %v1243_v28  ;;  %v1092_v29 = vpop.xlane.xlu1 %1091 }
  0xc6   : > { %v1159_v16 = vmul.f32 0.03125, %v1089_v23  ;;  %v1160_v36 = vmul.f32 0.03125, %v1092_v29  ;;  %v1213_v37 = vmul.f32 %v13872_v30, %v13872_v30  ;;  %v1214_v15 = vmul.f32 %v13875_v38, %v13875_v38  ;;  %12745 = vmatprep.subr.mxu1 %v337_v24  ;;  %11302 = vmatprep.subr.mxu0 %v337_v24 }
  0xc7   : > { %12749 = vmatpush3.msra.mxu1 %v337_v24  ;;  %11303 = vmatpush3.msra.mxu0 %v337_v24 }
  0xc8   : > { %v13887_v12 = vsub.f32 %v13577_v40, %v1159_v16  ;;  %v13890_v1 = vsub.f32 %v13580_v41, %v1160_v36  ;;  %v1249_v32 = vsel %vm19600_vm0, %v1213_v37, 0.0  ;;  %v1252_v28 = vsel %vm19600_vm0, %v1214_v15, 0.0 }
  0xc9   : > { %v1095_v33 = vpop.xlane.xlu0 %1094  ;;  %1247 = vadd.xlane.f32.xlu1 %v1246_v54  ;;  %1250 = vadd.xlane.f32.xlu0 %v1249_v32  ;;  %v1098_v8 = vpop.xlane.xlu1 %1097 }
  0xca   : > { %v1161_v23 = vmul.f32 0.03125, %v1095_v33  ;;  %v1162_v29 = vmul.f32 0.03125, %v1098_v8  ;;  %v1215_v20 = vmul.f32 %v13887_v12, %v13887_v12  ;;  %v1216_v40 = vmul.f32 %v13890_v1, %v13890_v1 }
  0xcc   : > { %v13899_v41 = vsub.f32 %v13587_v44, %v1161_v23  ;;  %v13902_v16 = vsub.f32 %v13590_v45, %v1162_v29  ;;  %v1255_v54 = vsel %vm19600_vm0, %v1215_v20, 0.0  ;;  %v1258_v15 = vsel %vm19600_vm0, %v1216_v40, 0.0 }
  0xcd   : > { %v1101_v36 = vpop.xlane.xlu0 %1100  ;;  %1253 = vadd.xlane.f32.xlu1 %v1252_v28  ;;  %1256 = vadd.xlane.f32.xlu0 %v1255_v54  ;;  %v1104_v37 = vpop.xlane.xlu1 %1103 }
  0xce   : > { %v1163_v32 = vmul.f32 0.03125, %v1101_v36  ;;  %v1164_v33 = vmul.f32 0.03125, %v1104_v37  ;;  %v1217_v8 = vmul.f32 %v13899_v41, %v13899_v41  ;;  %v1218_v44 = vmul.f32 %v13902_v16, %v13902_v16 }
  0xd0   : > { %v13911_v24 = vsub.f32 %v13597_v48, %v1163_v32  ;;  %v13914_v45 = vsub.f32 %v13600_v49, %v1164_v33  ;;  %v1261_v28 = vsel %vm19600_vm0, %v1217_v8, 0.0  ;;  %v1264_v20 = vsel %vm19600_vm0, %v1218_v44, 0.0 }
  0xd1   : > { %1259 = vadd.xlane.f32.xlu1 %v1258_v15  ;;  %1262 = vadd.xlane.f32.xlu0 %v1261_v28  ;;  %v385_v23 = vpop.xlane.xlu0 %384  ;;  %v1107_v29 = vpop.xlane.xlu1 %1106 }
  0xd2   : > { %v468_v40 = vmul.f32 0.03125, %v385_v23  ;;  %v1165_v54 = vmul.f32 0.03125, %v1107_v29  ;;  %v1219_v36 = vmul.f32 %v13911_v24, %v13911_v24  ;;  %v1220_v48 = vmul.f32 %v13914_v45, %v13914_v45 }
  0xd4   : > { %v13923_v37 = vsub.f32 %v13607_v52, %v468_v40  ;;  %v13926_v49 = vsub.f32 %v13610_v53, %v1165_v54  ;;  %v1267_v15 = vsel %vm19600_vm0, %v1219_v36, 0.0  ;;  %v1270_v8 = vsel %vm19600_vm0, %v1220_v48, 0.0 }
  0xd5   : > { %1265 = vadd.xlane.f32.xlu1 %v1264_v20  ;;  %1268 = vadd.xlane.f32.xlu0 %v1267_v15  ;;  %v388_v32 = vpop.xlane.xlu0 %387  ;;  %v1110_v33 = vpop.xlane.xlu1 %1109 }
  0xd6   : > { %v469_v44 = vmul.f32 0.03125, %v388_v32  ;;  %v1166_v28 = vmul.f32 0.03125, %v1110_v33  ;;  %v524_v23 = vmul.f32 %v13923_v37, %v13923_v37  ;;  %v1221_v52 = vmul.f32 %v13926_v49, %v13926_v49 }
  0xd8   : > { %v13935_v29 = vsub.f32 %v13617_v56, %v469_v44  ;;  %v13938_v53 = vsub.f32 %v13620_v57, %v1166_v28  ;;  %v552_v20 = vsel %vm19600_vm0, %v524_v23, 0.0  ;;  %v1273_v36 = vsel %vm19600_vm0, %v1221_v52, 0.0  ;;  %v13949_v57 = vld [vmem:[%s19405_s4 + $0x38] sm:$0xff] }
  0xd9   : > { %1271 = vadd.xlane.f32.xlu1 %v1270_v8  ;;  %553 = vadd.xlane.f32.xlu0 %v552_v20  ;;  %v1113_v40 = vpop.xlane.xlu0 %1112  ;;  %v1116_v54 = vpop.xlane.xlu1 %1115 }
  0xda   : > { %v1167_v48 = vmul.f32 0.03125, %v1113_v40  ;;  %v1168_v15 = vmul.f32 0.03125, %v1116_v54  ;;  %v525_v32 = vmul.f32 %v13935_v29, %v13935_v29  ;;  %v1222_v56 = vmul.f32 %v13938_v53, %v13938_v53  ;;  %11346 = vmatprep.subr.mxu1 %v13949_v57 }
  0xdc   : > { %v13952_v33 = vsub.f32 %v13627_v60, %v1167_v48  ;;  %v13955_v8 = vsub.f32 %v13630_v61, %v1168_v15  ;;  %v555_v44 = vsel %vm19600_vm0, %v525_v32, 0.0  ;;  %v1276_v52 = vsel %vm19600_vm0, %v1222_v56, 0.0 }
  0xdd   : > { %1274 = vadd.xlane.f32.xlu1 %v1273_v36  ;;  %556 = vadd.xlane.f32.xlu0 %v555_v44  ;;  %v391_v28 = vpop.xlane.xlu0 %390  ;;  %v1119_v23 = vpop.xlane.xlu1 %1118 }
  0xde   : > { %v470_v20 = vmul.f32 0.03125, %v391_v28  ;;  %v1169_v40 = vmul.f32 0.03125, %v1119_v23  ;;  %v1223_v54 = vmul.f32 %v13952_v33, %v13952_v33  ;;  %v1224_v60 = vmul.f32 %v13955_v8, %v13955_v8 }
  0xe0   : > { %v13965_v61 = vsub.f32 %v13637_v3, %v470_v20  ;;  %v13968_v48 = vsub.f32 %v13640_v4, %v1169_v40  ;;  %v1279_v36 = vsel %vm19600_vm0, %v1223_v54, 0.0  ;;  %v1282_v56 = vsel %vm19600_vm0, %v1224_v60, 0.0 }
  0xe1   : > { %1277 = vadd.xlane.f32.xlu1 %v1276_v52  ;;  %1280 = vadd.xlane.f32.xlu0 %v1279_v36  ;;  %v394_v15 = vpop.xlane.xlu0 %393  ;;  %v1122_v32 = vpop.xlane.xlu1 %1121 }
  0xe2   : > { %v471_v44 = vmul.f32 0.03125, %v394_v15  ;;  %v1170_v28 = vmul.f32 0.03125, %v1122_v32  ;;  %v526_v23 = vmul.f32 %v13965_v61, %v13965_v61  ;;  %v1225_v3 = vmul.f32 %v13968_v48, %v13968_v48 }
  0xe4   : > { %v13977_v20 = vsub.f32 %v13647_v10, %v471_v44  ;;  %v13980_v4 = vsub.f32 %v13650_v11, %v1170_v28  ;;  %v558_v52 = vsel %vm19600_vm0, %v526_v23, 0.0  ;;  %v1285_v60 = vsel %vm19600_vm0, %v1225_v3, 0.0 }
  0xe5   : > { %1283 = vadd.xlane.f32.xlu1 %v1282_v56  ;;  %559 = vadd.xlane.f32.xlu0 %v558_v52  ;;  %v1125_v40 = vpop.xlane.xlu0 %1124  ;;  %v1128_v54 = vpop.xlane.xlu1 %1127 }
  0xe6   : > { %v1171_v36 = vmul.f32 0.03125, %v1125_v40  ;;  %v1172_v15 = vmul.f32 0.03125, %v1128_v54  ;;  %v527_v32 = vmul.f32 %v13977_v20, %v13977_v20  ;;  %v1226_v10 = vmul.f32 %v13980_v4, %v13980_v4 }
  0xe8   : > { %v13989_v44 = vsub.f32 %v13657_v18, %v1171_v36  ;;  %v13992_v11 = vsub.f32 %v13660_v19, %v1172_v15  ;;  %v561_v56 = vsel %vm19600_vm0, %v527_v32, 0.0  ;;  %v1288_v3 = vsel %vm19600_vm0, %v1226_v10, 0.0 }
  0xe9   : > { %1286 = vadd.xlane.f32.xlu1 %v1285_v60  ;;  %562 = vadd.xlane.f32.xlu0 %v561_v56  ;;  %v397_v28 = vpop.xlane.xlu0 %396  ;;  %v1131_v23 = vpop.xlane.xlu1 %1130 }
  0xea   : > { %v472_v52 = vmul.f32 0.03125, %v397_v28  ;;  %v1173_v40 = vmul.f32 0.03125, %v1131_v23  ;;  %v1227_v54 = vmul.f32 %v13989_v44, %v13989_v44  ;;  %v1228_v18 = vmul.f32 %v13992_v11, %v13992_v11 }
  0xec   : > { %v14001_v36 = vsub.f32 %v13667_v26, %v472_v52  ;;  %v14004_v19 = vsub.f32 %v13670_v27, %v1173_v40  ;;  %v1291_v60 = vsel %vm19600_vm0, %v1227_v54, 0.0  ;;  %v1294_v10 = vsel %vm19600_vm0, %v1228_v18, 0.0 }
  0xed   : > { %1289 = vadd.xlane.f32.xlu1 %v1288_v3  ;;  %1292 = vadd.xlane.f32.xlu0 %v1291_v60  ;;  %v400_v15 = vpop.xlane.xlu0 %399  ;;  %v1134_v32 = vpop.xlane.xlu1 %1133 }
  0xee   : > { %v473_v56 = vmul.f32 0.03125, %v400_v15  ;;  %v1174_v28 = vmul.f32 0.03125, %v1134_v32  ;;  %v528_v23 = vmul.f32 %v14001_v36, %v14001_v36  ;;  %v1229_v26 = vmul.f32 %v14004_v19, %v14004_v19 }
  0xf0   : > { %v14013_v52 = vsub.f32 %v13677_v34, %v473_v56  ;;  %v14016_v27 = vsub.f32 %v13680_v35, %v1174_v28  ;;  %v564_v3 = vsel %vm19600_vm0, %v528_v23, 0.0  ;;  %v1297_v54 = vsel %vm19600_vm0, %v1229_v26, 0.0 }
  0xf1   : > { %1295 = vadd.xlane.f32.xlu1 %v1294_v10  ;;  %565 = vadd.xlane.f32.xlu0 %v564_v3  ;;  %v1137_v40 = vpop.xlane.xlu0 %1136  ;;  %v403_v18 = vpop.xlane.xlu1 %402 }
  0xf2   : > { %v1175_v60 = vmul.f32 0.03125, %v1137_v40  ;;  %v474_v15 = vmul.f32 0.03125, %v403_v18  ;;  %v529_v32 = vmul.f32 %v14013_v52, %v14013_v52  ;;  %v1230_v34 = vmul.f32 %v14016_v27, %v14016_v27 }
  0xf4   : > { %v14025_v56 = vsub.f32 %v13687_v42, %v1175_v60  ;;  %v14028_v35 = vsub.f32 %v13690_v43, %v474_v15  ;;  %v567_v10 = vsel %vm19600_vm0, %v529_v32, 0.0  ;;  %v1300_v23 = vsel %vm19600_vm0, %v1230_v34, 0.0 }
  0xf5   : > { %1298 = vadd.xlane.f32.xlu1 %v1297_v54  ;;  %568 = vadd.xlane.f32.xlu0 %v567_v10  ;;  %v1140_v28 = vpop.xlane.xlu0 %1139  ;;  %v406_v26 = vpop.xlane.xlu1 %405 }
  0xf6   : > { %v1176_v3 = vmul.f32 0.03125, %v1140_v28  ;;  %v475_v40 = vmul.f32 0.03125, %v406_v26  ;;  %v1231_v18 = vmul.f32 %v14025_v56, %v14025_v56  ;;  %v530_v42 = vmul.f32 %v14028_v35, %v14028_v35 }
  0xf8   : > { %v14037_v60 = vsub.f32 %v13697_v50, %v1176_v3  ;;  %v14040_v43 = vsub.f32 %v13700_v51, %v475_v40  ;;  %v1303_v54 = vsel %vm19600_vm0, %v1231_v18, 0.0  ;;  %v570_v32 = vsel %vm19600_vm0, %v530_v42, 0.0 }
  0xf9   : > { %1301 = vadd.xlane.f32.xlu1 %v1300_v23  ;;  %1304 = vadd.xlane.f32.xlu0 %v1303_v54  ;;  %v1143_v15 = vpop.xlane.xlu0 %1142  ;;  %v1146_v34 = vpop.xlane.xlu1 %1145 }
  0xfa   : > { %v1177_v10 = vmul.f32 0.03125, %v1143_v15  ;;  %v1178_v28 = vmul.f32 0.03125, %v1146_v34  ;;  %v1232_v26 = vmul.f32 %v14037_v60, %v14037_v60  ;;  %v531_v50 = vmul.f32 %v14040_v43, %v14040_v43 }
  0xfc   : > { %v14049_v3 = vsub.f32 %v13707_v58, %v1177_v10  ;;  %v14052_v51 = vsub.f32 %v13710_v59, %v1178_v28  ;;  %v1306_v23 = vsel %vm19600_vm0, %v1232_v26, 0.0  ;;  %v573_v18 = vsel %vm19600_vm0, %v531_v50, 0.0 }
  0xfd   : > { %571 = vadd.xlane.f32.xlu1 %v570_v32  ;;  %1307 = vadd.xlane.f32.xlu0 %v1306_v23  ;;  %v1149_v40 = vpop.xlane.xlu0 %1148  ;;  %v409_v42 = vpop.xlane.xlu1 %408 }
  0xfe   : > { %19739 = vst [vmem:[#allocation9_spill] sm:$0xff] %v14049_v3  ;;  %19740 = vst [vmem:[#allocation10_spill] sm:$0xff] %v14052_v51  ;;  %v1179_v54 = vmul.f32 0.03125, %v1149_v40  ;;  %v476_v15 = vmul.f32 0.03125, %v409_v42  ;;  %v1233_v34 = vmul.f32 %v14049_v3, %v14049_v3  ;;  %v1234_v58 = vmul.f32 %v14052_v51, %v14052_v51  ;;  %v1752_v3 = vld [vmem:[%s14107_s19 + $0xd0] sm:$0xff] }
 0x100   : > { %v14061_v10 = vsub.f32 %v13717_v6, %v1179_v54  ;;  %v14064_v59 = vsub.f32 %v13720_v7, %v476_v15  ;;  %v1309_v32 = vsel %vm19600_vm0, %v1233_v34, 0.0  ;;  %v1312_v26 = vsel %vm19600_vm0, %v1234_v58, 0.0  ;;  %v19743_v54 = vld [vmem:[#allocation2_spill] sm:$0xff]  ;;  %v19745_v7 = vld [vmem:[#allocation3_spill] sm:$0xff] }
 0x101   : > { %574 = vadd.xlane.f32.xlu1 %v573_v18  ;;  %1310 = vadd.xlane.f32.xlu0 %v1309_v32  ;;  %v1152_v28 = vpop.xlane.xlu0 %1151  ;;  %v412_v50 = vpop.xlane.xlu1 %411 }
 0x102   : > { %19741 = vst [vmem:[#allocation11_spill] sm:$0xff] %v14061_v10  ;;  %19742 = vst [vmem:[#allocation12_spill] sm:$0xff] %v14064_v59  ;;  %v1180_v23 = vmul.f32 0.03125, %v1152_v28  ;;  %v477_v40 = vmul.f32 0.03125, %v412_v50  ;;  %v1235_v42 = vmul.f32 %v14061_v10, %v14061_v10  ;;  %v532_v6 = vmul.f32 %v14064_v59, %v14064_v59 }
 0x104   : > { %v14073_v51 = vsub.f32 %v19743_v54, %v1180_v23  ;;  %v14076_v15 = vsub.f32 %v19745_v7, %v477_v40  ;;  %v1315_v18 = vsel %vm19600_vm0, %v1235_v42, 0.0  ;;  %v576_v58 = vsel %vm19600_vm0, %v532_v6, 0.0  ;;  %v19747_v54 = vld [vmem:[#allocation4_spill] sm:$0xff]  ;;  %v19749_v7 = vld [vmem:[#allocation5_spill] sm:$0xff] }
 0x105   : > { %1313 = vadd.xlane.f32.xlu1 %v1312_v26  ;;  %1316 = vadd.xlane.f32.xlu0 %v1315_v18  ;;  %v415_v34 = vpop.xlane.xlu0 %414  ;;  %v418_v32 = vpop.xlane.xlu1 %417 }
 0x106   : > { %19744 = vst [vmem:[#allocation2_spill] sm:$0xff] %v14073_v51  ;;  %19746 = vst [vmem:[#allocation3_spill] sm:$0xff] %v14076_v15  ;;  %v478_v28 = vmul.f32 0.03125, %v415_v34  ;;  %v479_v50 = vmul.f32 0.03125, %v418_v32  ;;  %v1236_v10 = vmul.f32 %v14073_v51, %v14073_v51  ;;  %v533_v23 = vmul.f32 %v14076_v15, %v14076_v15 }
 0x108   : > { %v14085_v40 = vsub.f32 %v19747_v54, %v478_v28  ;;  %v14088_v42 = vsub.f32 %v19749_v7, %v479_v50  ;;  %v1318_v26 = vsel %vm19600_vm0, %v1236_v10, 0.0  ;;  %v579_v18 = vsel %vm19600_vm0, %v533_v23, 0.0  ;;  %v19751_v54 = vld [vmem:[#allocation6_spill] sm:$0xff] }
 0x109   : > { %577 = vadd.xlane.f32.xlu1 %v576_v58  ;;  %1319 = vadd.xlane.f32.xlu0 %v1318_v26  ;;  %v421_v6 = vpop.xlane.xlu0 %420  ;;  %v424_v34 = vpop.xlane.xlu1 %423 }
 0x10a   : > { %19748 = vst [vmem:[#allocation4_spill] sm:$0xff] %v14085_v40  ;;  %19750 = vst [vmem:[#allocation5_spill] sm:$0xff] %v14088_v42  ;;  %v480_v32 = vmul.f32 0.03125, %v421_v6  ;;  %v481_v51 = vmul.f32 0.03125, %v424_v34  ;;  %v534_v15 = vmul.f32 %v14085_v40, %v14085_v40  ;;  %v535_v28 = vmul.f32 %v14088_v42, %v14088_v42  ;;  %v14122_v6 = vld [vmem:[%s14107_s19 + $0x8] sm:$0xff]  ;;  %v1741_v40 = vld [vmem:[%s14107_s19 + $0x78] sm:$0xff] }
 0x10b   : > { %19755 = vst [vmem:[#allocation15_spill] sm:$0xff] %v14122_v6  ;;  %v1757_v34 = vsel %vm19600_vm0, %v14122_v6, 0.0 }
 0x10c   : > { %v14097_v59 = vsub.f32 %v19751_v54, %v480_v32  ;;  %v14100_v50 = vsub.f32 %v13750_v55, %v481_v51  ;;  %v582_v10 = vsel %vm19600_vm0, %v534_v15, 0.0  ;;  %v585_v58 = vsel %vm19600_vm0, %v535_v28, 0.0  ;;  %v14115_v15 = vld [vmem:[%s14107_s19] sm:$0xff]  ;;  %v14132_v28 = vld [vmem:[%s14107_s19 + $0x18] sm:$0xff] }
 0x10d   : > { %580 = vadd.xlane.f32.xlu1 %v579_v18  ;;  %583 = vadd.xlane.f32.xlu0 %v582_v10  ;;  %19754 = vst [vmem:[#allocation14_spill] sm:$0xff] %v14115_v15  ;;  %v1754_v26 = vsel %vm19600_vm0, %v14115_v15, 0.0  ;;  %v14125_v18 = vld [vmem:[%s14107_s19 + $0x10] sm:$0xff]  ;;  %19757 = vst [vmem:[#allocation17_spill] sm:$0xff] %v14132_v28  ;;  %v14135_v54 = vld [vmem:[%s14107_s19 + $0x20] sm:$0xff]  ;;  %v1763_v10 = vsel %vm19600_vm0, %v14132_v28, 0.0 }
 0x10e   : > { %19752 = vst [vmem:[#allocation6_spill] sm:$0xff] %v14097_v59  ;;  %19753 = vst [vmem:[#allocation13_spill] sm:$0xff] %v14100_v50  ;;  %v536_v55 = vmul.f32 %v14097_v59, %v14097_v59  ;;  %v537_v51 = vmul.f32 %v14100_v50, %v14100_v50  ;;  %v1760_v32 = vsel %vm19600_vm0, %v14125_v18, 0.0  ;;  %v1736_v50 = vld [vmem:[%s14107_s19 + $0x50] sm:$0xff]  ;;  %v1743_v28 = vld [vmem:[%s14107_s19 + $0x88] sm:$0xff] }
 0x10f   : > { %19756 = vst [vmem:[#allocation16_spill] sm:$0xff] %v14125_v18  ;;  %19758 = vst [vmem:[#allocation18_spill] sm:$0xff] %v14135_v54  ;;  %v1784_v42 = vsel %vm19600_vm0, %v1736_v50, 0.0  ;;  %v1744_v18 = vld [vmem:[%s14107_s19 + $0x90] sm:$0xff] }
 0x110   : > { %v588_v23 = vsel %vm19600_vm0, %v536_v55, 0.0  ;;  %v591_v7 = vsel %vm19600_vm0, %v537_v51, 0.0  ;;  %v14142_v55 = vld [vmem:[%s14107_s19 + $0x28] sm:$0xff]  ;;  %v14145_v51 = vld [vmem:[%s14107_s19 + $0x30] sm:$0xff]  ;;  %v1808_v6 = vsel %vm19600_vm0, %v1744_v18, 0.0 }
 0x111   : > { %586 = vadd.xlane.f32.xlu1 %v585_v58  ;;  %589 = vadd.xlane.f32.xlu0 %v588_v23  ;;  %v1766_v58 = vsel %vm19600_vm0, %v14135_v54, 0.0  ;;  %19759 = vst [vmem:[#allocation19_spill] sm:$0xff] %v14142_v55  ;;  %19760 = vst [vmem:[#allocation20_spill] sm:$0xff] %v14145_v51  ;;  %v1769_v23 = vsel %vm19600_vm0, %v14142_v55, 0.0  ;;  %v1739_v55 = vld [vmem:[%s14107_s19 + $0x68] sm:$0xff]  ;;  %v1742_v54 = vld [vmem:[%s14107_s19 + $0x80] sm:$0xff] }
 0x115   : > { %592 = vadd.xlane.f32.xlu1 %v591_v7  ;;  %1755 = vadd.xlane.f32.xlu0 %v1754_v26  ;;  %v1772_v7 = vsel %vm19600_vm0, %v14145_v51, 0.0  ;;  %v14152_v26 = vld [vmem:[%s14107_s19 + $0x38] sm:$0xff]  ;;  %v1738_v51 = vld [vmem:[%s14107_s19 + $0x60] sm:$0xff] }
 0x116   : > { %19761 = vst [vmem:[#allocation21_spill] sm:$0xff] %v14152_v26 }
 0x119   : > { %1758 = vadd.xlane.f32.xlu1 %v1757_v34  ;;  %1761 = vadd.xlane.f32.xlu0 %v1760_v32  ;;  %v14155_v34 = vld [vmem:[%s14107_s19 + $0x40] sm:$0xff]  ;;  %v1775_v32 = vsel %vm19600_vm0, %v14152_v26, 0.0  ;;  %v1790_v26 = vsel %vm19600_vm0, %v1738_v51, 0.0  ;;  %v1799_v51 = vsel %vm19600_vm0, %v1741_v40, 0.0 }
 0x11a   : > { %19762 = vst [vmem:[#allocation22_spill] sm:$0xff] %v14155_v34 }
 0x11d   : > { %1764 = vadd.xlane.f32.xlu1 %v1763_v10  ;;  %1767 = vadd.xlane.f32.xlu0 %v1766_v58  ;;  %v1778_v10 = vsel %vm19600_vm0, %v14155_v34, 0.0  ;;  %v1735_v58 = vld [vmem:[%s14107_s19 + $0x48] sm:$0xff]  ;;  %v1740_v34 = vld [vmem:[%s14107_s19 + $0x70] sm:$0xff] }
 0x11e   : > { %v1781_v59 = vsel %vm19600_vm0, %v1735_v58, 0.0  ;;  %v1796_v50 = vsel %vm19600_vm0, %v1740_v34, 0.0 }
 0x121   : > { %1770 = vadd.xlane.f32.xlu1 %v1769_v23  ;;  %1773 = vadd.xlane.f32.xlu0 %v1772_v7  ;;  %v1737_v23 = vld [vmem:[%s14107_s19 + $0x58] sm:$0xff] }
 0x122   : > { %v1787_v7 = vsel %vm19600_vm0, %v1737_v23, 0.0 }
 0x125   : > { %1776 = vadd.xlane.f32.xlu1 %v1775_v32  ;;  %1779 = vadd.xlane.f32.xlu0 %v1778_v10  ;;  %v1793_v10 = vsel %vm19600_vm0, %v1739_v55, 0.0 }
 0x129   : > { %1782 = vadd.xlane.f32.xlu1 %v1781_v59  ;;  %1785 = vadd.xlane.f32.xlu0 %v1784_v42 }
 0x12d   : > { %1788 = vadd.xlane.f32.xlu1 %v1787_v7  ;;  %1791 = vadd.xlane.f32.xlu0 %v1790_v26  ;;  %v1802_v7 = vsel %vm19600_vm0, %v1742_v54, 0.0 }
 0x12e   : > { %v596_v32 = vpop.xlane.xlu0 %595 }
 0x12f   : > { %v650_v58 = vmul.f32 0.03125, %v596_v32 }
 0x131   : > { %v678_v59 = vadd.f32 1e-05, %v650_v58  ;;  %1794 = vadd.xlane.f32.xlu1 %v1793_v10  ;;  %1797 = vadd.xlane.f32.xlu0 %v1796_v50  ;;  %v1805_v50 = vsel %vm19600_vm0, %v1743_v28, 0.0 }
 0x132   : > { %v599_v42 = vpop.xlane.xlu1 %598  ;;  %v602_v23 = vpop.xlane.xlu0 %601 }
 0x133   : > { %12766 = vrsqrt.f32 %v678_v59  ;;  %v651_v26 = vmul.f32 0.03125, %v599_v42  ;;  %v652_v55 = vmul.f32 0.03125, %v602_v23  ;;  %v1745_v59 = vld [vmem:[%s14107_s19 + $0x98] sm:$0xff]  ;;  %v1746_v42 = vld [vmem:[%s14107_s19 + $0xa0] sm:$0xff] }
 0x134   : > { %v1814_v28 = vsel %vm19600_vm0, %v1746_v42, 0.0 }
 0x135   : > { %v679_v34 = vadd.f32 1e-05, %v651_v26  ;;  %v680_v32 = vadd.f32 1e-05, %v652_v55  ;;  %1800 = vadd.xlane.f32.xlu1 %v1799_v51  ;;  %1803 = vadd.xlane.f32.xlu0 %v1802_v7  ;;  %v1811_v26 = vsel %vm19600_vm0, %v1745_v59, 0.0 }
 0x136   : > { %v605_v58 = vpop.xlane.xlu1 %604  ;;  %v608_v10 = vpop.xlane.xlu0 %607 }
 0x137   : > { %12768 = vrsqrt.f32 %v679_v34  ;;  %v653_v40 = vmul.f32 0.03125, %v605_v58  ;;  %v654_v54 = vmul.f32 0.03125, %v608_v10  ;;  %v1747_v34 = vld [vmem:[%s14107_s19 + $0xa8] sm:$0xff]  ;;  %v1748_v58 = vld [vmem:[%s14107_s19 + $0xb0] sm:$0xff] }
 0x138   : > { %12770 = vrsqrt.f32 %v680_v32 }
 0x139   : > { %v681_v23 = vadd.f32 1e-05, %v653_v40  ;;  %v682_v15 = vadd.f32 1e-05, %v654_v54  ;;  %1806 = vadd.xlane.f32.xlu1 %v1805_v50  ;;  %1809 = vadd.xlane.f32.xlu0 %v1808_v6  ;;  %v1817_v40 = vsel %vm19600_vm0, %v1747_v34, 0.0  ;;  %v1820_v54 = vsel %vm19600_vm0, %v1748_v58, 0.0 }
 0x13a   : > { %v611_v51 = vpop.xlane.xlu1 %610  ;;  %v614_v7 = vpop.xlane.xlu0 %613 }
 0x13b   : > { %12772 = vrsqrt.f32 %v681_v23  ;;  %v655_v18 = vmul.f32 0.03125, %v611_v51  ;;  %v656_v55 = vmul.f32 0.03125, %v614_v7  ;;  %v1749_v23 = vld [vmem:[%s14107_s19 + $0xb8] sm:$0xff]  ;;  %v1750_v51 = vld [vmem:[%s14107_s19 + $0xc0] sm:$0xff] }
 0x13c   : > { %12774 = vrsqrt.f32 %v682_v15  ;;  %v1823_v34 = vsel %vm19600_vm0, %v1749_v23, 0.0  ;;  %v1826_v58 = vsel %vm19600_vm0, %v1750_v51, 0.0  ;;  %v19763_v51 = vld [vmem:[#allocation7_spill] sm:$0xff] }
 0x13d   : > { %v683_v10 = vadd.f32 1e-05, %v655_v18  ;;  %v684_v32 = vadd.f32 1e-05, %v656_v55  ;;  %1812 = vadd.xlane.f32.xlu1 %v1811_v26  ;;  %1815 = vadd.xlane.f32.xlu0 %v1814_v28 }
 0x13e   : > { %v617_v50 = vpop.xlane.xlu1 %616  ;;  %v620_v6 = vpop.xlane.xlu0 %619 }
 0x13f   : > { %12776 = vrsqrt.f32 %v683_v10  ;;  %v657_v59 = vmul.f32 0.03125, %v617_v50  ;;  %v658_v42 = vmul.f32 0.03125, %v620_v6  ;;  %v1751_v6 = vld [vmem:[%s14107_s19 + $0xc8] sm:$0xff] }
 0x140   : > { %v12767_v7 = vpop.eup %12766  ;;  %12778 = vrsqrt.f32 %v684_v32 }
 0x141   : > { %v685_v15 = vadd.f32 1e-05, %v657_v59  ;;  %v686_v18 = vadd.f32 1e-05, %v658_v42  ;;  %1818 = vadd.xlane.f32.xlu1 %v1817_v40  ;;  %1821 = vadd.xlane.f32.xlu0 %v1820_v54  ;;  %v734_v26 = vmul.f32 %v12767_v7, %v13757_v39 }
 0x142   : > { %v623_v28 = vpop.xlane.xlu1 %622  ;;  %v626_v55 = vpop.xlane.xlu0 %625 }
 0x143   : > { %12780 = vrsqrt.f32 %v685_v15  ;;  %v659_v10 = vmul.f32 0.03125, %v623_v28  ;;  %v660_v50 = vmul.f32 0.03125, %v626_v55  ;;  %11325 = vmatprep.mubr.msk.f32.mxu1 %vm19600_vm0, %v734_v26  ;;  %v1829_v15 = vsel %vm19600_vm0, %v1751_v6, 0.0 }
 0x144   : > { %v12769_v32 = vpop.eup %12768  ;;  %12782 = vrsqrt.f32 %v686_v18  ;;  %v1832_v26 = vsel %vm19600_vm0, %v1752_v3, 0.0  ;;  %v1753_v18 = vld [vmem:[%s14107_s19 + $0xd8] sm:$0xff] }
 0x145   : > { %v12771_v40 = vpop.eup %12770  ;;  %v687_v54 = vadd.f32 1e-05, %v659_v10  ;;  %v688_v59 = vadd.f32 1e-05, %v660_v50  ;;  %1824 = vadd.xlane.f32.xlu1 %v1823_v34  ;;  %1827 = vadd.xlane.f32.xlu0 %v1826_v58  ;;  %v735_v39 = vmul.f32 %v12769_v32, %v13767_v63  ;;  %v343_v34 = vld [vmem:[%s19405_s4 + $0x30] sm:$0xff] }
 0x146   : > { %v629_v42 = vpop.xlane.xlu1 %628  ;;  %v632_v23 = vpop.xlane.xlu0 %631  ;;  %v736_v7 = vmul.f32 %v12771_v40, %v19763_v51 }
 0x147   : > { %12784 = vrsqrt.f32 %v687_v54  ;;  %v661_v28 = vmul.f32 0.03125, %v629_v42  ;;  %v662_v55 = vmul.f32 0.03125, %v632_v23  ;;  %11326 = vmatmul.mubr.msk.f32.vlgmr.msra.gmra.mxu1 %vm19600_vm0, %v735_v39  ;;  %v1835_v54 = vsel %vm19600_vm0, %v1753_v18, 0.0 }
 0x148   : > { %v12773_v58 = vpop.eup %12772  ;;  %12786 = vrsqrt.f32 %v688_v59  ;;  %11328 = vmatprep.mubr.msk.f32.mxu1 %vm19600_vm0, %v736_v7  ;;  %11347 = vmatpush3.msra.mxu1 %v13949_v57  ;;  %v342_v59 = vld [vmem:[%s19405_s4 + $0x28] sm:$0xff] }
 0x149   : > { %v12775_v63 = vpop.eup %12774  ;;  %v689_v10 = vadd.f32 1e-05, %v661_v28  ;;  %v690_v50 = vadd.f32 1e-05, %v662_v55  ;;  %1830 = vadd.xlane.f32.xlu1 %v1829_v15  ;;  %1833 = vadd.xlane.f32.xlu0 %v1832_v26  ;;  %v737_v3 = vmul.f32 %v12773_v58, %v13770_v14  ;;  %v341_v14 = vld [vmem:[%s19405_s4 + $0x20] sm:$0xff] }
 0x14a   : > { %v635_v6 = vpop.xlane.xlu1 %634  ;;  %v1239_v32 = vpop.xlane.xlu0 %1238  ;;  %v738_v40 = vmul.f32 %v12775_v63, %v13779_v2  ;;  %11348 = vmatprep.subr.mxu1 %v343_v34 }
 0x14b   : > { %12788 = vrsqrt.f32 %v689_v10  ;;  %v663_v57 = vmul.f32 0.03125, %v635_v6  ;;  %v1321_v39 = vmul.f32 0.03125, %v1239_v32  ;;  %11329 = vmatmul.mubr.msk.f32.gmra.mxu1 %vm19600_vm0, %v737_v3 }
 0x14c   : > { %v12777_v42 = vpop.eup %12776  ;;  %12790 = vrsqrt.f32 %v690_v50  ;;  %11331 = vmatprep.mubr.msk.f32.mxu1 %vm19600_vm0, %v738_v40  ;;  %11349 = vmatpush3.msra.mxu1 %v343_v34 }
 0x14d   : > { %v12779_v2 = vpop.eup %12778  ;;  %v691_v23 = vadd.f32 1e-05, %v663_v57  ;;  %v1349_v51 = vadd.f32 1e-05, %v1321_v39  ;;  %1836 = vadd.xlane.f32.xlu1 %v1835_v54  ;;  %v739_v7 = vmul.f32 %v12777_v42, %v13782_v5  ;;  %11350 = vmatprep.subr.mxu1 %v342_v59 }
 0x14e   : > { %v1242_v15 = vpop.xlane.xlu1 %1241  ;;  %v1245_v26 = vpop.xlane.xlu0 %1244  ;;  %v740_v28 = vmul.f32 %v12779_v2, %v13791_v31  ;;  %11351 = vmatpush3.msra.mxu1 %v342_v59 }
 0x14f   : > { %12792 = vrsqrt.f32 %v691_v23  ;;  %v1322_v55 = vmul.f32 0.03125, %v1242_v15  ;;  %v1323_v18 = vmul.f32 0.03125, %v1245_v26  ;;  %11332 = vmatmul.mubr.msk.f32.gmra.mxu1 %vm19600_vm0, %v739_v7  ;;  %11352 = vmatprep.subr.mxu1 %v341_v14 }
 0x150   : > { %v12781_v34 = vpop.eup %12780  ;;  %12794 = vrsqrt.f32 %v1349_v51  ;;  %11334 = vmatprep.mubr.msk.f32.mxu1 %vm19600_vm0, %v740_v28  ;;  %11353 = vmatpush3.msra.mxu1 %v341_v14 }
 0x151   : > { %v12783_v58 = vpop.eup %12782  ;;  %v1350_v63 = vadd.f32 1e-05, %v1322_v55  ;;  %v1351_v5 = vadd.f32 1e-05, %v1323_v18  ;;  %v741_v10 = vmul.f32 %v12781_v34, %v13794_v9 }
 0x152   : > { %v1248_v50 = vpop.xlane.xlu1 %1247  ;;  %v1251_v3 = vpop.xlane.xlu0 %1250  ;;  %v742_v31 = vmul.f32 %v12783_v58, %v13803_v0 }
 0x153   : > { %12796 = vrsqrt.f32 %v1350_v63  ;;  %v1324_v6 = vmul.f32 0.03125, %v1248_v50  ;;  %v1325_v32 = vmul.f32 0.03125, %v1251_v3  ;;  %11335 = vmatmul.mubr.msk.f32.gmra.mxu1 %vm19600_vm0, %v741_v10 }
 0x154   : > { %v12785_v40 = vpop.eup %12784  ;;  %12798 = vrsqrt.f32 %v1351_v5  ;;  %11337 = vmatprep.mubr.msk.f32.mxu1 %vm19600_vm0, %v742_v31 }
 0x155   : > { %v12787_v54 = vpop.eup %12786  ;;  %v1352_v59 = vadd.f32 1e-05, %v1324_v6  ;;  %v1353_v57 = vadd.f32 1e-05, %v1325_v32  ;;  %v743_v39 = vmul.f32 %v12785_v40, %v13806_v13 }
 0x156   : > { %v1254_v42 = vpop.xlane.xlu1 %1253  ;;  %v1257_v9 = vpop.xlane.xlu0 %1256  ;;  %v744_v14 = vmul.f32 %v12787_v54, %v13815_v22 }
 0x157   : > { %12800 = vrsqrt.f32 %v1352_v59  ;;  %v1326_v0 = vmul.f32 0.03125, %v1254_v42  ;;  %v1327_v2 = vmul.f32 0.03125, %v1257_v9  ;;  %11338 = vmatmul.mubr.msk.f32.gmra.mxu1 %vm19600_vm0, %v743_v39 }
 0x158   : > { %v12789_v23 = vpop.eup %12788  ;;  %12802 = vrsqrt.f32 %v1353_v57  ;;  %11340 = vmatprep.mubr.msk.f32.mxu1 %vm19600_vm0, %v744_v14 }
 0x159   : > { %v12791_v51 = vpop.eup %12790  ;;  %v1354_v7 = vadd.f32 1e-05, %v1326_v0  ;;  %v1355_v15 = vadd.f32 1e-05, %v1327_v2  ;;  %v745_v26 = vmul.f32 %v12789_v23, %v13818_v17  ;;  %v19764_v23 = vld [vmem:[#allocation8_spill] sm:$0xff] }
 0x15a   : > { %v1260_v28 = vpop.xlane.xlu1 %1259  ;;  %v1263_v13 = vpop.xlane.xlu0 %1262  ;;  %v746_v55 = vmul.f32 %v12791_v51, %v13827_v46 }
 0x15b   : > { %12804 = vrsqrt.f32 %v1354_v7  ;;  %v1328_v22 = vmul.f32 0.03125, %v1260_v28  ;;  %v1329_v18 = vmul.f32 0.03125, %v1263_v13  ;;  %11341 = vmatmul.mubr.msk.f32.gmra.mxu1 %vm19600_vm0, %v745_v26 }
 0x15c   : > { %v12793_v34 = vpop.eup %12792  ;;  %12806 = vrsqrt.f32 %v1355_v15  ;;  %11343 = vmatprep.mubr.msk.f32.mxu1 %vm19600_vm0, %v746_v55 }
 0x15d   : > { %v12795_v58 = vpop.eup %12794  ;;  %v1356_v63 = vadd.f32 1e-05, %v1328_v22  ;;  %v1357_v5 = vadd.f32 1e-05, %v1329_v18  ;;  %v747_v10 = vmul.f32 %v12793_v34, %v13830_v21 }
 0x15e   : > { %v1266_v50 = vpop.xlane.xlu1 %1265  ;;  %v1269_v17 = vpop.xlane.xlu0 %1268  ;;  %v1405_v3 = vmul.f32 %v12795_v58, %v13839_v62 }
 0x15f   : > { %12808 = vrsqrt.f32 %v1356_v63  ;;  %v1330_v46 = vmul.f32 0.03125, %v1266_v50  ;;  %v1331_v31 = vmul.f32 0.03125, %v1269_v17  ;;  %11344 = vmatmul.mubr.msk.f32.gmra.mxu1 %vm19600_vm0, %v747_v10 }
 0x160   : > { %v12797_v6 = vpop.eup %12796  ;;  %12810 = vrsqrt.f32 %v1357_v5  ;;  %11354 = vmatprep.mubr.msk.f32.mxu1 %vm19600_vm0, %v1405_v3 }
 0x161   : > { %v12799_v32 = vpop.eup %12798  ;;  %v1406_v40 = vmul.f32 %v12797_v6, %v13842_v25  ;;  %v1358_v54 = vadd.f32 1e-05, %v1330_v46  ;;  %v1359_v59 = vadd.f32 1e-05, %v1331_v31 }
 0x162   : > { %v1272_v57 = vpop.xlane.xlu1 %1271  ;;  %v554_v21 = vpop.xlane.xlu0 %553  ;;  %v1407_v39 = vmul.f32 %v12799_v32, %v13854_v47 }
 0x163   : > { %12812 = vrsqrt.f32 %v1358_v54  ;;  %v1332_v62 = vmul.f32 0.03125, %v1272_v57  ;;  %v636_v42 = vmul.f32 0.03125, %v554_v21  ;;  %11355 = vmatmul.mubr.msk.f32.vlgmr.msra.gmra.mxu1 %vm19600_vm0, %v1406_v40 }
 0x164   : > { %v12801_v9 = vpop.eup %12800  ;;  %12814 = vrsqrt.f32 %v1359_v59  ;;  %11357 = vmatprep.mubr.msk.f32.mxu1 %vm19600_vm0, %v1407_v39 }
 0x165   : > { %v12803_v14 = vpop.eup %12802  ;;  %v1360_v0 = vadd.f32 1e-05, %v1332_v62  ;;  %v664_v2 = vadd.f32 1e-05, %v636_v42  ;;  %v1408_v25 = vmul.f32 %v12801_v9, %v19764_v23 }
 0x166   : > { %v1275_v51 = vpop.xlane.xlu1 %1274  ;;  %v557_v7 = vpop.xlane.xlu0 %556  ;;  %v1409_v15 = vmul.f32 %v12803_v14, %v13872_v30 }
 0x167   : > { %12816 = vrsqrt.f32 %v1360_v0  ;;  %v1333_v47 = vmul.f32 0.03125, %v1275_v51  ;;  %v637_v26 = vmul.f32 0.03125, %v557_v7  ;;  %11358 = vmatmul.mubr.msk.f32.gmra.mxu1 %vm19600_vm0, %v1408_v25 }
 0x168   : > { %v12805_v28 = vpop.eup %12804  ;;  %12818 = vrsqrt.f32 %v664_v2  ;;  %11360 = vmatprep.mubr.msk.f32.mxu1 %vm19600_vm0, %v1409_v15 }
 0x169   : > { %v12807_v13 = vpop.eup %12806  ;;  %v1361_v55 = vadd.f32 1e-05, %v1333_v47  ;;  %v665_v22 = vadd.f32 1e-05, %v637_v26  ;;  %v1410_v18 = vmul.f32 %v12805_v28, %v13875_v38 }
 0x16a   : > { %v1278_v34 = vpop.xlane.xlu1 %1277  ;;  %v1281_v58 = vpop.xlane.xlu0 %1280  ;;  %v1411_v63 = vmul.f32 %v12807_v13, %v13887_v12 }
 0x16b   : > { %12820 = vrsqrt.f32 %v1361_v55  ;;  %v1334_v30 = vmul.f32 0.03125, %v1278_v34  ;;  %v1335_v5 = vmul.f32 0.03125, %v1281_v58  ;;  %11361 = vmatmul.mubr.msk.f32.gmra.mxu1 %vm19600_vm0, %v1410_v18 }
 0x16c   : > { %v12809_v10 = vpop.eup %12808  ;;  %12822 = vrsqrt.f32 %v665_v22  ;;  %11363 = vmatprep.mubr.msk.f32.mxu1 %vm19600_vm0, %v1411_v63 }
 0x16d   : > { %v12811_v50 = vpop.eup %12810  ;;  %v1362_v17 = vadd.f32 1e-05, %v1334_v30  ;;  %v1363_v3 = vadd.f32 1e-05, %v1335_v5  ;;  %v1412_v46 = vmul.f32 %v12809_v10, %v13890_v1 }
 0x16e   : > { %v1284_v31 = vpop.xlane.xlu1 %1283  ;;  %v560_v38 = vpop.xlane.xlu0 %559  ;;  %v1413_v6 = vmul.f32 %v12811_v50, %v13899_v41 }
 0x16f   : > { %12824 = vrsqrt.f32 %v1362_v17  ;;  %v1336_v12 = vmul.f32 0.03125, %v1284_v31  ;;  %v638_v32 = vmul.f32 0.03125, %v560_v38  ;;  %11364 = vmatmul.mubr.msk.f32.gmra.mxu1 %vm19600_vm0, %v1412_v46 }
 0x170   : > { %v12813_v40 = vpop.eup %12812  ;;  %12826 = vrsqrt.f32 %v1363_v3  ;;  %11366 = vmatprep.mubr.msk.f32.mxu1 %vm19600_vm0, %v1413_v6 }
 0x171   : > { %v12815_v54 = vpop.eup %12814  ;;  %v1364_v59 = vadd.f32 1e-05, %v1336_v12  ;;  %v666_v57 = vadd.f32 1e-05, %v638_v32  ;;  %v1414_v21 = vmul.f32 %v12813_v40, %v13902_v16 }
 0x172   : > { %v1287_v39 = vpop.xlane.xlu1 %1286  ;;  %v563_v1 = vpop.xlane.xlu0 %562  ;;  %v1415_v62 = vmul.f32 %v12815_v54, %v13911_v24 }
 0x173   : > { %12828 = vrsqrt.f32 %v1364_v59  ;;  %v1337_v41 = vmul.f32 0.03125, %v1287_v39  ;;  %v639_v42 = vmul.f32 0.03125, %v563_v1  ;;  %11367 = vmatmul.mubr.msk.f32.gmra.mxu1 %vm19600_vm0, %v1414_v21 }
 0x174   : > { %v12817_v9 = vpop.eup %12816  ;;  %12830 = vrsqrt.f32 %v666_v57  ;;  %11369 = vmatprep.mubr.msk.f32.mxu1 %vm19600_vm0, %v1415_v62 }
 0x175   : > { %v12819_v14 = vpop.eup %12818  ;;  %v1365_v0 = vadd.f32 1e-05, %v1337_v41  ;;  %v667_v2 = vadd.f32 1e-05, %v639_v42  ;;  %v1416_v23 = vmul.f32 %v12817_v9, %v13914_v45 }
 0x176   : > { %v1290_v25 = vpop.xlane.xlu1 %1289  ;;  %v1293_v16 = vpop.xlane.xlu0 %1292  ;;  %v720_v51 = vmul.f32 %v12819_v14, %v13923_v37 }
 0x177   : > { %12832 = vrsqrt.f32 %v1365_v0  ;;  %v1338_v24 = vmul.f32 0.03125, %v1290_v25  ;;  %v1339_v7 = vmul.f32 0.03125, %v1293_v16  ;;  %11370 = vmatmul.mubr.msk.f32.gmra.mxu1 %vm19600_vm0, %v1416_v23 }
 0x178   : > { %v12821_v15 = vpop.eup %12820  ;;  %12834 = vrsqrt.f32 %v667_v2  ;;  %11304 = vmatprep.mubr.msk.f32.mxu0 %vm19600_vm0, %v720_v51 }
 0x179   : > { %v12823_v47 = vpop.eup %12822  ;;  %v1366_v26 = vadd.f32 1e-05, %v1338_v24  ;;  %v1367_v28 = vadd.f32 1e-05, %v1339_v7  ;;  %v1417_v13 = vmul.f32 %v12821_v15, %v13926_v49 }
 0x17a   : > { %v1296_v55 = vpop.xlane.xlu1 %1295  ;;  %v566_v45 = vpop.xlane.xlu0 %565  ;;  %v721_v22 = vmul.f32 %v12823_v47, %v13935_v29 }
 0x17b   : > { %12836 = vrsqrt.f32 %v1366_v26  ;;  %v1340_v37 = vmul.f32 0.03125, %v1296_v55  ;;  %v640_v18 = vmul.f32 0.03125, %v566_v45  ;;  %11372 = vmatprep.mubr.msk.f32.mxu1 %vm19600_vm0, %v1417_v13 }
 0x17c   : > { %v12825_v34 = vpop.eup %12824  ;;  %12838 = vrsqrt.f32 %v1367_v28  ;;  %11305 = vmatmul.mubr.msk.f32.vlgmr.msra.gmra.mxu0 %vm19600_vm0, %v721_v22 }
 0x17d   : > { %v12827_v58 = vpop.eup %12826  ;;  %v1368_v63 = vadd.f32 1e-05, %v1340_v37  ;;  %v668_v30 = vadd.f32 1e-05, %v640_v18  ;;  %v1418_v5 = vmul.f32 %v12825_v34, %v13938_v53 }
 0x17e   : > { %v1299_v10 = vpop.xlane.xlu1 %1298  ;;  %v569_v49 = vpop.xlane.xlu0 %568  ;;  %v1419_v50 = vmul.f32 %v12827_v58, %v13952_v33 }
 0x17f   : > { %12840 = vrsqrt.f32 %v1368_v63  ;;  %v1341_v29 = vmul.f32 0.03125, %v1299_v10  ;;  %v641_v17 = vmul.f32 0.03125, %v569_v49  ;;  %11373 = vmatmul.mubr.msk.f32.gmra.mxu1 %vm19600_vm0, %v1418_v5 }
 0x180   : > { %v12829_v3 = vpop.eup %12828  ;;  %12842 = vrsqrt.f32 %v668_v30  ;;  %11375 = vmatprep.mubr.msk.f32.mxu1 %vm19600_vm0, %v1419_v50 }
 0x181   : > { %v12831_v46 = vpop.eup %12830  ;;  %v1369_v31 = vadd.f32 1e-05, %v1341_v29  ;;  %v669_v38 = vadd.f32 1e-05, %v641_v17  ;;  %v1420_v6 = vmul.f32 %v12829_v3, %v13955_v8 }
 0x182   : > { %v1302_v12 = vpop.xlane.xlu1 %1301  ;;  %v1305_v53 = vpop.xlane.xlu0 %1304  ;;  %v722_v32 = vmul.f32 %v12831_v46, %v13965_v61 }
 0x183   : > { %12844 = vrsqrt.f32 %v1369_v31  ;;  %v1342_v33 = vmul.f32 0.03125, %v1302_v12  ;;  %v1343_v40 = vmul.f32 0.03125, %v1305_v53  ;;  %11376 = vmatmul.mubr.msk.f32.gmra.mxu1 %vm19600_vm0, %v1420_v6 }
 0x184   : > { %v12833_v54 = vpop.eup %12832  ;;  %12846 = vrsqrt.f32 %v669_v38  ;;  %11307 = vmatprep.mubr.msk.f32.mxu0 %vm19600_vm0, %v722_v32 }
 0x185   : > { %v12835_v59 = vpop.eup %12834  ;;  %v1370_v57 = vadd.f32 1e-05, %v1342_v33  ;;  %v1371_v21 = vadd.f32 1e-05, %v1343_v40  ;;  %v1421_v39 = vmul.f32 %v12833_v54, %v13968_v48 }
 0x186   : > { %v572_v1 = vpop.xlane.xlu1 %571  ;;  %v1308_v8 = vpop.xlane.xlu0 %1307  ;;  %v723_v62 = vmul.f32 %v12835_v59, %v13977_v20 }
 0x187   : > { %12848 = vrsqrt.f32 %v1370_v57  ;;  %v642_v61 = vmul.f32 0.03125, %v572_v1  ;;  %v1344_v41 = vmul.f32 0.03125, %v1308_v8  ;;  %11378 = vmatprep.mubr.msk.f32.mxu1 %vm19600_vm0, %v1421_v39  ;;  %v19765_v1 = vld [vmem:[#allocation9_spill] sm:$0xff] }
 0x188   : > { %v12837_v42 = vpop.eup %12836  ;;  %12850 = vrsqrt.f32 %v1371_v21  ;;  %11308 = vmatmul.mubr.msk.f32.gmra.mxu0 %vm19600_vm0, %v723_v62 }
 0x189   : > { %v12839_v9 = vpop.eup %12838  ;;  %v670_v14 = vadd.f32 1e-05, %v642_v61  ;;  %v1372_v0 = vadd.f32 1e-05, %v1344_v41  ;;  %v1422_v2 = vmul.f32 %v12837_v42, %v13980_v4 }
 0x18a   : > { %v575_v23 = vpop.xlane.xlu1 %574  ;;  %v1311_v48 = vpop.xlane.xlu0 %1310  ;;  %v1423_v25 = vmul.f32 %v12839_v9, %v13989_v44  ;;  %v19766_v9 = vld [vmem:[#allocation14_spill] sm:$0xff] }
 0x18b   : > { %12852 = vrsqrt.f32 %v670_v14  ;;  %v643_v20 = vmul.f32 0.03125, %v575_v23  ;;  %v1345_v16 = vmul.f32 0.03125, %v1311_v48  ;;  %11379 = vmatmul.mubr.msk.f32.gmra.mxu1 %vm19600_vm0, %v1422_v2  ;;  %v19768_v48 = vld [vmem:[#allocation11_spill] sm:$0xff] }
 0x18c   : > { %v12841_v51 = vpop.eup %12840  ;;  %12854 = vrsqrt.f32 %v1372_v0  ;;  %11381 = vmatprep.mubr.msk.f32.mxu1 %vm19600_vm0, %v1423_v25  ;;  %v19767_v0 = vld [vmem:[#allocation10_spill] sm:$0xff] }
 0x18d   : > { %v12843_v24 = vpop.eup %12842  ;;  %v671_v7 = vadd.f32 1e-05, %v643_v20  ;;  %v1373_v15 = vadd.f32 1e-05, %v1345_v16  ;;  %v1424_v47 = vmul.f32 %v12841_v51, %v13992_v11 }
 0x18e   : > { %v1314_v26 = vpop.xlane.xlu1 %1313  ;;  %v1317_v4 = vpop.xlane.xlu0 %1316  ;;  %v724_v28 = vmul.f32 %v12843_v24, %v14001_v36 }
 0x18f   : > { %12856 = vrsqrt.f32 %v671_v7  ;;  %v1346_v44 = vmul.f32 0.03125, %v1314_v26  ;;  %v1347_v13 = vmul.f32 0.03125, %v1317_v4  ;;  %11382 = vmatmul.mubr.msk.f32.gmra.mxu1 %vm19600_vm0, %v1424_v47  ;;  %v19770_v26 = vld [vmem:[#allocation16_spill] sm:$0xff] }
 0x190   : > { %v12845_v55 = vpop.eup %12844  ;;  %12858 = vrsqrt.f32 %v1373_v15  ;;  %11310 = vmatprep.mubr.msk.f32.mxu0 %vm19600_vm0, %v724_v28  ;;  %v19769_v15 = vld [vmem:[#allocation15_spill] sm:$0xff] }
 0x191   : > { %v12847_v45 = vpop.eup %12846  ;;  %v1374_v22 = vadd.f32 1e-05, %v1346_v44  ;;  %v1375_v37 = vadd.f32 1e-05, %v1347_v13  ;;  %v1425_v18 = vmul.f32 %v12845_v55, %v14004_v19  ;;  %v19771_v44 = vld [vmem:[#allocation12_spill] sm:$0xff] }
 0x192   : > { %v578_v34 = vpop.xlane.xlu1 %577  ;;  %v1320_v11 = vpop.xlane.xlu0 %1319  ;;  %v725_v58 = vmul.f32 %v12847_v45, %v14013_v52 }
 0x193   : > { %12860 = vrsqrt.f32 %v1374_v22  ;;  %v644_v36 = vmul.f32 0.03125, %v578_v34  ;;  %v1348_v63 = vmul.f32 0.03125, %v1320_v11  ;;  %11384 = vmatprep.mubr.msk.f32.mxu1 %vm19600_vm0, %v1425_v18  ;;  %v19772_v22 = vld [vmem:[#allocation2_spill] sm:$0xff] }
 0x194   : > { %v12849_v30 = vpop.eup %12848  ;;  %12862 = vrsqrt.f32 %v1375_v37  ;;  %11311 = vmatmul.mubr.msk.f32.gmra.mxu0 %vm19600_vm0, %v725_v58 }
 0x195   : > { %v12851_v5 = vpop.eup %12850  ;;  %v672_v10 = vadd.f32 1e-05, %v644_v36  ;;  %v1376_v49 = vadd.f32 1e-05, %v1348_v63  ;;  %v1426_v50 = vmul.f32 %v12849_v30, %v14016_v27  ;;  %v19773_v30 = vld [vmem:[#allocation17_spill] sm:$0xff] }
 0x196   : > { %v581_v29 = vpop.xlane.xlu1 %580  ;;  %v584_v19 = vpop.xlane.xlu0 %583  ;;  %v1427_v17 = vmul.f32 %v12851_v5, %v14025_v56 }
 0x197   : > { %12864 = vrsqrt.f32 %v672_v10  ;;  %v645_v52 = vmul.f32 0.03125, %v581_v29  ;;  %v646_v3 = vmul.f32 0.03125, %v584_v19  ;;  %11385 = vmatmul.mubr.msk.f32.gmra.mxu1 %vm19600_vm0, %v1426_v50  ;;  %v19774_v10 = vld [vmem:[#allocation18_spill] sm:$0xff] }
 0x198   : > { %v12853_v46 = vpop.eup %12852  ;;  %12866 = vrsqrt.f32 %v1376_v49  ;;  %11387 = vmatprep.mubr.msk.f32.mxu1 %vm19600_vm0, %v1427_v17 }
 0x199   : > { %v12855_v31 = vpop.eup %12854  ;;  %v673_v38 = vadd.f32 1e-05, %v645_v52  ;;  %v674_v6 = vadd.f32 1e-05, %v646_v3  ;;  %v726_v12 = vmul.f32 %v12853_v46, %v14028_v35  ;;  %v19775_v52 = vld [vmem:[#allocation3_spill] sm:$0xff]  ;;  %v19776_v46 = vld [vmem:[#allocation4_spill] sm:$0xff] }
 0x19a   : > { %v587_v53 = vpop.xlane.xlu1 %586  ;;  %v590_v27 = vpop.xlane.xlu0 %589  ;;  %v1428_v32 = vmul.f32 %v12855_v31, %v14037_v60 }
 0x19b   : > { %12868 = vrsqrt.f32 %v673_v38  ;;  %v647_v56 = vmul.f32 0.03125, %v587_v53  ;;  %v648_v33 = vmul.f32 0.03125, %v590_v27  ;;  %11313 = vmatprep.mubr.msk.f32.mxu0 %vm19600_vm0, %v726_v12 }
 0x19c   : > { %v12857_v40 = vpop.eup %12856  ;;  %12870 = vrsqrt.f32 %v674_v6  ;;  %11388 = vmatmul.mubr.msk.f32.gmra.mxu1 %vm19600_vm0, %v1428_v32  ;;  %v348_v32 = vld [vmem:[%s19405_s4 + $0x58] sm:$0xff] }
 0x19d   : > { %v12859_v54 = vpop.eup %12858  ;;  %v675_v59 = vadd.f32 1e-05, %v647_v56  ;;  %v676_v57 = vadd.f32 1e-05, %v648_v33  ;;  %v727_v21 = vmul.f32 %v12857_v40, %v14040_v43  ;;  %v19777_v33 = vld [vmem:[#allocation19_spill] sm:$0xff]  ;;  %11396 = vmatprep.subr.mxu0 %v348_v32 }
 0x19e   : > { %v593_v39 = vpop.xlane.xlu1 %592  ;;  %v1756_v35 = vpop.xlane.xlu0 %1755  ;;  %v1429_v8 = vmul.f32 %v12859_v54, %v19765_v1  ;;  %v19778_v54 = vld [vmem:[#allocation20_spill] sm:$0xff]  ;;  %v19779_v1 = vld [vmem:[#allocation5_spill] sm:$0xff]  ;;  %11397 = vmatpush3.msra.mxu0 %v348_v32 }
 0x19f   : > { %12872 = vrsqrt.f32 %v675_v59  ;;  %v649_v60 = vmul.f32 0.03125, %v593_v39  ;;  %v1838_v62 = vmul.f32 0.03125, %v1756_v35  ;;  %11314 = vmatmul.mubr.msk.f32.gmra.mxu0 %vm19600_vm0, %v727_v21 }
 0x1a0   : > { %v12861_v61 = vpop.eup %12860  ;;  %12874 = vrsqrt.f32 %v676_v57  ;;  %11390 = vmatprep.mubr.msk.f32.mxu1 %vm19600_vm0, %v1429_v8 }
 0x1a1   : > { %v12863_v41 = vpop.eup %12862  ;;  %v677_v42 = vadd.f32 1e-05, %v649_v60  ;;  %v14304_v14 = vsub.f32 %v19766_v9, %v1838_v62  ;;  %v1430_v43 = vmul.f32 %v12861_v61, %v19767_v0  ;;  %v19780_v60 = vld [vmem:[#allocation6_spill] sm:$0xff] }
 0x1a2   : > { %v1759_v2 = vpop.xlane.xlu1 %1758  ;;  %v1762_v23 = vpop.xlane.xlu0 %1761  ;;  %v1431_v25 = vmul.f32 %v12863_v41, %v19768_v48 }
 0x1a3   : > { %12876 = vrsqrt.f32 %v677_v42  ;;  %v1839_v20 = vmul.f32 0.03125, %v1759_v2  ;;  %v1840_v16 = vmul.f32 0.03125, %v1762_v23  ;;  %11391 = vmatmul.mubr.msk.f32.gmra.mxu1 %vm19600_vm0, %v1430_v43  ;;  %v1894_v51 = vmul.f32 %v14304_v14, %v14304_v14  ;;  %v19781_v43 = vld [vmem:[#allocation21_spill] sm:$0xff]  ;;  %v19782_v23 = vld [vmem:[#allocation22_spill] sm:$0xff] }
 0x1a4   : > { %v12865_v24 = vpop.eup %12864  ;;  %11393 = vmatprep.mubr.msk.f32.mxu1 %vm19600_vm0, %v1431_v25 }
 0x1a5   : > { %v12867_v7 = vpop.eup %12866  ;;  %v14313_v47 = vsub.f32 %v19769_v15, %v1839_v20  ;;  %v14316_v4 = vsub.f32 %v19770_v26, %v1840_v16  ;;  %v1922_v28 = vsel %vm19600_vm0, %v1894_v51, 0.0  ;;  %v728_v13 = vmul.f32 %v12865_v24, %v19771_v44  ;;  %v19783_v24 = vld [vmem:[#allocation13_spill] sm:$0xff] }
 0x1a6   : > { %v1765_v55 = vpop.xlane.xlu1 %1764  ;;  %1923 = vadd.xlane.f32.xlu0 %v1922_v28  ;;  %v1768_v45 = vpop.xlane.xlu0 %1767  ;;  %v1432_v37 = vmul.f32 %v12867_v7, %v19772_v22 }
 0x1a7   : > { %v1841_v18 = vmul.f32 0.03125, %v1765_v55  ;;  %v1842_v34 = vmul.f32 0.03125, %v1768_v45  ;;  %11316 = vmatprep.mubr.msk.f32.mxu0 %vm19600_vm0, %v728_v13  ;;  %v1895_v11 = vmul.f32 %v14313_v47, %v14313_v47  ;;  %v1896_v58 = vmul.f32 %v14316_v4, %v14316_v4  ;;  %v13382_v13 = vld [vmem:[%s14107_s19 + $0x48] sm:$0xff]  ;;  %v13383_v45 = vld [vmem:[%s14107_s19 + $0x50] sm:$0xff] }
 0x1a8   : > { %v12869_v36 = vpop.eup %12868  ;;  %11394 = vmatmul.mubr.msk.f32.gmra.mxu1 %vm19600_vm0, %v1432_v37 }
 0x1a9   : > { %v12871_v63 = vpop.eup %12870  ;;  %v14328_v5 = vsub.f32 %v19773_v30, %v1841_v18  ;;  %v14331_v49 = vsub.f32 %v19774_v10, %v1842_v34  ;;  %v1925_v50 = vsel %vm19600_vm0, %v1895_v11, 0.0  ;;  %v1928_v29 = vsel %vm19600_vm0, %v1896_v58, 0.0 }
 0x1aa   : > { %1926 = vadd.xlane.f32.xlu1 %v1925_v50  ;;  %v1771_v19 = vpop.xlane.xlu1 %1770  ;;  %1929 = vadd.xlane.f32.xlu0 %v1928_v29  ;;  %v1774_v17 = vpop.xlane.xlu0 %1773  ;;  %v729_v3 = vmul.f32 %v12869_v36, %v19775_v52  ;;  %v730_v31 = vmul.f32 %v12871_v63, %v19776_v46  ;;  %v19434_v34 = vmov 0.0   ;;  %v13384_v50 = vld [vmem:[%s14107_s19 + $0x58] sm:$0xff] }
 0x1ab   : > { %v1843_v38 = vmul.f32 0.03125, %v1771_v19  ;;  %v1844_v6 = vmul.f32 0.03125, %v1774_v17  ;;  %v1897_v12 = vmul.f32 %v14328_v5, %v14328_v5  ;;  %v1898_v53 = vmul.f32 %v14331_v49, %v14331_v49  ;;  %11446 = vmatprep.subr.mxu1 %v19434_v34  ;;  %v13385_v19 = vld [vmem:[%s14107_s19 + $0x60] sm:$0xff]  ;;  %11460 = vmatprep.mubr.msk.f32.mxu1 %vm19606_vm1, %v19434_v34 }
 0x1ac   : > { %v12873_v27 = vpop.eup %12872  ;;  %11317 = vmatmul.mubr.msk.f32.gmra.mxu0 %vm19600_vm0, %v729_v3 }
 0x1ad   : > { %v12875_v56 = vpop.eup %12874  ;;  %v14346_v40 = vsub.f32 %v19777_v33, %v1843_v38  ;;  %v14349_v59 = vsub.f32 %v19778_v54, %v1844_v6  ;;  %11319 = vmatprep.mubr.msk.f32.mxu0 %vm19600_vm0, %v730_v31  ;;  %v1931_v57 = vsel %vm19600_vm0, %v1897_v12, 0.0  ;;  %v1934_v21 = vsel %vm19600_vm0, %v1898_v53, 0.0 }
 0x1ae   : > { %1932 = vadd.xlane.f32.xlu1 %v1931_v57  ;;  %v1777_v39 = vpop.xlane.xlu1 %1776  ;;  %1935 = vadd.xlane.f32.xlu0 %v1934_v21  ;;  %v1780_v35 = vpop.xlane.xlu0 %1779  ;;  %v731_v8 = vmul.f32 %v12873_v27, %v19779_v1  ;;  %v732_v62 = vmul.f32 %v12875_v56, %v19780_v60  ;;  %v13386_v27 = vld [vmem:[%s14107_s19 + $0x68] sm:$0xff]  ;;  %v13387_v56 = vld [vmem:[%s14107_s19 + $0x70] sm:$0xff] }
 0x1af   : > { %v1845_v61 = vmul.f32 0.03125, %v1777_v39  ;;  %v1846_v41 = vmul.f32 0.03125, %v1780_v35  ;;  %v1899_v42 = vmul.f32 %v14346_v40, %v14346_v40  ;;  %v1900_v9 = vmul.f32 %v14349_v59, %v14349_v59 }
 0x1b0   : > { %v12877_v0 = vpop.eup %12876  ;;  %11320 = vmatmul.mubr.msk.f32.gmra.mxu0 %vm19600_vm0, %v731_v8 }
 0x1b1   : > { %v14362_v2 = vsub.f32 %v19781_v43, %v1845_v61  ;;  %v14365_v48 = vsub.f32 %v19782_v23, %v1846_v41  ;;  %11322 = vmatprep.mubr.msk.f32.mxu0 %vm19600_vm0, %v732_v62  ;;  %v1937_v25 = vsel %vm19600_vm0, %v1899_v42, 0.0  ;;  %v1940_v20 = vsel %vm19600_vm0, %v1900_v9, 0.0  ;;  %v13388_v62 = vld [vmem:[%s14107_s19 + $0x78] sm:$0xff]  ;;  %v13389_v41 = vld [vmem:[%s14107_s19 + $0x80] sm:$0xff] }
 0x1b2   : > { %1938 = vadd.xlane.f32.xlu1 %v1937_v25  ;;  %v1783_v16 = vpop.xlane.xlu1 %1782  ;;  %1941 = vadd.xlane.f32.xlu0 %v1940_v20  ;;  %v1786_v51 = vpop.xlane.xlu0 %1785  ;;  %v733_v7 = vmul.f32 %v12877_v0, %v19783_v24  ;;  %v347_v25 = vld [vmem:[%s19405_s4 + $0x50] sm:$0xff] }
 0x1b3   : > { %v1847_v15 = vmul.f32 0.03125, %v1783_v16  ;;  %v1848_v26 = vmul.f32 0.03125, %v1786_v51  ;;  %v1901_v28 = vmul.f32 %v14362_v2, %v14362_v2  ;;  %v1902_v44 = vmul.f32 %v14365_v48, %v14365_v48  ;;  %11398 = vmatprep.subr.mxu0 %v347_v25 }
 0x1b4   : > { %11323 = vmatmul.mubr.msk.f32.gmra.mxu0 %vm19600_vm0, %v733_v7  ;;  %v346_v7 = vld [vmem:[%s19405_s4 + $0x48] sm:$0xff] }
 0x1b5   : > { %v14377_v55 = vsub.f32 %v13382_v13, %v1847_v15  ;;  %v14380_v22 = vsub.f32 %v13383_v45, %v1848_v26  ;;  %v1943_v37 = vsel %vm19600_vm0, %v1901_v28, 0.0  ;;  %v1946_v18 = vsel %vm19600_vm0, %v1902_v44, 0.0  ;;  %11399 = vmatpush3.msra.mxu0 %v347_v25  ;;  %v13390_v15 = vld [vmem:[%s14107_s19 + $0x88] sm:$0xff]  ;;  %v13391_v28 = vld [vmem:[%s14107_s19 + $0x90] sm:$0xff] }
 0x1b6   : > { %1944 = vadd.xlane.f32.xlu1 %v1943_v37  ;;  %v1789_v11 = vpop.xlane.xlu1 %1788  ;;  %1947 = vadd.xlane.f32.xlu0 %v1946_v18  ;;  %v1792_v58 = vpop.xlane.xlu0 %1791 }
 0x1b7   : > { %v1849_v36 = vmul.f32 0.03125, %v1789_v11  ;;  %v1850_v63 = vmul.f32 0.03125, %v1792_v58  ;;  %v1903_v30 = vmul.f32 %v14377_v55, %v14377_v55  ;;  %v1904_v10 = vmul.f32 %v14380_v22, %v14380_v22  ;;  %11400 = vmatprep.subr.mxu0 %v346_v7  ;;  %v345_v11 = vld [vmem:[%s19405_s4 + $0x40] sm:$0xff] }
 0x1b8   : > { %11401 = vmatpush3.msra.mxu0 %v346_v7 }
 0x1b9   : > { %v14390_v29 = vsub.f32 %v13384_v50, %v1849_v36  ;;  %v14393_v17 = vsub.f32 %v13385_v19, %v1850_v63  ;;  %v1949_v52 = vsel %vm19600_vm0, %v1903_v30, 0.0  ;;  %v1952_v3 = vsel %vm19600_vm0, %v1904_v10, 0.0  ;;  %11402 = vmatprep.subr.mxu0 %v345_v11  ;;  %v13392_v10 = vld [vmem:[%s14107_s19 + $0x98] sm:$0xff]  ;;  %v13393_v19 = vld [vmem:[%s14107_s19 + $0xa0] sm:$0xff] }
 0x1ba   : > { %1950 = vadd.xlane.f32.xlu1 %v1949_v52  ;;  %v1795_v46 = vpop.xlane.xlu1 %1794  ;;  %1953 = vadd.xlane.f32.xlu0 %v1952_v3  ;;  %v1798_v31 = vpop.xlane.xlu0 %1797 }
 0x1bb   : > { %v1851_v38 = vmul.f32 0.03125, %v1795_v46  ;;  %v1852_v6 = vmul.f32 0.03125, %v1798_v31  ;;  %v1905_v12 = vmul.f32 %v14390_v29, %v14390_v29  ;;  %v1906_v53 = vmul.f32 %v14393_v17, %v14393_v17  ;;  %11403 = vmatpush3.msra.mxu0 %v345_v11 }
 0x1bc   : > { %11516 = vmatprep.subr.mxu0 %v19434_v34 }
 0x1bd   : > { %v14402_v32 = vsub.f32 %v13386_v27, %v1851_v38  ;;  %v14405_v33 = vsub.f32 %v13387_v56, %v1852_v6  ;;  %v1955_v54 = vsel %vm19600_vm0, %v1905_v12, 0.0  ;;  %v1958_v57 = vsel %vm19600_vm0, %v1906_v53, 0.0  ;;  %v13394_v56 = vld [vmem:[%s14107_s19 + $0xa8] sm:$0xff] }
 0x1be   : > { %1956 = vadd.xlane.f32.xlu1 %v1955_v54  ;;  %v1801_v21 = vpop.xlane.xlu1 %1800  ;;  %1959 = vadd.xlane.f32.xlu0 %v1958_v57  ;;  %v1804_v39 = vpop.xlane.xlu0 %1803  ;;  %v13395_v57 = vld [vmem:[%s14107_s19 + $0xb0] sm:$0xff] }
 0x1bf   : > { %v1853_v35 = vmul.f32 0.03125, %v1801_v21  ;;  %v1854_v1 = vmul.f32 0.03125, %v1804_v39  ;;  %v1907_v8 = vmul.f32 %v14402_v32, %v14402_v32  ;;  %v1908_v60 = vmul.f32 %v14405_v33, %v14405_v33 }
 0x1c1   : > { %v14414_v61 = vsub.f32 %v13388_v62, %v1853_v35  ;;  %v14417_v42 = vsub.f32 %v13389_v41, %v1854_v1  ;;  %v1961_v9 = vsel %vm19600_vm0, %v1907_v8, 0.0  ;;  %v1964_v0 = vsel %vm19600_vm0, %v1908_v60, 0.0 }
 0x1c2   : > { %1962 = vadd.xlane.f32.xlu1 %v1961_v9  ;;  %v1807_v43 = vpop.xlane.xlu1 %1806  ;;  %1965 = vadd.xlane.f32.xlu0 %v1964_v0  ;;  %v1810_v23 = vpop.xlane.xlu0 %1809  ;;  %v13396_v0 = vld [vmem:[%s14107_s19 + $0xb8] sm:$0xff] }
 0x1c3   : > { %v1855_v20 = vmul.f32 0.03125, %v1807_v43  ;;  %v1856_v16 = vmul.f32 0.03125, %v1810_v23  ;;  %v1909_v51 = vmul.f32 %v14414_v61, %v14414_v61  ;;  %v1910_v24 = vmul.f32 %v14417_v42, %v14417_v42  ;;  %v13397_v23 = vld [vmem:[%s14107_s19 + $0xc0] sm:$0xff] }
 0x1c5   : > { %v14432_v26 = vsub.f32 %v13390_v15, %v1855_v20  ;;  %v14435_v44 = vsub.f32 %v13391_v28, %v1856_v16  ;;  %v1967_v13 = vsel %vm19600_vm0, %v1909_v51, 0.0  ;;  %v1970_v45 = vsel %vm19600_vm0, %v1910_v24, 0.0 }
 0x1c6   : > { %1968 = vadd.xlane.f32.xlu1 %v1967_v13  ;;  %v1813_v37 = vpop.xlane.xlu1 %1812  ;;  %1971 = vadd.xlane.f32.xlu0 %v1970_v45  ;;  %v1816_v18 = vpop.xlane.xlu0 %1815  ;;  %v13398_v45 = vld [vmem:[%s14107_s19 + $0xc8] sm:$0xff] }
 0x1c7   : > { %v1857_v58 = vmul.f32 0.03125, %v1813_v37  ;;  %v1858_v36 = vmul.f32 0.03125, %v1816_v18  ;;  %v1911_v63 = vmul.f32 %v14432_v26, %v14432_v26  ;;  %v1912_v30 = vmul.f32 %v14435_v44, %v14435_v44  ;;  %v13399_v18 = vld [vmem:[%s14107_s19 + $0xd0] sm:$0xff] }
 0x1c9   : > { %v14447_v50 = vsub.f32 %v13392_v10, %v1857_v58  ;;  %v14450_v52 = vsub.f32 %v13393_v19, %v1858_v36  ;;  %v1973_v3 = vsel %vm19600_vm0, %v1911_v63, 0.0  ;;  %v1976_v46 = vsel %vm19600_vm0, %v1912_v30, 0.0 }
 0x1ca   : > { %1974 = vadd.xlane.f32.xlu1 %v1973_v3  ;;  %v1819_v31 = vpop.xlane.xlu1 %1818  ;;  %1977 = vadd.xlane.f32.xlu0 %v1976_v46  ;;  %v1822_v38 = vpop.xlane.xlu0 %1821  ;;  %v13400_v3 = vld [vmem:[%s14107_s19 + $0xd8] sm:$0xff] }
 0x1cb   : > { %v1859_v6 = vmul.f32 0.03125, %v1819_v31  ;;  %v1860_v12 = vmul.f32 0.03125, %v1822_v38  ;;  %v1913_v53 = vmul.f32 %v14447_v50, %v14447_v50  ;;  %v1914_v27 = vmul.f32 %v14450_v52, %v14450_v52 }
 0x1cd   : > { %v14460_v54 = vsub.f32 %v13394_v56, %v1859_v6  ;;  %v14463_v21 = vsub.f32 %v13395_v57, %v1860_v12  ;;  %v1979_v39 = vsel %vm19600_vm0, %v1913_v53, 0.0  ;;  %v1982_v35 = vsel %vm19600_vm0, %v1914_v27, 0.0  ;;  %v14511_v57 = vld [vmem:[%s19406_s5] sm:$0xf] }
 0x1ce   : > { %1980 = vadd.xlane.f32.xlu1 %v1979_v39  ;;  %v1825_v1 = vpop.xlane.xlu1 %1824  ;;  %1983 = vadd.xlane.f32.xlu0 %v1982_v35  ;;  %v1828_v8 = vpop.xlane.xlu0 %1827  ;;  %v748_v53 = vlaneseq  ;;  %19786 = vst [vmem:[#allocation9_spill] sm:$0xff] %v14511_v57 }
 0x1cf   : > { %v1861_v60 = vmul.f32 0.03125, %v1825_v1  ;;  %v1862_v62 = vmul.f32 0.03125, %v1828_v8  ;;  %v1915_v41 = vmul.f32 %v14460_v54, %v14460_v54  ;;  %v1916_v9 = vmul.f32 %v14463_v21, %v14463_v21 }
 0x1d0   : > { %v14505_v27 = vshrl.u32 %v748_v53, 7 }
 0x1d1   : > { %v14474_v43 = vsub.f32 %v13396_v0, %v1861_v60  ;;  %v14477_v25 = vsub.f32 %v13397_v23, %v1862_v62  ;;  %v1985_v20 = vsel %vm19600_vm0, %v1915_v41, 0.0  ;;  %v1988_v16 = vsel %vm19600_vm0, %v1916_v9, 0.0 }
 0x1d2   : > { %1986 = vadd.xlane.f32.xlu1 %v1985_v20  ;;  %v1831_v51 = vpop.xlane.xlu1 %1830  ;;  %1989 = vadd.xlane.f32.xlu0 %v1988_v16  ;;  %v1834_v24 = vpop.xlane.xlu0 %1833  ;;  %19785 = vst [vmem:[#allocation8_spill] sm:$0xff] %v14505_v27  ;;  %v750_v56 = vsub.s32 0, %v14505_v27 }
 0x1d3   : > { %v1863_v7 = vmul.f32 0.03125, %v1831_v51  ;;  %v1864_v15 = vmul.f32 0.03125, %v1834_v24  ;;  %v1917_v28 = vmul.f32 %v14474_v43, %v14474_v43  ;;  %v1918_v13 = vmul.f32 %v14477_v25, %v14477_v25 }
 0x1d4   : > { %v14514_v39 = vrot.slane %v14511_v57, %v750_v56 }
 0x1d5   : > { %v14486_v37 = vsub.f32 %v13398_v45, %v1863_v7  ;;  %v14489_v11 = vsub.f32 %v13399_v18, %v1864_v15  ;;  %v1991_v58 = vsel %vm19600_vm0, %v1917_v28, 0.0  ;;  %v1994_v36 = vsel %vm19600_vm0, %v1918_v13, 0.0 }
 0x1d6   : > { %1992 = vadd.xlane.f32.xlu1 %v1991_v58  ;;  %v1837_v63 = vpop.xlane.xlu1 %1836  ;;  %1995 = vadd.xlane.f32.xlu0 %v1994_v36  ;;  %v1435_v36 = vsub.s32 1, %v14505_v27 }
 0x1d7   : > { %v1865_v30 = vmul.f32 0.03125, %v1837_v63  ;;  %v1919_v10 = vmul.f32 %v14486_v37, %v14486_v37  ;;  %v1920_v19 = vmul.f32 %v14489_v11, %v14489_v11 }
 0x1d9   : > { %v14498_v46 = vsub.f32 %v13400_v3, %v1865_v30  ;;  %v1997_v31 = vsel %vm19600_vm0, %v1919_v10, 0.0  ;;  %v2000_v38 = vsel %vm19600_vm0, %v1920_v19, 0.0  ;;  %v14557_v19 = vrot.slane %v14511_v57, %v1435_v36 }
 0x1da   : > { %1998 = vadd.xlane.f32.xlu1 %v1997_v31  ;;  %2001 = vadd.xlane.f32.xlu0 %v2000_v38  ;;  %v19791_v36 = vmov 0.0  }
 0x1db   : > { %19784 = vst [vmem:[#allocation7_spill] sm:$0xff] %v14498_v46  ;;  %v1921_v6 = vmul.f32 %v14498_v46, %v14498_v46 }
 0x1dd   : > { %v2003_v12 = vsel %vm19600_vm0, %v1921_v6, 0.0 }
 0x1de   : > { %2004 = vadd.xlane.f32.xlu1 %v2003_v12 }
 0x207   : > { %v11327_v35 = vpop.f32.mrf.mxu1 }
 0x208   : > { %v14517_v1 = vadd.f32 %v11327_v35, %v14514_v39 }
 0x209   : > { %v14519_v8 = vpop.f32.mrf.mxu1 }
 0x20a   : > { %19787 = vst [vmem:[#allocation14_spill] sm:$0xff] %v14517_v1  ;;  %4283 = vrot.lane.b32.xlu1 %v14517_v1, %s13412_s16 }
 0x20b   : > { %v14523_v60 = vpop.f32.mrf.mxu1 }
 0x20d   : > { %v14525_v62 = vpop.f32.mrf.mxu1 }
 0x20f   : > { %v14527_v41 = vpop.f32.mrf.mxu1 }
 0x211   : > { %v14529_v9 = vpop.f32.mrf.mxu1 }
 0x213   : > { %v14531_v0 = vpop.f32.mrf.mxu1 }
 0x215   : > { %v14533_v23 = vpop.f32.mrf.mxu1 }
 0x217   : > { %v14535_v20 = vpop.f32.mrf.mxu1 }
 0x219   : > { %v14537_v16 = vpop.f32.mrf.mxu1 }
 0x21b   : > { %v14539_v51 = vpop.f32.mrf.mxu1 }
 0x21d   : > { %v14541_v24 = vpop.f32.mrf.mxu1 }
 0x21f   : > { %v14543_v7 = vpop.f32.mrf.mxu1 }
 0x220   : > { %19788 = vst [vmem:[#allocation10_spill] sm:$0xff] %v14543_v7 }
 0x221   : > { %v14545_v15 = vpop.f32.mrf.mxu1 }
 0x222   : > { %19789 = vst [vmem:[#allocation11_spill] sm:$0xff] %v14545_v15 }
 0x223   : > { %v14547_v28 = vpop.f32.mrf.mxu1 }
 0x225   : > { %v14549_v13 = vpop.f32.mrf.mxu1 }
 0x227   : > { %v11359_v45 = vpop.f32.mrf.mxu1 }
 0x229   : > { %v14551_v18 = vpop.f32.mrf.mxu1 }
 0x22b   : > { %v11362_v58 = vpop.f32.mrf.mxu1 }
 0x22d   : > { %v1607_v63 = vpop.f32.mrf.mxu1 }
 0x22f   : > { %v14554_v30 = vpop.f32.mrf.mxu1  ;;  %v1924_v10 = vpop.xlane.xlu0 %1923 }
 0x230   : > { %v2006_v3 = vmul.f32 0.03125, %v1924_v10  ;;  %v14570_v10 = vadd.f32 %v11362_v58, %v14557_v19 }
 0x231   : > { %v1617_v31 = vpop.f32.mrf.mxu1 }
 0x232   : > { %v2034_v38 = vadd.f32 1e-05, %v2006_v3  ;;  %v14560_v6 = vadd.f32 %v1617_v31, %v14557_v19  ;;  %19792 = vst [vmem:[#allocation16_spill] sm:$0xff] %v14570_v10 }
 0x233   : > { %v1927_v12 = vpop.xlane.xlu1 %1926  ;;  %v14562_v53 = vpop.f32.mrf.mxu1 }
 0x234   : > { %19790 = vst [vmem:[#allocation15_spill] sm:$0xff] %v14560_v6  ;;  %12878 = vrsqrt.f32 %v2034_v38  ;;  %v2007_v56 = vmul.f32 0.03125, %v1927_v12  ;;  %v1930_v35 = vpop.xlane.xlu0 %1929  ;;  %11447 = vmatpush3.xpose.msk.msra.mxu1 %vm19603_vm2, %v14560_v6 }
 0x235   : > { %v2008_v34 = vmul.f32 0.03125, %v1930_v35  ;;  %v14566_v27 = vpop.f32.mrf.mxu1  ;;  %11448 = vmatprep.subr.mxu1 %v19791_v36  ;;  %v14578_v35 = vadd.f32 %v1607_v63, %v14557_v19 }
 0x236   : > { %v2035_v3 = vadd.f32 1e-05, %v2007_v56 }
 0x237   : > { %v2036_v31 = vadd.f32 1e-05, %v2008_v34  ;;  %v1933_v57 = vpop.xlane.xlu1 %1932  ;;  %v14574_v38 = vpop.f32.mrf.mxu1  ;;  %19793 = vst [vmem:[#allocation12_spill] sm:$0xff] %v14578_v35 }
 0x238   : > { %12880 = vrsqrt.f32 %v2035_v3  ;;  %v2009_v1 = vmul.f32 0.03125, %v1933_v57  ;;  %v1936_v7 = vpop.xlane.xlu0 %1935  ;;  %11449 = vmatpush3.xpose.msk.msra.mxu1 %vm19603_vm2, %v14570_v10 }
 0x239   : > { %12882 = vrsqrt.f32 %v2036_v31  ;;  %v2010_v12 = vmul.f32 0.03125, %v1936_v7  ;;  %11450 = vmatprep.subr.mxu1 %v19791_v36  ;;  %v14582_v31 = vpop.f32.mrf.mxu1 }
 0x23a   : > { %v2037_v58 = vadd.f32 1e-05, %v2009_v1  ;;  %v14589_v1 = vadd.f32 %v11359_v45, %v14557_v19 }
 0x23b   : > { %v2038_v6 = vadd.f32 1e-05, %v2010_v12  ;;  %v1939_v56 = vpop.xlane.xlu1 %1938 }
 0x23c   : > { %12884 = vrsqrt.f32 %v2037_v58  ;;  %v2011_v34 = vmul.f32 0.03125, %v1939_v56  ;;  %v11306_v3 = vpop.f32.mrf.mxu0  ;;  %v1942_v57 = vpop.xlane.xlu0 %1941  ;;  %11451 = vmatpush3.xpose.msk.msra.mxu1 %vm19603_vm2, %v14578_v35  ;;  %19795 = vst [vmem:[#allocation17_spill] sm:$0xff] %v14589_v1 }
 0x23d   : > { %12886 = vrsqrt.f32 %v2038_v6  ;;  %v14585_v7 = vadd.f32 %v11306_v3, %v14514_v39  ;;  %v2012_v10 = vmul.f32 0.03125, %v1942_v57  ;;  %11452 = vmatprep.subr.mxu1 %v19791_v36 }
 0x23e   : > { %v2039_v63 = vadd.f32 1e-05, %v2011_v34  ;;  %v902_v12 = vpop.f32.mrf.mxu0  ;;  %v14602_v34 = vadd.f32 %v14519_v8, %v14514_v39  ;;  %v14616_v8 = vadd.f32 %v14523_v60, %v14514_v39 }
 0x23f   : > { %19794 = vst [vmem:[#allocation2_spill] sm:$0xff] %v14585_v7  ;;  %v2040_v58 = vadd.f32 1e-05, %v2012_v10  ;;  %v14592_v56 = vadd.f32 %v902_v12, %v14514_v39  ;;  %3971 = vrot.lane.b32.xlu0 %v14585_v7, %s13412_s16  ;;  %v1945_v6 = vpop.xlane.xlu1 %1944  ;;  %v14596_v35 = vpop.f32.mrf.mxu1 }
 0x240   : > { %12888 = vrsqrt.f32 %v2039_v63  ;;  %v2013_v3 = vmul.f32 0.03125, %v1945_v6  ;;  %v1948_v57 = vpop.xlane.xlu0 %1947  ;;  %11453 = vmatpush3.xpose.msk.msra.mxu1 %vm19603_vm2, %v14589_v1  ;;  %19797 = vst [vmem:[#allocation3_spill] sm:$0xff] %v14602_v34  ;;  %v14611_v63 = vadd.f32 %v14551_v18, %v14557_v19  ;;  %19799 = vst [vmem:[#allocation19_spill] sm:$0xff] %v14616_v8 }
 0x241   : > { %19796 = vst [vmem:[#allocation18_spill] sm:$0xff] %v14592_v56  ;;  %v12879_v45 = vpop.eup %12878  ;;  %12890 = vrsqrt.f32 %v2040_v58  ;;  %v2014_v10 = vmul.f32 0.03125, %v1948_v57  ;;  %3969 = vrot.lane.b32.xlu1 %v14592_v56, %s13412_s16  ;;  %v14606_v12 = vpop.f32.mrf.mxu1  ;;  %11454 = vmatprep.subr.mxu1 %v19791_v36 }
 0x242   : > { %19798 = vst [vmem:[#allocation4_spill] sm:$0xff] %v14611_v63  ;;  %v2041_v6 = vadd.f32 1e-05, %v2013_v3  ;;  %v2090_v1 = vmul.f32 %v12879_v45, %v14304_v14  ;;  %v14630_v45 = vadd.f32 %v14547_v28, %v14557_v19 }
 0x243   : > { %v2042_v58 = vadd.f32 1e-05, %v2014_v10  ;;  %4281 = vrot.lane.b32.xlu0 %v14602_v34, %s13412_s16  ;;  %v1951_v57 = vpop.xlane.xlu1 %1950  ;;  %v14623_v14 = vpop.f32.mrf.mxu1 }
 0x244   : > { %12892 = vrsqrt.f32 %v2041_v6  ;;  %v2015_v15 = vmul.f32 0.03125, %v1951_v57  ;;  %v1954_v46 = vpop.xlane.xlu0 %1953  ;;  %11455 = vmatpush3.xpose.msk.msra.mxu1 %vm19603_vm2, %v14611_v63  ;;  %11404 = vmatprep.mubr.msk.f32.mxu0 %vm19600_vm0, %v2090_v1  ;;  %19800 = vst [vmem:[#allocation20_spill] sm:$0xff] %v14630_v45 }
 0x245   : > { %v12881_v18 = vpop.eup %12880  ;;  %12894 = vrsqrt.f32 %v2042_v58  ;;  %v2016_v3 = vmul.f32 0.03125, %v1954_v46  ;;  %4287 = vrot.lane.b32.xlu1 %v14616_v8, %s13412_s16  ;;  %11456 = vmatprep.subr.mxu1 %v19791_v36  ;;  %v14637_v28 = vpop.f32.mrf.mxu1 }
 0x246   : > { %v12883_v60 = vpop.eup %12882  ;;  %v2091_v10 = vmul.f32 %v12881_v18, %v14313_v47  ;;  %v2043_v6 = vadd.f32 1e-05, %v2015_v15  ;;  %v14646_v18 = vadd.f32 %v14549_v13, %v14557_v19 }
 0x247   : > { %v2044_v57 = vadd.f32 1e-05, %v2016_v3  ;;  %v1957_v1 = vpop.xlane.xlu1 %1956  ;;  %v2092_v58 = vmul.f32 %v12883_v60, %v14316_v4 }
 0x248   : > { %12896 = vrsqrt.f32 %v2043_v6  ;;  %v2017_v63 = vmul.f32 0.03125, %v1957_v1  ;;  %v11309_v46 = vpop.f32.mrf.mxu0  ;;  %v1960_v34 = vpop.xlane.xlu0 %1959  ;;  %11405 = vmatmul.mubr.msk.f32.vlgmr.msra.gmra.mxu0 %vm19600_vm0, %v2091_v10  ;;  %11457 = vmatpush3.xpose.msk.msra.mxu1 %vm19603_vm2, %v14630_v45  ;;  %19802 = vst [vmem:[#allocation6_spill] sm:$0xff] %v14646_v18 }
 0x249   : > { %v12885_v8 = vpop.eup %12884  ;;  %12898 = vrsqrt.f32 %v2044_v57  ;;  %v14640_v47 = vadd.f32 %v11309_v46, %v14514_v39  ;;  %v2018_v15 = vmul.f32 0.03125, %v1960_v34  ;;  %11407 = vmatprep.mubr.msk.f32.mxu0 %vm19600_vm0, %v2092_v58  ;;  %11458 = vmatprep.subr.mxu1 %v19791_v36 }
 0x24a   : > { %v12887_v4 = vpop.eup %12886  ;;  %v2045_v3 = vadd.f32 1e-05, %v2017_v63  ;;  %v912_v60 = vpop.f32.mrf.mxu0  ;;  %v2093_v10 = vmul.f32 %v12885_v8, %v14328_v5  ;;  %v14662_v63 = vadd.f32 %v14525_v62, %v14514_v39 }
 0x24b   : > { %19801 = vst [vmem:[#allocation5_spill] sm:$0xff] %v14640_v47  ;;  %v2046_v6 = vadd.f32 1e-05, %v2018_v15  ;;  %v14650_v57 = vadd.f32 %v912_v60, %v14514_v39  ;;  %3975 = vrot.lane.b32.xlu0 %v14640_v47, %s13412_s16  ;;  %v1963_v34 = vpop.xlane.xlu1 %1962  ;;  %v14654_v1 = vpop.f32.mrf.mxu1  ;;  %v2094_v58 = vmul.f32 %v12887_v4, %v14331_v49  ;;  %v14671_v4 = vadd.f32 %v14596_v35, %v14557_v19 }
 0x24c   : > { %12900 = vrsqrt.f32 %v2045_v3  ;;  %v2019_v46 = vmul.f32 0.03125, %v1963_v34  ;;  %v1966_v13 = vpop.xlane.xlu0 %1965  ;;  %11459 = vmatpush3.xpose.msk.msra.mxu1 %vm19603_vm2, %v14646_v18  ;;  %11408 = vmatmul.mubr.msk.f32.gmra.mxu0 %vm19600_vm0, %v2093_v10  ;;  %19804 = vst [vmem:[#allocation22_spill] sm:$0xff] %v14662_v63  ;;  %v14677_v60 = vadd.f32 %v14527_v41, %v14514_v39 }
 0x24d   : > { %19803 = vst [vmem:[#allocation21_spill] sm:$0xff] %v14650_v57  ;;  %v12889_v5 = vpop.eup %12888  ;;  %12902 = vrsqrt.f32 %v2046_v6  ;;  %v2020_v8 = vmul.f32 0.03125, %v1966_v13  ;;  %3973 = vrot.lane.b32.xlu1 %v14650_v57, %s13412_s16  ;;  %v14666_v15 = vpop.f32.mrf.mxu1  ;;  %11410 = vmatprep.mubr.msk.f32.mxu0 %vm19600_vm0, %v2094_v58  ;;  %19805 = vst [vmem:[#allocation13_spill] sm:$0xff] %v14671_v4 }
 0x24e   : > { %v12891_v49 = vpop.eup %12890  ;;  %v2047_v3 = vadd.f32 1e-05, %v2019_v46  ;;  %11481 = vmatprep.subr.mxu1 %v19791_v36  ;;  %v2095_v62 = vmul.f32 %v12889_v5, %v14346_v40  ;;  %19806 = vst [vmem:[#allocation23_spill] sm:$0xff] %v14677_v60 }
 0x24f   : > { %v2048_v10 = vadd.f32 1e-05, %v2020_v8  ;;  %4285 = vrot.lane.b32.xlu0 %v14662_v63, %s13412_s16  ;;  %v1969_v6 = vpop.xlane.xlu1 %1968  ;;  %11461 = vmatmul.mubr.msk.f32.vlgmr.msra.gmra.mxu1 %vm19603_vm2, %v14592_v56  ;;  %v2096_v35 = vmul.f32 %v12891_v49, %v14349_v59  ;;  %v14687_v41 = vpop.f32.mrf.mxu1  ;;  %v14694_v59 = vadd.f32 %v14606_v12, %v14557_v19  ;;  %v14702_v49 = vadd.f32 %v14529_v9, %v14514_v39 }
 0x250   : > { %12904 = vrsqrt.f32 %v2047_v3  ;;  %v2021_v34 = vmul.f32 0.03125, %v1969_v6  ;;  %v1972_v58 = vpop.xlane.xlu0 %1971  ;;  %11411 = vmatmul.mubr.msk.f32.gmra.mxu0 %vm19600_vm0, %v2095_v62  ;;  %11482 = vmatpush3.xpose.msk.msra.mxu1 %vm19603_vm2, %v14671_v4 }
 0x251   : > { %v12893_v40 = vpop.eup %12892  ;;  %12906 = vrsqrt.f32 %v2048_v10  ;;  %v2022_v46 = vmul.f32 0.03125, %v1972_v58  ;;  %4291 = vrot.lane.b32.xlu1 %v14677_v60, %s13412_s16  ;;  %11413 = vmatprep.mubr.msk.f32.mxu0 %vm19600_vm0, %v2096_v35  ;;  %19807 = vst [vmem:[#allocation24_spill] sm:$0xff] %v14694_v59  ;;  %19808 = vst [vmem:[#allocation25_spill] sm:$0xff] %v14702_v49  ;;  %v14710_v9 = vpop.f32.mrf.mxu1 }
 0x252   : > { %v12895_v13 = vpop.eup %12894  ;;  %v2049_v5 = vadd.f32 1e-05, %v2021_v34  ;;  %11463 = vmatprep.mubr.msk.f32.mxu1 %vm19606_vm1, %v19791_v36  ;;  %11483 = vmatprep.subr.mxu1 %v19791_v36  ;;  %v2097_v8 = vmul.f32 %v12893_v40, %v14362_v2  ;;  %v14720_v40 = vadd.f32 %v14574_v38, %v14557_v19 }
 0x253   : > { %v2050_v3 = vadd.f32 1e-05, %v2022_v46  ;;  %v1975_v62 = vpop.xlane.xlu1 %1974  ;;  %11464 = vmatmul.mubr.msk.f32.gmra.mxu1 %vm19603_vm2, %v14585_v7  ;;  %v2098_v12 = vmul.f32 %v12895_v13, %v14365_v48 }
 0x254   : > { %12908 = vrsqrt.f32 %v2049_v5  ;;  %v2023_v10 = vmul.f32 0.03125, %v1975_v62  ;;  %v11312_v6 = vpop.f32.mrf.mxu0  ;;  %v1978_v35 = vpop.xlane.xlu0 %1977  ;;  %11414 = vmatmul.mubr.msk.f32.gmra.mxu0 %vm19600_vm0, %v2097_v8  ;;  %11484 = vmatpush3.xpose.msk.msra.mxu1 %vm19603_vm2, %v14694_v59  ;;  %19810 = vst [vmem:[#allocation27_spill] sm:$0xff] %v14720_v40 }
 0x255   : > { %v12897_v2 = vpop.eup %12896  ;;  %12910 = vrsqrt.f32 %v2050_v3  ;;  %v14713_v34 = vadd.f32 %v11312_v6, %v14514_v39  ;;  %v2024_v58 = vmul.f32 0.03125, %v1978_v35  ;;  %4289 = vrot.lane.b32.xlu1 %v14702_v49, %s13412_s16  ;;  %11416 = vmatprep.mubr.msk.f32.mxu0 %vm19600_vm0, %v2098_v12 }
 0x256   : > { %v12899_v48 = vpop.eup %12898  ;;  %v2051_v46 = vadd.f32 1e-05, %v2023_v10  ;;  %v922_v13 = vpop.f32.mrf.mxu0  ;;  %11466 = vmatprep.mubr.msk.f32.mxu1 %vm19606_vm1, %v19791_v36  ;;  %11485 = vmatprep.subr.mxu1 %v19791_v36  ;;  %v2099_v5 = vmul.f32 %v12897_v2, %v14377_v55 }
 0x257   : > { %19809 = vst [vmem:[#allocation26_spill] sm:$0xff] %v14713_v34  ;;  %v2052_v8 = vadd.f32 1e-05, %v2024_v58  ;;  %3979 = vrot.lane.b32.xlu0 %v14713_v34, %s13412_s16  ;;  %v1981_v3 = vpop.xlane.xlu1 %1980  ;;  %v14728_v62 = vpop.f32.mrf.mxu1  ;;  %11467 = vmatmul.mubr.msk.f32.gmra.mxu1 %vm19603_vm2, %v14650_v57  ;;  %v2100_v38 = vmul.f32 %v12899_v48, %v14380_v22  ;;  %v14737_v6 = vadd.f32 %v922_v13, %v14514_v39 }
 0x258   : > { %12912 = vrsqrt.f32 %v2051_v46  ;;  %v2025_v12 = vmul.f32 0.03125, %v1981_v3  ;;  %v1984_v10 = vpop.xlane.xlu0 %1983  ;;  %11417 = vmatmul.mubr.msk.f32.gmra.mxu0 %vm19600_vm0, %v2099_v5  ;;  %11486 = vmatpush3.xpose.msk.msra.mxu1 %vm19603_vm2, %v14720_v40  ;;  %v14744_v58 = vadd.f32 %v14582_v31, %v14557_v19 }
 0x259   : > { %v12901_v55 = vpop.eup %12900  ;;  %12914 = vrsqrt.f32 %v2052_v8  ;;  %19811 = vst [vmem:[#allocation28_spill] sm:$0xff] %v14737_v6  ;;  %v2026_v35 = vmul.f32 0.03125, %v1984_v10  ;;  %v1687_v2 = vpop.f32.mrf.mxu1  ;;  %11419 = vmatprep.mubr.msk.f32.mxu0 %vm19600_vm0, %v2100_v38  ;;  %11469 = vmatprep.mubr.msk.f32.mxu1 %vm19606_vm1, %v19791_v36 }
 0x25a   : > { %v12903_v22 = vpop.eup %12902  ;;  %19812 = vst [vmem:[#allocation29_spill] sm:$0xff] %v14744_v58  ;;  %v2053_v48 = vadd.f32 1e-05, %v2025_v12  ;;  %v14747_v46 = vadd.f32 %v1687_v2, %v14557_v19  ;;  %11487 = vmatprep.subr.mxu1 %v19791_v36  ;;  %v2101_v13 = vmul.f32 %v12901_v55, %v14390_v29  ;;  %v14761_v29 = vadd.f32 %v14531_v0, %v14514_v39 }
 0x25b   : > { %v2054_v5 = vadd.f32 1e-05, %v2026_v35  ;;  %3977 = vrot.lane.b32.xlu0 %v14737_v6, %s13412_s16  ;;  %v1987_v8 = vpop.xlane.xlu1 %1986  ;;  %11470 = vmatmul.mubr.msk.f32.gmra.mxu1 %vm19603_vm2, %v14640_v47  ;;  %v2102_v3 = vmul.f32 %v12903_v22, %v14393_v17  ;;  %v14774_v0 = vadd.f32 %v14562_v53, %v14557_v19  ;;  %v14778_v22 = vadd.f32 %v14687_v41, %v14557_v19 }
 0x25c   : > { %19813 = vst [vmem:[#allocation30_spill] sm:$0xff] %v14747_v46  ;;  %12916 = vrsqrt.f32 %v2053_v48  ;;  %v2027_v31 = vmul.f32 0.03125, %v1987_v8  ;;  %v1990_v38 = vpop.xlane.xlu0 %1989  ;;  %11420 = vmatmul.mubr.msk.f32.gmra.mxu0 %vm19600_vm0, %v2101_v13  ;;  %11488 = vmatpush3.xpose.msk.msra.mxu1 %vm19603_vm2, %v14744_v58  ;;  %19814 = vst [vmem:[#allocation31_spill] sm:$0xff] %v14761_v29  ;;  %v14763_v10 = vpop.f32.mrf.mxu1 }
 0x25d   : > { %v12905_v12 = vpop.eup %12904  ;;  %12918 = vrsqrt.f32 %v2054_v5  ;;  %v2028_v55 = vmul.f32 0.03125, %v1990_v38  ;;  %11517 = vmatpush3.xpose.msk.msra.mxu0 %vm19603_vm2, %v14747_v46  ;;  %11422 = vmatprep.mubr.msk.f32.mxu0 %vm19600_vm0, %v2102_v3  ;;  %19815 = vst [vmem:[#allocation32_spill] sm:$0xff] %v14774_v0  ;;  %19816 = vst [vmem:[#allocation33_spill] sm:$0xff] %v14778_v22 }
 0x25e   : > { %v12907_v17 = vpop.eup %12906  ;;  %v2055_v35 = vadd.f32 1e-05, %v2027_v31  ;;  %11472 = vmatprep.mubr.msk.f32.mxu1 %vm19606_vm1, %v19791_v36  ;;  %11489 = vmatprep.subr.mxu1 %v19791_v36  ;;  %v2103_v2 = vmul.f32 %v12905_v12, %v14402_v32  ;;  %v14790_v31 = vpop.f32.mrf.mxu1 }
 0x25f   : > { %v2056_v48 = vadd.f32 1e-05, %v2028_v55  ;;  %4437 = vrot.lane.b32.xlu0 %v14761_v29, %s13412_s16  ;;  %v1993_v13 = vpop.xlane.xlu1 %1992  ;;  %v11315_v5 = vpop.f32.mrf.mxu0  ;;  %11473 = vmatmul.mubr.msk.f32.gmra.mxu1 %vm19603_vm2, %v14737_v6  ;;  %v2104_v8 = vmul.f32 %v12907_v17, %v14405_v33 }
 0x260   : > { %12920 = vrsqrt.f32 %v2055_v35  ;;  %v2029_v32 = vmul.f32 0.03125, %v1993_v13  ;;  %v14786_v53 = vadd.f32 %v11315_v5, %v14514_v39  ;;  %11518 = vmatprep.subr.mxu0 %v19791_v36  ;;  %v1996_v41 = vpop.xlane.xlu0 %1995  ;;  %11423 = vmatmul.mubr.msk.f32.gmra.mxu0 %vm19600_vm0, %v2103_v2  ;;  %v14805_v2 = vadd.f32 %v14566_v27, %v14557_v19 }
 0x261   : > { %v12909_v3 = vpop.eup %12908  ;;  %12922 = vrsqrt.f32 %v2056_v48  ;;  %v2030_v38 = vmul.f32 0.03125, %v1996_v41  ;;  %11490 = vmatpush3.xpose.msk.msra.mxu1 %vm19603_vm2, %v14774_v0  ;;  %11519 = vmatpush3.xpose.msk.msra.mxu0 %vm19603_vm2, %v14778_v22  ;;  %v932_v33 = vpop.f32.mrf.mxu0 }
 0x262   : > { %19817 = vst [vmem:[#allocation34_spill] sm:$0xff] %v14786_v53  ;;  %v12911_v12 = vpop.eup %12910  ;;  %v2057_v55 = vadd.f32 1e-05, %v2029_v32  ;;  %v14797_v17 = vadd.f32 %v932_v33, %v14514_v39  ;;  %11425 = vmatprep.mubr.msk.f32.mxu0 %vm19600_vm0, %v2104_v8  ;;  %4125 = vrot.lane.b32.xlu1 %v14786_v53, %s13412_s16  ;;  %v2105_v35 = vmul.f32 %v12909_v3, %v14414_v61  ;;  %19819 = vst [vmem:[#allocation36_spill] sm:$0xff] %v14805_v2 }
 0x263   : > { %v2058_v48 = vadd.f32 1e-05, %v2030_v38  ;;  %11475 = vmatprep.mubr.msk.f32.mxu1 %vm19606_vm1, %v19791_v36  ;;  %v1999_v13 = vpop.xlane.xlu1 %1998  ;;  %v14809_v5 = vpop.f32.mrf.mxu1  ;;  %11491 = vmatprep.subr.mxu1 %v19791_v36  ;;  %v2106_v8 = vmul.f32 %v12911_v12, %v14417_v42  ;;  %v14815_v32 = vadd.f32 %v14533_v23, %v14514_v39  ;;  %v14822_v3 = vadd.f32 %v14710_v9, %v14557_v19 }
 0x264   : > { %19818 = vst [vmem:[#allocation35_spill] sm:$0xff] %v14797_v17  ;;  %12924 = vrsqrt.f32 %v2057_v55  ;;  %v2031_v61 = vmul.f32 0.03125, %v1999_v13  ;;  %11476 = vmatmul.mubr.msk.f32.gmra.mxu1 %vm19603_vm2, %v14713_v34  ;;  %11520 = vmatprep.subr.mxu0 %v19791_v36  ;;  %v2002_v27 = vpop.xlane.xlu0 %2001 }
 0x265   : > { %19820 = vst [vmem:[#allocation37_spill] sm:$0xff] %v14815_v32  ;;  %v12913_v41 = vpop.eup %12912  ;;  %19821 = vst [vmem:[#allocation38_spill] sm:$0xff] %v14822_v3  ;;  %v2032_v38 = vmul.f32 0.03125, %v2002_v27  ;;  %11492 = vmatpush3.xpose.msk.msra.mxu1 %vm19603_vm2, %v14805_v2  ;;  %3981 = vrot.lane.b32.xlu0 %v14797_v17, %s13412_s16  ;;  %12926 = vrsqrt.f32 %v2058_v48  ;;  %v14829_v33 = vpop.f32.mrf.mxu1  ;;  %v14839_v48 = vadd.f32 %v14535_v20, %v14514_v39 }
 0x266   : > { %v12915_v42 = vpop.eup %12914  ;;  %v2059_v23 = vadd.f32 1e-05, %v2031_v61  ;;  %11426 = vmatmul.mubr.msk.f32.gmra.mxu0 %vm19600_vm0, %v2105_v35  ;;  %4293 = vrot.lane.b32.xlu1 %v14815_v32, %s13412_s16  ;;  %v2107_v55 = vmul.f32 %v12913_v41, %v14432_v26  ;;  %v14843_v35 = vadd.f32 %v14554_v30, %v14557_v19  ;;  %v14854_v20 = vadd.f32 %v14654_v1, %v14557_v19 }
 0x267   : > { %v2060_v12 = vadd.f32 1e-05, %v2032_v38  ;;  %11521 = vmatpush3.xpose.msk.msra.mxu0 %vm19603_vm2, %v14822_v3  ;;  %11428 = vmatprep.mubr.msk.f32.mxu0 %vm19600_vm0, %v2106_v8  ;;  %v2005_v9 = vpop.xlane.xlu1 %2004  ;;  %19822 = vst [vmem:[#allocation39_spill] sm:$0xff] %v14839_v48  ;;  %v2108_v61 = vmul.f32 %v12915_v42, %v14435_v44  ;;  %v14866_v1 = vadd.f32 %v14537_v16, %v14514_v39 }
 0x268   : > { %19823 = vst [vmem:[#allocation40_spill] sm:$0xff] %v14843_v35  ;;  %11478 = vmatprep.mubr.msk.f32.mxu1 %vm19606_vm1, %v19791_v36  ;;  %v2033_v13 = vmul.f32 0.03125, %v2005_v9  ;;  %11493 = vmatprep.subr.mxu1 %v19791_v36  ;;  %12928 = vrsqrt.f32 %v2059_v23  ;;  %19824 = vst [vmem:[#allocation41_spill] sm:$0xff] %v14854_v20  ;;  %v11395_v27 = vpop.f32.mrf.mxu1  ;;  %v14883_v16 = vadd.f32 %v14666_v15, %v14557_v19 }
 0x269   : > { %v12917_v8 = vpop.eup %12916  ;;  %11479 = vmatmul.mubr.msk.f32.gmra.mxu1 %vm19603_vm2, %v14797_v17  ;;  %11522 = vmatprep.subr.mxu0 %v19791_v36  ;;  %12930 = vrsqrt.f32 %v2060_v12  ;;  %19825 = vst [vmem:[#allocation42_spill] sm:$0xff] %v14866_v1  ;;  %v14873_v23 = vadd.f32 %v11395_v27, %v14557_v19 }
 0x26a   : > { %v12919_v26 = vpop.eup %12918  ;;  %v2061_v30 = vadd.f32 1e-05, %v2033_v13  ;;  %11494 = vmatpush3.xpose.msk.msra.mxu1 %vm19603_vm2, %v14843_v35  ;;  %4441 = vrot.lane.b32.xlu0 %v14839_v48, %s13412_s16  ;;  %v2109_v44 = vmul.f32 %v12917_v8, %v14447_v50  ;;  %19828 = vst [vmem:[#allocation45_spill] sm:$0xff] %v14883_v16  ;;  %v1717_v9 = vpop.f32.mrf.mxu1  ;;  %v14900_v8 = vadd.f32 %v14541_v24, %v14514_v39 }
 0x26b   : > { %11429 = vmatmul.mubr.msk.f32.gmra.mxu0 %vm19600_vm0, %v2107_v55  ;;  %11495 = vmatprep.mubr.msk.f32.mxu1 %vm19606_vm1, %v19791_v36  ;;  %v2110_v38 = vmul.f32 %v12919_v26, %v14450_v52  ;;  %19826 = vst [vmem:[#allocation43_spill] sm:$0xff] %v14873_v23  ;;  %v14914_v24 = vadd.f32 %v14623_v14, %v14557_v19 }
 0x26c   : > { %11523 = vmatpush3.xpose.msk.msra.mxu0 %vm19603_vm2, %v14854_v20  ;;  %11431 = vmatprep.mubr.msk.f32.mxu0 %vm19600_vm0, %v2108_v61  ;;  %v11318_v41 = vpop.f32.mrf.mxu0  ;;  %12932 = vrsqrt.f32 %v2061_v30  ;;  %19830 = vst [vmem:[#allocation47_spill] sm:$0xff] %v14900_v8  ;;  %v14908_v30 = vadd.f32 %v1717_v9, %v14557_v19 }
 0x26d   : > { %v12921_v42 = vpop.eup %12920  ;;  %v14876_v12 = vadd.f32 %v11318_v41, %v14514_v39  ;;  %11496 = vmatmul.mubr.msk.f32.vlgmr.msra.gmra.mxu1 %vm19603_vm2, %v14786_v53  ;;  %11524 = vmatprep.subr.mxu0 %v19791_v36  ;;  %19832 = vst [vmem:[#allocation49_spill] sm:$0xff] %v14914_v24 }
 0x26e   : > { %v12923_v50 = vpop.eup %12922  ;;  %11551 = vmatprep.subr.mxu1 %v19791_v36  ;;  %4439 = vrot.lane.b32.xlu0 %v14866_v1, %s13412_s16  ;;  %v942_v52 = vpop.f32.mrf.mxu0  ;;  %v2111_v13 = vmul.f32 %v12921_v42, %v14460_v54  ;;  %19831 = vst [vmem:[#allocation48_spill] sm:$0xff] %v14908_v30 }
 0x26f   : > { %19827 = vst [vmem:[#allocation44_spill] sm:$0xff] %v14876_v12  ;;  %11552 = vmatpush3.xpose.msk.msra.mxu1 %vm19603_vm2, %v14873_v23  ;;  %11432 = vmatmul.mubr.msk.f32.gmra.mxu0 %vm19600_vm0, %v2109_v44  ;;  %v14892_v55 = vadd.f32 %v942_v52, %v14514_v39  ;;  %v2112_v26 = vmul.f32 %v12923_v50, %v14463_v21 }
 0x270   : > { %11525 = vmatpush3.xpose.msk.msra.mxu0 %vm19603_vm2, %v14883_v16  ;;  %11434 = vmatprep.mubr.msk.f32.mxu0 %vm19600_vm0, %v2110_v38  ;;  %v11321_v15 = vpop.f32.mrf.mxu0  ;;  %v14934_v50 = vadd.f32 %v14637_v28, %v14557_v19 }
 0x271   : > { %19829 = vst [vmem:[#allocation46_spill] sm:$0xff] %v14892_v55  ;;  %v12925_v61 = vpop.eup %12924  ;;  %4129 = vrot.lane.b32.xlu1 %v14876_v12, %s13412_s16  ;;  %11498 = vmatprep.mubr.msk.f32.mxu1 %vm19606_vm1, %v19791_v36  ;;  %v14943_v52 = vadd.f32 %v11321_v15, %v14514_v39 }
 0x272   : > { %11526 = vmatprep.subr.mxu0 %v19791_v36  ;;  %11553 = vmatprep.subr.mxu1 %v19791_v36  ;;  %v952_v54 = vpop.f32.mrf.mxu0  ;;  %v12927_v27 = vpop.eup %12926  ;;  %v2113_v44 = vmul.f32 %v12925_v61, %v14474_v43  ;;  %19833 = vst [vmem:[#allocation50_spill] sm:$0xff] %v14934_v50  ;;  %v14938_v43 = vadd.f32 %v14809_v5, %v14557_v19  ;;  %v19841_v61 = vld [vmem:[#allocation11_spill] sm:$0xff] }
 0x273   : > { %11499 = vmatmul.mubr.msk.f32.gmra.mxu1 %vm19603_vm2, %v14892_v55  ;;  %4443 = vrot.lane.b32.xlu0 %v14900_v8, %s13412_s16  ;;  %v2114_v38 = vmul.f32 %v12927_v27, %v14477_v25  ;;  %19835 = vst [vmem:[#allocation52_spill] sm:$0xff] %v14943_v52  ;;  %v14957_v9 = vadd.f32 %v952_v54, %v14514_v39  ;;  %v19846_v27 = vld [vmem:[#allocation3_spill] sm:$0xff] }
 0x274   : > { %11554 = vmatpush3.xpose.msk.msra.mxu1 %vm19603_vm2, %v14908_v30  ;;  %11435 = vmatmul.mubr.msk.f32.gmra.mxu0 %vm19600_vm0, %v2111_v13  ;;  %v11324_v21 = vpop.f32.mrf.mxu0  ;;  %19834 = vst [vmem:[#allocation51_spill] sm:$0xff] %v14938_v43  ;;  %v14965_v13 = vadd.f32 %v14829_v33, %v14557_v19 }
 0x275   : > { %11527 = vmatpush3.xpose.msk.msra.mxu0 %vm19603_vm2, %v14914_v24  ;;  %11437 = vmatprep.mubr.msk.f32.mxu0 %vm19600_vm0, %v2112_v26  ;;  %v12929_v14 = vpop.eup %12928  ;;  %19837 = vst [vmem:[#allocation54_spill] sm:$0xff] %v14957_v9  ;;  %v14984_v26 = vadd.f32 %v19841_v61, %v14514_v39  ;;  %v15015_v54 = vadd.f32 %v11324_v21, %v14514_v39  ;;  %v19848_v21 = vld [vmem:[#allocation10_spill] sm:$0xff] }
 0x276   : > { %4127 = vrot.lane.b32.xlu1 %v14892_v55, %s13412_s16  ;;  %11501 = vmatprep.mubr.msk.f32.mxu1 %vm19606_vm1, %v19791_v36  ;;  %v962_v41 = vpop.f32.mrf.mxu0  ;;  %v12931_v42 = vpop.eup %12930  ;;  %v2115_v28 = vmul.f32 %v12929_v14, %v14486_v37  ;;  %19838 = vst [vmem:[#allocation55_spill] sm:$0xff] %v14965_v13  ;;  %v14972_v37 = vadd.f32 %v14539_v51, %v14514_v39 }
 0x277   : > { %11528 = vmatprep.subr.mxu0 %v19791_v36  ;;  %11555 = vmatprep.subr.mxu1 %v19791_v36  ;;  %v14949_v25 = vadd.f32 %v962_v41, %v14514_v39  ;;  %v2116_v15 = vmul.f32 %v12931_v42, %v14489_v11  ;;  %v19840_v11 = vld [vmem:[#allocation7_spill] sm:$0xff]  ;;  %v14991_v51 = vadd.f32 %v14763_v10, %v14557_v19  ;;  %v19853_v41 = vld [vmem:[#allocation9_spill] sm:$0xff] }
 0x278   : > { %11438 = vmatmul.mubr.msk.f32.gmra.mxu0 %vm19600_vm0, %v2113_v44  ;;  %11502 = vmatmul.mubr.msk.f32.gmra.mxu1 %vm19603_vm2, %v14876_v12  ;;  %19839 = vst [vmem:[#allocation56_spill] sm:$0xff] %v14972_v37  ;;  %19842 = vst [vmem:[#allocation7_spill] sm:$0xff] %v14984_v26  ;;  %v15009_v10 = vadd.f32 %v14790_v31, %v14557_v19  ;;  %v15031_v31 = vadd.f32 %v14728_v62, %v14557_v19  ;;  %v19850_v19 = vld [vmem:[#allocation14_spill] sm:$0xff]  ;;  %v19852_v62 = vld [vmem:[#allocation8_spill] sm:$0xff] }
 0x279   : > { %19836 = vst [vmem:[#allocation53_spill] sm:$0xff] %v14949_v25  ;;  %11529 = vmatpush3.xpose.msk.msra.mxu0 %vm19603_vm2, %v14934_v50  ;;  %11556 = vmatpush3.xpose.msk.msra.mxu1 %vm19603_vm2, %v14938_v43  ;;  %v12933_v5 = vpop.eup %12932  ;;  %19843 = vst [vmem:[#allocation11_spill] sm:$0xff] %v14991_v51  ;;  %v15038_v44 = vadd.f32 %v19848_v21, %v14514_v39  ;;  %v19851_v39 = vld [vmem:[#allocation19_spill] sm:$0xff]  ;;  %v2120_v14 = vsub.s32 2, %v19852_v62 }
 0x27a   : > { %11440 = vmatprep.mubr.msk.f32.mxu0 %vm19600_vm0, %v2114_v38  ;;  %4133 = vrot.lane.b32.xlu1 %v14943_v52, %s13412_s16  ;;  %v2117_v33 = vmul.f32 %v12933_v5, %v19840_v11  ;;  %19844 = vst [vmem:[#allocation57_spill] sm:$0xff] %v15009_v10  ;;  %19845 = vst [vmem:[#allocation58_spill] sm:$0xff] %v15015_v54 }
 0x27b   : > { %11504 = vmatprep.mubr.msk.f32.mxu1 %vm19606_vm1, %v19791_v36  ;;  %11557 = vmatprep.subr.mxu1 %v19791_v36  ;;  %19847 = vst [vmem:[#allocation59_spill] sm:$0xff] %v15031_v31  ;;  %19849 = vst [vmem:[#allocation10_spill] sm:$0xff] %v15038_v44  ;;  %v15106_v38 = vrot.slane %v19853_v41, %v2120_v14 }
 0x27c   : > { %11505 = vmatmul.mubr.msk.f32.gmra.mxu1 %vm19603_vm2, %v14957_v9  ;;  %4135 = vrot.lane.b32.xlu0 %v14949_v25, %s13412_s16 }
 0x27d   : > { %11558 = vmatpush3.xpose.msk.msra.mxu1 %vm19603_vm2, %v14965_v13  ;;  %11441 = vmatmul.mubr.msk.f32.gmra.mxu0 %vm19600_vm0, %v2115_v28 }
 0x27e   : > { %11443 = vmatprep.mubr.msk.f32.mxu0 %vm19600_vm0, %v2116_v15  ;;  %4445 = vrot.lane.b32.xlu1 %v14972_v37, %s13412_s16 }
 0x27f   : > { %11507 = vmatprep.mubr.msk.f32.mxu1 %vm19606_vm1, %v19791_v36  ;;  %11559 = vmatprep.subr.mxu1 %v19791_v36 }
 0x280   : > { %11508 = vmatmul.mubr.msk.f32.gmra.mxu1 %vm19603_vm2, %v14943_v52  ;;  %4447 = vrot.lane.b32.xlu0 %v14984_v26, %s13412_s16 }
 0x281   : > { %11560 = vmatpush3.xpose.msk.msra.mxu1 %vm19603_vm2, %v14991_v51  ;;  %11444 = vmatmul.mubr.msk.f32.gmra.mxu0 %vm19600_vm0, %v2117_v33 }
 0x282   : > { %4131 = vrot.lane.b32.xlu1 %v14957_v9, %s13412_s16  ;;  %11510 = vmatprep.mubr.msk.f32.mxu1 %vm19606_vm1, %v19791_v36 }
 0x283   : > { %11530 = vmatprep.mubr.msk.f32.mxu0 %vm19606_vm1, %v19791_v36  ;;  %11561 = vmatprep.subr.mxu1 %v19791_v36 }
 0x284   : > { %11511 = vmatmul.mubr.msk.f32.gmra.mxu1 %vm19603_vm2, %v14949_v25  ;;  %3985 = vrot.lane.b32.xlu0 %v14630_v45, %s13412_s16 }
 0x285   : > { %11562 = vmatpush3.xpose.msk.msra.mxu1 %vm19603_vm2, %v15009_v10  ;;  %11531 = vmatmul.mubr.msk.f32.vlgmr.msra.gmra.mxu0 %vm19603_vm2, %v19846_v27 }
 0x286   : > { %4137 = vrot.lane.b32.xlu1 %v15015_v54, %s13412_s16  ;;  %11513 = vmatprep.mubr.msk.f32.mxu1 %vm19606_vm1, %v19791_v36 }
 0x287   : > { %11533 = vmatprep.mubr.msk.f32.mxu0 %vm19606_vm1, %v19791_v36  ;;  %11563 = vmatprep.subr.mxu1 %v19791_v36 }
 0x288   : > { %11514 = vmatmul.mubr.msk.f32.gmra.mxu1 %vm19603_vm2, %v15015_v54  ;;  %3983 = vrot.lane.b32.xlu0 %v14646_v18, %s13412_s16 }
 0x289   : > { %11564 = vmatpush3.xpose.msk.msra.mxu1 %vm19603_vm2, %v15031_v31  ;;  %11534 = vmatmul.mubr.msk.f32.gmra.mxu0 %vm19603_vm2, %v19850_v19 }
 0x28a   : > { %4449 = vrot.lane.b32.xlu1 %v15038_v44, %s13412_s16  ;;  %11536 = vmatprep.mubr.msk.f32.mxu0 %vm19606_vm1, %v19791_v36 }
 0x28b   : > { %11565 = vmatprep.mubr.msk.f32.mxu1 %vm19606_vm1, %v19791_v36  ;;  %11586 = vmatprep.subr.mxu0 %v19791_v36 }
 0x28c   : > { %11566 = vmatmul.mubr.msk.f32.vlgmr.msra.gmra.mxu1 %vm19603_vm2, %v14761_v29  ;;  %11621 = vmatprep.subr.mxu1 %v19791_v36 }
 0x28d   : > { %11537 = vmatmul.mubr.msk.f32.gmra.mxu0 %vm19603_vm2, %v14662_v63  ;;  %11568 = vmatprep.mubr.msk.f32.mxu1 %vm19606_vm1, %v19791_v36  ;;  %v19865_v63 = vld [vmem:[#allocation12_spill] sm:$0xff] }
 0x28e   : > { %11539 = vmatprep.mubr.msk.f32.mxu0 %vm19606_vm1, %v19791_v36 }
 0x290   : > { %11569 = vmatmul.mubr.msk.f32.gmra.mxu1 %vm19603_vm2, %v14866_v1 }
 0x291   : > { %11540 = vmatmul.mubr.msk.f32.gmra.mxu0 %vm19603_vm2, %v19851_v39  ;;  %11571 = vmatprep.mubr.msk.f32.mxu1 %vm19606_vm1, %v19791_v36 }
 0x292   : > { %11542 = vmatprep.mubr.msk.f32.mxu0 %vm19606_vm1, %v19791_v36 }
 0x294   : > { %11572 = vmatmul.mubr.msk.f32.gmra.mxu1 %vm19603_vm2, %v14839_v48  ;;  %v19860_v48 = vld [vmem:[#allocation4_spill] sm:$0xff] }
 0x295   : > { %11543 = vmatmul.mubr.msk.f32.gmra.mxu0 %vm19603_vm2, %v14702_v49  ;;  %11574 = vmatprep.mubr.msk.f32.mxu1 %vm19606_vm1, %v19791_v36 }
 0x296   : > { %11545 = vmatprep.mubr.msk.f32.mxu0 %vm19606_vm1, %v19791_v36 }
 0x298   : > { %11575 = vmatmul.mubr.msk.f32.gmra.mxu1 %vm19603_vm2, %v14900_v8 }
 0x299   : > { %11546 = vmatmul.mubr.msk.f32.gmra.mxu0 %vm19603_vm2, %v14677_v60  ;;  %11577 = vmatprep.mubr.msk.f32.mxu1 %vm19606_vm1, %v19791_v36 }
 0x29a   : > { %11548 = vmatprep.mubr.msk.f32.mxu0 %vm19606_vm1, %v19791_v36 }
 0x29c   : > { %11578 = vmatmul.mubr.msk.f32.gmra.mxu1 %vm19603_vm2, %v14972_v37 }
 0x29d   : > { %11549 = vmatmul.mubr.msk.f32.gmra.mxu0 %vm19603_vm2, %v14815_v32  ;;  %11580 = vmatprep.mubr.msk.f32.mxu1 %vm19606_vm1, %v19791_v36 }
 0x29e   : > { %11600 = vmatprep.mubr.msk.f32.mxu0 %vm19606_vm1, %v19791_v36 }
 0x2a0   : > { %11581 = vmatmul.mubr.msk.f32.gmra.mxu1 %vm19603_vm2, %v14984_v26 }
 0x2a1   : > { %11583 = vmatprep.mubr.msk.f32.mxu1 %vm19606_vm1, %v19791_v36 }
 0x2a4   : > { %11584 = vmatmul.mubr.msk.f32.gmra.mxu1 %vm19603_vm2, %v15038_v44 }
 0x2a5   : > { %11635 = vmatprep.mubr.msk.f32.mxu1 %vm19606_vm1, %v19791_v36 }
 0x308   : > { %v11406_v42 = vpop.f32.mrf.mxu0 }
 0x309   : > { %v15109_v28 = vadd.f32 %v11406_v42, %v15106_v38  ;;  %v19857_v42 = vld [vmem:[#allocation17_spill] sm:$0xff] }
 0x30a   : > { %v2272_v5 = vpop.f32.mrf.mxu0 }
 0x30b   : > { %19854 = vst [vmem:[#allocation9_spill] sm:$0xff] %v15109_v28  ;;  %v15112_v15 = vadd.f32 %v2272_v5, %v15106_v38  ;;  %4938 = vrot.lane.b32.xlu1 %v15109_v28, %s13412_s16 }
 0x30c   : > { %v11409_v11 = vpop.f32.mrf.mxu0 }
 0x30d   : > { %19855 = vst [vmem:[#allocation60_spill] sm:$0xff] %v15112_v15  ;;  %v15117_v33 = vadd.f32 %v11409_v11, %v15106_v38  ;;  %4936 = vrot.lane.b32.xlu0 %v15112_v15, %s13412_s16  ;;  %v19858_v11 = vld [vmem:[#allocation16_spill] sm:$0xff] }
 0x30e   : > { %v2282_v61 = vpop.f32.mrf.mxu0 }
 0x30f   : > { %19856 = vst [vmem:[#allocation61_spill] sm:$0xff] %v15117_v33  ;;  %v15121_v21 = vpop.f32.mrf.mxu1  ;;  %4942 = vrot.lane.b32.xlu1 %v15117_v33, %s13412_s16 }
 0x310   : > { %v11412_v14 = vpop.f32.mrf.mxu0 }
 0x311   : > { %v11462_v41 = vpop.f32.mrf.mxu1  ;;  %3989 = vrot.lane.b32.xlu0 %v19857_v42, %s13412_s16  ;;  %v15134_v8 = vadd.f32 %v11412_v14, %v15106_v38 }
 0x312   : > { %v2292_v5 = vpop.f32.mrf.mxu0  ;;  %v15139_v41 = vadd.f32 %v2282_v61, %v15106_v38 }
 0x313   : > { %v15127_v62 = vpop.f32.mrf.mxu1  ;;  %3993 = vrot.lane.b32.xlu1 %v19858_v11, %s13412_s16  ;;  %19859 = vst [vmem:[#allocation62_spill] sm:$0xff] %v15134_v8  ;;  %v15153_v61 = vadd.f32 %v2292_v5, %v15106_v38 }
 0x314   : > { %v15131_v26 = vpop.f32.mrf.mxu0  ;;  %19861 = vst [vmem:[#allocation63_spill] sm:$0xff] %v15139_v41 }
 0x315   : > { %v11465_v44 = vpop.f32.mrf.mxu1  ;;  %3987 = vrot.lane.b32.xlu0 %v19860_v48, %s13412_s16  ;;  %19863 = vst [vmem:[#allocation65_spill] sm:$0xff] %v15153_v61 }
 0x316   : > { %v2302_v37 = vpop.f32.mrf.mxu0 }
 0x317   : > { %v15142_v1 = vadd.f32 %v2302_v37, %v15106_v38  ;;  %v15144_v32 = vpop.f32.mrf.mxu1  ;;  %4946 = vrot.lane.b32.xlu1 %v15134_v8, %s13412_s16 }
 0x318   : > { %v11418_v29 = vpop.f32.mrf.mxu0 }
 0x319   : > { %19862 = vst [vmem:[#allocation64_spill] sm:$0xff] %v15142_v1  ;;  %v11468_v60 = vpop.f32.mrf.mxu1  ;;  %4940 = vrot.lane.b32.xlu0 %v15139_v41, %s13412_s16  ;;  %11587 = vmatpush3.msra.mxu0 %v15142_v1 }
 0x31a   : > { %v2312_v44 = vpop.f32.mrf.mxu0  ;;  %11588 = vmatprep.subr.mxu0 %v19791_v36 }
 0x31b   : > { %v15155_v37 = vpop.f32.mrf.mxu1  ;;  %4139 = vrot.lane.b32.xlu1 %v14843_v35, %s13412_s16  ;;  %11589 = vmatpush3.msra.mxu0 %v15134_v8 }
 0x31c   : > { %v11421_v14 = vpop.f32.mrf.mxu0  ;;  %11590 = vmatprep.subr.mxu0 %v19791_v36 }
 0x31d   : > { %v15162_v60 = vadd.f32 %v11421_v14, %v15106_v38  ;;  %v11471_v49 = vpop.f32.mrf.mxu1  ;;  %3991 = vrot.lane.b32.xlu0 %v19865_v63, %s13412_s16  ;;  %11591 = vmatpush3.msra.mxu0 %v15153_v61 }
 0x31e   : > { %v2322_v5 = vpop.f32.mrf.mxu0  ;;  %11592 = vmatprep.subr.mxu0 %v19791_v36 }
 0x31f   : > { %19864 = vst [vmem:[#allocation66_spill] sm:$0xff] %v15162_v60  ;;  %v15168_v39 = vpop.f32.mrf.mxu1  ;;  %5093 = vrot.lane.b32.xlu1 %v15162_v60, %s13412_s16  ;;  %11593 = vmatpush3.msra.mxu0 %v15117_v33 }
 0x320   : > { %v11424_v8 = vpop.f32.mrf.mxu0  ;;  %11594 = vmatprep.subr.mxu0 %v19791_v36 }
 0x321   : > { %v15175_v49 = vadd.f32 %v11424_v8, %v15106_v38  ;;  %v11474_v14 = vpop.f32.mrf.mxu1  ;;  %4944 = vrot.lane.b32.xlu0 %v15153_v61, %s13412_s16  ;;  %11595 = vmatpush3.msra.mxu0 %v15139_v41  ;;  %v15192_v8 = vadd.f32 %v2312_v44, %v15106_v38  ;;  %v15206_v44 = vadd.f32 %v2322_v5, %v15106_v38 }
 0x322   : > { %v2332_v25 = vpop.f32.mrf.mxu0  ;;  %11596 = vmatprep.subr.mxu0 %v19791_v36  ;;  %v19869_v14 = vld [vmem:[#allocation15_spill] sm:$0xff] }
 0x323   : > { %19866 = vst [vmem:[#allocation67_spill] sm:$0xff] %v15175_v49  ;;  %v15182_v54 = vadd.f32 %v2332_v25, %v15106_v38  ;;  %5097 = vrot.lane.b32.xlu1 %v15175_v49, %s13412_s16  ;;  %11597 = vmatpush3.msra.mxu0 %v15109_v28  ;;  %19868 = vst [vmem:[#allocation69_spill] sm:$0xff] %v15192_v8 }
 0x324   : > { %v15187_v33 = vpop.f32.mrf.mxu1  ;;  %11622 = vmatpush3.msra.mxu1 %v15175_v49  ;;  %11598 = vmatprep.subr.mxu0 %v19791_v36  ;;  %19871 = vst [vmem:[#allocation71_spill] sm:$0xff] %v15206_v44 }
 0x325   : > { %19867 = vst [vmem:[#allocation68_spill] sm:$0xff] %v15182_v54  ;;  %11623 = vmatprep.subr.mxu1 %v19791_v36  ;;  %3995 = vrot.lane.b32.xlu0 %v19869_v14, %s13412_s16 }
 0x326   : > { %v11427_v25 = vpop.f32.mrf.mxu0  ;;  %v11477_v41 = vpop.f32.mrf.mxu1  ;;  %11599 = vmatpush3.msra.mxu0 %v15112_v15  ;;  %11624 = vmatpush3.msra.mxu1 %v15182_v54 }
 0x327   : > { %v15200_v28 = vadd.f32 %v11427_v25, %v15106_v38  ;;  %11625 = vmatprep.subr.mxu1 %v19791_v36  ;;  %5087 = vrot.lane.b32.xlu1 %v15192_v8, %s13412_s16  ;;  %v15218_v25 = vadd.f32 %v11418_v29, %v15106_v38  ;;  %v15233_v29 = vpop.permute.xlu0 %3971 }
 0x328   : > { %v15208_v49 = vpop.f32.mrf.mxu0  ;;  %11626 = vmatpush3.msra.mxu1 %v15162_v60  ;;  %11656 = vmatprep.subr.mxu0 %v19791_v36  ;;  %19874 = vst [vmem:[#allocation74_spill] sm:$0xff] %v15233_v29 }
 0x329   : > { %19870 = vst [vmem:[#allocation70_spill] sm:$0xff] %v15200_v28  ;;  %v15212_v41 = vpop.f32.mrf.mxu1  ;;  %11627 = vmatprep.subr.mxu1 %v19791_v36  ;;  %4948 = vrot.lane.b32.xlu0 %v15142_v1, %s13412_s16  ;;  %19872 = vst [vmem:[#allocation72_spill] sm:$0xff] %v15218_v25 }
 0x32a   : > { %11628 = vmatpush3.msra.mxu1 %v15206_v44 }
 0x32b   : > { %v11430_v5 = vpop.f32.mrf.mxu0  ;;  %v11480_v15 = vpop.f32.mrf.mxu1  ;;  %11629 = vmatprep.subr.mxu1 %v19791_v36 }
 0x32c   : > { %v15223_v60 = vadd.f32 %v11430_v5, %v15106_v38  ;;  %11630 = vmatpush3.msra.mxu1 %v15218_v25  ;;  %v15237_v15 = vadd.f32 %v15131_v26, %v15106_v38  ;;  %v15250_v9 = vpop.permute.xlu0 %4281 }
 0x32d   : > { %v15226_v61 = vpop.f32.mrf.mxu0  ;;  %v15228_v27 = vpop.f32.mrf.mxu1  ;;  %11631 = vmatprep.subr.mxu1 %v19791_v36  ;;  %4143 = vrot.lane.b32.xlu0 %v14774_v0, %s13412_s16  ;;  %19877 = vst [vmem:[#allocation77_spill] sm:$0xff] %v15250_v9 }
 0x32e   : > { %19873 = vst [vmem:[#allocation73_spill] sm:$0xff] %v15223_v60  ;;  %19875 = vst [vmem:[#allocation75_spill] sm:$0xff] %v15237_v15  ;;  %11632 = vmatpush3.msra.mxu1 %v15192_v8 }
 0x32f   : > { %v11433_v5 = vpop.f32.mrf.mxu0  ;;  %v11497_v1 = vpop.f32.mrf.mxu1  ;;  %11633 = vmatprep.subr.mxu1 %v19791_v36 }
 0x330   : > { %v15242_v19 = vadd.f32 %v11433_v5, %v15106_v38  ;;  %11634 = vmatpush3.msra.mxu1 %v15237_v15  ;;  %v15262_v55 = vpop.permute.xlu0 %3975 }
 0x331   : > { %v2362_v52 = vpop.f32.mrf.mxu0  ;;  %4141 = vrot.lane.b32.xlu0 %v14805_v2, %s13412_s16  ;;  %11691 = vmatprep.subr.mxu1 %v19791_v36  ;;  %19880 = vst [vmem:[#allocation80_spill] sm:$0xff] %v15262_v55 }
 0x332   : > { %19876 = vst [vmem:[#allocation76_spill] sm:$0xff] %v15242_v19 }
 0x333   : > { %v15248_v17 = vpop.f32.mrf.mxu1 }
 0x334   : > { %v11436_v26 = vpop.f32.mrf.mxu0  ;;  %v15282_v2 = vpop.permute.xlu0 %4285 }
 0x335   : > { %v15253_v1 = vadd.f32 %v11436_v26, %v15106_v38  ;;  %v11500_v8 = vpop.f32.mrf.mxu1  ;;  %4147 = vrot.lane.b32.xlu0 %v14720_v40, %s13412_s16  ;;  %19883 = vst [vmem:[#allocation83_spill] sm:$0xff] %v15282_v2 }
 0x336   : > { %v2372_v5 = vpop.f32.mrf.mxu0 }
 0x337   : > { %19878 = vst [vmem:[#allocation78_spill] sm:$0xff] %v15253_v1  ;;  %v15258_v34 = vadd.f32 %v2372_v5, %v15106_v38  ;;  %v15274_v5 = vadd.f32 %v2362_v52, %v15106_v38 }
 0x338   : > { %v11439_v12 = vpop.f32.mrf.mxu0  ;;  %v15260_v6 = vpop.f32.mrf.mxu1 }
 0x339   : > { %19879 = vst [vmem:[#allocation79_spill] sm:$0xff] %v15258_v34  ;;  %v15265_v47 = vadd.f32 %v11439_v12, %v15106_v38  ;;  %5246 = vrot.lane.b32.xlu1 %v15258_v34, %s13412_s16  ;;  %4145 = vrot.lane.b32.xlu0 %v14744_v58, %s13412_s16  ;;  %19882 = vst [vmem:[#allocation82_spill] sm:$0xff] %v15274_v5  ;;  %v15293_v58 = vpop.permute.xlu0 %3979 }
 0x33a   : > { %v15271_v8 = vpop.f32.mrf.mxu0  ;;  %v11503_v26 = vpop.f32.mrf.mxu1  ;;  %19885 = vst [vmem:[#allocation85_spill] sm:$0xff] %v15293_v58 }
 0x33b   : > { %19881 = vst [vmem:[#allocation81_spill] sm:$0xff] %v15265_v47 }
 0x33c   : > { %v15276_v53 = vpop.f32.mrf.mxu1 }
 0x33d   : > { %v11442_v35 = vpop.f32.mrf.mxu0  ;;  %5242 = vrot.lane.b32.xlu1 %v15274_v5, %s13412_s16  ;;  %4151 = vrot.lane.b32.xlu0 %v14671_v4, %s13412_s16 }
 0x33e   : > { %v11506_v12 = vpop.f32.mrf.mxu1 }
 0x33f   : > { %v2392_v57 = vpop.f32.mrf.mxu0 }
 0x340   : > { %v15284_v7 = vpop.f32.mrf.mxu1 }
 0x341   : > { %v11445_v0 = vpop.f32.mrf.mxu0  ;;  %4453 = vrot.lane.b32.xlu1 %v15009_v10, %s13412_s16  ;;  %4149 = vrot.lane.b32.xlu0 %v14694_v59, %s13412_s16 }
 0x342   : > { %v15291_v52 = vadd.f32 %v11445_v0, %v15106_v38  ;;  %v11509_v26 = vpop.f32.mrf.mxu1  ;;  %v15307_v0 = vpop.permute.xlu0 %3977 }
 0x343   : > { %v15295_v56 = vpop.f32.mrf.mxu0  ;;  %19886 = vst [vmem:[#allocation86_spill] sm:$0xff] %v15307_v0  ;;  %v2417_v0 = vld [vmem:[%s15411_s22 + $0xc] sm:$0x3] }
 0x344   : > { %19884 = vst [vmem:[#allocation84_spill] sm:$0xff] %v15291_v52  ;;  %v15297_v12 = vpop.f32.mrf.mxu1  ;;  %vm2445_vm10 = vnez %v2417_v0  ;;  %v19922_v0 = vmov 0  }
 0x345   : > { %v15299_v40 = vpop.f32.mrf.mxu0  ;;  %4459 = vrot.lane.b32.xlu1 %v14938_v43, %s13412_s16  ;;  %5095 = vrot.lane.b32.xlu0 %v15182_v54, %s13412_s16 }
 0x346   : > { %v11512_v10 = vpop.f32.mrf.mxu1 }
 0x347   : > { %v11532_v18 = vpop.f32.mrf.mxu0  ;;  %v15323_v10 = vpop.permute.xlu0 %4437 }
 0x348   : > { %v15305_v42 = vpop.f32.mrf.mxu1  ;;  %19887 = vst [vmem:[#allocation87_spill] sm:$0xff] %v15323_v10 }
 0x349   : > { %v15309_v26 = vpop.f32.mrf.mxu0  ;;  %4457 = vrot.lane.b32.xlu1 %v14965_v13, %s13412_s16  ;;  %4297 = vrot.lane.b32.xlu0 %v14914_v24, %s13412_s16  ;;  %v15325_v13 = vpop.permute.xlu1 %4283 }
 0x34a   : > { %v11515_v45 = vpop.f32.mrf.mxu1  ;;  %19888 = vst [vmem:[#allocation88_spill] sm:$0xff] %v15325_v13 }
 0x34b   : > { %v11535_v59 = vpop.f32.mrf.mxu0  ;;  %v15335_v24 = vpop.permute.xlu0 %3981 }
 0x34c   : > { %v15315_v43 = vpop.f32.mrf.mxu1  ;;  %19889 = vst [vmem:[#allocation89_spill] sm:$0xff] %v15335_v24 }
 0x34d   : > { %v15317_v48 = vpop.f32.mrf.mxu0  ;;  %4463 = vrot.lane.b32.xlu1 %v14873_v23, %s13412_s16  ;;  %4295 = vrot.lane.b32.xlu0 %v14934_v50, %s13412_s16  ;;  %v15341_v50 = vpop.permute.xlu1 %3969 }
 0x34e   : > { %v11567_v18 = vpop.f32.mrf.mxu1  ;;  %19891 = vst [vmem:[#allocation91_spill] sm:$0xff] %v15341_v50  ;;  %v2411_v50 = vld [vmem:[%s15411_s22] sm:$0x3] }
 0x34f   : > { %v11538_v54 = vpop.f32.mrf.mxu0  ;;  %v15339_v18 = vadd.f32 %v15226_v61, %v15106_v38 }
 0x350   : > { %v15327_v4 = vpop.f32.mrf.mxu1 }
 0x351   : > { %v15329_v45 = vpop.f32.mrf.mxu0  ;;  %4461 = vrot.lane.b32.xlu1 %v14908_v30, %s13412_s16  ;;  %4301 = vrot.lane.b32.xlu0 %v14854_v20, %s13412_s16  ;;  %19890 = vst [vmem:[#allocation90_spill] sm:$0xff] %v15339_v18  ;;  %v15352_v30 = vadd.f32 %v11442_v35, %v15106_v38  ;;  %v15364_v2 = vpop.permute.xlu1 %4287 }
 0x352   : > { %v11570_v59 = vpop.f32.mrf.mxu1  ;;  %19894 = vst [vmem:[#allocation94_spill] sm:$0xff] %v15364_v2 }
 0x353   : > { %v11541_v54 = vpop.f32.mrf.mxu0  ;;  %19892 = vst [vmem:[#allocation92_spill] sm:$0xff] %v15352_v30 }
 0x354   : > { %v15343_v23 = vpop.f32.mrf.mxu1  ;;  %v15356_v54 = vpop.permute.xlu0 %4441 }
 0x355   : > { %v15345_v63 = vpop.f32.mrf.mxu0  ;;  %5238 = vrot.lane.b32.xlu1 %v15339_v18, %s13412_s16  ;;  %4299 = vrot.lane.b32.xlu0 %v14883_v16, %s13412_s16  ;;  %19893 = vst [vmem:[#allocation93_spill] sm:$0xff] %v15356_v54  ;;  %v15377_v54 = vpop.permute.xlu1 %3973 }
 0x356   : > { %v11573_v59 = vpop.f32.mrf.mxu1  ;;  %19896 = vst [vmem:[#allocation96_spill] sm:$0xff] %v15377_v54 }
 0x357   : > { %v11544_v20 = vpop.f32.mrf.mxu0  ;;  %v15367_v59 = vadd.f32 %v2392_v57, %v15106_v38 }
 0x358   : > { %v15354_v61 = vpop.f32.mrf.mxu1  ;;  %v15379_v2 = vpop.permute.xlu0 %4439 }
 0x359   : > { %v15358_v10 = vpop.f32.mrf.mxu0  ;;  %5391 = vrot.lane.b32.xlu1 %v15352_v30, %s13412_s16  ;;  %4305 = vrot.lane.b32.xlu0 %v14778_v22, %s13412_s16  ;;  %19895 = vst [vmem:[#allocation95_spill] sm:$0xff] %v15367_v59  ;;  %19897 = vst [vmem:[#allocation97_spill] sm:$0xff] %v15379_v2  ;;  %v15387_v9 = vpop.permute.xlu1 %4291  ;;  %v3037_v2 = vmul.f32 0.35355338, %v15127_v62 }
 0x35a   : > { %v11576_v16 = vpop.f32.mrf.mxu1  ;;  %19898 = vst [vmem:[#allocation98_spill] sm:$0xff] %v15387_v9 }
 0x35b   : > { %v11547_v35 = vpop.f32.mrf.mxu0 }
 0x35c   : > { %v15369_v20 = vpop.f32.mrf.mxu1  ;;  %v15391_v24 = vpop.permute.xlu0 %4443 }
 0x35d   : > { %v15371_v13 = vpop.f32.mrf.mxu0  ;;  %5389 = vrot.lane.b32.xlu1 %v15367_v59, %s13412_s16  ;;  %4303 = vrot.lane.b32.xlu0 %v14822_v3, %s13412_s16  ;;  %19899 = vst [vmem:[#allocation99_spill] sm:$0xff] %v15391_v24 }
 0x35e   : > { %v11579_v22 = vpop.f32.mrf.mxu1 }
 0x35f   : > { %v11550_v16 = vpop.f32.mrf.mxu0 }
 0x360   : > { %v15381_v57 = vpop.f32.mrf.mxu1  ;;  %v15395_v16 = vpop.permute.xlu0 %4135 }
 0x361   : > { %6157 = vrot.lane.b32.xlu1 %v19869_v14, %s13413_s17  ;;  %4451 = vrot.lane.b32.xlu0 %v15031_v31, %s13412_s16  ;;  %19900 = vst [vmem:[#allocation100_spill] sm:$0xff] %v15395_v16  ;;  %v15399_v14 = vpop.permute.xlu1 %4289 }
 0x362   : > { %v11582_v35 = vpop.f32.mrf.mxu1  ;;  %19901 = vst [vmem:[#allocation101_spill] sm:$0xff] %v15399_v14  ;;  %v2415_v14 = vld [vmem:[%s15411_s22 + $0x8] sm:$0x3] }
 0x363   : > { %vm2443_vm5 = vnez %v2415_v14  ;;  %v3039_v14 = vmul.f32 0.35355338, %v15155_v37 }
 0x364   : > { %v15389_v3 = vpop.f32.mrf.mxu1  ;;  %v15406_v31 = vpop.permute.xlu0 %4447 }
 0x365   : > { %4307 = vrot.lane.b32.xlu0 %v14747_v46, %s13412_s16  ;;  %v15404_v35 = vpop.permute.xlu1 %4125  ;;  %19903 = vst [vmem:[#allocation103_spill] sm:$0xff] %v15406_v31  ;;  %v2414_v46 = vld [vmem:[%s15411_s22 + $0x6] sm:$0x3]  ;;  %v19583_v31 = vmov 0  }
 0x366   : > { %v11585_v22 = vpop.f32.mrf.mxu1  ;;  %19902 = vst [vmem:[#allocation102_spill] sm:$0xff] %v15404_v35  ;;  %vm2442_vm4 = vnez %v2414_v46  ;;  %v19909_v46 = vmov 0 }
 0x367   : > { %v2412_v22 = vld [vmem:[%s15411_s22 + $0x2] sm:$0x3] }
 0x368   : > { %vm2440_vm3 = vnez %v2412_v22  ;;  %v3067_v22 = vsel %vm2442_vm4, 16843009, %v19583_v31 }
 0x369   : > { %4455 = vrot.lane.b32.xlu0 %v14991_v51, %s13412_s16  ;;  %v15416_v51 = vpop.permute.xlu1 %4293  ;;  %v3065_v24 = vsel %vm2440_vm3, 16843009, %v19583_v31  ;;  %v3095_v58 = vunpack.c.0.s8 %v3067_v22 }
 0x36a   : > { %19904 = vst [vmem:[#allocation104_spill] sm:$0xff] %v15416_v51 }
 0x36b   : > { %vm15453_vm8 = vcmp.ne.s32.totalorder %v3095_v58, 0 }
 0x36c   : > { %v15470_v37 = vsel %vm15453_vm8, -1e+09, %v3039_v14 }
 0x36d   : > { %5091 = vrot.lane.b32.xlu0 %v15206_v44, %s13412_s16  ;;  %v15418_v44 = vpop.permute.xlu0 %3985  ;;  %v15424_v9 = vpop.permute.xlu1 %4129  ;;  %v3186_v14 = vsel %vm19618_vm9, %v15470_v37, -inf }
 0x36e   : > { %19905 = vst [vmem:[#allocation105_spill] sm:$0xff] %v15418_v44  ;;  %19906 = vst [vmem:[#allocation106_spill] sm:$0xff] %v15424_v9 }
 0x371   : > { %5089 = vrot.lane.b32.xlu0 %v15218_v25, %s13412_s16  ;;  %v3093_v25 = vunpack.c.0.s8 %v3065_v24  ;;  %v15429_v51 = vpop.permute.xlu0 %3983  ;;  %v15436_v16 = vpop.permute.xlu1 %4127  ;;  %v3068_v24 = vsel %vm2443_vm5, 16843009, %v19583_v31 }
 0x372   : > { %19907 = vst [vmem:[#allocation107_spill] sm:$0xff] %v15429_v51  ;;  %19908 = vst [vmem:[#allocation108_spill] sm:$0xff] %v15436_v16  ;;  %v3096_v22 = vunpack.c.0.s8 %v3068_v24  ;;  %v3040_v24 = vmul.f32 0.35355338, %v15168_v39  ;;  %v2418_v51 = vld [vmem:[%s15411_s22 + $0xe] sm:$0x3] }
 0x373   : > { %vm15438_vm6 = vcmp.ne.s32.totalorder %v3093_v25, 0  ;;  %v19913_v25 = vmov 0 }
 0x374   : > { %v19910_v46 = vsel %vm15438_vm6, 4294967295, %v19909_v46  ;;  %v15447_v62 = vsel %vm15438_vm6, -1e+09, %v3037_v2  ;;  %v19914_v25 = vsel %vm15453_vm8, 4294967295, %v19913_v25  ;;  %vm15476_vm11 = vcmp.ne.s32.totalorder %v3096_v22, 0 }
 0x375   : > { %5085 = vrot.lane.b32.xlu0 %v15237_v15, %s13412_s16  ;;  %v2416_v15 = vld [vmem:[%s15411_s22 + $0xa] sm:$0x3]  ;;  %19911 = vst [vmem:[#allocation109_spill] sm:$0xff] %v19910_v46  ;;  %19915 = vst [vmem:[#allocation111_spill] sm:$0xff] %v19914_v25  ;;  %v15464_v46 = vpop.permute.xlu1 %4133  ;;  %v3180_v58 = vsel %vm19618_vm9, %v15447_v62, -inf  ;;  %v19925_v25 = vmov 0 }
 0x376   : > { %vm2444_vm7 = vnez %v2416_v15  ;;  %v15460_v15 = vadd.f32 %v15208_v49, %v15106_v38  ;;  %19918 = vst [vmem:[#allocation114_spill] sm:$0xff] %v15464_v46  ;;  %v19919_v49 = vmov 0  ;;  %v3070_v46 = vsel %vm2445_vm10, 16843009, %v19922_v0  ;;  %v2426_v22 = vld [vmem:[%s15411_s22 + $0x1e] sm:$0x3] }
 0x377   : > { %v3069_v16 = vsel %vm2444_vm7, 16843009, %v19583_v31  ;;  %v2425_v31 = vld [vmem:[%s15411_s22 + $0x1c] sm:$0x3]  ;;  %v19920_v49 = vsel %vm15476_vm11, 4294967295, %v19919_v49  ;;  %vm2454_vm14 = vnez %v2426_v22 }
 0x378   : > { %19916 = vst [vmem:[#allocation112_spill] sm:$0xff] %v15460_v15  ;;  %19921 = vst [vmem:[#allocation115_spill] sm:$0xff] %v19920_v49  ;;  %vm2453_vm12 = vnez %v2425_v31  ;;  %v15487_v39 = vsel %vm15476_vm11, -1e+09, %v3040_v24  ;;  %v3098_v31 = vunpack.c.0.s8 %v3070_v46  ;;  %v15501_v49 = vadd.f32 %v15295_v56, %v15106_v38  ;;  %v2427_v46 = vld [vmem:[%s15411_s22 + $0x20] sm:$0x3] }
 0x379   : > { %5244 = vrot.lane.b32.xlu0 %v15242_v19, %s13412_s16  ;;  %v3078_v24 = vsel %vm2453_vm12, 16843009, %v19922_v0  ;;  %v19930_v56 = vmov 0  ;;  %vm2455_vm3 = vnez %v2427_v46 }
 0x37a   : > { %19928 = vst [vmem:[#allocation119_spill] sm:$0xff] %v15501_v49  ;;  %vm15516_vm15 = vcmp.ne.s32.totalorder %v3098_v31, 0  ;;  %v3106_v22 = vunpack.c.0.s8 %v3078_v24  ;;  %v3050_v31 = vmul.f32 0.35355338, %v15299_v40  ;;  %v19934_v24 = vmov 0 }
 0x37b   : > { %v19931_v56 = vsel %vm15516_vm15, 4294967295, %v19930_v56 }
 0x37c   : > { %19932 = vst [vmem:[#allocation121_spill] sm:$0xff] %v19931_v56  ;;  %vm15535_vm4 = vcmp.ne.s32.totalorder %v3106_v22, 0  ;;  %v3080_v56 = vsel %vm2455_vm3, 16843009, %v19922_v0 }
 0x37d   : > { %5240 = vrot.lane.b32.xlu0 %v15223_v60, %s13412_s16  ;;  %v19935_v24 = vsel %vm15535_vm4, 4294967295, %v19934_v24  ;;  %v15550_v22 = vsel %vm15535_vm4, -1e+09, %v3050_v31 }
 0x37e   : > { %19936 = vst [vmem:[#allocation123_spill] sm:$0xff] %v19935_v24 }
 0x37f   : > { %v15443_v9 = vpop.permute.xlu0 %4936 }
 0x380   : > { %19912 = vst [vmem:[#allocation110_spill] sm:$0xff] %v15443_v9  ;;  %v3097_v9 = vunpack.c.0.s8 %v3069_v16  ;;  %v15493_v16 = vpop.permute.xlu1 %4445 }
 0x381   : > { %5236 = vrot.lane.b32.xlu0 %v15200_v28, %s13412_s16  ;;  %19924 = vst [vmem:[#allocation117_spill] sm:$0xff] %v15493_v16  ;;  %v3079_v16 = vsel %vm2454_vm14, 16843009, %v19922_v0 }
 0x382   : > { %vm15495_vm13 = vcmp.ne.s32.totalorder %v3097_v9, 0  ;;  %v3107_v46 = vunpack.c.0.s8 %v3079_v16  ;;  %v2429_v16 = vld [vmem:[%s15411_s22 + $0x24] sm:$0x3] }
 0x383   : > { %v15462_v2 = vpop.permute.xlu0 %3989  ;;  %v19926_v25 = vsel %vm15495_vm13, 4294967295, %v19925_v25  ;;  %vm2457_vm10 = vnez %v2429_v16 }
 0x384   : > { %19917 = vst [vmem:[#allocation113_spill] sm:$0xff] %v15462_v2  ;;  %19927 = vst [vmem:[#allocation118_spill] sm:$0xff] %v19926_v25  ;;  %v15523_v54 = vpop.permute.xlu1 %4131  ;;  %v15541_v25 = vadd.f32 %v15271_v8, %v15106_v38  ;;  %vm15558_vm7 = vcmp.ne.s32.totalorder %v3107_v46, 0  ;;  %v19940_v8 = vmov 0  ;;  %v2430_v46 = vld [vmem:[%s15411_s22 + $0x26] sm:$0x3] }
 0x385   : > { %3181 = vmax.xlane.f32.xlu1 %v3180_v58  ;;  %5234 = vrot.lane.b32.xlu0 %v15460_v15, %s13412_s16  ;;  %v3041_v58 = vmul.f32 0.35355338, %v15187_v33  ;;  %v3189_v33 = vsel %vm19618_vm9, %v15487_v39, -inf  ;;  %19933 = vst [vmem:[#allocation122_spill] sm:$0xff] %v15523_v54  ;;  %v19941_v8 = vsel %vm15558_vm7, 4294967295, %v19940_v8  ;;  %vm2458_vm14 = vnez %v2430_v46 }
 0x386   : > { %19937 = vst [vmem:[#allocation124_spill] sm:$0xff] %v15541_v25  ;;  %19942 = vst [vmem:[#allocation127_spill] sm:$0xff] %v19941_v8  ;;  %v3082_v24 = vsel %vm2457_vm10, 16843009, %v19922_v0  ;;  %v3083_v8 = vsel %vm2458_vm14, 16843009, %v19922_v0 }
 0x387   : > { %v15481_v55 = vpop.permute.xlu0 %3987  ;;  %v15510_v9 = vsel %vm15495_vm13, -1e+09, %v3041_v58  ;;  %v3110_v46 = vunpack.c.0.s8 %v3082_v24  ;;  %v19953_v24 = vmov 0 }
 0x388   : > { %19923 = vst [vmem:[#allocation116_spill] sm:$0xff] %v15481_v55  ;;  %v15556_v38 = vpop.permute.xlu1 %4137 }
 0x389   : > { %3187 = vmax.xlane.f32.xlu1 %v3186_v14  ;;  %5395 = vrot.lane.b32.xlu0 %v15291_v52, %s13412_s16  ;;  %v3042_v14 = vmul.f32 0.35355338, %v15212_v41  ;;  %v3192_v41 = vsel %vm19618_vm9, %v15510_v9, -inf  ;;  %19939 = vst [vmem:[#allocation126_spill] sm:$0xff] %v15556_v38  ;;  %vm15611_vm10 = vcmp.ne.s32.totalorder %v3110_v46, 0 }
 0x38a   : > { %v19954_v24 = vsel %vm15611_vm10, 4294967295, %v19953_v24  ;;  %v2437_v46 = vld [vmem:[%s15411_s22 + $0x34] sm:$0x3] }
 0x38b   : > { %v15504_v35 = vpop.permute.xlu0 %4940  ;;  %v15529_v58 = vsel %vm15516_vm15, -1e+09, %v3042_v14  ;;  %19955 = vst [vmem:[#allocation134_spill] sm:$0xff] %v19954_v24 }
 0x38c   : > { %19929 = vst [vmem:[#allocation120_spill] sm:$0xff] %v15504_v35  ;;  %v3195_v40 = vsel %vm19618_vm9, %v15529_v58, -inf  ;;  %v15582_v29 = vpop.permute.xlu1 %4449 }
 0x38d   : > { %3190 = vmax.xlane.f32.xlu1 %v3189_v33  ;;  %5393 = vrot.lane.b32.xlu0 %v15501_v49, %s13412_s16  ;;  %v2428_v33 = vld [vmem:[%s15411_s22 + $0x22] sm:$0x3]  ;;  %19947 = vst [vmem:[#allocation130_spill] sm:$0xff] %v15582_v29 }
 0x38e   : > { %vm2456_vm5 = vnez %v2428_v33  ;;  %v3108_v33 = vunpack.c.0.s8 %v3080_v56  ;;  %v19943_v56 = vmov 0 }
 0x38f   : > { %v15521_v35 = vpop.permute.xlu0 %3991 }
 0x390   : > { %vm15575_vm12 = vcmp.ne.s32.totalorder %v3108_v33, 0  ;;  %v3053_v33 = vmul.f32 0.35355338, %v15329_v45 }
 0x391   : > { %3193 = vmax.xlane.f32.xlu1 %v3192_v41  ;;  %5387 = vrot.lane.b32.xlu0 %v15265_v47, %s13412_s16  ;;  %v3051_v41 = vmul.f32 0.35355338, %v15309_v26  ;;  %v3219_v26 = vsel %vm19618_vm9, %v15550_v22, -inf  ;;  %v19944_v56 = vsel %vm15575_vm12, 4294967295, %v19943_v56 }
 0x392   : > { %19945 = vst [vmem:[#allocation128_spill] sm:$0xff] %v19944_v56  ;;  %v3111_v56 = vunpack.c.0.s8 %v3083_v8 }
 0x393   : > { %v15544_v14 = vpop.permute.xlu0 %4944  ;;  %v15569_v31 = vsel %vm15558_vm7, -1e+09, %v3051_v41 }
 0x394   : > { %19938 = vst [vmem:[#allocation125_spill] sm:$0xff] %v15544_v14  ;;  %v3081_v14 = vsel %vm2456_vm5, 16843009, %v19922_v0  ;;  %vm15626_vm0 = vcmp.ne.s32.totalorder %v3111_v56, 0  ;;  %v3056_v56 = vmul.f32 0.35355338, %v15371_v13 }
 0x395   : > { %3196 = vmax.xlane.f32.xlu1 %v3195_v40  ;;  %5385 = vrot.lane.b32.xlu0 %v15541_v25, %s13412_s16  ;;  %v3052_v40 = vmul.f32 0.35355338, %v15317_v48  ;;  %v3109_v16 = vunpack.c.0.s8 %v3081_v14  ;;  %v3222_v48 = vsel %vm19618_vm9, %v15569_v31, -inf  ;;  %v19948_v14 = vmov 0 }
 0x397   : > { %v15563_v54 = vpop.permute.xlu0 %3995  ;;  %v15588_v41 = vsel %vm15575_vm12, -1e+09, %v3052_v40  ;;  %vm15594_vm3 = vcmp.ne.s32.totalorder %v3109_v16, 0  ;;  %v15601_v40 = vpop.permute.xlu1 %4938  ;;  %v3054_v16 = vmul.f32 0.35355338, %v15345_v63 }
 0x398   : > { %v19949_v14 = vsel %vm15594_vm3, 4294967295, %v19948_v14  ;;  %19952 = vst [vmem:[#allocation133_spill] sm:$0xff] %v15601_v40  ;;  %v3225_v45 = vsel %vm19618_vm9, %v15588_v41, -inf }
 0x399   : > { %3220 = vmax.xlane.f32.xlu1 %v3219_v26  ;;  %5383 = vrot.lane.b32.xlu0 %v15253_v1, %s13412_s16  ;;  %v2431_v26 = vld [vmem:[%s15411_s22 + $0x28] sm:$0x3]  ;;  %19950 = vst [vmem:[#allocation131_spill] sm:$0xff] %v19949_v14  ;;  %v15622_v63 = vsel %vm15611_vm10, -1e+09, %v3054_v16  ;;  %v19957_v14 = vmov 0 }
 0x39a   : > { %vm2459_vm5 = vnez %v2431_v26  ;;  %v19958_v14 = vsel %vm15626_vm0, 4294967295, %v19957_v14  ;;  %v3231_v16 = vsel %vm19618_vm9, %v15622_v63, -inf }
 0x39b   : > { %v15580_v38 = vpop.permute.xlu0 %4948  ;;  %v3084_v26 = vsel %vm2459_vm5, 16843009, %v19922_v0  ;;  %19959 = vst [vmem:[#allocation136_spill] sm:$0xff] %v19958_v14  ;;  %vm2465_vm5 = vnez %v2437_v46 }
 0x39c   : > { %19946 = vst [vmem:[#allocation129_spill] sm:$0xff] %v15580_v38  ;;  %v3112_v8 = vunpack.c.0.s8 %v3084_v26  ;;  %v15630_v38 = vpop.permute.xlu1 %4942  ;;  %v19962_v26 = vmov 0  ;;  %v3090_v46 = vsel %vm2465_vm5, 16843009, %v19922_v0 }
 0x39d   : > { %3223 = vmax.xlane.f32.xlu1 %v3222_v48  ;;  %6155 = vrot.lane.b32.xlu0 %v19858_v11, %s13413_s17  ;;  %v15607_v48 = vsel %vm15594_vm3, -1e+09, %v3053_v33  ;;  %v2436_v11 = vld [vmem:[%s15411_s22 + $0x32] sm:$0x3]  ;;  %19960 = vst [vmem:[#allocation137_spill] sm:$0xff] %v15630_v38 }
 0x39e   : > { %vm2464_vm14 = vnez %v2436_v11  ;;  %v3228_v33 = vsel %vm19618_vm9, %v15607_v48, -inf  ;;  %vm15644_vm2 = vcmp.ne.s32.totalorder %v3112_v8, 0  ;;  %v3061_v8 = vmul.f32 0.35355338, %v15369_v20 }
 0x39f   : > { %v15599_v29 = vpop.permute.xlu0 %4143  ;;  %v3089_v11 = vsel %vm2464_vm14, 16843009, %v19922_v0  ;;  %v19963_v26 = vsel %vm15644_vm2, 4294967295, %v19962_v26  ;;  %vm2439_vm14 = vnez %v2411_v50 }
 0x3a0   : > { %19951 = vst [vmem:[#allocation132_spill] sm:$0xff] %v15599_v29  ;;  %19964 = vst [vmem:[#allocation139_spill] sm:$0xff] %v19963_v26  ;;  %v3117_v24 = vunpack.c.0.s8 %v3089_v11  ;;  %v2413_v29 = vld [vmem:[%s15411_s22 + $0x4] sm:$0x3]  ;;  %v15652_v14 = vpop.permute.xlu1 %3993  ;;  %v3064_v50 = vsel %vm2439_vm14, 16843009, %v19922_v0 }
 0x3a1   : > { %3226 = vmax.xlane.f32.xlu1 %v3225_v45  ;;  %v3055_v45 = vmul.f32 0.35355338, %v15358_v10  ;;  %v19966_v11 = vmov 0  ;;  %vm2441_vm5 = vnez %v2413_v29  ;;  %v19970_v29 = vmov 0 }
 0x3a3   : > { %v15616_v40 = vpop.permute.xlu0 %4141  ;;  %v15640_v10 = vsel %vm15626_vm0, -1e+09, %v3055_v45  ;;  %v15658_v45 = vsel %vm15644_vm2, -1e+09, %v3056_v56  ;;  %vm15662_vm0 = vcmp.ne.s32.totalorder %v3117_v24, 0  ;;  %v3092_v56 = vunpack.c.0.s8 %v3064_v50 }
 0x3a4   : > { %19956 = vst [vmem:[#allocation135_spill] sm:$0xff] %v15616_v40  ;;  %v3234_v13 = vsel %vm19618_vm9, %v15640_v10, -inf  ;;  %v19967_v11 = vsel %vm15662_vm0, 4294967295, %v19966_v11  ;;  %v3237_v26 = vsel %vm19618_vm9, %v15658_v45, -inf  ;;  %v15672_v20 = vsel %vm15662_vm0, -1e+09, %v3061_v8  ;;  %v15682_v44 = vpop.permute.xlu1 %4946 }
 0x3a5   : > { %3229 = vmax.xlane.f32.xlu1 %v3228_v33  ;;  %v2438_v33 = vld [vmem:[%s15411_s22 + $0x36] sm:$0x3]  ;;  %19968 = vst [vmem:[#allocation141_spill] sm:$0xff] %v19967_v11  ;;  %19973 = vst [vmem:[#allocation144_spill] sm:$0xff] %v15682_v44  ;;  %v3036_v50 = vmul.f32 0.35355338, %v15121_v21 }
 0x3a6   : > { %vm2466_vm1 = vnez %v2438_v33  ;;  %v2419_v8 = vld [vmem:[%s15411_s22 + $0x10] sm:$0x3]  ;;  %vm15688_vm0 = vcmp.ne.s32.totalorder %v3092_v56, 0  ;;  %v19977_v21 = vmov 0  ;;  %v2420_v56 = vld [vmem:[%s15411_s22 + $0x12] sm:$0x3] }
 0x3a7   : > { %v15633_v40 = vpop.permute.xlu0 %4147  ;;  %v3091_v33 = vsel %vm2466_vm1, 16843009, %v19922_v0  ;;  %vm2446_vm1 = vnez %v2418_v51  ;;  %vm2448_vm2 = vnez %v2420_v56 }
 0x3a8   : > { %19961 = vst [vmem:[#allocation138_spill] sm:$0xff] %v15633_v40  ;;  %v3071_v51 = vsel %vm2446_vm1, 16843009, %v19922_v0 }
 0x3a9   : > { %3232 = vmax.xlane.f32.xlu1 %v3231_v16  ;;  %v3118_v16 = vunpack.c.0.s8 %v3090_v46  ;;  %v3066_v46 = vsel %vm2441_vm5, 16843009, %v19922_v0 }
 0x3aa   : > { %v3094_v11 = vunpack.c.0.s8 %v3066_v46  ;;  %v15707_v46 = vsel %vm15688_vm0, -1e+09, %v3036_v50 }
 0x3ab   : > { %v15649_v38 = vpop.permute.xlu0 %4145  ;;  %vm15678_vm14 = vcmp.ne.s32.totalorder %v3118_v16, 0 }
 0x3ac   : > { %19965 = vst [vmem:[#allocation140_spill] sm:$0xff] %v15649_v38  ;;  %v19971_v29 = vsel %vm15678_vm14, 4294967295, %v19970_v29  ;;  %v3119_v38 = vunpack.c.0.s8 %v3091_v33  ;;  %v3063_v33 = vmul.f32 0.35355338, %v15389_v3  ;;  %vm15714_vm1 = vcmp.ne.s32.totalorder %v3094_v11, 0 }
 0x3ad   : > { %3235 = vmax.xlane.f32.xlu1 %v3234_v13  ;;  %v3062_v13 = vmul.f32 0.35355338, %v15381_v57  ;;  %19972 = vst [vmem:[#allocation143_spill] sm:$0xff] %v19971_v29  ;;  %v3252_v57 = vsel %vm19618_vm9, %v15672_v20, -inf  ;;  %vm2447_vm9 = vnez %v2419_v8  ;;  %v15710_v29 = vpop.permute.xlu1 %4139 }
 0x3ae   : > { %vm15698_vm5 = vcmp.ne.s32.totalorder %v3119_v38, 0  ;;  %19981 = vst [vmem:[#allocation148_spill] sm:$0xff] %v15710_v29  ;;  %v19983_v38 = vmov 0  ;;  %v3072_v50 = vsel %vm2447_vm9, 16843009, %v19922_v0 }
 0x3af   : > { %v15675_v24 = vpop.permute.xlu0 %4151  ;;  %v15694_v16 = vsel %vm15678_vm14, -1e+09, %v3062_v13  ;;  %v19978_v21 = vsel %vm15698_vm5, 4294967295, %v19977_v21  ;;  %v3038_v13 = vmul.f32 0.35355338, %v15144_v32  ;;  %vm19982_vm14 = vcmask 457728  }
 0x3b0   : > { %19969 = vst [vmem:[#allocation142_spill] sm:$0xff] %v15675_v24  ;;  %19979 = vst [vmem:[#allocation146_spill] sm:$0xff] %v19978_v21  ;;  %v3255_v3 = vsel %vm19982_vm14, %v15694_v16, -inf  ;;  %v19984_v38 = vsel %vm15714_vm1, 4294967295, %v19983_v38  ;;  %v15720_v8 = vsel %vm15698_vm5, -1e+09, %v3063_v33  ;;  %v3100_v56 = vunpack.c.0.s8 %v3072_v50 }
 0x3b1   : > { %3238 = vmax.xlane.f32.xlu1 %v3237_v26  ;;  %v19974_v26 = vmov 0  ;;  %19985 = vst [vmem:[#allocation149_spill] sm:$0xff] %v19984_v38  ;;  %19986 = vst [vmem:[#allocation150_spill] sm:$0xff] %v15720_v8  ;;  %v15728_v11 = vsel %vm15714_vm1, -1e+09, %v3038_v13  ;;  %v19989_v33 = vmov 0  ;;  %v15740_v38 = vpop.permute.xlu1 %5093 }
 0x3b2   : > { %v19975_v26 = vsel %vm15688_vm0, 4294967295, %v19974_v26  ;;  %vm19987_vm10 = vmmov %vm19982_vm14  ;;  %v3043_v29 = vmul.f32 0.35355338, %v15228_v27  ;;  %v3073_v21 = vsel %vm2448_vm2, 16843009, %v19922_v0  ;;  %19993 = vst [vmem:[#allocation153_spill] sm:$0xff] %v15740_v38 }
 0x3b3   : > { %19976 = vst [vmem:[#allocation145_spill] sm:$0xff] %v19975_v26  ;;  %v15703_v44 = vpop.permute.xlu0 %4149  ;;  %v2421_v26 = vld [vmem:[%s15411_s22 + $0x14] sm:$0x3]  ;;  %v3177_v32 = vsel %vm19987_vm10, %v15707_v46, -inf  ;;  %vm19988_vm14 = vmmov %vm19987_vm10  ;;  %v3183_v27 = vsel %vm19987_vm10, %v15728_v11, -inf  ;;  %v19994_v50 = vmov 0 }
 0x3b4   : > { %19980 = vst [vmem:[#allocation147_spill] sm:$0xff] %v15703_v44  ;;  %vm2449_vm9 = vnez %v2421_v26 }
 0x3b5   : > { %3253 = vmax.xlane.f32.xlu1 %v3252_v57  ;;  %v3099_v57 = vunpack.c.0.s8 %v3071_v51  ;;  %v3258_v51 = vsel %vm19988_vm14, %v15720_v8, -inf  ;;  %vm15750_vm14 = vcmp.ne.s32.totalorder %v3100_v56, 0  ;;  %v2423_v56 = vld [vmem:[%s15411_s22 + $0x18] sm:$0x3] }
 0x3b6   : > { %v19995_v50 = vsel %vm15750_vm14, 4294967295, %v19994_v50 }
 0x3b7   : > { %vm15733_vm5 = vcmp.ne.s32.totalorder %v3099_v57, 0  ;;  %v3044_v57 = vmul.f32 0.35355338, %v15248_v17  ;;  %19996 = vst [vmem:[#allocation154_spill] sm:$0xff] %v19995_v50  ;;  %v3045_v17 = vmul.f32 0.35355338, %v15260_v6 }
 0x3b8   : > { %v19990_v33 = vsel %vm15733_vm5, 4294967295, %v19989_v33  ;;  %v15746_v13 = vsel %vm15733_vm5, -1e+09, %v3043_v29  ;;  %v3046_v6 = vmul.f32 0.35355338, %v15276_v53 }
 0x3b9   : > { %3256 = vmax.xlane.f32.xlu1 %v3255_v3  ;;  %19991 = vst [vmem:[#allocation151_spill] sm:$0xff] %v19990_v33  ;;  %v15737_v3 = vpop.permute.xlu0 %5095  ;;  %v3198_v33 = vsel %vm19987_vm10, %v15746_v13, -inf  ;;  %v15761_v29 = vsel %vm15750_vm14, -1e+09, %v3044_v57  ;;  %vm20015_vm14 = vmmov %vm19987_vm10 }
 0x3ba   : > { %19992 = vst [vmem:[#allocation152_spill] sm:$0xff] %v15737_v3  ;;  %v3074_v3 = vsel %vm2449_vm9, 16843009, %v19922_v0  ;;  %vm2451_vm9 = vnez %v2423_v56  ;;  %v3201_v50 = vsel %vm19987_vm10, %v15761_v29, -inf }
 0x3bb   : > { %v3076_v56 = vsel %vm2451_vm9, 16843009, %v19922_v0 }
 0x3bc   : > { %3178 = vmax.xlane.f32.xlu0 %v3177_v32  ;;  %v2422_v32 = vld [vmem:[%s15411_s22 + $0x16] sm:$0x3] }
 0x3bd   : > { %3259 = vmax.xlane.f32.xlu1 %v3258_v51  ;;  %v3101_v51 = vunpack.c.0.s8 %v3073_v21  ;;  %vm2450_vm2 = vnez %v2422_v32  ;;  %v15755_v26 = vpop.permute.xlu0 %4297  ;;  %v19999_v21 = vmov 0  ;;  %v3102_v32 = vunpack.c.0.s8 %v3074_v3 }
 0x3be   : > { %19997 = vst [vmem:[#allocation155_spill] sm:$0xff] %v15755_v26  ;;  %v3075_v38 = vsel %vm2450_vm2, 16843009, %v19922_v0 }
 0x3bf   : > { %vm15767_vm3 = vcmp.ne.s32.totalorder %v3101_v51, 0  ;;  %vm15780_vm12 = vcmp.ne.s32.totalorder %v3102_v32, 0  ;;  %v3103_v3 = vunpack.c.0.s8 %v3075_v38  ;;  %v2432_v32 = vld [vmem:[%s15411_s22 + $0x2a] sm:$0x3]  ;;  %v20007_v38 = vmov 0 }
 0x3c0   : > { %3184 = vmax.xlane.f32.xlu0 %v3183_v27  ;;  %v15765_v27 = vpop.permute.xlu1 %5097  ;;  %v20000_v21 = vsel %vm15767_vm3, 4294967295, %v19999_v21  ;;  %v15776_v57 = vsel %vm15767_vm3, -1e+09, %v3045_v17  ;;  %v15793_v53 = vsel %vm15780_vm12, -1e+09, %v3046_v6  ;;  %vm2460_vm9 = vnez %v2432_v32 }
 0x3c1   : > { %19998 = vst [vmem:[#allocation156_spill] sm:$0xff] %v15765_v27  ;;  %20001 = vst [vmem:[#allocation157_spill] sm:$0xff] %v20000_v21  ;;  %v2424_v27 = vld [vmem:[%s15411_s22 + $0x1a] sm:$0x3]  ;;  %v15784_v51 = vpop.permute.xlu0 %4295  ;;  %v3204_v17 = vsel %vm19987_vm10, %v15776_v57, -inf  ;;  %vm15797_vm7 = vcmp.ne.s32.totalorder %v3103_v3, 0  ;;  %v3104_v21 = vunpack.c.0.s8 %v3076_v56 }
 0x3c2   : > { %20005 = vst [vmem:[#allocation159_spill] sm:$0xff] %v15784_v51  ;;  %vm2452_vm2 = vnez %v2424_v27  ;;  %v20008_v38 = vsel %vm15797_vm7, 4294967295, %v20007_v38  ;;  %v3207_v6 = vsel %vm19987_vm10, %v15793_v53, -inf  ;;  %v3048_v3 = vmul.f32 0.35355338, %v15297_v12 }
 0x3c3   : > { %20009 = vst [vmem:[#allocation161_spill] sm:$0xff] %v20008_v38  ;;  %v20012_v56 = vmov 0  ;;  %v3085_v32 = vsel %vm2460_vm9, 16843009, %v19922_v0  ;;  %v3049_v12 = vmul.f32 0.35355338, %v15305_v42 }
 0x3c4   : > { %3199 = vmax.xlane.f32.xlu0 %v3198_v33  ;;  %v20002_v33 = vmov 0  ;;  %v15787_v26 = vpop.permute.xlu1 %5087  ;;  %v2434_v38 = vld [vmem:[%s15411_s22 + $0x2e] sm:$0x3]  ;;  %vm20021_vm9 = vcmask 457728  }
 0x3c5   : > { %v20003_v33 = vsel %vm15780_vm12, 4294967295, %v20002_v33  ;;  %20006 = vst [vmem:[#allocation160_spill] sm:$0xff] %v15787_v26  ;;  %v3077_v26 = vsel %vm2452_vm2, 16843009, %v19922_v0  ;;  %v15804_v51 = vpop.permute.xlu0 %4301  ;;  %vm15814_vm12 = vcmp.ne.s32.totalorder %v3104_v21, 0  ;;  %v20017_v21 = vmov 0 }
 0x3c6   : > { %20004 = vst [vmem:[#allocation158_spill] sm:$0xff] %v20003_v33  ;;  %20011 = vst [vmem:[#allocation163_spill] sm:$0xff] %v15804_v51  ;;  %v20013_v56 = vsel %vm15814_vm12, 4294967295, %v20012_v56  ;;  %v3105_v33 = vunpack.c.0.s8 %v3077_v26  ;;  %v3113_v26 = vunpack.c.0.s8 %v3085_v32 }
 0x3c7   : > { %20014 = vst [vmem:[#allocation164_spill] sm:$0xff] %v20013_v56 }
 0x3c8   : > { %3202 = vmax.xlane.f32.xlu0 %v3201_v50  ;;  %v3047_v50 = vmul.f32 0.35355338, %v15284_v7  ;;  %v15802_v27 = vpop.permute.xlu1 %5246  ;;  %vm15829_vm10 = vcmp.ne.s32.totalorder %v3105_v33, 0  ;;  %v20022_v33 = vmov 0 }
 0x3c9   : > { %20010 = vst [vmem:[#allocation162_spill] sm:$0xff] %v15802_v27  ;;  %v20018_v21 = vsel %vm15829_vm10, 4294967295, %v20017_v21  ;;  %v15833_v51 = vpop.permute.xlu0 %4299  ;;  %v15840_v42 = vsel %vm15829_vm10, -1e+09, %v3049_v12 }
 0x3ca   : > { %v15810_v7 = vsel %vm15797_vm7, -1e+09, %v3047_v50  ;;  %v15823_v50 = vsel %vm15814_vm12, -1e+09, %v3048_v3  ;;  %20019 = vst [vmem:[#allocation166_spill] sm:$0xff] %v20018_v21  ;;  %20020 = vst [vmem:[#allocation167_spill] sm:$0xff] %v15833_v51 }
 0x3cb   : > { %v3210_v27 = vsel %vm20015_vm14, %v15810_v7, -inf  ;;  %vm2462_vm14 = vnez %v2434_v38  ;;  %v3213_v3 = vsel %vm20021_vm9, %v15823_v50, -inf  ;;  %vm15844_vm12 = vcmp.ne.s32.totalorder %v3113_v26, 0 }
 0x3cc   : > { %3205 = vmax.xlane.f32.xlu0 %v3204_v17  ;;  %v2433_v17 = vld [vmem:[%s15411_s22 + $0x2c] sm:$0x3]  ;;  %v20023_v33 = vsel %vm15844_vm12, 4294967295, %v20022_v33  ;;  %v3087_v56 = vsel %vm2462_vm14, 16843009, %v19922_v0  ;;  %v3216_v12 = vsel %vm20021_vm9, %v15840_v42, -inf  ;;  %vm20030_vm14 = vmmov %vm20021_vm9 }
 0x3cd   : > { %vm2461_vm2 = vnez %v2433_v17  ;;  %20024 = vst [vmem:[#allocation168_spill] sm:$0xff] %v20023_v33  ;;  %v15851_v38 = vpop.permute.xlu0 %4305  ;;  %v3058_v26 = vmul.f32 0.35355338, %v15327_v4  ;;  %v20032_v4 = vmov 0 }
 0x3ce   : > { %v3086_v17 = vsel %vm2461_vm2, 16843009, %v19922_v0  ;;  %20026 = vst [vmem:[#allocation170_spill] sm:$0xff] %v15851_v38 }
 0x3cf   : > { %v3114_v32 = vunpack.c.0.s8 %v3086_v17  ;;  %v3115_v17 = vunpack.c.0.s8 %v3087_v56 }
 0x3d0   : > { %3208 = vmax.xlane.f32.xlu0 %v3207_v6  ;;  %v15827_v6 = vpop.permute.xlu1 %5242 }
 0x3d1   : > { %20016 = vst [vmem:[#allocation165_spill] sm:$0xff] %v15827_v6  ;;  %v3057_v6 = vmul.f32 0.35355338, %v15315_v43  ;;  %vm15860_vm10 = vcmp.ne.s32.totalorder %v3114_v32, 0  ;;  %vm15874_vm9 = vcmp.ne.s32.totalorder %v3115_v17, 0  ;;  %v15878_v56 = vpop.permute.xlu0 %4303 }
 0x3d2   : > { %v20033_v4 = vsel %vm15874_vm9, 4294967295, %v20032_v4  ;;  %20035 = vst [vmem:[#allocation174_spill] sm:$0xff] %v15878_v56 }
 0x3d3   : > { %v15857_v43 = vsel %vm15844_vm12, -1e+09, %v3057_v6  ;;  %v3059_v6 = vmul.f32 0.35355338, %v15343_v23  ;;  %20034 = vst [vmem:[#allocation173_spill] sm:$0xff] %v20033_v4  ;;  %v20037_v23 = vmov 0 }
 0x3d4   : > { %3211 = vmax.xlane.f32.xlu0 %v3210_v27  ;;  %v2435_v27 = vld [vmem:[%s15411_s22 + $0x30] sm:$0x3]  ;;  %v15849_v51 = vpop.permute.xlu1 %4453 }
 0x3d5   : > { %20025 = vst [vmem:[#allocation169_spill] sm:$0xff] %v15849_v51  ;;  %vm2463_vm2 = vnez %v2435_v27  ;;  %v3240_v27 = vsel %vm20030_vm14, %v15857_v43, -inf  ;;  %v15869_v51 = vsel %vm15860_vm10, -1e+09, %v3058_v26  ;;  %v3060_v26 = vmul.f32 0.35355338, %v15354_v61 }
 0x3d6   : > { %v3088_v21 = vsel %vm2463_vm2, 16843009, %v19922_v0  ;;  %vm20036_vm2 = vmmov %vm20030_vm14 }
 0x3d7   : > { %v3116_v32 = vunpack.c.0.s8 %v3088_v21  ;;  %v3243_v0 = vsel %vm20036_vm2, %v15869_v51, -inf  ;;  %vm20080_vm12 = vmmov %vm20036_vm2 }
 0x3d8   : > { %3214 = vmax.xlane.f32.xlu0 %v3213_v3  ;;  %v20027_v3 = vmov 0  ;;  %v15872_v33 = vpop.permute.xlu1 %4459 }
 0x3d9   : > { %v20028_v3 = vsel %vm15860_vm10, 4294967295, %v20027_v3  ;;  %20031 = vst [vmem:[#allocation172_spill] sm:$0xff] %v15872_v33  ;;  %vm15887_vm14 = vcmp.ne.s32.totalorder %v3116_v32, 0  ;;  %vm20042_vm10 = vmmov %vm20036_vm2 }
 0x3da   : > { %20029 = vst [vmem:[#allocation171_spill] sm:$0xff] %v20028_v3  ;;  %v20038_v23 = vsel %vm15887_vm14, 4294967295, %v20037_v23  ;;  %v15899_v3 = vsel %vm15887_vm14, -1e+09, %v3060_v26  ;;  %vm20066_vm14 = vmmov 0  }
 0x3db   : > { %20039 = vst [vmem:[#allocation175_spill] sm:$0xff] %v20038_v23  ;;  %v3249_v61 = vsel %vm20036_vm2, %v15899_v3, -inf }
 0x3dc   : > { %3217 = vmax.xlane.f32.xlu0 %v3216_v12  ;;  %v15884_v12 = vsel %vm15874_vm9, -1e+09, %v3059_v6  ;;  %v15891_v17 = vpop.permute.xlu1 %4457  ;;  %vm20069_vm9 = vmmov %vm20036_vm2 }
 0x3dd   : > { %20040 = vst [vmem:[#allocation176_spill] sm:$0xff] %v15891_v17  ;;  %v3246_v21 = vsel %vm20042_vm10, %v15884_v12, -inf  ;;  %vm20058_vm10 = vmmov %vm20036_vm2 }
 0x3e0   : > { %3241 = vmax.xlane.f32.xlu0 %v3240_v27  ;;  %v15893_v27 = vpop.permute.xlu0 %4451  ;;  %v15903_v6 = vpop.permute.xlu1 %4463 }
 0x3e1   : > { %20041 = vst [vmem:[#allocation177_spill] sm:$0xff] %v15893_v27  ;;  %20043 = vst [vmem:[#allocation178_spill] sm:$0xff] %v15903_v6 }
 0x3e4   : > { %3244 = vmax.xlane.f32.xlu0 %v3243_v0  ;;  %v15905_v32 = vpop.permute.xlu0 %4307  ;;  %v15907_v0 = vpop.permute.xlu1 %4461 }
 0x3e5   : > { %20044 = vst [vmem:[#allocation179_spill] sm:$0xff] %v15905_v32  ;;  %20045 = vst [vmem:[#allocation180_spill] sm:$0xff] %v15907_v0 }
 0x3e8   : > { %3247 = vmax.xlane.f32.xlu0 %v3246_v21  ;;  %v15909_v4 = vpop.permute.xlu0 %4455  ;;  %v15911_v27 = vpop.permute.xlu1 %5238 }
 0x3e9   : > { %20046 = vst [vmem:[#allocation181_spill] sm:$0xff] %v15909_v4  ;;  %20047 = vst [vmem:[#allocation182_spill] sm:$0xff] %v15911_v27 }
 0x3ec   : > { %3250 = vmax.xlane.f32.xlu0 %v3249_v61  ;;  %v15913_v17 = vpop.permute.xlu0 %5091  ;;  %v15915_v23 = vpop.permute.xlu1 %5391 }
 0x3ed   : > { %20048 = vst [vmem:[#allocation183_spill] sm:$0xff] %v15913_v17  ;;  %20049 = vst [vmem:[#allocation184_spill] sm:$0xff] %v15915_v23 }
 0x3f0   : > { %v15917_v26 = vpop.permute.xlu0 %5089  ;;  %v15919_v21 = vpop.permute.xlu1 %5389 }
 0x3f1   : > { %20050 = vst [vmem:[#allocation185_spill] sm:$0xff] %v15917_v26  ;;  %20051 = vst [vmem:[#allocation186_spill] sm:$0xff] %v15919_v21 }
 0x3f4   : > { %v15921_v33 = vpop.permute.xlu0 %5085  ;;  %v15923_v6 = vpop.permute.xlu1 %6157 }
 0x3f5   : > { %20052 = vst [vmem:[#allocation187_spill] sm:$0xff] %v15921_v33  ;;  %20053 = vst [vmem:[#allocation188_spill] sm:$0xff] %v15923_v6 }
 0x3f8   : > { %v15925_v61 = vpop.permute.xlu0 %5244 }
 0x3f9   : > { %20054 = vst [vmem:[#allocation189_spill] sm:$0xff] %v15925_v61 }
 0x3fc   : > { %v15928_v4 = vpop.permute.xlu0 %5240 }
 0x3fd   : > { %20055 = vst [vmem:[#allocation190_spill] sm:$0xff] %v15928_v4 }
 0x400   : > { %v15930_v17 = vpop.permute.xlu0 %5236 }
 0x401   : > { %20056 = vst [vmem:[#allocation191_spill] sm:$0xff] %v15930_v17 }
 0x404   : > { %v15932_v23 = vpop.permute.xlu0 %5234 }
 0x405   : > { %20057 = vst [vmem:[#allocation192_spill] sm:$0xff] %v15932_v23 }
 0x408   : > { %v15935_v33 = vpop.permute.xlu0 %5395 }
 0x409   : > { %20059 = vst [vmem:[#allocation193_spill] sm:$0xff] %v15935_v33 }
 0x40c   : > { %v15937_v38 = vpop.permute.xlu0 %5393 }
 0x40d   : > { %20060 = vst [vmem:[#allocation194_spill] sm:$0xff] %v15937_v38 }
 0x40e   : > { %v3182_v56 = vpop.xlane.xlu1 %3181 }
 0x40f   : > { %v3262_v0 = vsub.f32 %v15447_v62, %v3182_v56 }
 0x410   : > { %v15939_v32 = vpop.permute.xlu0 %5387 }
 0x411   : > { %v3291_v27 = vmul.f32 1.442695, %v3262_v0  ;;  %20061 = vst [vmem:[#allocation195_spill] sm:$0xff] %v15939_v32 }
 0x412   : > { %v3188_v6 = vpop.xlane.xlu1 %3187 }
 0x413   : > { %12934 = vpow2.f32 %v3291_v27  ;;  %v3264_v38 = vsub.f32 %v15470_v37, %v3188_v6 }
 0x414   : > { %v15941_v56 = vpop.permute.xlu0 %5385 }
 0x415   : > { %20062 = vst [vmem:[#allocation196_spill] sm:$0xff] %v15941_v56 }
 0x416   : > { %v3191_v61 = vpop.xlane.xlu1 %3190 }
 0x417   : > { %v3265_v8 = vsub.f32 %v15487_v39, %v3191_v61 }
 0x418   : > { %v15943_v0 = vpop.permute.xlu0 %5383 }
 0x419   : > { %20063 = vst [vmem:[#allocation197_spill] sm:$0xff] %v15943_v0  ;;  %v3295_v0 = vmul.f32 1.442695, %v3264_v38 }
 0x41a   : > { %v3194_v62 = vpop.xlane.xlu1 %3193 }
 0x41c   : > { %v15947_v23 = vpop.permute.xlu0 %6155 }
 0x41d   : > { %20064 = vst [vmem:[#allocation198_spill] sm:$0xff] %v15947_v23 }
 0x41e   : > { %v3197_v27 = vpop.xlane.xlu1 %3196 }
 0x420   : > { %v12935_v26 = vpop.eup %12934 }
 0x421   : > { %v3348_v21 = vsel %vm20058_vm10, %v12935_v26, 0.0  ;;  %vm20065_vm10 = vmmov %vm20036_vm2 }
 0x422   : > { %3349 = vadd.xlane.f32.xlu0 %v3348_v21  ;;  %v15945_v17 = vpop.xlane.xlu1 %3220 }
 0x426   : > { %v15949_v21 = vpop.xlane.xlu1 %3223 }
 0x42a   : > { %v15954_v56 = vpop.xlane.xlu1 %3226 }
 0x445   : > { %v3179_v4 = vpop.xlane.xlu0 %3178 }
 0x446   : > { %v3261_v33 = vsub.f32 %v15707_v46, %v3179_v4 }
 0x448   : > { %v3289_v40 = vmul.f32 1.442695, %v3261_v33  ;;  %v15958_v33 = vpop.xlane.xlu1 %3229 }
 0x449   : > { %v3185_v55 = vpop.xlane.xlu0 %3184 }
 0x44a   : > { %12936 = vpow2.f32 %v3289_v40  ;;  %v3263_v32 = vsub.f32 %v15728_v11, %v3185_v55  ;;  %v3266_v55 = vsub.f32 %v15510_v9, %v3194_v62  ;;  %v3297_v40 = vmul.f32 1.442695, %v3265_v8 }
 0x44c   : > { %v3293_v44 = vmul.f32 1.442695, %v3263_v32  ;;  %v3299_v6 = vmul.f32 1.442695, %v3266_v55  ;;  %v15964_v39 = vpop.xlane.xlu1 %3232 }
 0x44d   : > { %v3200_v2 = vpop.xlane.xlu0 %3199 }
 0x44e   : > { %12938 = vpow2.f32 %v3293_v44  ;;  %v3268_v23 = vsub.f32 %v15746_v13, %v3200_v2  ;;  %v3267_v2 = vsub.f32 %v15529_v58, %v3197_v27 }
 0x44f   : > { %12940 = vpow2.f32 %v3295_v0 }
 0x450   : > { %v3303_v24 = vmul.f32 1.442695, %v3268_v23  ;;  %v3301_v58 = vmul.f32 1.442695, %v3267_v2  ;;  %v15978_v61 = vpop.xlane.xlu1 %3235 }
 0x451   : > { %v3203_v46 = vpop.xlane.xlu0 %3202 }
 0x452   : > { %12942 = vpow2.f32 %v3303_v24  ;;  %v3269_v37 = vsub.f32 %v15761_v29, %v3203_v46 }
 0x454   : > { %v3305_v11 = vmul.f32 1.442695, %v3269_v37  ;;  %v16001_v55 = vpop.xlane.xlu1 %3238 }
 0x455   : > { %v3206_v4 = vpop.xlane.xlu0 %3205 }
 0x456   : > { %v3270_v38 = vsub.f32 %v15776_v57, %v3206_v4  ;;  %12944 = vpow2.f32 %v3305_v11  ;;  %v3276_v4 = vsub.f32 %v15569_v31, %v15949_v21 }
 0x457   : > { %v12937_v44 = vpop.eup %12936  ;;  %12946 = vpow2.f32 %v3297_v40 }
 0x458   : > { %v3307_v13 = vmul.f32 1.442695, %v3270_v38  ;;  %11601 = vmatmul.mubr.msk.f32.vlgmr.msra.gmra.mxu0 %vm20036_vm2, %v12937_v44  ;;  %v3345_v24 = vsel %vm20065_vm10, %v12937_v44, 0.0  ;;  %12948 = vpow2.f32 %v3299_v6  ;;  %vm20067_vm10 = vmmov %vm20036_vm2  ;;  %v3319_v2 = vmul.f32 1.442695, %v3276_v4 }
 0x459   : > { %11657 = vmatpush3.msra.mxu0 %v15258_v34  ;;  %3346 = vadd.xlane.f32.xlu1 %v3345_v24  ;;  %v3209_v9 = vpop.xlane.xlu0 %3208  ;;  %v16025_v24 = vpop.xlane.xlu1 %3253 }
 0x45a   : > { %11658 = vmatprep.subr.mxu0 %v19791_v36  ;;  %v3271_v8 = vsub.f32 %v15793_v53, %v3209_v9  ;;  %11603 = vmatprep.mubr.msk.f32.mxu0 %vm20066_vm14, %v19791_v36  ;;  %12950 = vpow2.f32 %v3307_v13  ;;  %v3277_v13 = vsub.f32 %v15588_v41, %v15954_v56 }
 0x45b   : > { %v12939_v29 = vpop.eup %12938  ;;  %11659 = vmatpush3.msra.mxu0 %v15242_v19  ;;  %12952 = vpow2.f32 %v3301_v58 }
 0x45c   : > { %11660 = vmatprep.subr.mxu0 %v19791_v36  ;;  %11604 = vmatmul.mubr.msk.f32.gmra.mxu0 %vm20036_vm2, %v12935_v26  ;;  %v3351_v57 = vsel %vm20067_vm10, %v12939_v29, 0.0  ;;  %v3309_v23 = vmul.f32 1.442695, %v3271_v8  ;;  %v12941_v32 = vpop.eup %12940  ;;  %v3275_v26 = vsub.f32 %v15550_v22, %v15945_v17  ;;  %vm20068_vm10 = vmmov %vm20036_vm2  ;;  %v3321_v58 = vmul.f32 1.442695, %v3277_v13 }
 0x45d   : > { %11661 = vmatpush3.msra.mxu0 %v15274_v5  ;;  %3352 = vadd.xlane.f32.xlu0 %v3351_v57  ;;  %v3212_v53 = vpop.xlane.xlu0 %3211  ;;  %v3354_v46 = vsel %vm20069_vm9, %v12941_v32, 0.0  ;;  %vm20070_vm9 = vmmov %vm20036_vm2 }
 0x45e   : > { %11662 = vmatprep.subr.mxu0 %v19791_v36  ;;  %v3272_v62 = vsub.f32 %v15810_v7, %v3212_v53  ;;  %11606 = vmatprep.mubr.msk.f32.mxu0 %vm20066_vm14, %v19791_v36  ;;  %12954 = vpow2.f32 %v3309_v23  ;;  %v3317_v37 = vmul.f32 1.442695, %v3275_v26  ;;  %v3278_v23 = vsub.f32 %v15607_v48, %v15958_v33  ;;  %v3257_v53 = vpop.xlane.xlu1 %3256 }
 0x45f   : > { %v15984_v27 = vpop.eup %12942  ;;  %11663 = vmatpush3.msra.mxu0 %v15223_v60 }
 0x460   : > { %11664 = vmatprep.subr.mxu0 %v19791_v36  ;;  %11607 = vmatmul.mubr.msk.f32.gmra.mxu0 %vm20036_vm2, %v12939_v29  ;;  %v3311_v0 = vmul.f32 1.442695, %v3272_v62  ;;  %v3323_v26 = vmul.f32 1.442695, %v3278_v23 }
 0x461   : > { %11636 = vmatmul.mubr.msk.f32.vlgmr.msra.gmra.mxu1 %vm20068_vm10, %v15984_v27  ;;  %11665 = vmatpush3.msra.mxu0 %v15339_v18  ;;  %v3215_v7 = vpop.xlane.xlu0 %3214  ;;  %vm20071_vm10 = vmmov %vm20036_vm2 }
 0x462   : > { %11692 = vmatpush3.msra.mxu1 %v15291_v52  ;;  %11666 = vmatprep.subr.mxu0 %v19791_v36  ;;  %v3273_v22 = vsub.f32 %v15823_v50, %v3215_v7  ;;  %12956 = vpow2.f32 %v3311_v0  ;;  %v3287_v0 = vsub.f32 %v15694_v16, %v3257_v53  ;;  %v3279_v7 = vsub.f32 %v15622_v63, %v15964_v39 }
 0x463   : > { %3355 = vadd.xlane.f32.xlu0 %v3354_v46  ;;  %11693 = vmatprep.subr.mxu1 %v19791_v36  ;;  %v15999_v17 = vpop.eup %12944  ;;  %12958 = vpow2.f32 %v3317_v37  ;;  %v3366_v46 = vsel %vm20036_vm2, %v15984_v27, 0.0 }
 0x464   : > { %11667 = vmatpush3.msra.mxu0 %v15200_v28  ;;  %11694 = vmatpush3.msra.mxu1 %v15501_v49  ;;  %v12947_v40 = vpop.eup %12946  ;;  %v3313_v11 = vmul.f32 1.442695, %v3273_v22  ;;  %v3341_v63 = vmul.f32 1.442695, %v3287_v0  ;;  %v3325_v27 = vmul.f32 1.442695, %v3279_v7 }
 0x465   : > { %11609 = vmatprep.mubr.msk.f32.mxu0 %vm20066_vm14, %v19791_v36  ;;  %11638 = vmatprep.mubr.msk.f32.mxu1 %vm20066_vm14, %v19791_v36  ;;  %v3218_v50 = vpop.xlane.xlu0 %3217  ;;  %v12949_v44 = vpop.eup %12948  ;;  %v3357_v6 = vsel %vm20071_vm10, %v12947_v40, 0.0  ;;  %vm20073_vm10 = vmmov %vm20036_vm2 }
 0x466   : > { %11668 = vmatprep.subr.mxu0 %v19791_v36  ;;  %11695 = vmatprep.subr.mxu1 %v19791_v36  ;;  %v3274_v38 = vsub.f32 %v15840_v42, %v3218_v50  ;;  %12960 = vpow2.f32 %v3313_v11  ;;  %v3360_v41 = vsel %vm20073_vm10, %v12949_v44, 0.0  ;;  %vm20075_vm10 = vmmov %vm20036_vm2 }
 0x467   : > { %11610 = vmatmul.mubr.msk.f32.gmra.mxu0 %vm20070_vm9, %v12941_v32  ;;  %11639 = vmatmul.mubr.msk.f32.gmra.mxu1 %vm20036_vm2, %v15999_v17  ;;  %v16020_v31 = vpop.eup %12950  ;;  %vm20072_vm9 = vmmov %vm20036_vm2 }
 0x468   : > { %11669 = vmatpush3.msra.mxu0 %v15460_v15  ;;  %11696 = vmatpush3.msra.mxu1 %v15352_v30  ;;  %v3315_v42 = vmul.f32 1.442695, %v3274_v38  ;;  %v12953_v56 = vpop.eup %12952 }
 0x469   : > { %3358 = vadd.xlane.f32.xlu0 %v3357_v6  ;;  %11697 = vmatprep.subr.mxu1 %v19791_v36  ;;  %v3242_v21 = vpop.xlane.xlu0 %3241  ;;  %v3363_v32 = vsel %vm20036_vm2, %v12953_v56, 0.0 }
 0x46a   : > { %11698 = vmatpush3.msra.mxu1 %v15367_v59  ;;  %11612 = vmatprep.mubr.msk.f32.mxu0 %vm20066_vm14, %v19791_v36  ;;  %v3282_v9 = vsub.f32 %v15857_v43, %v3242_v21  ;;  %12962 = vpow2.f32 %v3315_v42  ;;  %v3260_v42 = vpop.xlane.xlu1 %3259 }
 0x46b   : > { %11641 = vmatprep.mubr.msk.f32.mxu1 %vm20066_vm14, %v19791_v36  ;;  %11699 = vmatprep.subr.mxu1 %v19791_v36  ;;  %v16039_v43 = vpop.eup %12954  ;;  %12964 = vpow2.f32 %v3319_v2  ;;  %v20091_v2 = vld [vmem:[#allocation150_spill] sm:$0xff] }
 0x46c   : > { %11613 = vmatmul.mubr.msk.f32.gmra.mxu0 %vm20072_vm9, %v12947_v40  ;;  %11642 = vmatmul.mubr.msk.f32.gmra.mxu1 %vm20036_vm2, %v16020_v31  ;;  %v3331_v8 = vmul.f32 1.442695, %v3282_v9  ;;  %vm20074_vm9 = vmmov %vm20036_vm2  ;;  %v3280_v40 = vsub.f32 %v15640_v10, %v15978_v61  ;;  %v3281_v10 = vsub.f32 %v15658_v45, %v16001_v55  ;;  %v20087_v55 = vld [vmem:[#allocation142_spill] sm:$0xff]  ;;  %v3288_v13 = vsub.f32 %v20091_v2, %v3260_v42  ;;  %v20093_v9 = vld [vmem:[#allocation147_spill] sm:$0xff] }
 0x46d   : > { %11700 = vmatpush3.msra.mxu1 %v15265_v47  ;;  %3361 = vadd.xlane.f32.xlu0 %v3360_v41  ;;  %v3245_v29 = vpop.xlane.xlu0 %3244  ;;  %v20149_v42 = vld [vmem:[#allocation167_spill] sm:$0xff]  ;;  %v20152_v2 = vld [vmem:[#allocation85_spill] sm:$0xff] }
 0x46e   : > { %11701 = vmatprep.subr.mxu1 %v19791_v36  ;;  %11615 = vmatprep.mubr.msk.f32.mxu0 %vm20066_vm14, %v19791_v36  ;;  %v3283_v57 = vsub.f32 %v15869_v51, %v3245_v29  ;;  %12966 = vpow2.f32 %v3331_v8  ;;  %v3329_v45 = vmul.f32 1.442695, %v3281_v10  ;;  %v20133_v10 = vld [vmem:[#allocation174_spill] sm:$0xff] }
 0x46f   : > { %11702 = vmatpush3.msra.mxu1 %v15541_v25  ;;  %11644 = vmatprep.mubr.msk.f32.mxu1 %vm20066_vm14, %v19791_v36  ;;  %v16055_v48 = vpop.eup %12956  ;;  %12968 = vpow2.f32 %v3321_v58  ;;  %v3343_v58 = vmul.f32 1.442695, %v3288_v13  ;;  %v20154_v13 = vld [vmem:[#allocation122_spill] sm:$0xff] }
 0x470   : > { %11703 = vmatprep.subr.mxu1 %v19791_v36  ;;  %11616 = vmatmul.mubr.msk.f32.gmra.mxu0 %vm20074_vm9, %v12949_v44  ;;  %v3333_v62 = vmul.f32 1.442695, %v3283_v57  ;;  %vm20076_vm9 = vmmov %vm20036_vm2  ;;  %v3286_v44 = vsub.f32 %v15672_v20, %v16025_v24  ;;  %v20092_v24 = vld [vmem:[#allocation113_spill] sm:$0xff]  ;;  %v20100_v57 = vld [vmem:[#allocation138_spill] sm:$0xff] }
 0x471   : > { %11645 = vmatmul.mubr.msk.f32.gmra.mxu1 %vm20075_vm10, %v16039_v43  ;;  %3364 = vadd.xlane.f32.xlu0 %v3363_v32  ;;  %v3248_v51 = vpop.xlane.xlu0 %3247  ;;  %vm20077_vm10 = vmmov %vm20036_vm2 }
 0x472   : > { %11704 = vmatpush3.msra.mxu1 %v15253_v1  ;;  %11618 = vmatprep.mubr.msk.f32.mxu0 %vm20066_vm14, %v19791_v36  ;;  %v3284_v33 = vsub.f32 %v15884_v12, %v3248_v51  ;;  %12970 = vpow2.f32 %v3333_v62  ;;  %v12959_v12 = vpop.eup %12958  ;;  %v20105_v51 = vld [vmem:[#allocation105_spill] sm:$0xff] }
 0x473   : > { %11647 = vmatprep.mubr.msk.f32.mxu1 %vm20066_vm14, %v19791_v36  ;;  %11726 = vmatprep.subr.mxu0 %v19791_v36  ;;  %v16073_v22 = vpop.eup %12960  ;;  %12972 = vpow2.f32 %v3323_v26  ;;  %v3387_v11 = vsel %vm20080_vm12, %v12959_v12, 0.0  ;;  %vm20082_vm12 = vmmov %vm20036_vm2 }
 0x474   : > { %11619 = vmatmul.mubr.msk.f32.gmra.mxu0 %vm20076_vm9, %v12953_v56  ;;  %11761 = vmatprep.subr.mxu1 %v19791_v36  ;;  %v3335_v37 = vmul.f32 1.442695, %v3284_v33  ;;  %vm20078_vm9 = vmmov %vm20036_vm2  ;;  %v20107_v33 = vld [vmem:[#allocation140_spill] sm:$0xff] }
 0x475   : > { %11648 = vmatmul.mubr.msk.f32.gmra.mxu1 %vm20077_vm10, %v16055_v48  ;;  %3367 = vadd.xlane.f32.xlu0 %v3366_v46  ;;  %v3251_v16 = vpop.xlane.xlu0 %3250  ;;  %vm20079_vm10 = vcmask 64512  }
 0x476   : > { %11650 = vmatprep.mubr.msk.f32.mxu1 %vm20066_vm14, %v19791_v36  ;;  %11670 = vmatprep.mubr.msk.f32.mxu0 %vm20066_vm14, %v19791_v36  ;;  %v3285_v39 = vsub.f32 %v15899_v3, %v3251_v16  ;;  %12974 = vpow2.f32 %v3335_v37  ;;  %v20115_v16 = vld [vmem:[#allocation91_spill] sm:$0xff] }
 0x477   : > { %v16088_v50 = vpop.eup %12962  ;;  %12976 = vpow2.f32 %v3341_v63  ;;  %v20117_v37 = vld [vmem:[#allocation135_spill] sm:$0xff] }
 0x478   : > { %11671 = vmatmul.mubr.msk.f32.vlgmr.msra.gmra.mxu0 %vm20078_vm9, %v12959_v12  ;;  %v12965_v3 = vpop.eup %12964  ;;  %v3337_v4 = vmul.f32 1.442695, %v3285_v39  ;;  %12978 = vpow2.f32 %v3325_v27  ;;  %vm20081_vm9 = vmmov %vm20036_vm2  ;;  %v20114_v12 = vld [vmem:[#allocation132_spill] sm:$0xff]  ;;  %v20119_v63 = vld [vmem:[#allocation179_spill] sm:$0xff] }
 0x479   : > { %11651 = vmatmul.mubr.msk.f32.gmra.mxu1 %vm20036_vm2, %v16073_v22  ;;  %11727 = vmatpush3.xpose.msk.msra.mxu0 %vm20079_vm10, %v15563_v54  ;;  %v3327_v54 = vmul.f32 1.442695, %v3280_v40  ;;  %vm20083_vm2 = vmmov %vm20079_vm10  ;;  %v20123_v40 = vld [vmem:[#allocation74_spill] sm:$0xff] }
 0x47a   : > { %3388 = vadd.xlane.f32.xlu0 %v3387_v11  ;;  %11653 = vmatprep.mubr.msk.f32.mxu1 %vm20066_vm14, %v19791_v36  ;;  %vm20084_vm10 = vmmov %vm20081_vm9  ;;  %12980 = vpow2.f32 %v3337_v4  ;;  %v20129_v4 = vld [vmem:[#allocation96_spill] sm:$0xff] }
 0x47b   : > { %11673 = vmatprep.mubr.msk.f32.mxu0 %vm20066_vm14, %v19791_v36  ;;  %11728 = vmatprep.subr.mxu0 %v19791_v36  ;;  %v3369_v61 = vsel %vm20084_vm10, %v15999_v17, 0.0  ;;  %v16104_v38 = vpop.eup %12966  ;;  %12982 = vpow2.f32 %v3327_v54  ;;  %vm20086_vm10 = vmmov %vm20081_vm9  ;;  %v3339_v17 = vmul.f32 1.442695, %v3286_v44  ;;  %v20131_v54 = vld [vmem:[#allocation102_spill] sm:$0xff] }
 0x47c   : > { %11674 = vmatmul.mubr.msk.f32.gmra.mxu0 %vm20081_vm9, %v12965_v3  ;;  %v12969_v6 = vpop.eup %12968  ;;  %v3390_v20 = vsel %vm20086_vm10, %v12965_v3, 0.0  ;;  %vm20088_vm7 = vmmov %vm20083_vm2  ;;  %12984 = vpow2.f32 %v3329_v45  ;;  %v20128_v3 = vld [vmem:[#allocation170_spill] sm:$0xff]  ;;  %v20141_v45 = vld [vmem:[#allocation163_spill] sm:$0xff] }
 0x47d   : > { %11654 = vmatmul.mubr.msk.f32.gmra.mxu1 %vm20082_vm12, %v16088_v50  ;;  %11729 = vmatpush3.xpose.msk.msra.mxu0 %vm20083_vm2, %v15652_v14  ;;  %vm20085_vm12 = vmmov %vm20081_vm9  ;;  %12986 = vpow2.f32 %v3339_v17  ;;  %v20145_v17 = vld [vmem:[#allocation86_spill] sm:$0xff] }
 0x47e   : > { %3370 = vadd.xlane.f32.xlu0 %v3369_v61  ;;  %11676 = vmatprep.mubr.msk.f32.mxu0 %vm20066_vm14, %v19791_v36  ;;  %vm20094_vm10 = vmmov %vm20088_vm7  ;;  %12988 = vpow2.f32 %v3343_v58  ;;  %v20135_v61 = vld [vmem:[#allocation178_spill] sm:$0xff]  ;;  %v20166_v58 = vld [vmem:[#allocation181_spill] sm:$0xff] }
 0x47f   : > { %11705 = vmatprep.mubr.msk.f32.mxu1 %vm20066_vm14, %v19791_v36  ;;  %11730 = vmatprep.subr.mxu0 %v19791_v36  ;;  %v12971_v14 = vpop.eup %12970 }
 0x480   : > { %11677 = vmatmul.mubr.msk.f32.gmra.mxu0 %vm20081_vm9, %v12969_v6  ;;  %v12973_v21 = vpop.eup %12972 }
 0x481   : > { %11706 = vmatmul.mubr.msk.f32.vlgmr.msra.gmra.mxu1 %vm20085_vm12, %v16104_v38  ;;  %11731 = vmatpush3.xpose.msk.msra.mxu0 %vm20083_vm2, %v15521_v35  ;;  %v3411_v35 = vsel %vm20081_vm9, %v12971_v14, 0.0  ;;  %vm20089_vm12 = vmmov %vm20081_vm9 }
 0x482   : > { %11762 = vmatpush3.xpose.msk.msra.mxu1 %vm20088_vm7, %v20087_v55  ;;  %3391 = vadd.xlane.f32.xlu0 %v3390_v20  ;;  %vm20090_vm2 = vmmov %vm20081_vm9  ;;  %v20143_v20 = vld [vmem:[#allocation180_spill] sm:$0xff]  ;;  %v20147_v55 = vld [vmem:[#allocation106_spill] sm:$0xff] }
 0x483   : > { %11679 = vmatprep.mubr.msk.f32.mxu0 %vm20066_vm14, %v19791_v36  ;;  %11708 = vmatprep.mubr.msk.f32.mxu1 %vm20066_vm14, %v19791_v36  ;;  %vm20095_vm4 = vmmov %vm20090_vm2  ;;  %v16137_v56 = vpop.eup %12974 }
 0x484   : > { %11732 = vmatprep.subr.mxu0 %v19791_v36  ;;  %11763 = vmatprep.subr.mxu1 %v19791_v36  ;;  %v3372_v41 = vsel %vm20095_vm4, %v16020_v31, 0.0  ;;  %v12977_v8 = vpop.eup %12976  ;;  %vm20096_vm9 = vmmov %vm20090_vm2  ;;  %v20098_v31 = vld [vmem:[#allocation116_spill] sm:$0xff] }
 0x485   : > { %11680 = vmatmul.mubr.msk.f32.gmra.mxu0 %vm20089_vm12, %v12973_v21  ;;  %11709 = vmatmul.mubr.msk.f32.gmra.mxu1 %vm20090_vm2, %v12971_v14  ;;  %v12979_v29 = vpop.eup %12978  ;;  %vm20097_vm4 = vmmov %vm20090_vm2  ;;  %v20139_v14 = vld [vmem:[#allocation108_spill] sm:$0xff] }
 0x486   : > { %11733 = vmatpush3.xpose.msk.msra.mxu0 %vm20088_vm7, %v20092_v24  ;;  %11764 = vmatpush3.xpose.msk.msra.mxu1 %vm20094_vm10, %v20093_v9  ;;  %vm20099_vm12 = vmmov %vm20088_vm7  ;;  %v20156_v24 = vld [vmem:[#allocation155_spill] sm:$0xff]  ;;  %v20159_v9 = vld [vmem:[#allocation176_spill] sm:$0xff] }
 0x487   : > { %3373 = vadd.xlane.f32.xlu0 %v3372_v41  ;;  %3412 = vadd.xlane.f32.xlu1 %v3411_v35  ;;  %vm20101_vm2 = vmmov %vm20088_vm7  ;;  %v16154_v32 = vpop.eup %12980  ;;  %v20160_v41 = vld [vmem:[#allocation89_spill] sm:$0xff] }
 0x488   : > { %11682 = vmatprep.mubr.msk.f32.mxu0 %vm20066_vm14, %v19791_v36  ;;  %11711 = vmatprep.mubr.msk.f32.mxu1 %vm20066_vm14, %v19791_v36  ;;  %vm20102_vm7 = vmmov %vm20097_vm4  ;;  %v12983_v62 = vpop.eup %12982 }
 0x489   : > { %11734 = vmatprep.subr.mxu0 %v19791_v36  ;;  %11765 = vmatprep.subr.mxu1 %v19791_v36  ;;  %v3393_v23 = vsel %vm20102_vm7, %v12969_v6, 0.0  ;;  %vm20103_vm10 = vmmov %vm20097_vm4  ;;  %v16173_v0 = vpop.eup %12984  ;;  %v20137_v6 = vld [vmem:[#allocation80_spill] sm:$0xff] }
 0x48a   : > { %11683 = vmatmul.mubr.msk.f32.gmra.mxu0 %vm20096_vm9, %v12979_v29  ;;  %11712 = vmatmul.mubr.msk.f32.gmra.mxu1 %vm20097_vm4, %v16137_v56  ;;  %v3423_v53 = vsel %vm20103_vm10, %v12977_v8, 0.0  ;;  %vm20104_vm9 = vmmov %vm20097_vm4  ;;  %v16178_v7 = vpop.eup %12986 }
 0x48b   : > { %11735 = vmatpush3.xpose.msk.msra.mxu0 %vm20099_vm12, %v20098_v31  ;;  %11766 = vmatpush3.xpose.msk.msra.mxu1 %vm20101_vm2, %v20100_v57  ;;  %vm20106_vm12 = vmmov %vm20101_vm2  ;;  %v16207_v27 = vpop.eup %12988  ;;  %v20168_v57 = vld [vmem:[#allocation100_spill] sm:$0xff] }
 0x48c   : > { %3394 = vadd.xlane.f32.xlu0 %v3393_v23  ;;  %3424 = vadd.xlane.f32.xlu1 %v3423_v53  ;;  %vm20108_vm7 = vmmov %vm20097_vm4  ;;  %v20169_v23 = vld [vmem:[#allocation77_spill] sm:$0xff] }
 0x48d   : > { %11685 = vmatprep.mubr.msk.f32.mxu0 %vm20066_vm14, %v19791_v36  ;;  %11714 = vmatprep.mubr.msk.f32.mxu1 %vm20066_vm14, %v19791_v36  ;;  %v3375_v26 = vsel %vm20108_vm7, %v16039_v43, 0.0  ;;  %vm20109_vm10 = vmmov %vm20097_vm4  ;;  %v20111_v43 = vld [vmem:[#allocation107_spill] sm:$0xff]  ;;  %v20171_v53 = vld [vmem:[#allocation169_spill] sm:$0xff] }
 0x48e   : > { %11736 = vmatprep.subr.mxu0 %v19791_v36  ;;  %11767 = vmatprep.subr.mxu1 %v19791_v36 }
 0x48f   : > { %11686 = vmatmul.mubr.msk.f32.gmra.mxu0 %vm20104_vm9, %v12983_v62  ;;  %11715 = vmatmul.mubr.msk.f32.gmra.mxu1 %vm20097_vm4, %v16154_v32  ;;  %vm20110_vm9 = vmmov %vm20097_vm4 }
 0x490   : > { %11737 = vmatpush3.xpose.msk.msra.mxu0 %vm20106_vm12, %v20105_v51  ;;  %11768 = vmatpush3.xpose.msk.msra.mxu1 %vm20101_vm2, %v20107_v33  ;;  %vm20112_vm4 = vmmov %vm20101_vm2  ;;  %v20175_v51 = vld [vmem:[#allocation144_spill] sm:$0xff]  ;;  %v20176_v33 = vld [vmem:[#allocation126_spill] sm:$0xff] }
 0x491   : > { %3376 = vadd.xlane.f32.xlu0 %v3375_v26  ;;  %11688 = vmatprep.mubr.msk.f32.mxu0 %vm20066_vm14, %v19791_v36  ;;  %vm20113_vm12 = vmmov %vm20108_vm7  ;;  %v20180_v26 = vld [vmem:[#allocation177_spill] sm:$0xff] }
 0x492   : > { %11717 = vmatprep.mubr.msk.f32.mxu1 %vm20066_vm14, %v19791_v36  ;;  %11738 = vmatprep.subr.mxu0 %v19791_v36  ;;  %v3396_v46 = vsel %vm20113_vm12, %v12973_v21, 0.0  ;;  %vm20121_vm12 = vmmov %vm20108_vm7  ;;  %v20151_v21 = vld [vmem:[#allocation172_spill] sm:$0xff] }
 0x493   : > { %11769 = vmatprep.subr.mxu1 %v19791_v36  ;;  %11689 = vmatmul.mubr.msk.f32.gmra.mxu0 %vm20109_vm10, %v16173_v0  ;;  %vm20116_vm10 = vmmov %vm20101_vm2  ;;  %v3378_v39 = vsel %vm20121_vm12, %v16055_v48, 0.0  ;;  %v20125_v48 = vld [vmem:[#allocation148_spill] sm:$0xff] }
 0x494   : > { %11718 = vmatmul.mubr.msk.f32.gmra.mxu1 %vm20110_vm9, %v16178_v7  ;;  %11739 = vmatpush3.xpose.msk.msra.mxu0 %vm20112_vm4, %v20111_v43  ;;  %vm20118_vm9 = vmmov %vm20101_vm2 }
 0x495   : > { %11770 = vmatpush3.xpose.msk.msra.mxu1 %vm20101_vm2, %v20114_v12  ;;  %3397 = vadd.xlane.f32.xlu0 %v3396_v46  ;;  %vm20120_vm4 = vmmov %vm20101_vm2  ;;  %v20183_v46 = vld [vmem:[#allocation137_spill] sm:$0xff]  ;;  %v20184_v12 = vld [vmem:[#allocation83_spill] sm:$0xff] }
 0x496   : > { %11720 = vmatprep.mubr.msk.f32.mxu1 %vm20066_vm14, %v19791_v36  ;;  %11740 = vmatprep.mubr.msk.f32.mxu0 %vm20066_vm14, %v19791_v36  ;;  %vm20122_vm2 = vmmov %vm20108_vm7 }
 0x497   : > { %11771 = vmatprep.subr.mxu1 %v19791_v36  ;;  %11796 = vmatprep.subr.mxu0 %v19791_v36  ;;  %vm20130_vm12 = vmmov %vm20120_vm4 }
 0x498   : > { %11721 = vmatmul.mubr.msk.f32.gmra.mxu1 %vm20108_vm7, %v12977_v8  ;;  %11741 = vmatmul.mubr.msk.f32.vlgmr.msra.gmra.mxu0 %vm20116_vm10, %v20115_v16  ;;  %vm20124_vm7 = vmmov %vm20120_vm4  ;;  %v20162_v8 = vld [vmem:[#allocation114_spill] sm:$0xff]  ;;  %v20186_v16 = vld [vmem:[#allocation87_spill] sm:$0xff] }
 0x499   : > { %11772 = vmatpush3.xpose.msk.msra.mxu1 %vm20118_vm9, %v20117_v37  ;;  %11797 = vmatpush3.xpose.msk.msra.mxu0 %vm20120_vm4, %v20119_v63  ;;  %vm20126_vm10 = vmmov %vm20120_vm4  ;;  %v20189_v37 = vld [vmem:[#allocation156_spill] sm:$0xff] }
 0x49a   : > { %3379 = vadd.xlane.f32.xlu0 %v3378_v39  ;;  %11723 = vmatprep.mubr.msk.f32.mxu1 %vm20066_vm14, %v19791_v36  ;;  %vm20127_vm9 = vmmov %vm20122_vm2  ;;  %v20191_v39 = vld [vmem:[#allocation133_spill] sm:$0xff] }
 0x49b   : > { %11743 = vmatprep.mubr.msk.f32.mxu0 %vm20066_vm14, %v19791_v36  ;;  %11773 = vmatprep.subr.mxu1 %v19791_v36  ;;  %v3399_v11 = vsel %vm20127_vm9, %v12979_v29, 0.0  ;;  %v3381_v44 = vsel %vm20127_vm9, %v16073_v22, 0.0  ;;  %v20164_v29 = vld [vmem:[#allocation159_spill] sm:$0xff] }
 0x49c   : > { %11798 = vmatprep.subr.mxu0 %v19791_v36  ;;  %11724 = vmatmul.mubr.msk.f32.gmra.mxu1 %vm20122_vm2, %v16207_v27  ;;  %vm20132_vm2 = vmmov %vm20120_vm4 }
 0x49d   : > { %11744 = vmatmul.mubr.msk.f32.gmra.mxu0 %vm20124_vm7, %v20123_v40  ;;  %11774 = vmatpush3.xpose.msk.msra.mxu1 %vm20126_vm10, %v20125_v48  ;;  %vm20134_vm7 = vmmov %vm20132_vm2  ;;  %v20192_v40 = vld [vmem:[#allocation152_spill] sm:$0xff]  ;;  %v20193_v48 = vld [vmem:[#allocation94_spill] sm:$0xff] }
 0x49e   : > { %11799 = vmatpush3.xpose.msk.msra.mxu0 %vm20120_vm4, %v20128_v3  ;;  %3400 = vadd.xlane.f32.xlu0 %v3399_v11  ;;  %vm20136_vm10 = vmmov %vm20132_vm2  ;;  %v20196_v11 = vld [vmem:[#allocation110_spill] sm:$0xff]  ;;  %v20197_v3 = vld [vmem:[#allocation153_spill] sm:$0xff] }
 0x49f   : > { %11746 = vmatprep.mubr.msk.f32.mxu0 %vm20066_vm14, %v19791_v36  ;;  %11775 = vmatprep.mubr.msk.f32.mxu1 %vm20066_vm14, %v19791_v36  ;;  %vm20138_vm4 = vmmov %vm20132_vm2 }
 0x4a0   : > { %11800 = vmatprep.subr.mxu0 %v19791_v36  ;;  %11831 = vmatprep.subr.mxu1 %v19791_v36 }
 0x4a1   : > { %11747 = vmatmul.mubr.msk.f32.gmra.mxu0 %vm20130_vm12, %v20129_v4  ;;  %11776 = vmatmul.mubr.msk.f32.vlgmr.msra.gmra.mxu1 %vm20132_vm2, %v20131_v54  ;;  %vm20140_vm12 = vmmov %vm20132_vm2  ;;  %v20198_v4 = vld [vmem:[#allocation183_spill] sm:$0xff]  ;;  %v20199_v54 = vld [vmem:[#allocation101_spill] sm:$0xff] }
 0x4a2   : > { %11801 = vmatpush3.xpose.msk.msra.mxu0 %vm20134_vm7, %v20133_v10  ;;  %11832 = vmatpush3.xpose.msk.msra.mxu1 %vm20136_vm10, %v20135_v61  ;;  %vm20142_vm7 = vmmov %vm20127_vm9  ;;  %v20201_v10 = vld [vmem:[#allocation93_spill] sm:$0xff] }
 0x4a3   : > { %3382 = vadd.xlane.f32.xlu0 %v3381_v44  ;;  %11749 = vmatprep.mubr.msk.f32.mxu0 %vm20066_vm14, %v19791_v36  ;;  %v3402_v22 = vsel %vm20142_vm7, %v12983_v62, 0.0  ;;  %vm20144_vm10 = vmmov %vm20132_vm2  ;;  %v3384_v35 = vsel %vm20142_vm7, %v16088_v50, 0.0  ;;  %v20174_v62 = vld [vmem:[#allocation129_spill] sm:$0xff]  ;;  %v20204_v44 = vld [vmem:[#allocation160_spill] sm:$0xff] }
 0x4a4   : > { %11778 = vmatprep.mubr.msk.f32.mxu1 %vm20066_vm14, %v19791_v36  ;;  %11802 = vmatprep.subr.mxu0 %v19791_v36  ;;  %vm20146_vm9 = vmmov %vm20132_vm2  ;;  %v20203_v61 = vld [vmem:[#allocation185_spill] sm:$0xff] }
 0x4a5   : > { %11833 = vmatprep.subr.mxu1 %v19791_v36  ;;  %11750 = vmatmul.mubr.msk.f32.gmra.mxu0 %vm20138_vm4, %v20137_v6  ;;  %vm20148_vm4 = vmmov %vm20132_vm2  ;;  %v20205_v6 = vld [vmem:[#allocation98_spill] sm:$0xff] }
 0x4a6   : > { %11779 = vmatmul.mubr.msk.f32.gmra.mxu1 %vm20140_vm12, %v20139_v14  ;;  %11803 = vmatpush3.xpose.msk.msra.mxu0 %vm20132_vm2, %v20141_v45  ;;  %vm20150_vm12 = vmmov %vm20132_vm2  ;;  %v20207_v14 = vld [vmem:[#allocation99_spill] sm:$0xff] }
 0x4a7   : > { %11834 = vmatpush3.xpose.msk.msra.mxu1 %vm20144_vm10, %v20143_v20  ;;  %3403 = vadd.xlane.f32.xlu0 %v3402_v22  ;;  %vm20153_vm10 = vmmov %vm20132_vm2  ;;  %v20209_v45 = vld [vmem:[#allocation187_spill] sm:$0xff]  ;;  %v20210_v22 = vld [vmem:[#allocation104_spill] sm:$0xff] }
 0x4a8   : > { %11752 = vmatprep.mubr.msk.f32.mxu0 %vm20066_vm14, %v19791_v36  ;;  %11781 = vmatprep.mubr.msk.f32.mxu1 %vm20066_vm14, %v19791_v36  ;;  %v20212_v20 = vld [vmem:[#allocation117_spill] sm:$0xff] }
 0x4a9   : > { %11804 = vmatprep.subr.mxu0 %v19791_v36  ;;  %11835 = vmatprep.subr.mxu1 %v19791_v36 }
 0x4aa   : > { %11753 = vmatmul.mubr.msk.f32.gmra.mxu0 %vm20146_vm9, %v20145_v17  ;;  %11782 = vmatmul.mubr.msk.f32.gmra.mxu1 %vm20148_vm4, %v20147_v55  ;;  %vm20155_vm9 = vmmov %vm20132_vm2  ;;  %v20213_v17 = vld [vmem:[#allocation103_spill] sm:$0xff]  ;;  %v20215_v55 = vld [vmem:[#allocation130_spill] sm:$0xff] }
 0x4ab   : > { %11805 = vmatpush3.xpose.msk.msra.mxu0 %vm20150_vm12, %v20149_v42  ;;  %11836 = vmatpush3.xpose.msk.msra.mxu1 %vm20132_vm2, %v20151_v21  ;;  %vm20157_vm4 = vmmov %vm20132_vm2 }
 0x4ac   : > { %3385 = vadd.xlane.f32.xlu0 %v3384_v35  ;;  %11755 = vmatprep.mubr.msk.f32.mxu0 %vm20066_vm14, %v19791_v36  ;;  %vm20158_vm12 = vmmov %vm20142_vm7 }
 0x4ad   : > { %11784 = vmatprep.mubr.msk.f32.mxu1 %vm20066_vm14, %v19791_v36  ;;  %11806 = vmatprep.subr.mxu0 %v19791_v36  ;;  %v3405_v50 = vsel %vm20158_vm12, %v16173_v0, 0.0  ;;  %vm20161_vm7 = vmmov %vm20132_vm2  ;;  %v3408_v31 = vsel %vm20158_vm12, %v16104_v38, 0.0  ;;  %v20181_v0 = vld [vmem:[#allocation125_spill] sm:$0xff] }
 0x4ae   : > { %11837 = vmatprep.subr.mxu1 %v19791_v36  ;;  %11756 = vmatmul.mubr.msk.f32.gmra.mxu0 %vm20153_vm10, %v20152_v2  ;;  %vm20163_vm10 = vmmov %vm20132_vm2 }
 0x4af   : > { %11785 = vmatmul.mubr.msk.f32.gmra.mxu1 %vm20155_vm9, %v20154_v13  ;;  %11807 = vmatpush3.xpose.msk.msra.mxu0 %vm20157_vm4, %v20156_v24  ;;  %vm20165_vm9 = vmmov %vm20132_vm2 }
 0x4b0   : > { %11838 = vmatpush3.xpose.msk.msra.mxu1 %vm20132_vm2, %v20159_v9  ;;  %3406 = vadd.xlane.f32.xlu0 %v3405_v50  ;;  %vm20167_vm4 = vmmov %vm20132_vm2 }
 0x4b1   : > { %11758 = vmatprep.mubr.msk.f32.mxu0 %vm20066_vm14, %v19791_v36  ;;  %11787 = vmatprep.mubr.msk.f32.mxu1 %vm20066_vm14, %v19791_v36 }
 0x4b2   : > { %11808 = vmatprep.subr.mxu0 %v19791_v36  ;;  %11839 = vmatprep.subr.mxu1 %v19791_v36 }
 0x4b3   : > { %11759 = vmatmul.mubr.msk.f32.gmra.mxu0 %vm20161_vm7, %v20160_v41  ;;  %11788 = vmatmul.mubr.msk.f32.gmra.mxu1 %vm20163_vm10, %v20162_v8  ;;  %vm20170_vm7 = vmmov %vm20132_vm2 }
 0x4b4   : > { %11809 = vmatpush3.xpose.msk.msra.mxu0 %vm20165_vm9, %v20164_v29  ;;  %11840 = vmatpush3.xpose.msk.msra.mxu1 %vm20167_vm4, %v20166_v58  ;;  %vm20172_vm10 = vmmov %vm20132_vm2 }
 0x4b5   : > { %3409 = vadd.xlane.f32.xlu0 %v3408_v31  ;;  %11790 = vmatprep.mubr.msk.f32.mxu1 %vm20066_vm14, %v19791_v36  ;;  %vm20173_vm9 = vmmov %vm20158_vm12 }
 0x4b6   : > { %11810 = vmatprep.mubr.msk.f32.mxu0 %vm20066_vm14, %v19791_v36  ;;  %11841 = vmatprep.subr.mxu1 %v19791_v36  ;;  %v3414_v38 = vsel %vm20173_vm9, %v16137_v56, 0.0  ;;  %vm20177_vm4 = vmmov %vm20132_vm2  ;;  %v20178_v56 = vld [vmem:[#allocation88_spill] sm:$0xff] }
 0x4b7   : > { %11866 = vmatprep.subr.mxu0 %v19791_v36  ;;  %11791 = vmatmul.mubr.msk.f32.gmra.mxu1 %vm20132_vm2, %v20168_v57  ;;  %vm20179_vm12 = vmmov %vm20132_vm2 }
 0x4b8   : > { %11811 = vmatmul.mubr.msk.f32.vlgmr.msra.gmra.mxu0 %vm20170_vm7, %v20169_v23  ;;  %11842 = vmatpush3.xpose.msk.msra.mxu1 %vm20172_vm10, %v20171_v53  ;;  %vm20182_vm7 = vmmov %vm20173_vm9 }
 0x4b9   : > { %11867 = vmatpush3.msra.mxu0 %v20174_v62  ;;  %3415 = vadd.xlane.f32.xlu0 %v3414_v38  ;;  %v3417_v43 = vsel %vm20182_vm7, %v16154_v32, 0.0  ;;  %vm20185_vm10 = vmmov %vm20132_vm2  ;;  %v20188_v32 = vld [vmem:[#allocation120_spill] sm:$0xff] }
 0x4ba   : > { %11868 = vmatprep.subr.mxu0 %v19791_v36  ;;  %11793 = vmatprep.mubr.msk.f32.mxu1 %vm20066_vm14, %v19791_v36  ;;  %vm20187_vm9 = vmmov %vm20132_vm2 }
 0x4bb   : > { %11869 = vmatpush3.msra.mxu0 %v20175_v51  ;;  %11813 = vmatprep.mubr.msk.f32.mxu0 %vm20066_vm14, %v19791_v36 }
 0x4bc   : > { %11843 = vmatprep.subr.mxu1 %v19791_v36  ;;  %11870 = vmatprep.subr.mxu0 %v19791_v36 }
 0x4bd   : > { %11794 = vmatmul.mubr.msk.f32.gmra.mxu1 %vm20177_vm4, %v20176_v33  ;;  %11814 = vmatmul.mubr.msk.f32.gmra.mxu0 %vm20179_vm12, %v20178_v56  ;;  %vm20190_vm4 = vmmov %vm20182_vm7 }
 0x4be   : > { %11844 = vmatpush3.xpose.msk.msra.mxu1 %vm20132_vm2, %v20180_v26  ;;  %11871 = vmatpush3.msra.mxu0 %v20181_v0  ;;  %v3420_v63 = vsel %vm20190_vm4, %v16178_v7, 0.0  ;;  %vm20194_vm12 = vmmov %vm20132_vm2  ;;  %v20195_v7 = vld [vmem:[#allocation97_spill] sm:$0xff] }
 0x4bf   : > { %11872 = vmatprep.subr.mxu0 %v19791_v36  ;;  %3418 = vadd.xlane.f32.xlu0 %v3417_v43  ;;  %vm20200_vm7 = vmmov %vm20132_vm2 }
 0x4c0   : > { %11873 = vmatpush3.msra.mxu0 %v20183_v46  ;;  %11816 = vmatprep.mubr.msk.f32.mxu0 %vm20066_vm14, %v19791_v36  ;;  %vm20208_vm4 = vmmov %vm20132_vm2 }
 0x4c1   : > { %11845 = vmatprep.mubr.msk.f32.mxu1 %vm20066_vm14, %v19791_v36  ;;  %11874 = vmatprep.subr.mxu0 %v19791_v36 }
 0x4c2   : > { %11901 = vmatprep.subr.mxu1 %v19791_v36  ;;  %11817 = vmatmul.mubr.msk.f32.gmra.mxu0 %vm20185_vm10, %v20184_v12  ;;  %vm20202_vm10 = vmmov %vm20132_vm2 }
 0x4c3   : > { %11846 = vmatmul.mubr.msk.f32.vlgmr.msra.gmra.mxu1 %vm20187_vm9, %v20186_v16  ;;  %11875 = vmatpush3.msra.mxu0 %v20188_v32  ;;  %vm20206_vm9 = vmmov %vm20132_vm2 }
 0x4c4   : > { %11902 = vmatpush3.msra.mxu1 %v20189_v37  ;;  %11876 = vmatprep.subr.mxu0 %v19791_v36 }
 0x4c5   : > { %11903 = vmatprep.subr.mxu1 %v19791_v36  ;;  %3421 = vadd.xlane.f32.xlu0 %v3420_v63 }
 0x4c6   : > { %11877 = vmatpush3.msra.mxu0 %v20191_v39  ;;  %11904 = vmatpush3.msra.mxu1 %v20192_v40 }
 0x4c7   : > { %11819 = vmatprep.mubr.msk.f32.mxu0 %vm20066_vm14, %v19791_v36  ;;  %11848 = vmatprep.mubr.msk.f32.mxu1 %vm20066_vm14, %v19791_v36 }
 0x4c8   : > { %11878 = vmatprep.subr.mxu0 %v19791_v36  ;;  %11905 = vmatprep.subr.mxu1 %v19791_v36 }
 0x4c9   : > { %11820 = vmatmul.mubr.msk.f32.gmra.mxu0 %vm20194_vm12, %v20193_v48  ;;  %11849 = vmatmul.mubr.msk.f32.gmra.mxu1 %vm20132_vm2, %v20195_v7  ;;  %vm20211_vm12 = vmmov %vm20132_vm2 }
 0x4ca   : > { %11879 = vmatpush3.msra.mxu0 %v20196_v11  ;;  %11906 = vmatpush3.msra.mxu1 %v20197_v3 }
 0x4cb   : > { %11907 = vmatprep.subr.mxu1 %v19791_v36  ;;  %11822 = vmatprep.mubr.msk.f32.mxu0 %vm20066_vm14, %v19791_v36 }
 0x4cc   : > { %11908 = vmatpush3.msra.mxu1 %v20198_v4  ;;  %11851 = vmatprep.mubr.msk.f32.mxu1 %vm20066_vm14, %v19791_v36 }
 0x4cd   : > { %11909 = vmatprep.subr.mxu1 %v19791_v36  ;;  %11823 = vmatmul.mubr.msk.f32.gmra.mxu0 %vm20200_vm7, %v20199_v54  ;;  %vm20214_vm7 = vmmov %vm20132_vm2 }
 0x4ce   : > { %11852 = vmatmul.mubr.msk.f32.gmra.mxu1 %vm20202_vm10, %v20201_v10  ;;  %11825 = vmatprep.mubr.msk.f32.mxu0 %vm20066_vm14, %v19791_v36  ;;  %vm20216_vm10 = vmmov %vm20132_vm2 }
 0x4cf   : > { %11910 = vmatpush3.msra.mxu1 %v20203_v61  ;;  %11854 = vmatprep.mubr.msk.f32.mxu1 %vm20066_vm14, %v19791_v36 }
 0x4d0   : > { %11911 = vmatprep.subr.mxu1 %v19791_v36  ;;  %11936 = vmatprep.subr.mxu0 %v19791_v36 }
 0x4d1   : > { %11912 = vmatpush3.msra.mxu1 %v20204_v44  ;;  %11826 = vmatmul.mubr.msk.f32.gmra.mxu0 %vm20206_vm9, %v20205_v6  ;;  %vm20239_vm9 = vcmask 457728  }
 0x4d2   : > { %11913 = vmatprep.subr.mxu1 %v19791_v36  ;;  %11855 = vmatmul.mubr.msk.f32.gmra.mxu1 %vm20208_vm4, %v20207_v14  ;;  %vm20241_vm4 = vmmov %vm20239_vm9 }
 0x4d3   : > { %11914 = vmatpush3.msra.mxu1 %v20209_v45  ;;  %11828 = vmatprep.mubr.msk.f32.mxu0 %vm20066_vm14, %v19791_v36 }
 0x4d4   : > { %11857 = vmatprep.mubr.msk.f32.mxu1 %vm20066_vm14, %v19791_v36  ;;  %11971 = vmatprep.subr.mxu1 %v19791_v36 }
 0x4d5   : > { %11829 = vmatmul.mubr.msk.f32.gmra.mxu0 %vm20211_vm12, %v20210_v22  ;;  %vm20243_vm12 = vmmov %vm20241_vm4 }
 0x4d6   : > { %11858 = vmatmul.mubr.msk.f32.gmra.mxu1 %vm20132_vm2, %v20212_v20  ;;  %11880 = vmatprep.mubr.msk.f32.mxu0 %vm20066_vm14, %v19791_v36  ;;  %vm20245_vm2 = vmmov %vm20241_vm4 }
 0x4d7   : > { %11860 = vmatprep.mubr.msk.f32.mxu1 %vm20066_vm14, %v19791_v36 }
 0x4da   : > { %11861 = vmatmul.mubr.msk.f32.gmra.mxu1 %vm20214_vm7, %v20213_v17  ;;  %vm20247_vm7 = vmmov %vm20245_vm2 }
 0x4db   : > { %11863 = vmatprep.mubr.msk.f32.mxu1 %vm20066_vm14, %v19791_v36 }
 0x4de   : > { %11864 = vmatmul.mubr.msk.f32.gmra.mxu1 %vm20216_vm10, %v20215_v55  ;;  %vm20250_vm10 = vmmov %vm20245_vm2 }
 0x4df   : > { %11915 = vmatprep.mubr.msk.f32.mxu1 %vm20066_vm14, %v19791_v36 }
 0x518   : > { %v16411_v42 = vpop.f32.mrf.mxu0 }
 0x51a   : > { %v11602_v21 = vpop.f32.mrf.mxu0 }
 0x51c   : > { %v16413_v35 = vpop.f32.mrf.mxu0 }
 0x51e   : > { %v11605_v2 = vpop.f32.mrf.mxu0 }
 0x520   : > { %v16415_v13 = vpop.f32.mrf.mxu0 }
 0x521   : > { %v16417_v24 = vpop.f32.mrf.mxu1 }
 0x522   : > { %20217 = vst [vmem:[#allocation142_spill] sm:$0xff] %v16417_v24  ;;  %v11608_v50 = vpop.f32.mrf.mxu0 }
 0x523   : > { %v11637_v9 = vpop.f32.mrf.mxu1 }
 0x527   : > { %v16419_v41 = vpop.f32.mrf.mxu0  ;;  %v16421_v8 = vpop.f32.mrf.mxu1 }
 0x528   : > { %20218 = vst [vmem:[#allocation150_spill] sm:$0xff] %v16421_v8 }
 0x529   : > { %v11611_v29 = vpop.f32.mrf.mxu0  ;;  %v11640_v58 = vpop.f32.mrf.mxu1 }
 0x52a   : > { %v16463_v29 = vpop.xlane.xlu0 %3349 }
 0x52c   : > { %v16423_v31 = vpop.f32.mrf.mxu0  ;;  %v16425_v57 = vpop.f32.mrf.mxu1 }
 0x52d   : > { %20219 = vst [vmem:[#allocation113_spill] sm:$0xff] %v16425_v57 }
 0x52e   : > { %v11614_v23 = vpop.f32.mrf.mxu0  ;;  %v11643_v53 = vpop.f32.mrf.mxu1 }
 0x530   : > { %v16427_v38 = vpop.f32.mrf.mxu0 }
 0x531   : > { %v16429_v62 = vpop.f32.mrf.mxu1 }
 0x532   : > { %20220 = vst [vmem:[#allocation147_spill] sm:$0xff] %v16429_v62  ;;  %v11617_v51 = vpop.f32.mrf.mxu0  ;;  %v20317_v62 = vld [vmem:[#allocation27_spill] sm:$0xff] }
 0x533   : > { %v11646_v33 = vpop.f32.mrf.mxu1 }
 0x534   : > { %v16431_v56 = vpop.f32.mrf.mxu0 }
 0x535   : > { %v16433_v26 = vpop.f32.mrf.mxu1 }
 0x536   : > { %20221 = vst [vmem:[#allocation116_spill] sm:$0xff] %v16433_v26  ;;  %v11620_v0 = vpop.f32.mrf.mxu0 }
 0x537   : > { %v11649_v43 = vpop.f32.mrf.mxu1 }
 0x538   : > { %v16435_v46 = vpop.f32.mrf.mxu0 }
 0x539   : > { %20222 = vst [vmem:[#allocation138_spill] sm:$0xff] %v16435_v46  ;;  %v16437_v12 = vpop.f32.mrf.mxu1 }
 0x53a   : > { %20223 = vst [vmem:[#allocation105_spill] sm:$0xff] %v16437_v12  ;;  %v11672_v16 = vpop.f32.mrf.mxu0  ;;  %v20295_v12 = vld [vmem:[#allocation141_spill] sm:$0xff] }
 0x53b   : > { %v11652_v32 = vpop.f32.mrf.mxu1  ;;  %v16471_v16 = vpop.xlane.xlu0 %3352 }
 0x53c   : > { %v16439_v37 = vpop.f32.mrf.mxu0 }
 0x53d   : > { %20224 = vst [vmem:[#allocation140_spill] sm:$0xff] %v16439_v37  ;;  %v16441_v63 = vpop.f32.mrf.mxu1 }
 0x53e   : > { %20225 = vst [vmem:[#allocation107_spill] sm:$0xff] %v16441_v63  ;;  %v11675_v39 = vpop.f32.mrf.mxu0 }
 0x53f   : > { %v11655_v40 = vpop.f32.mrf.mxu1 }
 0x540   : > { %v16443_v48 = vpop.f32.mrf.mxu0 }
 0x541   : > { %20226 = vst [vmem:[#allocation132_spill] sm:$0xff] %v16443_v48  ;;  %v16445_v7 = vpop.f32.mrf.mxu1  ;;  %v20284_v48 = vld [vmem:[#allocation166_spill] sm:$0xff] }
 0x542   : > { %20227 = vst [vmem:[#allocation91_spill] sm:$0xff] %v16445_v7  ;;  %v11678_v11 = vpop.f32.mrf.mxu0 }
 0x543   : > { %v11707_v3 = vpop.f32.mrf.mxu1 }
 0x545   : > { %v16447_v4 = vpop.f32.mrf.mxu0  ;;  %v16449_v54 = vpop.f32.mrf.mxu1 }
 0x546   : > { %20228 = vst [vmem:[#allocation135_spill] sm:$0xff] %v16447_v4  ;;  %20229 = vst [vmem:[#allocation179_spill] sm:$0xff] %v16449_v54 }
 0x547   : > { %v11681_v10 = vpop.f32.mrf.mxu0  ;;  %v11710_v61 = vpop.f32.mrf.mxu1 }
 0x54a   : > { %v16451_v44 = vpop.f32.mrf.mxu0  ;;  %v16453_v6 = vpop.f32.mrf.mxu1 }
 0x54b   : > { %20230 = vst [vmem:[#allocation74_spill] sm:$0xff] %v16451_v44  ;;  %20231 = vst [vmem:[#allocation148_spill] sm:$0xff] %v16453_v6 }
 0x54c   : > { %v11684_v14 = vpop.f32.mrf.mxu0  ;;  %v11713_v45 = vpop.f32.mrf.mxu1 }
 0x54f   : > { %v16455_v22 = vpop.f32.mrf.mxu0  ;;  %v16457_v20 = vpop.f32.mrf.mxu1 }
 0x550   : > { %20232 = vst [vmem:[#allocation170_spill] sm:$0xff] %v16455_v22  ;;  %20233 = vst [vmem:[#allocation96_spill] sm:$0xff] %v16457_v20 }
 0x551   : > { %v11687_v17 = vpop.f32.mrf.mxu0  ;;  %v11716_v55 = vpop.f32.mrf.mxu1 }
 0x553   : > { %v16459_v21 = vpop.f32.mrf.mxu0 }
 0x554   : > { %20234 = vst [vmem:[#allocation102_spill] sm:$0xff] %v16459_v21  ;;  %v16461_v2 = vpop.f32.mrf.mxu1 }
 0x555   : > { %20235 = vst [vmem:[#allocation174_spill] sm:$0xff] %v16461_v2  ;;  %v11690_v50 = vpop.f32.mrf.mxu0 }
 0x556   : > { %v11719_v9 = vpop.f32.mrf.mxu1  ;;  %v16483_v50 = vpop.xlane.xlu0 %3355 }
 0x558   : > { %v16465_v58 = vpop.f32.mrf.mxu1  ;;  %v4091_v23 = vpop.f32.mrf.mxu0 }
 0x559   : > { %20236 = vst [vmem:[#allocation178_spill] sm:$0xff] %v16465_v58  ;;  %v4593_v53 = vmul.f32 0.35355338, %v4091_v23 }
 0x55a   : > { %v11722_v51 = vpop.f32.mrf.mxu1  ;;  %v11742_v33 = vpop.f32.mrf.mxu0 }
 0x55b   : > { %v16469_v43 = vsel %vm15688_vm0, -1e+09, %v4593_v53 }
 0x55c   : > { %v16473_v32 = vpop.f32.mrf.mxu1  ;;  %v4649_v39 = vsel %vm20239_vm9, %v16469_v43, -inf  ;;  %vm20251_vm9 = vmmov %vm20245_vm2 }
 0x55d   : > { %20238 = vst [vmem:[#allocation80_spill] sm:$0xff] %v16473_v32  ;;  %v4096_v40 = vpop.f32.mrf.mxu0  ;;  %4650 = vmax.xlane.f32.xlu0 %v4649_v39 }
 0x55e   : > { %v4594_v11 = vmul.f32 0.35355338, %v4096_v40  ;;  %v11725_v3 = vpop.f32.mrf.mxu1 }
 0x55f   : > { %v11745_v10 = vpop.f32.mrf.mxu0 }
 0x560   : > { %v16479_v14 = vsel %vm15438_vm6, -1e+09, %v4594_v11 }
 0x561   : > { %v4101_v45 = vpop.f32.mrf.mxu0  ;;  %v4247_v17 = vpop.f32.mrf.mxu1  ;;  %v4652_v55 = vsel %vm20241_vm4, %v16479_v14, -inf  ;;  %vm20253_vm4 = vmmov %vm20245_vm2 }
 0x562   : > { %v4595_v9 = vmul.f32 0.35355338, %v4101_v45  ;;  %4653 = vmax.xlane.f32.xlu1 %v4652_v55  ;;  %v16495_v55 = vpop.xlane.xlu0 %3358 }
 0x563   : > { %v11748_v23 = vpop.f32.mrf.mxu0  ;;  %v11777_v53 = vpop.f32.mrf.mxu1 }
 0x564   : > { %v16487_v33 = vsel %vm15714_vm1, -1e+09, %v4595_v9  ;;  %vm20296_vm1 = vnez %v20295_v12 }
 0x565   : > { %v4106_v39 = vpop.f32.mrf.mxu0  ;;  %v4655_v40 = vsel %vm20243_vm12, %v16487_v33, -inf  ;;  %vm20255_vm12 = vmmov %vm20245_vm2 }
 0x566   : > { %v4596_v11 = vmul.f32 0.35355338, %v4106_v39  ;;  %v4252_v3 = vpop.f32.mrf.mxu1  ;;  %4656 = vmax.xlane.f32.xlu0 %v4655_v40 }
 0x567   : > { %v11751_v10 = vpop.f32.mrf.mxu0 }
 0x568   : > { %v16493_v25 = vsel %vm15453_vm8, -1e+09, %v4596_v11  ;;  %v11780_v45 = vpop.f32.mrf.mxu1 }
 0x569   : > { %v4658_v23 = vsel %vm20245_vm2, %v16493_v25, -inf }
 0x56a   : > { %v4111_v9 = vpop.f32.mrf.mxu0  ;;  %v4257_v53 = vpop.f32.mrf.mxu1  ;;  %4659 = vmax.xlane.f32.xlu0 %v4658_v23 }
 0x56b   : > { %v4597_v47 = vmul.f32 0.35355338, %v4111_v9  ;;  %v4602_v49 = vmul.f32 0.35355338, %v4257_v53  ;;  %v16509_v23 = vpop.xlane.xlu0 %3361 }
 0x56c   : > { %v11754_v59 = vpop.f32.mrf.mxu0  ;;  %v11783_v39 = vpop.f32.mrf.mxu1 }
 0x56d   : > { %v16501_v40 = vsel %vm15476_vm11, -1e+09, %v4597_v47  ;;  %v16507_v30 = vsel %vm15767_vm3, -1e+09, %v4602_v49  ;;  %v20256_v59 = vld [vmem:[#allocation123_spill] sm:$0xff] }
 0x56e   : > { %v4116_v10 = vpop.f32.mrf.mxu0  ;;  %v4661_v11 = vsel %vm20247_vm7, %v16501_v40, -inf  ;;  %v4676_v18 = vsel %vm20251_vm9, %v16507_v30, -inf  ;;  %vm20257_vm2 = vnez %v20256_v59  ;;  %vm20258_vm7 = vmmov %vm20253_vm4 }
 0x56f   : > { %v4598_v15 = vmul.f32 0.35355338, %v4116_v10  ;;  %v4262_v28 = vpop.f32.mrf.mxu1  ;;  %4662 = vmax.xlane.f32.xlu0 %v4661_v11  ;;  %v4600_v10 = vmul.f32 0.35355338, %v4247_v17  ;;  %vm20262_vm9 = vmmov %vm20253_vm4 }
 0x570   : > { %v11757_v9 = vpop.f32.mrf.mxu0  ;;  %v4603_v59 = vmul.f32 0.35355338, %v4262_v28  ;;  %v20267_v28 = vld [vmem:[#allocation158_spill] sm:$0xff] }
 0x571   : > { %v16513_v53 = vsel %vm15495_vm13, -1e+09, %v4598_v15  ;;  %v11786_v47 = vpop.f32.mrf.mxu1  ;;  %v16519_v9 = vpop.xlane.xlu0 %3364  ;;  %v16529_v0 = vsel %vm15733_vm5, -1e+09, %v4600_v10 }
 0x572   : > { %v4664_v39 = vsel %vm20250_vm10, %v16513_v53, -inf }
 0x573   : > { %v4121_v60 = vpop.f32.mrf.mxu0  ;;  %v4267_v49 = vpop.f32.mrf.mxu1  ;;  %4665 = vmax.xlane.f32.xlu1 %v4664_v39  ;;  %4677 = vmax.xlane.f32.xlu0 %v4676_v18 }
 0x574   : > { %v4599_v11 = vmul.f32 0.35355338, %v4121_v60 }
 0x575   : > { %v11760_v52 = vpop.f32.mrf.mxu0  ;;  %v11789_v1 = vpop.f32.mrf.mxu1 }
 0x576   : > { %v16523_v15 = vsel %vm15516_vm15, -1e+09, %v4599_v11  ;;  %v4670_v1 = vsel %vm20255_vm12, %v16529_v0, -inf  ;;  %v16533_v17 = vpop.xlane.xlu0 %3367  ;;  %v4601_v11 = vmul.f32 0.35355338, %v4252_v3 }
 0x577   : > { %v4272_v47 = vpop.f32.mrf.mxu1  ;;  %v4667_v51 = vsel %vm20253_vm4, %v16523_v15, -inf }
 0x578   : > { %v4403_v39 = vpop.f32.mrf.mxu0  ;;  %4668 = vmax.xlane.f32.xlu1 %v4667_v51 }
 0x579   : > { %v4607_v18 = vmul.f32 0.35355338, %v4403_v39  ;;  %v11792_v60 = vpop.f32.mrf.mxu1  ;;  %v20259_v39 = vld [vmem:[#allocation154_spill] sm:$0xff] }
 0x57a   : > { %v11812_v52 = vpop.f32.mrf.mxu0  ;;  %vm20260_vm10 = vnez %v20259_v39  ;;  %v16545_v61 = vpop.xlane.xlu0 %3388  ;;  %v20265_v39 = vld [vmem:[#allocation128_spill] sm:$0xff] }
 0x57b   : > { %v16537_v19 = vsel %vm20257_vm2, -1e+09, %v4607_v18  ;;  %v16543_v60 = vsel %vm20260_vm10, -1e+09, %v4601_v11  ;;  %20261 = vst [vmem:[#allocation108_spill] sm:$0xff] %v16545_v61  ;;  %vm20266_vm12 = vnez %v20265_v39  ;;  %vm20268_vm2 = vnez %v20267_v28  ;;  %v20271_v28 = vld [vmem:[#allocation131_spill] sm:$0xff] }
 0x57c   : > { %4671 = vmax.xlane.f32.xlu1 %v4670_v1  ;;  %v4691_v51 = vsel %vm20258_vm7, %v16537_v19, -inf  ;;  %v4673_v1 = vsel %vm20262_vm9, %v16543_v60, -inf  ;;  %vm20269_vm9 = vmmov %vm20258_vm7 }
 0x57d   : > { %v4277_v5 = vpop.f32.mrf.mxu1  ;;  %v4408_v34 = vpop.f32.mrf.mxu0 }
 0x57e   : > { %v4608_v52 = vmul.f32 0.35355338, %v4408_v34  ;;  %v4606_v22 = vmul.f32 0.35355338, %v4277_v5 }
 0x57f   : > { %v11795_v10 = vpop.f32.mrf.mxu1  ;;  %v11815_v45 = vpop.f32.mrf.mxu0 }
 0x580   : > { %4692 = vmax.xlane.f32.xlu1 %v4691_v51  ;;  %v20263_v10 = vld [vmem:[#allocation127_spill] sm:$0xff] }
 0x581   : > { %vm20264_vm4 = vnez %v20263_v10 }
 0x582   : > { %v4413_v3 = vpop.f32.mrf.mxu0  ;;  %v16551_v45 = vsel %vm20264_vm4, -1e+09, %v4608_v52  ;;  %v16565_v52 = vpop.xlane.xlu0 %3370 }
 0x583   : > { %v4609_v18 = vmul.f32 0.35355338, %v4413_v3  ;;  %v4559_v32 = vpop.f32.mrf.mxu1  ;;  %v16561_v3 = vsel %vm20268_vm2, -1e+09, %v4603_v59  ;;  %v4694_v10 = vsel %vm20269_vm9, %v16551_v45, -inf }
 0x584   : > { %v11818_v58 = vpop.f32.mrf.mxu0  ;;  %4674 = vmax.xlane.f32.xlu1 %v4673_v1 }
 0x585   : > { %v16555_v11 = vsel %vm20266_vm12, -1e+09, %v4609_v18  ;;  %v11847_v34 = vpop.f32.mrf.mxu1  ;;  %vm20270_vm12 = vmmov %vm20258_vm7 }
 0x586   : > { %v4697_v51 = vsel %vm20258_vm7, %v16555_v11, -inf  ;;  %v4679_v18 = vsel %vm20270_vm12, %v16561_v3, -inf  ;;  %v4604_v34 = vmul.f32 0.35355338, %v4267_v49  ;;  %vm20272_vm7 = vnez %v20271_v28  ;;  %v16573_v6 = vpop.xlane.xlu0 %3391 }
 0x587   : > { %4698 = vmax.xlane.f32.xlu0 %v4697_v51  ;;  %20273 = vst [vmem:[#allocation163_spill] sm:$0xff] %v16573_v6  ;;  %v4605_v49 = vmul.f32 0.35355338, %v4272_v47 }
 0x588   : > { %4695 = vmax.xlane.f32.xlu1 %v4694_v10 }
 0x589   : > { %v4418_v58 = vpop.f32.mrf.mxu0  ;;  %v4564_v1 = vpop.f32.mrf.mxu1 }
 0x58a   : > { %v4610_v39 = vmul.f32 0.35355338, %v4418_v58  ;;  %v20274_v58 = vld [vmem:[#allocation161_spill] sm:$0xff] }
 0x58b   : > { %v11821_v2 = vpop.f32.mrf.mxu0  ;;  %v11850_v20 = vpop.f32.mrf.mxu1  ;;  %4680 = vmax.xlane.f32.xlu0 %v4679_v18  ;;  %vm20275_vm4 = vnez %v20274_v58  ;;  %v20280_v58 = vld [vmem:[#allocation164_spill] sm:$0xff] }
 0x58c   : > { %v16571_v59 = vsel %vm20272_vm7, -1e+09, %v4610_v39  ;;  %v16579_v21 = vsel %vm20275_vm4, -1e+09, %v4604_v34  ;;  %v20276_v20 = vld [vmem:[#allocation134_spill] sm:$0xff]  ;;  %vm20278_vm7 = vmmov %vm20269_vm9  ;;  %vm20281_vm15 = vnez %v20280_v58 }
 0x58d   : > { %v4423_v51 = vpop.f32.mrf.mxu0  ;;  %v4700_v10 = vsel %vm20269_vm9, %v16571_v59, -inf  ;;  %vm20277_vm12 = vnez %v20276_v20  ;;  %vm20279_vm9 = vmmov %vm20278_vm7  ;;  %v16591_v47 = vsel %vm20281_vm15, -1e+09, %v4605_v49 }
 0x58e   : > { %v4611_v54 = vmul.f32 0.35355338, %v4423_v51  ;;  %v4569_v7 = vpop.f32.mrf.mxu1  ;;  %v4682_v34 = vsel %vm20279_vm9, %v16579_v21, -inf  ;;  %vm20285_vm9 = vnez %v20284_v48  ;;  %vm20286_vm13 = vmmov %vm20278_vm7 }
 0x58f   : > { %v11824_v2 = vpop.f32.mrf.mxu0  ;;  %4701 = vmax.xlane.f32.xlu0 %v4700_v10  ;;  %v4614_v10 = vmul.f32 0.35355338, %v4559_v32  ;;  %v16603_v37 = vsel %vm20285_vm9, -1e+09, %v4606_v22  ;;  %v4685_v32 = vsel %vm20286_vm13, %v16591_v47, -inf  ;;  %v20290_v22 = vld [vmem:[#allocation139_spill] sm:$0xff]  ;;  %vm20292_vm13 = vmmov %vm20278_vm7 }
 0x590   : > { %v16583_v18 = vsel %vm20277_vm12, -1e+09, %v4611_v54  ;;  %v11853_v39 = vpop.f32.mrf.mxu1  ;;  %v16593_v54 = vpop.xlane.xlu0 %3373  ;;  %v4688_v46 = vsel %vm20278_vm7, %v16603_v37, -inf }
 0x591   : > { %v4428_v28 = vpop.f32.mrf.mxu0  ;;  %v4703_v51 = vsel %vm20278_vm7, %v16583_v18, -inf  ;;  %v20282_v39 = vld [vmem:[#allocation136_spill] sm:$0xff] }
 0x592   : > { %v4612_v44 = vmul.f32 0.35355338, %v4428_v28  ;;  %v4574_v4 = vpop.f32.mrf.mxu1  ;;  %4704 = vmax.xlane.f32.xlu1 %v4703_v51  ;;  %vm20283_vm12 = vnez %v20282_v39 }
 0x593   : > { %v11827_v2 = vpop.f32.mrf.mxu0  ;;  %4683 = vmax.xlane.f32.xlu0 %v4682_v34  ;;  %v20287_v34 = vld [vmem:[#allocation168_spill] sm:$0xff] }
 0x594   : > { %v16597_v20 = vsel %vm20283_vm12, -1e+09, %v4612_v44  ;;  %v11856_v5 = vpop.f32.mrf.mxu1  ;;  %vm20288_vm11 = vnez %v20287_v34  ;;  %v4615_v44 = vmul.f32 0.35355338, %v4564_v1  ;;  %v16613_v48 = vpop.xlane.xlu0 %3394  ;;  %vm20291_vm12 = vnez %v20290_v22  ;;  %v20293_v34 = vld [vmem:[#allocation171_spill] sm:$0xff]  ;;  %v20298_v22 = vld [vmem:[#allocation173_spill] sm:$0xff] }
 0x595   : > { %v4433_v28 = vpop.f32.mrf.mxu0  ;;  %v4706_v51 = vsel %vm20278_vm7, %v16597_v20, -inf  ;;  %v16609_v2 = vsel %vm20288_vm11, -1e+09, %v4614_v10  ;;  %20289 = vst [vmem:[#allocation180_spill] sm:$0xff] %v16613_v48  ;;  %vm20294_vm8 = vnez %v20293_v34 }
 0x596   : > { %v4613_v49 = vmul.f32 0.35355338, %v4433_v28  ;;  %v4579_v58 = vpop.f32.mrf.mxu1  ;;  %4707 = vmax.xlane.f32.xlu1 %v4706_v51  ;;  %v4712_v10 = vsel %vm20292_vm13, %v16609_v2, -inf  ;;  %v16623_v1 = vsel %vm20294_vm8, -1e+09, %v4615_v44  ;;  %vm20299_vm13 = vnez %v20298_v22 }
 0x597   : > { %v11830_v5 = vpop.f32.mrf.mxu0  ;;  %4686 = vmax.xlane.f32.xlu0 %v4685_v32  ;;  %v4618_v51 = vmul.f32 0.35355338, %v4579_v58  ;;  %v4617_v44 = vmul.f32 0.35355338, %v4574_v4 }
 0x598   : > { %v11859_v39 = vpop.f32.mrf.mxu1  ;;  %v16617_v28 = vsel %vm20291_vm12, -1e+09, %v4613_v49  ;;  %vm20297_vm12 = vmmov %vm20278_vm7 }
 0x599   : > { %v4616_v39 = vmul.f32 0.35355338, %v4569_v7  ;;  %v4709_v5 = vsel %vm20278_vm7, %v16617_v28, -inf  ;;  %v16629_v49 = vsel %vm20296_vm1, -1e+09, %v4618_v51  ;;  %v16637_v7 = vpop.xlane.xlu0 %3376  ;;  %vm20300_vm1 = vmmov %vm20278_vm7 }
 0x59a   : > { %v4584_v63 = vpop.f32.mrf.mxu1  ;;  %4689 = vmax.xlane.f32.xlu1 %v4688_v46  ;;  %v4715_v46 = vsel %vm20297_vm12, %v16623_v1, -inf  ;;  %vm20304_vm12 = vmmov %vm20300_vm1 }
 0x59b   : > { %4713 = vmax.xlane.f32.xlu0 %v4712_v10  ;;  %v16635_v34 = vsel %vm20299_vm13, -1e+09, %v4616_v39  ;;  %v4619_v26 = vmul.f32 0.35355338, %v4584_v63  ;;  %v3426_v63 = vsel %vm20300_vm1, %v16207_v27, 0.0  ;;  %v20314_v27 = vld [vmem:[#allocation20_spill] sm:$0xff] }
 0x59c   : > { %v11862_v32 = vpop.f32.mrf.mxu1  ;;  %v4718_v51 = vsel %vm20300_vm1, %v16635_v34, -inf }
 0x59d   : > { %v4724_v32 = vsel %vm20278_vm7, %v16629_v49, -inf  ;;  %v16647_v39 = vpop.xlane.xlu0 %3397  ;;  %vm20307_vm7 = vmmov %vm20300_vm1 }
 0x59e   : > { %v4589_v58 = vpop.f32.mrf.mxu1  ;;  %4710 = vmax.xlane.f32.xlu1 %v4709_v5  ;;  %v20301_v5 = vld [vmem:[#allocation175_spill] sm:$0xff]  ;;  %20303 = vst [vmem:[#allocation86_spill] sm:$0xff] %v16647_v39 }
 0x59f   : > { %4716 = vmax.xlane.f32.xlu0 %v4715_v46  ;;  %vm20302_vm6 = vnez %v20301_v5  ;;  %v20305_v46 = vld [vmem:[#allocation143_spill] sm:$0xff]  ;;  %v20313_v5 = vld [vmem:[#allocation24_spill] sm:$0xff]  ;;  %v4620_v24 = vmul.f32 0.35355338, %v4589_v58 }
 0x5a0   : > { %v11865_v10 = vpop.f32.mrf.mxu1  ;;  %v16645_v12 = vsel %vm20302_vm6, -1e+09, %v4617_v44  ;;  %vm20306_vm0 = vnez %v20305_v46  ;;  %v20310_v46 = vld [vmem:[#allocation13_spill] sm:$0xff] }
 0x5a1   : > { %v4721_v4 = vsel %vm20304_vm12, %v16645_v12, -inf  ;;  %v16653_v10 = vsel %vm20306_vm0, -1e+09, %v4619_v26  ;;  %v16657_v22 = vpop.xlane.xlu0 %3379  ;;  %vm20336_vm0 = vmmov %vm20300_vm1 }
 0x5a2   : > { %4725 = vmax.xlane.f32.xlu1 %v4724_v32  ;;  %v4727_v32 = vsel %vm20307_vm7, %v16653_v10, -inf  ;;  %vm20335_vm7 = vmmov %vm20300_vm1 }
 0x5a3   : > { %4719 = vmax.xlane.f32.xlu0 %v4718_v51  ;;  %v20309_v51 = vld [vmem:[#allocation12_spill] sm:$0xff] }
 0x5a5   : > { %v16661_v44 = vpop.xlane.xlu0 %3400 }
 0x5a6   : > { %20308 = vst [vmem:[#allocation106_spill] sm:$0xff] %v16661_v44 }
 0x5a7   : > { %4722 = vmax.xlane.f32.xlu0 %v4721_v4  ;;  %v20311_v4 = vld [vmem:[#allocation4_spill] sm:$0xff] }
 0x5a9   : > { %v16667_v26 = vpop.xlane.xlu0 %3382 }
 0x5ab   : > { %4728 = vmax.xlane.f32.xlu0 %v4727_v32 }
 0x5ad   : > { %v16671_v32 = vpop.xlane.xlu0 %3403 }
 0x5ae   : > { %20312 = vst [vmem:[#allocation167_spill] sm:$0xff] %v16671_v32  ;;  %v20319_v32 = vld [vmem:[#allocation18_spill] sm:$0xff] }
 0x5af   : > { %3427 = vadd.xlane.f32.xlu0 %v3426_v63 }
 0x5b1   : > { %v16677_v63 = vpop.xlane.xlu0 %3385 }
 0x5b3   : > { %6153 = vrot.lane.b32.xlu1 %v20309_v51, %s13413_s17  ;;  %v20315_v51 = vld [vmem:[#allocation17_spill] sm:$0xff] }
 0x5b7   : > { %6313 = vrot.lane.b32.xlu1 %v20310_v46, %s13413_s17  ;;  %v20316_v46 = vld [vmem:[#allocation6_spill] sm:$0xff] }
 0x5bb   : > { %6149 = vrot.lane.b32.xlu1 %v20311_v4, %s13413_s17  ;;  %v16685_v4 = vpop.xlane.xlu0 %3406 }
 0x5bc   : > { %20318 = vst [vmem:[#allocation172_spill] sm:$0xff] %v16685_v4 }
 0x5bf   : > { %6311 = vrot.lane.b32.xlu1 %v20313_v5, %s13413_s17  ;;  %v20320_v5 = vld [vmem:[#allocation29_spill] sm:$0xff]  ;;  %v16693_v44 = vpop.xlane.xlu0 %3409 }
 0x5c0   : > { %20322 = vst [vmem:[#allocation85_spill] sm:$0xff] %v16693_v44  ;;  %v16709_v44 = vpop.xlane.xlu1 %3346 }
 0x5c3   : > { %6147 = vrot.lane.b32.xlu1 %v20314_v27, %s13413_s17  ;;  %v20321_v27 = vld [vmem:[#allocation32_spill] sm:$0xff]  ;;  %v16701_v4 = vpop.xlane.xlu0 %3415 }
 0x5c4   : > { %20326 = vst [vmem:[#allocation122_spill] sm:$0xff] %v16701_v4  ;;  %v16711_v39 = vpop.xlane.xlu1 %3412 }
 0x5c5   : > { %6151 = vrot.lane.b32.xlu0 %v20315_v51, %s13413_s17  ;;  %v20323_v51 = vld [vmem:[#allocation30_spill] sm:$0xff]  ;;  %20330 = vst [vmem:[#allocation176_spill] sm:$0xff] %v16711_v39 }
 0x5c7   : > { %6145 = vrot.lane.b32.xlu1 %v20316_v46, %s13413_s17  ;;  %v20324_v46 = vld [vmem:[#allocation33_spill] sm:$0xff] }
 0x5c8   : > { %v16715_v57 = vpop.xlane.xlu1 %3424 }
 0x5c9   : > { %6309 = vrot.lane.b32.xlu0 %v20317_v62, %s13413_s17  ;;  %v20325_v62 = vld [vmem:[#allocation2_spill] sm:$0xff]  ;;  %20332 = vst [vmem:[#allocation114_spill] sm:$0xff] %v16715_v57 }
 0x5ca   : > { %v20333_v57 = vld [vmem:[#allocation146_spill] sm:$0xff] }
 0x5cb   : > { %6131 = vrot.lane.b32.xlu1 %v20319_v32, %s13413_s17  ;;  %v20327_v32 = vld [vmem:[#allocation21_spill] sm:$0xff]  ;;  %vm20334_vm12 = vnez %v20333_v57 }
 0x5cd   : > { %6307 = vrot.lane.b32.xlu0 %v20320_v5, %s13413_s17  ;;  %v20328_v5 = vld [vmem:[#allocation36_spill] sm:$0xff] }
 0x5cf   : > { %6305 = vrot.lane.b32.xlu1 %v20321_v27, %s13413_s17  ;;  %v16707_v27 = vpop.xlane.xlu0 %3418 }
 0x5d0   : > { %20329 = vst [vmem:[#allocation155_spill] sm:$0xff] %v16707_v27 }
 0x5d1   : > { %6469 = vrot.lane.b32.xlu0 %v20323_v51, %s13413_s17 }
 0x5d3   : > { %6467 = vrot.lane.b32.xlu1 %v20324_v46, %s13413_s17  ;;  %v16713_v51 = vpop.xlane.xlu0 %3421 }
 0x5d4   : > { %20331 = vst [vmem:[#allocation89_spill] sm:$0xff] %v16713_v51 }
 0x5d5   : > { %6133 = vrot.lane.b32.xlu0 %v20325_v62, %s13413_s17 }
 0x5d7   : > { %6135 = vrot.lane.b32.xlu1 %v20327_v32, %s13413_s17 }
 0x5d9   : > { %6303 = vrot.lane.b32.xlu0 %v20328_v5, %s13413_s17 }
 0x5e6   : > { %v4651_v46 = vpop.xlane.xlu0 %4650 }
 0x5e7   : > { %v4733_v62 = vsub.f32 %v16469_v43, %v4651_v46  ;;  %v16723_v43 = vsel %vm20334_vm12, -1e+09, %v4620_v24 }
 0x5e9   : > { %v4761_v4 = vmul.f32 1.442695, %v4733_v62 }
 0x5eb   : > { %12990 = vpow2.f32 %v4761_v4  ;;  %v4654_v48 = vpop.xlane.xlu1 %4653  ;;  %v20340_v4 = vld [vmem:[#allocation190_spill] sm:$0xff] }
 0x5ec   : > { %v4734_v32 = vsub.f32 %v16479_v14, %v4654_v48  ;;  %v4730_v14 = vsel %vm20336_vm0, %v16723_v43, -inf }
 0x5ee   : > { %v4763_v8 = vmul.f32 1.442695, %v4734_v32  ;;  %v20342_v32 = vld [vmem:[#allocation182_spill] sm:$0xff] }
 0x5ef   : > { %v4657_v5 = vpop.xlane.xlu0 %4656 }
 0x5f0   : > { %12992 = vpow2.f32 %v4763_v8  ;;  %v4735_v27 = vsub.f32 %v16487_v33, %v4657_v5  ;;  %v20338_v33 = vld [vmem:[#allocation189_spill] sm:$0xff] }
 0x5f1   : > { %v20339_v5 = vld [vmem:[#allocation165_spill] sm:$0xff] }
 0x5f2   : > { %v4765_v6 = vmul.f32 1.442695, %v4735_v27 }
 0x5f3   : > { %v4660_v39 = vpop.xlane.xlu0 %4659 }
 0x5f4   : > { %12994 = vpow2.f32 %v4765_v6  ;;  %v4736_v51 = vsub.f32 %v16493_v25, %v4660_v39  ;;  %v20337_v6 = vld [vmem:[#allocation162_spill] sm:$0xff] }
 0x5f6   : > { %v4767_v61 = vmul.f32 1.442695, %v4736_v51 }
 0x5f8   : > { %v12991_v62 = vpop.eup %12990  ;;  %12996 = vpow2.f32 %v4767_v61  ;;  %v4663_v46 = vpop.xlane.xlu0 %4662 }
 0x5f9   : > { %v4737_v48 = vsub.f32 %v16501_v40, %v4663_v46  ;;  %11881 = vmatmul.mubr.msk.f32.vlgmr.msra.gmra.mxu0 %vm20335_vm7, %v12991_v62  ;;  %v4817_v8 = vsel %vm20300_vm1, %v12991_v62, 0.0  ;;  %vm20341_vm7 = vmmov %vm20336_vm0 }
 0x5fa   : > { %11937 = vmatpush3.msra.mxu0 %v20337_v6  ;;  %4818 = vadd.xlane.f32.xlu0 %v4817_v8  ;;  %vm20344_vm1 = vmmov %vm20336_vm0  ;;  %v20345_v8 = vld [vmem:[#allocation192_spill] sm:$0xff] }
 0x5fb   : > { %4731 = vmax.xlane.f32.xlu1 %v4730_v14  ;;  %v4769_v25 = vmul.f32 1.442695, %v4737_v48  ;;  %11938 = vmatprep.subr.mxu0 %v19791_v36  ;;  %v20343_v48 = vld [vmem:[#allocation191_spill] sm:$0xff] }
 0x5fc   : > { %v4666_v24 = vpop.xlane.xlu1 %4665  ;;  %11939 = vmatpush3.msra.mxu0 %v20338_v33  ;;  %11883 = vmatprep.mubr.msk.f32.mxu0 %vm20066_vm14, %v19791_v36  ;;  %v20346_v33 = vld [vmem:[#allocation40_spill] sm:$0xff] }
 0x5fd   : > { %v16735_v61 = vpop.eup %12992  ;;  %12998 = vpow2.f32 %v4769_v25  ;;  %v4738_v40 = vsub.f32 %v16513_v53, %v4666_v24  ;;  %11940 = vmatprep.subr.mxu0 %v19791_v36 }
 0x5fe   : > { %11884 = vmatmul.mubr.msk.f32.gmra.mxu0 %vm20336_vm0, %v16735_v61 }
 0x5ff   : > { %v4771_v58 = vmul.f32 1.442695, %v4738_v40  ;;  %11941 = vmatpush3.msra.mxu0 %v20339_v5  ;;  %11886 = vmatprep.mubr.msk.f32.mxu0 %vm20066_vm14, %v19791_v36 }
 0x600   : > { %11942 = vmatprep.subr.mxu0 %v19791_v36 }
 0x601   : > { %v16745_v39 = vpop.eup %12994  ;;  %13000 = vpow2.f32 %v4771_v58  ;;  %v4669_v51 = vpop.xlane.xlu1 %4668  ;;  %11943 = vmatpush3.msra.mxu0 %v20340_v4 }
 0x602   : > { %v4739_v53 = vsub.f32 %v16523_v15, %v4669_v51  ;;  %11944 = vmatprep.subr.mxu0 %v19791_v36  ;;  %11887 = vmatmul.mubr.msk.f32.gmra.mxu0 %vm20341_vm7, %v16745_v39  ;;  %vm20347_vm7 = vmmov %vm20336_vm0 }
 0x603   : > { %11945 = vmatpush3.msra.mxu0 %v20342_v32  ;;  %11889 = vmatprep.mubr.msk.f32.mxu0 %vm20066_vm14, %v19791_v36 }
 0x604   : > { %v4773_v27 = vmul.f32 1.442695, %v4739_v53  ;;  %11946 = vmatprep.subr.mxu0 %v19791_v36 }
 0x605   : > { %v16756_v62 = vpop.eup %12996  ;;  %v4672_v46 = vpop.xlane.xlu1 %4671  ;;  %11947 = vmatpush3.msra.mxu0 %v20343_v48 }
 0x606   : > { %13002 = vpow2.f32 %v4773_v27  ;;  %v4740_v15 = vsub.f32 %v16529_v0, %v4672_v46  ;;  %11948 = vmatprep.subr.mxu0 %v19791_v36  ;;  %11890 = vmatmul.mubr.msk.f32.gmra.mxu0 %vm20344_vm1, %v16756_v62  ;;  %v4678_v0 = vpop.xlane.xlu0 %4677  ;;  %v20349_v27 = vld [vmem:[#allocation38_spill] sm:$0xff]  ;;  %vm20351_vm1 = vmmov %vm20336_vm0 }
 0x607   : > { %11949 = vmatpush3.msra.mxu0 %v20345_v8  ;;  %11892 = vmatprep.mubr.msk.f32.mxu0 %vm20066_vm14, %v19791_v36  ;;  %v4742_v4 = vsub.f32 %v16507_v30, %v4678_v0  ;;  %v20350_v8 = vld [vmem:[#allocation43_spill] sm:$0xff]  ;;  %v20352_v0 = vld [vmem:[#allocation5_spill] sm:$0xff] }
 0x608   : > { %v4775_v14 = vmul.f32 1.442695, %v4740_v15 }
 0x609   : > { %v4693_v6 = vpop.xlane.xlu1 %4692  ;;  %v4779_v30 = vmul.f32 1.442695, %v4742_v4  ;;  %v20354_v4 = vld [vmem:[#allocation193_spill] sm:$0xff] }
 0x60a   : > { %v16766_v25 = vpop.eup %12998  ;;  %13004 = vpow2.f32 %v4775_v14  ;;  %v4747_v24 = vsub.f32 %v16537_v19, %v4693_v6  ;;  %v20348_v19 = vld [vmem:[#allocation34_spill] sm:$0xff] }
 0x60b   : > { %11893 = vmatmul.mubr.msk.f32.gmra.mxu0 %vm20336_vm0, %v16766_v25 }
 0x60c   : > { %6301 = vrot.lane.b32.xlu1 %v20346_v33, %s13413_s17  ;;  %v4789_v40 = vmul.f32 1.442695, %v4747_v24  ;;  %11895 = vmatprep.mubr.msk.f32.mxu0 %vm20066_vm14, %v19791_v36 }
 0x60d   : > { %v4675_v58 = vpop.xlane.xlu1 %4674 }
 0x60e   : > { %v16775_v5 = vpop.eup %13000  ;;  %13006 = vpow2.f32 %v4789_v40  ;;  %v4741_v51 = vsub.f32 %v16543_v60, %v4675_v58  ;;  %v20353_v58 = vld [vmem:[#allocation46_spill] sm:$0xff] }
 0x60f   : > { %11896 = vmatmul.mubr.msk.f32.gmra.mxu0 %vm20347_vm7, %v16775_v5  ;;  %vm20358_vm7 = vmmov %vm20336_vm0 }
 0x610   : > { %6287 = vrot.lane.b32.xlu1 %v20348_v19, %s13413_s17  ;;  %v4777_v53 = vmul.f32 1.442695, %v4741_v51  ;;  %v4699_v32 = vpop.xlane.xlu0 %4698  ;;  %6465 = vrot.lane.b32.xlu0 %v20349_v27, %s13413_s17 }
 0x611   : > { %v4696_v46 = vpop.xlane.xlu1 %4695  ;;  %11898 = vmatprep.mubr.msk.f32.mxu0 %vm20066_vm14, %v19791_v36  ;;  %v4749_v15 = vsub.f32 %v16555_v11, %v4699_v32 }
 0x612   : > { %13008 = vpow2.f32 %v4777_v53  ;;  %v4748_v60 = vsub.f32 %v16551_v45, %v4696_v46  ;;  %v20355_v53 = vld [vmem:[#allocation41_spill] sm:$0xff] }
 0x613   : > { %v16788_v48 = vpop.eup %13002  ;;  %v4793_v40 = vmul.f32 1.442695, %v4749_v15  ;;  %v20357_v15 = vld [vmem:[#allocation48_spill] sm:$0xff] }
 0x614   : > { %6625 = vrot.lane.b32.xlu1 %v20350_v8, %s13413_s17  ;;  %v4791_v14 = vmul.f32 1.442695, %v4748_v60  ;;  %v4681_v6 = vpop.xlane.xlu0 %4680  ;;  %11899 = vmatmul.mubr.msk.f32.gmra.mxu0 %vm20351_vm1, %v16788_v48  ;;  %v20356_v60 = vld [vmem:[#allocation194_spill] sm:$0xff]  ;;  %vm20363_vm1 = vmmov %vm20336_vm0 }
 0x615   : > { %v4743_v24 = vsub.f32 %v16561_v3, %v4681_v6  ;;  %6137 = vrot.lane.b32.xlu0 %v20352_v0, %s13413_s17  ;;  %11950 = vmatprep.mubr.msk.f32.mxu0 %vm20066_vm14, %v19791_v36 }
 0x616   : > { %13010 = vpow2.f32 %v4791_v14 }
 0x617   : > { %v16800_v45 = vpop.eup %13004  ;;  %13012 = vpow2.f32 %v4779_v30  ;;  %v4781_v11 = vmul.f32 1.442695, %v4743_v24  ;;  %v20359_v24 = vld [vmem:[#allocation184_spill] sm:$0xff] }
 0x618   : > { %6289 = vrot.lane.b32.xlu1 %v20353_v58, %s13413_s17  ;;  %v4702_v51 = vpop.xlane.xlu0 %4701  ;;  %11916 = vmatmul.mubr.msk.f32.vlgmr.msra.gmra.mxu1 %vm20336_vm0, %v16800_v45  ;;  %v20405_v58 = vld [vmem:[#allocation47_spill] sm:$0xff] }
 0x619   : > { %v4750_v3 = vsub.f32 %v16571_v59, %v4702_v51  ;;  %11972 = vmatpush3.msra.mxu1 %v20354_v4  ;;  %6463 = vrot.lane.b32.xlu0 %v20355_v53, %s13413_s17  ;;  %13014 = vpow2.f32 %v4781_v11  ;;  %v20360_v11 = vld [vmem:[#allocation28_spill] sm:$0xff] }
 0x61a   : > { %11973 = vmatprep.subr.mxu1 %v19791_v36  ;;  %11918 = vmatprep.mubr.msk.f32.mxu1 %vm20066_vm14, %v19791_v36  ;;  %13016 = vpow2.f32 %v4793_v40 }
 0x61b   : > { %v16813_v32 = vpop.eup %13006  ;;  %v4705_v46 = vpop.xlane.xlu1 %4704  ;;  %11974 = vmatpush3.msra.mxu1 %v20356_v60  ;;  %v4795_v59 = vmul.f32 1.442695, %v4750_v3  ;;  %v20361_v3 = vld [vmem:[#allocation186_spill] sm:$0xff] }
 0x61c   : > { %v4751_v30 = vsub.f32 %v16583_v18, %v4705_v46  ;;  %6623 = vrot.lane.b32.xlu1 %v20357_v15, %s13413_s17  ;;  %v4684_v14 = vpop.xlane.xlu0 %4683  ;;  %11975 = vmatprep.subr.mxu1 %v19791_v36  ;;  %v20362_v46 = vld [vmem:[#allocation44_spill] sm:$0xff] }
 0x61d   : > { %v4744_v6 = vsub.f32 %v16579_v21, %v4684_v14  ;;  %11951 = vmatmul.mubr.msk.f32.vlgmr.msra.gmra.mxu0 %vm20358_vm7, %v16813_v32  ;;  %11976 = vmatpush3.msra.mxu1 %v20359_v24  ;;  %13018 = vpow2.f32 %v4795_v59  ;;  %v20365_v24 = vld [vmem:[#allocation45_spill] sm:$0xff]  ;;  %vm20368_vm7 = vmmov %vm20336_vm0 }
 0x61e   : > { %11977 = vmatprep.subr.mxu1 %v19791_v36  ;;  %6139 = vrot.lane.b32.xlu0 %v20360_v11, %s13413_s17  ;;  %v4797_v21 = vmul.f32 1.442695, %v4751_v30 }
 0x61f   : > { %v16827_v18 = vpop.eup %13008  ;;  %v4708_v40 = vpop.xlane.xlu1 %4707  ;;  %v4783_v51 = vmul.f32 1.442695, %v4744_v6  ;;  %11978 = vmatpush3.msra.mxu1 %v20361_v3  ;;  %11953 = vmatprep.mubr.msk.f32.mxu0 %vm20066_vm14, %v19791_v36  ;;  %v20364_v6 = vld [vmem:[#allocation195_spill] sm:$0xff] }
 0x620   : > { %v4752_v4 = vsub.f32 %v16597_v20, %v4708_v40  ;;  %6291 = vrot.lane.b32.xlu1 %v20362_v46, %s13413_s17  ;;  %v4687_v60 = vpop.xlane.xlu0 %4686  ;;  %11979 = vmatprep.subr.mxu1 %v19791_v36  ;;  %v20366_v3 = vld [vmem:[#allocation51_spill] sm:$0xff] }
 0x621   : > { %13020 = vpow2.f32 %v4783_v51  ;;  %v4745_v14 = vsub.f32 %v16591_v47, %v4687_v60  ;;  %11919 = vmatmul.mubr.msk.f32.gmra.mxu1 %vm20363_vm1, %v16827_v18  ;;  %vm20372_vm1 = vmmov %vm20336_vm0 }
 0x622   : > { %11980 = vmatpush3.msra.mxu1 %v20364_v6  ;;  %11921 = vmatprep.mubr.msk.f32.mxu1 %vm20066_vm14, %v19791_v36  ;;  %13022 = vpow2.f32 %v4797_v21  ;;  %v4799_v47 = vmul.f32 1.442695, %v4752_v4  ;;  %v20367_v6 = vld [vmem:[#allocation196_spill] sm:$0xff]  ;;  %v20369_v21 = vld [vmem:[#allocation197_spill] sm:$0xff] }
 0x623   : > { %v16842_v30 = vpop.eup %13010  ;;  %v4690_v20 = vpop.xlane.xlu1 %4689  ;;  %v4785_v59 = vmul.f32 1.442695, %v4745_v14  ;;  %11981 = vmatprep.subr.mxu1 %v19791_v36  ;;  %6461 = vrot.lane.b32.xlu0 %v20365_v24, %s13413_s17  ;;  %v20378_v24 = vld [vmem:[#allocation52_spill] sm:$0xff] }
 0x624   : > { %v16847_v40 = vpop.eup %13012  ;;  %v4746_v51 = vsub.f32 %v16603_v37, %v4690_v20  ;;  %6621 = vrot.lane.b32.xlu1 %v20366_v3, %s13413_s17  ;;  %v4714_v60 = vpop.xlane.xlu0 %4713  ;;  %11982 = vmatpush3.msra.mxu1 %v20367_v6  ;;  %v16863_v37 = vld [vmem:[%s19405_s4 + $0x60] sm:$0xff] }
 0x625   : > { %13024 = vpow2.f32 %v4785_v59  ;;  %v4754_v14 = vsub.f32 %v16609_v2, %v4714_v60  ;;  %11983 = vmatprep.subr.mxu1 %v19791_v36  ;;  %11922 = vmatmul.mubr.msk.f32.gmra.mxu1 %vm20336_vm0, %v16847_v40  ;;  %v20370_v20 = vld [vmem:[#allocation26_spill] sm:$0xff] }
 0x626   : > { %v4787_v46 = vmul.f32 1.442695, %v4746_v51  ;;  %11954 = vmatmul.mubr.msk.f32.gmra.mxu0 %vm20368_vm7, %v16842_v30  ;;  %11984 = vmatpush3.msra.mxu1 %v20369_v21  ;;  %v16869_v2 = vpop.eup %13014  ;;  %13026 = vpow2.f32 %v4799_v47  ;;  %v20371_v51 = vld [vmem:[#allocation54_spill] sm:$0xff]  ;;  %vm20375_vm7 = vmmov %vm20336_vm0 }
 0x627   : > { %v4711_v4 = vpop.xlane.xlu1 %4710  ;;  %6141 = vrot.lane.b32.xlu0 %v20370_v20, %s13413_s17  ;;  %11924 = vmatprep.mubr.msk.f32.mxu1 %vm20066_vm14, %v19791_v36  ;;  %v16876_v6 = vpop.eup %13016  ;;  %v4803_v21 = vmul.f32 1.442695, %v4754_v14 }
 0x628   : > { %v4753_v59 = vsub.f32 %v16617_v28, %v4711_v4  ;;  %6293 = vrot.lane.b32.xlu1 %v20371_v51, %s13413_s17  ;;  %v4717_v60 = vpop.xlane.xlu0 %4716  ;;  %11956 = vmatprep.mubr.msk.f32.mxu0 %vm20066_vm14, %v19791_v36  ;;  %13028 = vpow2.f32 %v4787_v46  ;;  %v20373_v28 = vld [vmem:[#allocation49_spill] sm:$0xff] }
 0x629   : > { %v4755_v3 = vsub.f32 %v16623_v1, %v4717_v60  ;;  %11925 = vmatmul.mubr.msk.f32.gmra.mxu1 %vm20372_vm1, %v16869_v2  ;;  %12050 = vmatprep.subr.mxu1 %v16863_v37  ;;  %v20374_v1 = vld [vmem:[#allocation55_spill] sm:$0xff]  ;;  %vm20376_vm1 = vmmov %vm20336_vm0 }
 0x62a   : > { %v4801_v47 = vmul.f32 1.442695, %v4753_v59  ;;  %11957 = vmatmul.mubr.msk.f32.gmra.mxu0 %vm20336_vm0, %v16876_v6  ;;  %11927 = vmatprep.mubr.msk.f32.mxu1 %vm20066_vm14, %v19791_v36  ;;  %v16892_v14 = vpop.eup %13018 }
 0x62b   : > { %6459 = vrot.lane.b32.xlu0 %v20373_v28, %s13413_s17  ;;  %11959 = vmatprep.mubr.msk.f32.mxu0 %vm20066_vm14, %v19791_v36  ;;  %v4805_v4 = vmul.f32 1.442695, %v4755_v3  ;;  %v4726_v19 = vpop.xlane.xlu1 %4725  ;;  %v20401_v28 = vld [vmem:[#allocation56_spill] sm:$0xff] }
 0x62c   : > { %13030 = vpow2.f32 %v4801_v47  ;;  %6619 = vrot.lane.b32.xlu1 %v20374_v1, %s13413_s17  ;;  %v4720_v46 = vpop.xlane.xlu0 %4719  ;;  %v20377_v47 = vld [vmem:[#allocation35_spill] sm:$0xff] }
 0x62d   : > { %13032 = vpow2.f32 %v4803_v21  ;;  %v4756_v59 = vsub.f32 %v16635_v34, %v4720_v46 }
 0x62e   : > { %v16895_v60 = vpop.eup %13020  ;;  %11960 = vmatmul.mubr.msk.f32.gmra.mxu0 %vm20375_vm7, %v16892_v14  ;;  %13034 = vpow2.f32 %v4805_v4  ;;  %vm20379_vm7 = vmmov %vm20336_vm0  ;;  %v20381_v4 = vld [vmem:[#allocation14_spill] sm:$0xff] }
 0x62f   : > { %11928 = vmatmul.mubr.msk.f32.gmra.mxu1 %vm20376_vm1, %v16895_v60  ;;  %6143 = vrot.lane.b32.xlu0 %v20377_v47, %s13413_s17  ;;  %v16907_v3 = vpop.eup %13022  ;;  %v4807_v34 = vmul.f32 1.442695, %v4756_v59  ;;  %vm20382_vm1 = vmmov %vm20336_vm0 }
 0x630   : > { %6295 = vrot.lane.b32.xlu1 %v20378_v24, %s13413_s17  ;;  %v4723_v8 = vpop.xlane.xlu0 %4722  ;;  %11930 = vmatprep.mubr.msk.f32.mxu1 %vm20066_vm14, %v19791_v36  ;;  %v20380_v24 = vld [vmem:[#allocation50_spill] sm:$0xff] }
 0x631   : > { %v4757_v21 = vsub.f32 %v16645_v12, %v4723_v8  ;;  %11962 = vmatprep.mubr.msk.f32.mxu0 %vm20066_vm14, %v19791_v36  ;;  %v4758_v8 = vsub.f32 %v16629_v49, %v4726_v19  ;;  %13036 = vpow2.f32 %v4807_v34 }
 0x632   : > { %v16912_v46 = vpop.eup %13024  ;;  %11963 = vmatmul.mubr.msk.f32.gmra.mxu0 %vm20336_vm0, %v16907_v3 }
 0x633   : > { %11931 = vmatmul.mubr.msk.f32.gmra.mxu1 %vm20379_vm7, %v16912_v46  ;;  %6457 = vrot.lane.b32.xlu0 %v20380_v24, %s13413_s17  ;;  %v16924_v12 = vpop.eup %13026  ;;  %v4809_v59 = vmul.f32 1.442695, %v4757_v21  ;;  %v20383_v24 = vld [vmem:[#allocation3_spill] sm:$0xff]  ;;  %v4811_v19 = vmul.f32 1.442695, %v4758_v8  ;;  %vm20385_vm7 = vmmov %vm20336_vm0  ;;  %v20389_v8 = vld [vmem:[#allocation53_spill] sm:$0xff] }
 0x634   : > { %6445 = vrot.lane.b32.xlu1 %v20381_v4, %s13413_s17  ;;  %11933 = vmatprep.mubr.msk.f32.mxu1 %vm20066_vm14, %v19791_v36  ;;  %v4729_v1 = vpop.xlane.xlu0 %4728  ;;  %v20384_v4 = vld [vmem:[#allocation57_spill] sm:$0xff] }
 0x635   : > { %11965 = vmatprep.mubr.msk.f32.mxu0 %vm20066_vm14, %v19791_v36  ;;  %v16929_v27 = vpop.eup %13028  ;;  %13038 = vpow2.f32 %v4809_v59  ;;  %v4759_v34 = vsub.f32 %v16653_v10, %v4729_v1  ;;  %v20390_v59 = vld [vmem:[#allocation19_spill] sm:$0xff] }
 0x636   : > { %11966 = vmatmul.mubr.msk.f32.gmra.mxu0 %vm20382_vm1, %v16924_v12  ;;  %vm20386_vm1 = vmmov %vm20336_vm0  ;;  %13040 = vpow2.f32 %v4811_v19 }
 0x637   : > { %11934 = vmatmul.mubr.msk.f32.gmra.mxu1 %vm20336_vm0, %v16929_v27  ;;  %6443 = vrot.lane.b32.xlu0 %v20383_v24, %s13413_s17  ;;  %v20387_v24 = vld [vmem:[#allocation11_spill] sm:$0xff]  ;;  %v4813_v10 = vmul.f32 1.442695, %v4759_v34  ;;  %v20393_v34 = vld [vmem:[#allocation25_spill] sm:$0xff] }
 0x638   : > { %6615 = vrot.lane.b32.xlu1 %v20384_v4, %s13413_s17  ;;  %11968 = vmatprep.mubr.msk.f32.mxu0 %vm20066_vm14, %v19791_v36  ;;  %v20388_v4 = vld [vmem:[#allocation58_spill] sm:$0xff]  ;;  %v17032_v47 = vpop.xlane.xlu0 %3427 }
 0x639   : > { %v16941_v49 = vpop.eup %13030  ;;  %11985 = vmatprep.mubr.msk.f32.mxu1 %vm20066_vm14, %v19791_v36  ;;  %13042 = vpow2.f32 %v4813_v10  ;;  %v20395_v10 = vld [vmem:[#allocation59_spill] sm:$0xff] }
 0x63a   : > { %v16946_v21 = vpop.eup %13032  ;;  %11969 = vmatmul.mubr.msk.f32.gmra.mxu0 %vm20385_vm7, %v16941_v49  ;;  %vm20391_vm7 = vmmov %vm20336_vm0  ;;  %13044 = vrcp.f32 %v16709_v44  ;;  %v350_v44 = vld [vmem:[%s19405_s4 + $0x68] sm:$0xff] }
 0x63b   : > { %11986 = vmatmul.mubr.msk.f32.vlgmr.msra.gmra.mxu1 %vm20386_vm1, %v16946_v21  ;;  %6617 = vrot.lane.b32.xlu0 %v20387_v24, %s13413_s17  ;;  %v16959_v1 = vpop.eup %13034  ;;  %vm20394_vm1 = vmmov %vm20336_vm0  ;;  %v20396_v24 = vld [vmem:[#allocation23_spill] sm:$0xff] }
 0x63c   : > { %6299 = vrot.lane.b32.xlu1 %v20388_v4, %s13413_s17  ;;  %11988 = vmatprep.mubr.msk.f32.mxu1 %vm20066_vm14, %v19791_v36  ;;  %v20398_v4 = vld [vmem:[#allocation37_spill] sm:$0xff] }
 0x63d   : > { %12051 = vmatpush3.msra.mxu1 %v16863_v37  ;;  %v20392_v37 = vld [vmem:[#allocation22_spill] sm:$0xff]  ;;  %12006 = vmatprep.subr.mxu0 %v350_v44 }
 0x63e   : > { %12129 = vmatprep.subr.mxu1 %v19791_v36  ;;  %v16970_v19 = vpop.eup %13036  ;;  %12007 = vmatpush3.msra.mxu0 %v350_v44  ;;  %v20440_v44 = vld [vmem:[#allocation180_spill] sm:$0xff] }
 0x63f   : > { %11989 = vmatmul.mubr.msk.f32.gmra.mxu1 %vm20336_vm0, %v16959_v1  ;;  %6297 = vrot.lane.b32.xlu0 %v20389_v8, %s13413_s17 }
 0x640   : > { %6449 = vrot.lane.b32.xlu1 %v20390_v59, %s13413_s17  ;;  %11991 = vmatprep.mubr.msk.f32.mxu1 %vm20066_vm14, %v19791_v36  ;;  %v20397_v59 = vld [vmem:[#allocation31_spill] sm:$0xff] }
 0x641   : > { %12094 = vmatprep.subr.mxu0 %v19791_v36 }
 0x642   : > { %v16980_v8 = vpop.eup %13038 }
 0x643   : > { %11992 = vmatmul.mubr.msk.f32.gmra.mxu1 %vm20391_vm7, %v16970_v19  ;;  %6447 = vrot.lane.b32.xlu0 %v20392_v37, %s13413_s17  ;;  %v16990_v37 = vpop.eup %13040  ;;  %vm20399_vm7 = vmmov %vm20336_vm0 }
 0x644   : > { %6451 = vrot.lane.b32.xlu1 %v20393_v34, %s13413_s17  ;;  %11994 = vmatprep.mubr.msk.f32.mxu1 %vm20066_vm14, %v19791_v36  ;;  %v16992_v34 = vpop.permute.xlu1 %6153 }
 0x647   : > { %11995 = vmatmul.mubr.msk.f32.gmra.mxu1 %vm20394_vm1, %v16980_v8  ;;  %6613 = vrot.lane.b32.xlu0 %v20395_v10, %s13413_s17  ;;  %v17002_v10 = vpop.eup %13042  ;;  %vm20417_vm1 = vmmov %vm20336_vm0 }
 0x648   : > { %6453 = vrot.lane.b32.xlu1 %v20396_v24, %s13413_s17  ;;  %11997 = vmatprep.mubr.msk.f32.mxu1 %vm20066_vm14, %v19791_v36  ;;  %v20400_v24 = vld [vmem:[#allocation42_spill] sm:$0xff]  ;;  %v17008_v51 = vpop.permute.xlu1 %6313 }
 0x64b   : > { %11998 = vmatmul.mubr.msk.f32.gmra.mxu1 %vm20336_vm0, %v16990_v37  ;;  %6599 = vrot.lane.b32.xlu0 %v20397_v59, %s13413_s17  ;;  %v20402_v59 = vld [vmem:[#allocation39_spill] sm:$0xff] }
 0x64c   : > { %6455 = vrot.lane.b32.xlu1 %v20398_v4, %s13413_s17  ;;  %12000 = vmatprep.mubr.msk.f32.mxu1 %vm20066_vm14, %v19791_v36  ;;  %v20403_v4 = vld [vmem:[#allocation10_spill] sm:$0xff]  ;;  %v17018_v15 = vpop.permute.xlu1 %6149 }
 0x64d   : > { %20404 = vst [vmem:[#allocation159_spill] sm:$0xff] %v17018_v15 }
 0x64f   : > { %12001 = vmatmul.mubr.msk.f32.gmra.mxu1 %vm20399_vm7, %v17002_v10  ;;  %6601 = vrot.lane.b32.xlu0 %v20400_v24, %s13413_s17  ;;  %v20406_v24 = vld [vmem:[#allocation7_spill] sm:$0xff]  ;;  %vm20421_vm7 = vmmov %vm20336_vm0 }
 0x650   : > { %6607 = vrot.lane.b32.xlu1 %v20401_v28, %s13413_s17  ;;  %12003 = vmatprep.mubr.msk.f32.mxu1 %vm20066_vm14, %v19791_v36  ;;  %v17024_v53 = vpop.permute.xlu1 %6311  ;;  %v20407_v28 = vld [vmem:[#allocation64_spill] sm:$0xff] }
 0x653   : > { %6603 = vrot.lane.b32.xlu0 %v20402_v59, %s13413_s17  ;;  %v20409_v59 = vld [vmem:[#allocation65_spill] sm:$0xff] }
 0x654   : > { %6611 = vrot.lane.b32.xlu1 %v20403_v4, %s13413_s17  ;;  %v17028_v33 = vpop.permute.xlu1 %6147  ;;  %v20410_v4 = vld [vmem:[#allocation63_spill] sm:$0xff] }
 0x655   : > { %20408 = vst [vmem:[#allocation181_spill] sm:$0xff] %v17028_v33  ;;  %v20420_v33 = vld [vmem:[#allocation75_spill] sm:$0xff] }
 0x657   : > { %6605 = vrot.lane.b32.xlu0 %v20405_v58, %s13413_s17  ;;  %v20412_v58 = vld [vmem:[#allocation60_spill] sm:$0xff] }
 0x658   : > { %v17036_v20 = vpop.permute.xlu1 %6145 }
 0x659   : > { %20411 = vst [vmem:[#allocation100_spill] sm:$0xff] %v17036_v20  ;;  %v20418_v20 = vld [vmem:[#allocation72_spill] sm:$0xff] }
 0x65b   : > { %6609 = vrot.lane.b32.xlu0 %v20406_v24, %s13413_s17  ;;  %v17040_v24 = vpop.permute.xlu0 %6151 }
 0x65c   : > { %20413 = vst [vmem:[#allocation77_spill] sm:$0xff] %v17040_v24  ;;  %v17042_v11 = vpop.permute.xlu1 %6131 }
 0x65d   : > { %20414 = vst [vmem:[#allocation169_spill] sm:$0xff] %v17042_v11 }
 0x65f   : > { %7103 = vrot.lane.b32.xlu0 %v20407_v28, %s13413_s17  ;;  %v20415_v28 = vld [vmem:[#allocation68_spill] sm:$0xff]  ;;  %v17046_v0 = vpop.permute.xlu0 %6309 }
 0x660   : > { %v17050_v57 = vpop.permute.xlu1 %6305 }
 0x663   : > { %7099 = vrot.lane.b32.xlu0 %v20409_v59, %s13413_s17  ;;  %v20416_v59 = vld [vmem:[#allocation71_spill] sm:$0xff] }
 0x664   : > { %v17058_v11 = vpop.permute.xlu1 %6467 }
 0x665   : > { %20419 = vst [vmem:[#allocation129_spill] sm:$0xff] %v17058_v11 }
 0x667   : > { %7095 = vrot.lane.b32.xlu0 %v20410_v4, %s13413_s17  ;;  %v4820_v4 = vsel %vm20417_vm1, %v16735_v61, 0.0  ;;  %v4826_v61 = vsel %vm20421_vm7, %v16756_v62, 0.0  ;;  %vm20422_vm1 = vmmov %vm20336_vm0 }
 0x668   : > { %v17068_v15 = vpop.permute.xlu1 %6135  ;;  %vm20423_vm7 = vmmov %vm20336_vm0 }
 0x66b   : > { %7091 = vrot.lane.b32.xlu0 %v20412_v58, %s13413_s17  ;;  %v17056_v58 = vpop.permute.xlu0 %6307 }
 0x66f   : > { %7243 = vrot.lane.b32.xlu0 %v20415_v28, %s13413_s17  ;;  %v4823_v28 = vsel %vm20336_vm0, %v16745_v39, 0.0 }
 0x673   : > { %7239 = vrot.lane.b32.xlu0 %v20416_v59, %s13413_s17  ;;  %v17064_v59 = vpop.permute.xlu0 %6469 }
 0x677   : > { %7237 = vrot.lane.b32.xlu0 %v20418_v20, %s13413_s17  ;;  %v17072_v20 = vpop.permute.xlu0 %6133 }
 0x678   : > { %4821 = vadd.xlane.f32.xlu1 %v4820_v4  ;;  %v4829_v4 = vsel %vm20422_vm1, %v16766_v25, 0.0  ;;  %v4835_v25 = vsel %vm20423_vm7, %v16788_v48, 0.0  ;;  %vm20424_vm1 = vmmov %vm20336_vm0 }
 0x679   : > { %vm20425_vm7 = vmmov %vm20336_vm0 }
 0x67b   : > { %7233 = vrot.lane.b32.xlu0 %v20420_v33, %s13413_s17  ;;  %v17078_v62 = vpop.permute.xlu0 %6303 }
 0x67c   : > { %4824 = vadd.xlane.f32.xlu1 %v4823_v28  ;;  %v4832_v28 = vsel %vm20336_vm0, %v16775_v5, 0.0  ;;  %v13045_v5 = vpop.eup %13044 }
 0x680   : > { %4827 = vadd.xlane.f32.xlu1 %v4826_v61 }
 0x683   : > { %v17084_v61 = vpop.xlane.xlu0 %4818 }
 0x684   : > { %v4732_v11 = vpop.xlane.xlu1 %4731  ;;  %4830 = vadd.xlane.f32.xlu1 %v4829_v4 }
 0x685   : > { %v4760_v39 = vsub.f32 %v16723_v43, %v4732_v11  ;;  %v4838_v43 = vsel %vm20424_vm1, %v16800_v45, 0.0  ;;  %vm20426_vm1 = vmmov %vm20336_vm0 }
 0x687   : > { %v4815_v24 = vmul.f32 1.442695, %v4760_v39 }
 0x688   : > { %4833 = vadd.xlane.f32.xlu1 %v4832_v28  ;;  %v20437_v28 = vld [vmem:[#allocation163_spill] sm:$0xff] }
 0x689   : > { %13046 = vpow2.f32 %v4815_v24 }
 0x68a   : > { %13048 = vrcp.f32 %v16463_v29  ;;  %v17093_v29 = vpop.permute.xlu1 %6301 }
 0x68b   : > { %13050 = vrcp.f32 %v16471_v16  ;;  %v4859_v16 = vsel %vm20336_vm0, %v16813_v32, 0.0  ;;  %vm20427_vm0 = vcmask 64512  }
 0x68c   : > { %4836 = vadd.xlane.f32.xlu1 %v4835_v25  ;;  %13052 = vrcp.f32 %v16483_v50  ;;  %v17099_v50 = vpop.permute.xlu0 %6465  ;;  %vm20428_vm12 = vmmov %vm20427_vm0  ;;  %v20438_v25 = vld [vmem:[#allocation150_spill] sm:$0xff] }
 0x68d   : > { %13054 = vrcp.f32 %v16495_v55  ;;  %v3941_v55 = vmul.f32 %v13045_v5, %v16411_v42 }
 0x68e   : > { %13056 = vrcp.f32 %v16509_v23  ;;  %v17106_v45 = vpop.permute.xlu1 %6287  ;;  %v4841_v23 = vsel %vm20426_vm1, %v16827_v18, 0.0 }
 0x68f   : > { %13058 = vrcp.f32 %v16519_v9 }
 0x690   : > { %4839 = vadd.xlane.f32.xlu1 %v4838_v43  ;;  %13060 = vrcp.f32 %v16533_v17  ;;  %v17115_v42 = vpop.permute.xlu0 %6137 }
 0x691   : > { %13062 = vrcp.f32 %v16565_v52 }
 0x692   : > { %13064 = vrcp.f32 %v16593_v54  ;;  %v17126_v52 = vpop.permute.xlu1 %6625 }
 0x693   : > { %13066 = vrcp.f32 %v16637_v7 }
 0x694   : > { %4860 = vadd.xlane.f32.xlu1 %v4859_v16  ;;  %13068 = vrcp.f32 %v16657_v22  ;;  %v20442_v16 = vld [vmem:[#allocation113_spill] sm:$0xff] }
 0x695   : > { %13070 = vrcp.f32 %v16667_v26 }
 0x696   : > { %v17102_v48 = vpop.eup %13046  ;;  %13072 = vrcp.f32 %v16677_v63  ;;  %v20436_v63 = vld [vmem:[#allocation142_spill] sm:$0xff] }
 0x697   : > { %12004 = vmatmul.mubr.msk.f32.gmra.mxu1 %vm20425_vm7, %v17102_v48  ;;  %v13049_v32 = vpop.eup %13048  ;;  %vm20429_vm7 = vmmov %vm20426_vm1 }
 0x698   : > { %4842 = vadd.xlane.f32.xlu1 %v4841_v23  ;;  %12052 = vmatprep.mubr.msk.f32.mxu1 %vm20427_vm0, %v3941_v55  ;;  %v3942_v9 = vmul.f32 %v13049_v32, %v16413_v35  ;;  %v13051_v11 = vpop.eup %13050  ;;  %v4862_v18 = vsel %vm20429_vm7, %v16842_v30, 0.0  ;;  %vm20430_vm1 = vmmov %vm20427_vm0  ;;  %v4844_v30 = vsel %vm20429_vm7, %v16847_v40, 0.0  ;;  %v17145_v40 = vpop.permute.xlu1 %6289  ;;  %v4865_v26 = vsel %vm20429_vm7, %v16876_v6, 0.0  ;;  %v20443_v32 = vld [vmem:[#allocation86_spill] sm:$0xff] }
 0x699   : > { %v3943_v17 = vmul.f32 %v13051_v11, %v16415_v13  ;;  %v13053_v24 = vpop.eup %13052 }
 0x69a   : > { %v3944_v35 = vmul.f32 %v13053_v24, %v16419_v41  ;;  %v13055_v13 = vpop.eup %13054  ;;  %v17136_v41 = vpop.permute.xlu0 %6463 }
 0x69b   : > { %12053 = vmatmul.mubr.msk.f32.vlgmr.msra.gmra.mxu1 %vm20428_vm12, %v3942_v9  ;;  %v3945_v54 = vmul.f32 %v13055_v13, %v16423_v31  ;;  %vm20431_vm12 = vmmov %vm20427_vm0  ;;  %v20444_v9 = vld [vmem:[#allocation106_spill] sm:$0xff] }
 0x69c   : > { %12130 = vmatpush3.xpose.msk.msra.mxu1 %vm20430_vm1, %v17008_v51  ;;  %4863 = vadd.xlane.f32.xlu1 %v4862_v18  ;;  %v13057_v51 = vpop.eup %13056  ;;  %vm20432_vm1 = vmmov %vm20427_vm0  ;;  %v17167_v55 = vpop.permute.xlu1 %6623 }
 0x69d   : > { %12055 = vmatprep.mubr.msk.f32.mxu1 %vm20427_vm0, %v3943_v17  ;;  %12131 = vmatprep.subr.mxu1 %v19791_v36  ;;  %v3946_v22 = vmul.f32 %v13057_v51, %v16427_v38  ;;  %v13059_v31 = vpop.eup %13058  ;;  %v20435_v38 = vld [vmem:[#allocation108_spill] sm:$0xff] }
 0x69e   : > { %v3947_v7 = vmul.f32 %v13059_v31, %v16431_v56  ;;  %13074 = vrcp.f32 %v20435_v38  ;;  %v17156_v39 = vpop.permute.xlu0 %6139  ;;  %v20454_v31 = vld [vmem:[#allocation85_spill] sm:$0xff] }
 0x69f   : > { %12056 = vmatmul.mubr.msk.f32.gmra.mxu1 %vm20431_vm12, %v3944_v35  ;;  %vm20433_vm12 = vmmov %vm20427_vm0  ;;  %13076 = vrcp.f32 %v20437_v28  ;;  %v20448_v35 = vld [vmem:[#allocation116_spill] sm:$0xff] }
 0x6a0   : > { %12132 = vmatpush3.xpose.msk.msra.mxu1 %vm20432_vm1, %v17024_v53  ;;  %4845 = vadd.xlane.f32.xlu1 %v4844_v30  ;;  %v13061_v53 = vpop.eup %13060  ;;  %vm20434_vm1 = vmmov %vm20427_vm0  ;;  %13078 = vrcp.f32 %v20440_v44  ;;  %v20449_v30 = vld [vmem:[#allocation167_spill] sm:$0xff] }
 0x6a1   : > { %12058 = vmatprep.mubr.msk.f32.mxu1 %vm20427_vm0, %v3945_v54  ;;  %12133 = vmatprep.subr.mxu1 %v19791_v36  ;;  %v3948_v4 = vmul.f32 %v13061_v53, %v20436_v63  ;;  %v13063_v56 = vpop.eup %13062  ;;  %13080 = vrcp.f32 %v20443_v32  ;;  %v20456_v63 = vld [vmem:[#allocation138_spill] sm:$0xff]  ;;  %v20462_v44 = vld [vmem:[#allocation155_spill] sm:$0xff] }
 0x6a2   : > { %v3949_v6 = vmul.f32 %v13063_v56, %v20438_v25  ;;  %v13065_v43 = vpop.eup %13064  ;;  %13082 = vrcp.f32 %v20444_v9  ;;  %v17178_v18 = vpop.permute.xlu0 %6461  ;;  %v20458_v56 = vld [vmem:[#allocation176_spill] sm:$0xff]  ;;  %v20460_v25 = vld [vmem:[#allocation122_spill] sm:$0xff] }
 0x6a3   : > { %12059 = vmatmul.mubr.msk.f32.gmra.mxu1 %vm20433_vm12, %v3946_v22  ;;  %vm20439_vm12 = vmmov %vm20427_vm0  ;;  %v3950_v5 = vmul.f32 %v13065_v43, %v20442_v16  ;;  %v13067_v23 = vpop.eup %13066  ;;  %13084 = vrcp.f32 %v17084_v61  ;;  %v17187_v22 = vpop.permute.xlu1 %6291  ;;  %v20452_v61 = vld [vmem:[#allocation172_spill] sm:$0xff] }
 0x6a4   : > { %12134 = vmatpush3.xpose.msk.msra.mxu1 %vm20434_vm1, %v17046_v0  ;;  %4866 = vadd.xlane.f32.xlu1 %v4865_v26  ;;  %v4847_v0 = vsel %vm20429_vm7, %v16869_v2, 0.0  ;;  %vm20441_vm1 = vmmov %vm20427_vm0  ;;  %v20445_v2 = vld [vmem:[#allocation147_spill] sm:$0xff]  ;;  %v13069_v17 = vpop.eup %13068  ;;  %13086 = vrcp.f32 %v20449_v30 }
 0x6a5   : > { %12061 = vmatprep.mubr.msk.f32.mxu1 %vm20427_vm0, %v3947_v7  ;;  %12135 = vmatprep.subr.mxu1 %v19791_v36  ;;  %v3951_v11 = vmul.f32 %v13067_v23, %v20445_v2  ;;  %v13071_v24 = vpop.eup %13070  ;;  %v3952_v13 = vmul.f32 %v13069_v17, %v20448_v35  ;;  %13088 = vrcp.f32 %v20452_v61  ;;  %v20455_v7 = vld [vmem:[#allocation107_spill] sm:$0xff]  ;;  %v20466_v2 = vld [vmem:[#allocation89_spill] sm:$0xff]  ;;  %v20472_v61 = vld [vmem:[#allocation170_spill] sm:$0xff] }
 0x6a6   : > { %v13073_v54 = vpop.eup %13072  ;;  %13090 = vrcp.f32 %v20454_v31  ;;  %v17199_v38 = vpop.permute.xlu0 %6141 }
 0x6a7   : > { %12062 = vmatmul.mubr.msk.f32.gmra.mxu1 %vm20439_vm12, %v3948_v4  ;;  %vm20446_vm12 = vmmov %vm20427_vm0  ;;  %v3954_v26 = vmul.f32 %v13073_v54, %v20455_v7  ;;  %13092 = vrcp.f32 %v20458_v56  ;;  %v17210_v43 = vpop.permute.xlu1 %6621 }
 0x6a8   : > { %12136 = vmatpush3.xpose.msk.msra.mxu1 %vm20441_vm1, %v17056_v58  ;;  %4848 = vadd.xlane.f32.xlu1 %v4847_v0  ;;  %v4868_v58 = vsel %vm20429_vm7, %v16892_v14, 0.0  ;;  %vm20447_vm1 = vmmov %vm20427_vm0  ;;  %v20450_v14 = vld [vmem:[#allocation105_spill] sm:$0xff]  ;;  %13094 = vrcp.f32 %v20460_v25 }
 0x6a9   : > { %12064 = vmatprep.mubr.msk.f32.mxu1 %vm20427_vm0, %v3949_v6  ;;  %12137 = vmatprep.subr.mxu1 %v19791_v36  ;;  %v3953_v51 = vmul.f32 %v13071_v24, %v20450_v14  ;;  %v20461_v6 = vld [vmem:[#allocation140_spill] sm:$0xff]  ;;  %13096 = vrcp.f32 %v20462_v44  ;;  %v20468_v24 = vld [vmem:[#allocation74_spill] sm:$0xff] }
 0x6aa   : > { %v17219_v32 = vpop.permute.xlu0 %6459  ;;  %13098 = vrcp.f32 %v20466_v2  ;;  %v20482_v2 = vld [vmem:[#allocation96_spill] sm:$0xff] }
 0x6ab   : > { %12065 = vmatmul.mubr.msk.f32.gmra.mxu1 %vm20446_vm12, %v3950_v5  ;;  %vm20451_vm12 = vmmov %vm20427_vm0  ;;  %v13075_v53 = vpop.eup %13074  ;;  %v17225_v54 = vpop.permute.xlu1 %6293 }
 0x6ac   : > { %12138 = vmatpush3.xpose.msk.msra.mxu1 %vm20447_vm1, %v17050_v57  ;;  %4869 = vadd.xlane.f32.xlu1 %v4868_v58  ;;  %v4850_v57 = vsel %vm20429_vm7, %v16895_v60, 0.0  ;;  %vm20453_vm1 = vmmov %vm20427_vm0  ;;  %v3955_v4 = vmul.f32 %v13075_v53, %v20456_v63  ;;  %v4871_v60 = vsel %vm20429_vm7, %v16907_v3, 0.0  ;;  %v20463_v3 = vld [vmem:[#allocation132_spill] sm:$0xff] }
 0x6ad   : > { %12067 = vmatprep.mubr.msk.f32.mxu1 %vm20427_vm0, %v3951_v11  ;;  %12139 = vmatprep.subr.mxu1 %v19791_v36  ;;  %v20467_v11 = vld [vmem:[#allocation135_spill] sm:$0xff] }
 0x6ae   : > { %v17236_v63 = vpop.permute.xlu0 %6143 }
 0x6af   : > { %12068 = vmatmul.mubr.msk.f32.gmra.mxu1 %vm20451_vm12, %v3952_v13  ;;  %vm20457_vm12 = vmmov %vm20427_vm0 }
 0x6b0   : > { %12140 = vmatpush3.xpose.msk.msra.mxu1 %vm20453_vm1, %v17078_v62  ;;  %4851 = vadd.xlane.f32.xlu1 %v4850_v57  ;;  %v13077_v62 = vpop.eup %13076  ;;  %vm20459_vm1 = vmmov %vm20427_vm0 }
 0x6b1   : > { %12070 = vmatprep.mubr.msk.f32.mxu1 %vm20427_vm0, %v3953_v51  ;;  %12141 = vmatprep.subr.mxu1 %v19791_v36  ;;  %v13079_v28 = vpop.eup %13078  ;;  %v3956_v0 = vmul.f32 %v13077_v62, %v20461_v6  ;;  %v20470_v51 = vld [vmem:[#allocation114_spill] sm:$0xff]  ;;  %v20477_v6 = vld [vmem:[#allocation179_spill] sm:$0xff] }
 0x6b2   : > { %v3957_v16 = vmul.f32 %v13079_v28, %v20463_v3  ;;  %v13081_v5 = vpop.eup %13080  ;;  %13100 = vrcp.f32 %v20470_v51  ;;  %v17245_v28 = vpop.permute.xlu1 %6619 }
 0x6b3   : > { %12071 = vmatmul.mubr.msk.f32.gmra.mxu1 %vm20457_vm12, %v3954_v26  ;;  %vm20464_vm12 = vmmov %vm20427_vm0  ;;  %v13083_v23 = vpop.eup %13082  ;;  %v3958_v58 = vmul.f32 %v13081_v5, %v20467_v11  ;;  %13102 = vrcp.f32 %v17032_v47  ;;  %v20474_v26 = vld [vmem:[#allocation102_spill] sm:$0xff]  ;;  %v20476_v47 = vld [vmem:[#allocation91_spill] sm:$0xff] }
 0x6b4   : > { %12142 = vmatpush3.xpose.msk.msra.mxu1 %vm20459_vm1, %v17093_v29  ;;  %4872 = vadd.xlane.f32.xlu1 %v4871_v60  ;;  %v4853_v29 = vsel %vm20429_vm7, %v16912_v46, 0.0  ;;  %vm20465_vm1 = vmmov %vm20427_vm0  ;;  %v13085_v9 = vpop.eup %13084  ;;  %v3959_v35 = vmul.f32 %v13083_v23, %v20468_v24 }
 0x6b5   : > { %12073 = vmatprep.mubr.msk.f32.mxu1 %vm20427_vm0, %v3955_v4  ;;  %12199 = vmatprep.subr.mxu1 %v19791_v36  ;;  %v13087_v14 = vpop.eup %13086 }
 0x6b6   : > { %v13089_v57 = vpop.eup %13088  ;;  %v3960_v31 = vmul.f32 %v13087_v14, %v20472_v61  ;;  %v20487_v14 = vld [vmem:[#allocation178_spill] sm:$0xff] }
 0x6b7   : > { %12074 = vmatmul.mubr.msk.f32.gmra.mxu1 %vm20464_vm12, %v3956_v0  ;;  %vm20469_vm12 = vmmov %vm20429_vm7  ;;  %v13091_v7 = vpop.eup %13090  ;;  %v3961_v53 = vmul.f32 %v13089_v57, %v20474_v26 }
 0x6b8   : > { %4854 = vadd.xlane.f32.xlu1 %v4853_v29  ;;  %12076 = vmatprep.mubr.msk.f32.mxu1 %vm20465_vm1, %v3957_v16  ;;  %v4874_v46 = vsel %vm20469_vm12, %v16924_v12, 0.0  ;;  %vm20471_vm7 = vmmov %vm20427_vm0  ;;  %v4856_v4 = vsel %vm20469_vm12, %v16929_v27, 0.0  ;;  %v13093_v62 = vpop.eup %13092  ;;  %v3962_v56 = vmul.f32 %v13091_v7, %v20476_v47  ;;  %v17253_v16 = vpop.permute.xlu0 %6457  ;;  %v20481_v29 = vld [vmem:[#allocation148_spill] sm:$0xff] }
 0x6b9   : > { %v5044_v17 = vpop.f32.mrf.mxu0  ;;  %vm20473_vm1 = vmmov %vm20427_vm0  ;;  %v13095_v25 = vpop.eup %13094  ;;  %v3963_v0 = vmul.f32 %v13093_v62, %v20477_v6  ;;  %v20491_v7 = vld [vmem:[#allocation80_spill] sm:$0xff] }
 0x6ba   : > { %v5525_v13 = vmul.f32 %v13085_v9, %v5044_v17  ;;  %v13097_v3 = vpop.eup %13096  ;;  %v3964_v23 = vmul.f32 %v13095_v25, %v20481_v29  ;;  %v17260_v17 = vpop.permute.xlu1 %6295 }
 0x6bb   : > { %12077 = vmatmul.mubr.msk.f32.gmra.mxu1 %vm20427_vm0, %v3958_v58  ;;  %v11882_v30 = vpop.f32.mrf.mxu0  ;;  %v13099_v9 = vpop.eup %13098  ;;  %v3965_v11 = vmul.f32 %v13097_v3, %v20482_v2 }
 0x6bc   : > { %4875 = vadd.xlane.f32.xlu1 %v4874_v46  ;;  %12079 = vmatprep.mubr.msk.f32.mxu1 %vm20471_vm7, %v3959_v35  ;;  %vm20475_vm7 = vmmov %vm20427_vm0  ;;  %v17268_v57 = vpop.permute.xlu0 %6443 }
 0x6bd   : > { %12008 = vmatprep.mubr.msk.f32.mxu0 %vm20473_vm1, %v5525_v13  ;;  %vm20478_vm1 = vmmov %vm20427_vm0  ;;  %v20486_v13 = vld [vmem:[#allocation174_spill] sm:$0xff] }
 0x6be   : > { %v17238_v12 = vpop.f32.mrf.mxu0  ;;  %v3966_v46 = vmul.f32 %v13099_v9, %v20486_v13 }
 0x6bf   : > { %12080 = vmatmul.mubr.msk.f32.gmra.mxu1 %vm20427_vm0, %v3960_v31  ;;  %vm20479_vm0 = vmmov %vm20469_vm12  ;;  %v13101_v35 = vpop.eup %13100 }
 0x6c0   : > { %4857 = vadd.xlane.f32.xlu1 %v4856_v4  ;;  %12082 = vmatprep.mubr.msk.f32.mxu1 %vm20475_vm7, %v3961_v53  ;;  %v11885_v60 = vpop.f32.mrf.mxu0  ;;  %v4877_v27 = vsel %vm20479_vm0, %v16941_v49, 0.0  ;;  %vm20480_vm12 = vmmov %vm20478_vm1  ;;  %v13103_v30 = vpop.eup %13102  ;;  %v3967_v51 = vmul.f32 %v13101_v35, %v20487_v14 }
 0x6c1   : > { %vm20483_vm7 = vmmov %vm20478_vm1  ;;  %v3968_v26 = vmul.f32 %v13103_v30, %v20491_v7  ;;  %v6618_v62 = vpop.permute.xlu0 %6617 }
 0x6c2   : > { %v17248_v44 = vpop.f32.mrf.mxu0 }
 0x6c3   : > { %12083 = vmatmul.mubr.msk.f32.gmra.mxu1 %vm20478_vm1, %v3962_v56  ;;  %vm20484_vm1 = vmmov %vm20479_vm0 }
 0x6c4   : > { %4878 = vadd.xlane.f32.xlu1 %v4877_v27  ;;  %12085 = vmatprep.mubr.msk.f32.mxu1 %vm20480_vm12, %v3963_v0  ;;  %v11888_v5 = vpop.f32.mrf.mxu0  ;;  %v4880_v49 = vsel %vm20484_vm1, %v16946_v21, 0.0  ;;  %vm20485_vm0 = vmmov %vm20483_vm7  ;;  %v17276_v21 = vpop.permute.xlu1 %6445 }
 0x6c5   : > { %vm20488_vm12 = vmmov %vm20485_vm0  ;;  %v6298_v25 = vpop.permute.xlu0 %6297 }
 0x6c6   : > { %v17258_v58 = vpop.f32.mrf.mxu0  ;;  %vm20489_vm6 = vmmov %vm20484_vm1 }
 0x6c7   : > { %12086 = vmatmul.mubr.msk.f32.gmra.mxu1 %vm20483_vm7, %v3964_v23  ;;  %v4883_v61 = vsel %vm20489_vm6, %v16959_v1, 0.0  ;;  %vm20490_vm7 = vmmov %vm20485_vm0 }
 0x6c8   : > { %4881 = vadd.xlane.f32.xlu1 %v4880_v49  ;;  %12088 = vmatprep.mubr.msk.f32.mxu1 %vm20485_vm0, %v3965_v11  ;;  %v11891_v24 = vpop.f32.mrf.mxu0  ;;  %vm20492_vm1 = vmmov %vm20485_vm0  ;;  %v6616_v47 = vpop.permute.xlu1 %6615 }
 0x6c9   : > { %vm20493_vm0 = vmmov %vm20489_vm6 }
 0x6ca   : > { %v4886_v4 = vsel %vm20493_vm0, %v16970_v19, 0.0  ;;  %vm20494_vm6 = vmmov %vm20492_vm1 }
 0x6cb   : > { %12089 = vmatmul.mubr.msk.f32.gmra.mxu1 %vm20488_vm12, %v3966_v46  ;;  %v17273_v31 = vpop.f32.mrf.mxu0  ;;  %vm20495_vm12 = vmmov %vm20493_vm0 }
 0x6cc   : > { %4884 = vadd.xlane.f32.xlu1 %v4883_v61  ;;  %12091 = vmatprep.mubr.msk.f32.mxu1 %vm20490_vm7, %v3967_v51  ;;  %v4889_v56 = vsel %vm20495_vm12, %v16980_v8, 0.0  ;;  %vm20496_vm7 = vmmov %vm20492_vm1  ;;  %v20509_v51 = vld [vmem:[#allocation62_spill] sm:$0xff] }
 0x6cd   : > { %v11894_v53 = vpop.f32.mrf.mxu0  ;;  %vm20498_vm12 = vmmov %vm20492_vm1 }
 0x6cf   : > { %12092 = vmatmul.mubr.msk.f32.gmra.mxu1 %vm20492_vm1, %v3968_v26  ;;  %v17282_v60 = vpop.f32.mrf.mxu0 }
 0x6d0   : > { %4887 = vadd.xlane.f32.xlu1 %v4886_v4  ;;  %12143 = vmatprep.mubr.msk.f32.mxu1 %vm20066_vm14, %v19791_v36 }
 0x6d1   : > { %v11897_v1 = vpop.f32.mrf.mxu0 }
 0x6d3   : > { %12144 = vmatmul.mubr.msk.f32.vlgmr.msra.gmra.mxu1 %vm20494_vm6, %v17106_v45  ;;  %v4892_v45 = vsel %vm20493_vm0, %v16990_v37, 0.0  ;;  %vm20497_vm6 = vmmov %vm20492_vm1  ;;  %v17312_v37 = vpop.permute.xlu0 %6447 }
 0x6d4   : > { %12200 = vmatpush3.xpose.msk.msra.mxu1 %vm20496_vm7, %v17126_v52  ;;  %4890 = vadd.xlane.f32.xlu1 %v4889_v56  ;;  %v17292_v19 = vpop.f32.mrf.mxu0  ;;  %v6300_v52 = vpop.permute.xlu1 %6299  ;;  %vm20499_vm7 = vmmov %vm20493_vm0 }
 0x6d5   : > { %12146 = vmatprep.mubr.msk.f32.mxu1 %vm20066_vm14, %v19791_v36  ;;  %12201 = vmatprep.subr.mxu1 %v19791_v36  ;;  %vm20500_vm0 = vmmov %vm20492_vm1 }
 0x6d6   : > { %v11900_v6 = vpop.f32.mrf.mxu0 }
 0x6d7   : > { %12147 = vmatmul.mubr.msk.f32.gmra.mxu1 %vm20492_vm1, %v17145_v40  ;;  %v4895_v40 = vsel %vm20499_vm7, %v17002_v10, 0.0  ;;  %v6614_v27 = vpop.permute.xlu0 %6613 }
 0x6d8   : > { %12202 = vmatpush3.xpose.msk.msra.mxu1 %vm20497_vm6, %v17167_v55  ;;  %4893 = vadd.xlane.f32.xlu1 %v4892_v45  ;;  %v17303_v8 = vpop.f32.mrf.mxu1  ;;  %v17321_v3 = vpop.permute.xlu1 %6449  ;;  %vm20501_vm6 = vmmov %vm20499_vm7  ;;  %v20512_v45 = vld [vmem:[#allocation9_spill] sm:$0xff] }
 0x6d9   : > { %12149 = vmatprep.mubr.msk.f32.mxu1 %vm20066_vm14, %v19791_v36  ;;  %12203 = vmatprep.subr.mxu1 %v19791_v36  ;;  %v4898_v10 = vsel %vm20501_vm6, %v17102_v48, 0.0  ;;  %vm20503_vm7 = vmmov %vm20500_vm0 }
 0x6da   : > { %v11917_v0 = vpop.f32.mrf.mxu1  ;;  %vm20505_vm6 = vmmov %vm20500_vm0 }
 0x6db   : > { %12150 = vmatmul.mubr.msk.f32.gmra.mxu1 %vm20498_vm12, %v17187_v22  ;;  %vm20502_vm12 = vmmov %vm20500_vm0  ;;  %v6600_v23 = vpop.permute.xlu0 %6599 }
 0x6dc   : > { %12204 = vmatpush3.xpose.msk.msra.mxu1 %vm20492_vm1, %v17210_v43  ;;  %4896 = vadd.xlane.f32.xlu1 %v4895_v40  ;;  %vm20504_vm1 = vmmov %vm20500_vm0  ;;  %v17339_v48 = vpop.permute.xlu1 %6451 }
 0x6dd   : > { %12152 = vmatprep.mubr.msk.f32.mxu1 %vm20066_vm14, %v19791_v36  ;;  %12205 = vmatprep.subr.mxu1 %v19791_v36  ;;  %v17319_v55 = vpop.f32.mrf.mxu0 }
 0x6df   : > { %12153 = vmatmul.mubr.msk.f32.gmra.mxu1 %vm20500_vm0, %v17225_v54  ;;  %v11952_v22 = vpop.f32.mrf.mxu0  ;;  %v6602_v35 = vpop.permute.xlu0 %6601 }
 0x6e0   : > { %12206 = vmatpush3.xpose.msk.msra.mxu1 %vm20502_vm12, %v17245_v28  ;;  %4899 = vadd.xlane.f32.xlu1 %v4898_v10  ;;  %vm20506_vm12 = vmmov %vm20500_vm0 }
 0x6e1   : > { %12155 = vmatprep.mubr.msk.f32.mxu1 %vm20066_vm14, %v19791_v36  ;;  %12207 = vmatprep.subr.mxu1 %v19791_v36  ;;  %v17332_v43 = vpop.f32.mrf.mxu1 }
 0x6e3   : > { %12156 = vmatmul.mubr.msk.f32.gmra.mxu1 %vm20503_vm7, %v17260_v17  ;;  %v11920_v54 = vpop.f32.mrf.mxu1  ;;  %v17355_v17 = vpop.permute.xlu1 %6453  ;;  %vm20507_vm7 = vmmov %vm20500_vm0 }
 0x6e4   : > { %12208 = vmatpush3.xpose.msk.msra.mxu1 %vm20504_vm1, %v6618_v62  ;;  %12158 = vmatprep.mubr.msk.f32.mxu1 %vm20066_vm14, %v19791_v36  ;;  %vm20508_vm1 = vmmov %vm20500_vm0  ;;  %v6604_v53 = vpop.permute.xlu0 %6603  ;;  %v20510_v62 = vld [vmem:[#allocation61_spill] sm:$0xff]  ;;  %v20514_v54 = vld [vmem:[#allocation67_spill] sm:$0xff] }
 0x6e5   : > { %12209 = vmatprep.subr.mxu1 %v19791_v36  ;;  %v17342_v28 = vpop.f32.mrf.mxu1 }
 0x6e6   : > { %v17344_v5 = vpop.f32.mrf.mxu0 }
 0x6e7   : > { %12159 = vmatmul.mubr.msk.f32.gmra.mxu1 %vm20500_vm0, %v6298_v25  ;;  %v11923_v29 = vpop.f32.mrf.mxu1  ;;  %v17369_v14 = vpop.permute.xlu1 %6455 }
 0x6e8   : > { %12210 = vmatpush3.xpose.msk.msra.mxu1 %vm20505_vm6, %v6616_v47  ;;  %12161 = vmatprep.mubr.msk.f32.mxu1 %vm20066_vm14, %v19791_v36  ;;  %v11955_v9 = vpop.f32.mrf.mxu0  ;;  %vm20511_vm6 = vmmov %vm20500_vm0  ;;  %v6606_v0 = vpop.permute.xlu0 %6605 }
 0x6e9   : > { %12211 = vmatprep.subr.mxu1 %v19791_v36  ;;  %v17351_v2 = vpop.f32.mrf.mxu1 }
 0x6ea   : > { %v17353_v11 = vpop.f32.mrf.mxu0 }
 0x6eb   : > { %12162 = vmatmul.mubr.msk.f32.gmra.mxu1 %vm20506_vm12, %v6300_v52  ;;  %v11926_v49 = vpop.f32.mrf.mxu1  ;;  %v6608_v56 = vpop.permute.xlu1 %6607  ;;  %vm20513_vm12 = vmmov %vm20500_vm0 }
 0x6ec   : > { %12212 = vmatpush3.xpose.msk.msra.mxu1 %vm20507_vm7, %v6614_v27  ;;  %12213 = vmatprep.mubr.msk.f32.mxu1 %vm20066_vm14, %v19791_v36  ;;  %v11958_v24 = vpop.f32.mrf.mxu0  ;;  %vm20515_vm7 = vmmov %vm20500_vm0  ;;  %v20516_v49 = vld [vmem:[#allocation66_spill] sm:$0xff] }
 0x6ed   : > { %12269 = vmatprep.subr.mxu1 %v19791_v36 }
 0x6ee   : > { %v17362_v13 = vpop.f32.mrf.mxu0 }
 0x6ef   : > { %12214 = vmatmul.mubr.msk.f32.vlgmr.msra.gmra.mxu1 %vm20508_vm1, %v6600_v23  ;;  %v17365_v46 = vpop.f32.mrf.mxu1  ;;  %v6612_v27 = vpop.permute.xlu1 %6611  ;;  %vm20517_vm1 = vmmov %vm20500_vm0 }
 0x6f0   : > { %12216 = vmatprep.mubr.msk.f32.mxu1 %vm20066_vm14, %v19791_v36  ;;  %v11961_v30 = vpop.f32.mrf.mxu0 }
 0x6f1   : > { %7101 = vrot.lane.b32.xlu1 %v20509_v51, %s13413_s17  ;;  %v11929_v61 = vpop.f32.mrf.mxu1 }
 0x6f2   : > { %v17373_v7 = vpop.f32.mrf.mxu0 }
 0x6f3   : > { %12217 = vmatmul.mubr.msk.f32.gmra.mxu1 %vm20500_vm0, %v6602_v35  ;;  %v17376_v26 = vpop.f32.mrf.mxu1  ;;  %v6610_v35 = vpop.permute.xlu0 %6609 }
 0x6f4   : > { %12219 = vmatprep.mubr.msk.f32.mxu1 %vm20066_vm14, %v19791_v36  ;;  %v11964_v4 = vpop.f32.mrf.mxu0 }
 0x6f5   : > { %7097 = vrot.lane.b32.xlu1 %v20510_v62, %s13413_s17  ;;  %v11932_v1 = vpop.f32.mrf.mxu1 }
 0x6f6   : > { %v17382_v47 = vpop.f32.mrf.mxu0 }
 0x6f7   : > { %12220 = vmatmul.mubr.msk.f32.gmra.mxu1 %vm20511_vm6, %v6604_v53  ;;  %v17385_v25 = vpop.f32.mrf.mxu1  ;;  %v20518_v53 = vld [vmem:[#allocation69_spill] sm:$0xff]  ;;  %vm20519_vm6 = vmmov %vm20500_vm0 }
 0x6f8   : > { %12222 = vmatprep.mubr.msk.f32.mxu1 %vm20066_vm14, %v19791_v36  ;;  %v11967_v6 = vpop.f32.mrf.mxu0 }
 0x6f9   : > { %7093 = vrot.lane.b32.xlu1 %v20512_v45, %s13413_s17  ;;  %v11935_v52 = vpop.f32.mrf.mxu1 }
 0x6fa   : > { %v17391_v40 = vpop.f32.mrf.mxu0 }
 0x6fb   : > { %12223 = vmatmul.mubr.msk.f32.gmra.mxu1 %vm20513_vm12, %v6606_v0  ;;  %v17394_v10 = vpop.f32.mrf.mxu1  ;;  %vm20521_vm12 = vmmov %vm20500_vm0 }
 0x6fc   : > { %12225 = vmatprep.mubr.msk.f32.mxu1 %vm20066_vm14, %v19791_v36  ;;  %v11970_v22 = vpop.f32.mrf.mxu0 }
 0x6fd   : > { %7245 = vrot.lane.b32.xlu1 %v20514_v54, %s13413_s17  ;;  %v11987_v29 = vpop.f32.mrf.mxu1 }
 0x6ff   : > { %12226 = vmatmul.mubr.msk.f32.gmra.mxu1 %vm20515_vm7, %v6608_v56  ;;  %v17401_v23 = vpop.f32.mrf.mxu1  ;;  %vm20522_vm7 = vmmov %vm20500_vm0 }
 0x700   : > { %12228 = vmatprep.mubr.msk.f32.mxu1 %vm20066_vm14, %v19791_v36 }
 0x701   : > { %v4822_v9 = vpop.xlane.xlu1 %4821  ;;  %7241 = vrot.lane.b32.xlu1 %v20516_v49, %s13413_s17  ;;  %v11990_v24 = vpop.f32.mrf.mxu1 }
 0x702   : > { %13104 = vrcp.f32 %v4822_v9 }
 0x703   : > { %12229 = vmatmul.mubr.msk.f32.gmra.mxu1 %vm20517_vm1, %v6610_v35  ;;  %v17408_v30 = vpop.f32.mrf.mxu1  ;;  %vm20524_vm1 = vmmov %vm20500_vm0 }
 0x704   : > { %12231 = vmatprep.mubr.msk.f32.mxu1 %vm20066_vm14, %v19791_v36 }
 0x705   : > { %v4825_v61 = vpop.xlane.xlu1 %4824  ;;  %7235 = vrot.lane.b32.xlu1 %v20518_v53, %s13413_s17  ;;  %v11993_v4 = vpop.f32.mrf.mxu1 }
 0x706   : > { %13106 = vrcp.f32 %v4825_v61  ;;  %v20520_v4 = vld [vmem:[#allocation188_spill] sm:$0xff] }
 0x707   : > { %12232 = vmatmul.mubr.msk.f32.gmra.mxu1 %vm20500_vm0, %v6612_v27  ;;  %v17415_v1 = vpop.f32.mrf.mxu1 }
 0x708   : > { %12283 = vmatprep.mubr.msk.f32.mxu1 %vm20066_vm14, %v19791_v36 }
 0x709   : > { %v4828_v56 = vpop.xlane.xlu1 %4827  ;;  %v11996_v6 = vpop.f32.mrf.mxu1 }
 0x70a   : > { %13108 = vrcp.f32 %v4828_v56 }
 0x70b   : > { %v17419_v52 = vpop.f32.mrf.mxu1 }
 0x70d   : > { %v4831_v0 = vpop.xlane.xlu1 %4830  ;;  %v11999_v22 = vpop.f32.mrf.mxu1 }
 0x70e   : > { %13110 = vrcp.f32 %v4831_v0  ;;  %v20523_v22 = vld [vmem:[#allocation198_spill] sm:$0xff] }
 0x70f   : > { %v13105_v29 = vpop.eup %13104  ;;  %v17421_v9 = vpop.f32.mrf.mxu1 }
 0x710   : > { %v5526_v24 = vmul.f32 %v13105_v29, %v17238_v12 }
 0x711   : > { %v4834_v35 = vpop.xlane.xlu1 %4833  ;;  %v12002_v27 = vpop.f32.mrf.mxu1 }
 0x712   : > { %13112 = vrcp.f32 %v4834_v35  ;;  %12009 = vmatmul.mubr.msk.f32.vlgmr.msra.gmra.mxu0 %vm20519_vm6, %v5526_v24  ;;  %vm20525_vm6 = vmmov %vm20500_vm0 }
 0x713   : > { %v13107_v61 = vpop.eup %13106  ;;  %12095 = vmatpush3.xpose.msk.msra.mxu0 %vm20521_vm12, %v20520_v4  ;;  %vm20526_vm12 = vmmov %vm20500_vm0 }
 0x714   : > { %12096 = vmatprep.subr.mxu0 %v19791_v36  ;;  %v5527_v56 = vmul.f32 %v13107_v61, %v17248_v44  ;;  %v20527_v61 = vld [vmem:[#allocation77_spill] sm:$0xff] }
 0x715   : > { %v4837_v6 = vpop.xlane.xlu1 %4836 }
 0x716   : > { %13114 = vrcp.f32 %v4837_v6  ;;  %12011 = vmatprep.mubr.msk.f32.mxu0 %vm20522_vm7, %v5527_v56  ;;  %vm20528_vm7 = vmmov %vm20500_vm0  ;;  %v20530_v56 = vld [vmem:[#allocation159_spill] sm:$0xff] }
 0x717   : > { %v13109_v0 = vpop.eup %13108  ;;  %12097 = vmatpush3.xpose.msk.msra.mxu0 %vm20524_vm1, %v20523_v22  ;;  %vm20529_vm1 = vmmov %vm20500_vm0  ;;  %v20532_v22 = vld [vmem:[#allocation181_spill] sm:$0xff] }
 0x718   : > { %12098 = vmatprep.subr.mxu0 %v19791_v36  ;;  %v5528_v12 = vmul.f32 %v13109_v0, %v17258_v58 }
 0x719   : > { %v4840_v29 = vpop.xlane.xlu1 %4839 }
 0x71a   : > { %13116 = vrcp.f32 %v4840_v29  ;;  %12012 = vmatmul.mubr.msk.f32.gmra.mxu0 %vm20500_vm0, %v5528_v12  ;;  %v20535_v29 = vld [vmem:[#allocation100_spill] sm:$0xff] }
 0x71b   : > { %v13111_v24 = vpop.eup %13110  ;;  %12099 = vmatpush3.xpose.msk.msra.mxu0 %vm20525_vm6, %v16992_v34  ;;  %vm20531_vm6 = vmmov %vm20500_vm0 }
 0x71c   : > { %12100 = vmatprep.subr.mxu0 %v19791_v36  ;;  %v5529_v44 = vmul.f32 %v13111_v24, %v17273_v31 }
 0x71d   : > { %v4861_v35 = vpop.xlane.xlu1 %4860 }
 0x71e   : > { %12014 = vmatprep.mubr.msk.f32.mxu0 %vm20526_vm12, %v5529_v44  ;;  %vm20533_vm12 = vmmov %vm20500_vm0 }
 0x71f   : > { %v13113_v27 = vpop.eup %13112  ;;  %12101 = vmatpush3.xpose.msk.msra.mxu0 %vm20528_vm7, %v20527_v61  ;;  %vm20534_vm7 = vmmov %vm20500_vm0 }
 0x720   : > { %12102 = vmatprep.subr.mxu0 %v19791_v36  ;;  %v5530_v58 = vmul.f32 %v13113_v27, %v17282_v60 }
 0x721   : > { %v4843_v4 = vpop.xlane.xlu1 %4842 }
 0x722   : > { %13118 = vrcp.f32 %v4843_v4  ;;  %12015 = vmatmul.mubr.msk.f32.gmra.mxu0 %vm20529_vm1, %v5530_v58  ;;  %vm20536_vm1 = vmmov %vm20500_vm0 }
 0x723   : > { %v13115_v34 = vpop.eup %13114  ;;  %12103 = vmatpush3.xpose.msk.msra.mxu0 %vm20500_vm0, %v20530_v56 }
 0x724   : > { %12104 = vmatprep.subr.mxu0 %v19791_v36  ;;  %v5531_v31 = vmul.f32 %v13115_v34, %v17292_v19 }
 0x725   : > { %v4864_v6 = vpop.xlane.xlu1 %4863 }
 0x726   : > { %12017 = vmatprep.mubr.msk.f32.mxu0 %vm20531_vm6, %v5531_v31  ;;  %vm20537_vm6 = vmmov %vm20500_vm0 }
 0x727   : > { %v13117_v0 = vpop.eup %13116  ;;  %12105 = vmatpush3.xpose.msk.msra.mxu0 %vm20533_vm12, %v20532_v22  ;;  %vm20538_vm12 = vmmov %vm20500_vm0 }
 0x728   : > { %12106 = vmatprep.subr.mxu0 %v19791_v36  ;;  %v5532_v60 = vmul.f32 %v13117_v0, %v17303_v8 }
 0x729   : > { %v4846_v12 = vpop.xlane.xlu1 %4845 }
 0x72a   : > { %13120 = vrcp.f32 %v4846_v12  ;;  %12018 = vmatmul.mubr.msk.f32.gmra.mxu0 %vm20534_vm7, %v5532_v60  ;;  %vm20539_vm7 = vmmov %vm20500_vm0 }
 0x72b   : > { %12107 = vmatpush3.xpose.msk.msra.mxu0 %vm20536_vm1, %v20535_v29  ;;  %vm20540_vm1 = vmmov %vm20500_vm0 }
 0x72c   : > { %12164 = vmatprep.subr.mxu0 %v19791_v36 }
 0x72d   : > { %v4867_v19 = vpop.xlane.xlu1 %4866 }
 0x72f   : > { %v13119_v24 = vpop.eup %13118 }
 0x730   : > { %v5533_v44 = vmul.f32 %v13119_v24, %v17332_v43 }
 0x731   : > { %v4849_v27 = vpop.xlane.xlu1 %4848 }
 0x732   : > { %13122 = vrcp.f32 %v4849_v27  ;;  %12020 = vmatprep.mubr.msk.f32.mxu0 %vm20500_vm0, %v5533_v44 }
 0x735   : > { %v4870_v61 = vpop.xlane.xlu1 %4869 }
 0x737   : > { %v13121_v58 = vpop.eup %13120 }
 0x738   : > { %v5534_v8 = vmul.f32 %v13121_v58, %v17342_v28 }
 0x739   : > { %v4852_v4 = vpop.xlane.xlu1 %4851 }
 0x73a   : > { %13124 = vrcp.f32 %v4852_v4  ;;  %12021 = vmatmul.mubr.msk.f32.gmra.mxu0 %vm20537_vm6, %v5534_v8  ;;  %v17472_v4 = vpop.permute.xlu0 %7103  ;;  %vm20541_vm6 = vmmov %vm20500_vm0 }
 0x73d   : > { %v4873_v34 = vpop.xlane.xlu1 %4872 }
 0x73f   : > { %v13123_v56 = vpop.eup %13122 }
 0x740   : > { %v5535_v31 = vmul.f32 %v13123_v56, %v17351_v2 }
 0x741   : > { %v4855_v0 = vpop.xlane.xlu1 %4854 }
 0x742   : > { %13126 = vrcp.f32 %v4855_v0  ;;  %12023 = vmatprep.mubr.msk.f32.mxu0 %vm20538_vm12, %v5535_v31  ;;  %vm20543_vm12 = vmmov %vm20500_vm0 }
 0x743   : > { %13128 = vrcp.f32 %v4861_v35 }
 0x745   : > { %v4876_v43 = vpop.xlane.xlu1 %4875 }
 0x747   : > { %v13125_v22 = vpop.eup %13124 }
 0x748   : > { %v5536_v60 = vmul.f32 %v13125_v22, %v17365_v46 }
 0x749   : > { %v4858_v12 = vpop.xlane.xlu1 %4857 }
 0x74a   : > { %13130 = vrcp.f32 %v4858_v12  ;;  %12024 = vmatmul.mubr.msk.f32.gmra.mxu0 %vm20539_vm7, %v5536_v60  ;;  %vm20544_vm7 = vmmov %vm20500_vm0  ;;  %v17486_v60 = vpop.permute.xlu0 %7099 }
 0x74b   : > { %13132 = vrcp.f32 %v4864_v6 }
 0x74c   : > { %13134 = vrcp.f32 %v4867_v19 }
 0x74d   : > { %v4879_v28 = vpop.xlane.xlu1 %4878  ;;  %13136 = vrcp.f32 %v4870_v61 }
 0x74e   : > { %13138 = vrcp.f32 %v4873_v34 }
 0x74f   : > { %v13127_v29 = vpop.eup %13126  ;;  %13140 = vrcp.f32 %v4876_v43 }
 0x750   : > { %v5537_v2 = vmul.f32 %v13127_v29, %v17376_v26  ;;  %13142 = vrcp.f32 %v4879_v28  ;;  %v13129_v46 = vpop.eup %13128 }
 0x751   : > { %v4882_v24 = vpop.xlane.xlu1 %4881  ;;  %v5539_v26 = vmul.f32 %v13129_v46, %v17319_v55 }
 0x752   : > { %12026 = vmatprep.mubr.msk.f32.mxu0 %vm20540_vm1, %v5537_v2  ;;  %13144 = vrcp.f32 %v4882_v24  ;;  %vm20546_vm1 = vmmov %vm20500_vm0 }
 0x755   : > { %v4885_v44 = vpop.xlane.xlu1 %4884 }
 0x756   : > { %13146 = vrcp.f32 %v4885_v44 }
 0x757   : > { %v13131_v35 = vpop.eup %13130  ;;  %v17468_v27 = vpop.f32.mrf.mxu1 }
 0x758   : > { %v5538_v6 = vmul.f32 %v13131_v35, %v17385_v25  ;;  %v13133_v19 = vpop.eup %13132 }
 0x759   : > { %v4888_v58 = vpop.xlane.xlu1 %4887  ;;  %v12005_v61 = vpop.f32.mrf.mxu1  ;;  %v5540_v56 = vmul.f32 %v13133_v19, %v17344_v5 }
 0x75a   : > { %v13135_v8 = vpop.eup %13134  ;;  %12027 = vmatmul.mubr.msk.f32.gmra.mxu0 %vm20500_vm0, %v5538_v6  ;;  %13148 = vrcp.f32 %v4888_v58  ;;  %v17500_v58 = vpop.permute.xlu0 %7095 }
 0x75b   : > { %12029 = vmatprep.mubr.msk.f32.mxu0 %vm20541_vm6, %v5539_v26  ;;  %v17476_v34 = vpop.f32.mrf.mxu1  ;;  %v13137_v31 = vpop.eup %13136  ;;  %v5541_v43 = vmul.f32 %v13135_v8, %v17353_v11  ;;  %vm20548_vm6 = vmmov %vm20500_vm0 }
 0x75c   : > { %v13139_v22 = vpop.eup %13138  ;;  %v5542_v12 = vmul.f32 %v13137_v31, %v17362_v13 }
 0x75d   : > { %v4891_v25 = vpop.xlane.xlu1 %4890  ;;  %v17479_v0 = vpop.f32.mrf.mxu1  ;;  %v5543_v2 = vmul.f32 %v13139_v22, %v17373_v7 }
 0x75e   : > { %20542 = vst [vmem:[#allocation144_spill] sm:$0xff] %v17479_v0  ;;  %13150 = vrcp.f32 %v4891_v25  ;;  %12030 = vmatmul.mubr.msk.f32.gmra.mxu0 %vm20543_vm12, %v5540_v56  ;;  %v13141_v28 = vpop.eup %13140  ;;  %vm20549_vm12 = vmmov %vm20500_vm0  ;;  %v17514_v25 = vpop.permute.xlu0 %7091 }
 0x75f   : > { %12032 = vmatprep.mubr.msk.f32.mxu0 %vm20544_vm7, %v5541_v43  ;;  %v17484_v55 = vpop.f32.mrf.mxu1  ;;  %v13143_v24 = vpop.eup %13142  ;;  %v5544_v44 = vmul.f32 %v13141_v28, %v17382_v47  ;;  %vm20551_vm7 = vmmov %vm20500_vm0 }
 0x760   : > { %v13145_v46 = vpop.eup %13144  ;;  %v5545_v6 = vmul.f32 %v13143_v24, %v17391_v40 }
 0x761   : > { %v4894_v5 = vpop.xlane.xlu1 %4893  ;;  %v17489_v29 = vpop.f32.mrf.mxu1  ;;  %v5546_v61 = vmul.f32 %v13145_v46, %v17394_v10 }
 0x762   : > { %20545 = vst [vmem:[#allocation126_spill] sm:$0xff] %v17489_v29  ;;  %13152 = vrcp.f32 %v4894_v5  ;;  %12033 = vmatmul.mubr.msk.f32.gmra.mxu0 %vm20546_vm1, %v5542_v12  ;;  %vm20552_vm1 = vmmov %vm20500_vm0 }
 0x763   : > { %12035 = vmatprep.mubr.msk.f32.mxu0 %vm20500_vm0, %v5543_v2  ;;  %v17494_v11 = vpop.f32.mrf.mxu1  ;;  %v13147_v19 = vpop.eup %13146 }
 0x764   : > { %v5547_v56 = vmul.f32 %v13147_v19, %v17401_v23 }
 0x765   : > { %v17497_v35 = vpop.f32.mrf.mxu1  ;;  %v4897_v13 = vpop.xlane.xlu1 %4896 }
 0x766   : > { %20547 = vst [vmem:[#allocation88_spill] sm:$0xff] %v17497_v35  ;;  %13154 = vrcp.f32 %v4897_v13  ;;  %12036 = vmatmul.mubr.msk.f32.gmra.mxu0 %vm20548_vm6, %v5544_v44  ;;  %vm20554_vm6 = vmmov %vm20500_vm0 }
 0x767   : > { %12038 = vmatprep.mubr.msk.f32.mxu0 %vm20549_vm12, %v5545_v6  ;;  %v17504_v7 = vpop.f32.mrf.mxu1  ;;  %v13149_v26 = vpop.eup %13148  ;;  %vm20556_vm12 = vmmov %vm20500_vm0 }
 0x768   : > { %v5548_v43 = vmul.f32 %v13149_v26, %v17408_v30  ;;  %v7244_v30 = vpop.permute.xlu0 %7243 }
 0x769   : > { %v17507_v47 = vpop.f32.mrf.mxu1  ;;  %v4900_v8 = vpop.xlane.xlu1 %4899 }
 0x76a   : > { %20550 = vst [vmem:[#allocation177_spill] sm:$0xff] %v17507_v47  ;;  %13156 = vrcp.f32 %v4900_v8  ;;  %12039 = vmatmul.mubr.msk.f32.gmra.mxu0 %vm20551_vm7, %v5546_v61  ;;  %vm20558_vm7 = vmmov %vm20500_vm0 }
 0x76b   : > { %v13151_v40 = vpop.eup %13150  ;;  %12041 = vmatprep.mubr.msk.f32.mxu0 %vm20552_vm1, %v5547_v56  ;;  %v17512_v31 = vpop.f32.mrf.mxu1  ;;  %vm20561_vm1 = vmmov %vm20500_vm0 }
 0x76c   : > { %v5549_v10 = vmul.f32 %v13151_v40, %v17415_v1  ;;  %v7240_v61 = vpop.permute.xlu0 %7239 }
 0x76d   : > { %v17518_v22 = vpop.f32.mrf.mxu1  ;;  %v17520_v12 = vpop.permute.xlu1 %7101 }
 0x76e   : > { %20553 = vst [vmem:[#allocation125_spill] sm:$0xff] %v17518_v22  ;;  %12042 = vmatmul.mubr.msk.f32.gmra.mxu0 %vm20500_vm0, %v5548_v43 }
 0x76f   : > { %v13153_v23 = vpop.eup %13152  ;;  %12044 = vmatprep.mubr.msk.f32.mxu0 %vm20554_vm6, %v5549_v10  ;;  %v17524_v28 = vpop.f32.mrf.mxu1  ;;  %vm20565_vm6 = vmmov %vm20500_vm0 }
 0x770   : > { %v5550_v5 = vmul.f32 %v13153_v23, %v17419_v52  ;;  %v7238_v10 = vpop.permute.xlu0 %7237 }
 0x771   : > { %v17527_v2 = vpop.f32.mrf.mxu1  ;;  %v17529_v24 = vpop.permute.xlu1 %7097 }
 0x772   : > { %20555 = vst [vmem:[#allocation137_spill] sm:$0xff] %v17527_v2  ;;  %12045 = vmatmul.mubr.msk.f32.gmra.mxu0 %vm20556_vm12, %v5550_v5  ;;  %vm20568_vm12 = vmmov %vm20500_vm0 }
 0x773   : > { %v13155_v1 = vpop.eup %13154  ;;  %v17532_v44 = vpop.f32.mrf.mxu1 }
 0x774   : > { %v5551_v46 = vmul.f32 %v13155_v1, %v17421_v9 }
 0x775   : > { %v17535_v13 = vpop.f32.mrf.mxu1  ;;  %v17537_v6 = vpop.permute.xlu1 %7093 }
 0x776   : > { %20557 = vst [vmem:[#allocation83_spill] sm:$0xff] %v17535_v13  ;;  %12047 = vmatprep.mubr.msk.f32.mxu0 %vm20558_vm7, %v5551_v46  ;;  %vm20570_vm7 = vmmov %vm20500_vm0  ;;  %v7234_v46 = vpop.permute.xlu0 %7233 }
 0x777   : > { %v13157_v19 = vpop.eup %13156  ;;  %v17540_v52 = vpop.f32.mrf.mxu1 }
 0x778   : > { %20559 = vst [vmem:[#allocation87_spill] sm:$0xff] %v17540_v52  ;;  %v5552_v26 = vmul.f32 %v13157_v19, %v17468_v27  ;;  %v20564_v27 = vld [vmem:[#allocation169_spill] sm:$0xff] }
 0x779   : > { %v17543_v8 = vpop.f32.mrf.mxu1  ;;  %v7246_v56 = vpop.permute.xlu1 %7245 }
 0x77a   : > { %20560 = vst [vmem:[#allocation120_spill] sm:$0xff] %v17543_v8  ;;  %12048 = vmatmul.mubr.msk.f32.gmra.mxu0 %vm20561_vm1, %v5552_v26  ;;  %12270 = vmatpush3.msra.mxu1 %v7246_v56  ;;  %vm20573_vm1 = vmmov %vm20500_vm0 }
 0x77b   : > { %v17546_v40 = vpop.f32.mrf.mxu1  ;;  %12271 = vmatprep.subr.mxu1 %v19791_v36  ;;  %12108 = vmatprep.mubr.msk.f32.mxu0 %vm20066_vm14, %v19791_v36 }
 0x77c   : > { %20562 = vst [vmem:[#allocation156_spill] sm:$0xff] %v17546_v40  ;;  %12272 = vmatpush3.msra.mxu1 %v7244_v30 }
 0x77d   : > { %v17551_v9 = vpop.f32.mrf.mxu1  ;;  %v7242_v43 = vpop.permute.xlu1 %7241  ;;  %12273 = vmatprep.subr.mxu1 %v19791_v36 }
 0x77e   : > { %20563 = vst [vmem:[#allocation133_spill] sm:$0xff] %v17551_v9  ;;  %12109 = vmatmul.mubr.msk.f32.vlgmr.msra.gmra.mxu0 %vm20500_vm0, %v20564_v27  ;;  %12274 = vmatpush3.msra.mxu1 %v7242_v43 }
 0x77f   : > { %12165 = vmatpush3.xpose.msk.msra.mxu0 %vm20565_vm6, %v17064_v59  ;;  %v17558_v23 = vpop.f32.mrf.mxu1  ;;  %12275 = vmatprep.subr.mxu1 %v19791_v36  ;;  %v20569_v59 = vld [vmem:[#allocation129_spill] sm:$0xff]  ;;  %vm20576_vm6 = vmmov %vm20500_vm0 }
 0x780   : > { %20566 = vst [vmem:[#allocation152_spill] sm:$0xff] %v17558_v23  ;;  %12276 = vmatpush3.msra.mxu1 %v7240_v61  ;;  %12111 = vmatprep.mubr.msk.f32.mxu0 %vm20066_vm14, %v19791_v36 }
 0x781   : > { %v17563_v5 = vpop.f32.mrf.mxu1  ;;  %12166 = vmatprep.subr.mxu0 %v19791_v36  ;;  %12277 = vmatprep.subr.mxu1 %v19791_v36  ;;  %v7236_v30 = vpop.permute.xlu1 %7235 }
 0x782   : > { %20567 = vst [vmem:[#allocation94_spill] sm:$0xff] %v17563_v5  ;;  %12112 = vmatmul.mubr.msk.f32.gmra.mxu0 %vm20568_vm12, %v17072_v20  ;;  %12278 = vmatpush3.msra.mxu1 %v7238_v10  ;;  %vm20577_vm12 = vmmov %vm20500_vm0 }
 0x783   : > { %12167 = vmatpush3.xpose.msk.msra.mxu0 %vm20570_vm7, %v20569_v59  ;;  %v17571_v1 = vpop.f32.mrf.mxu1  ;;  %12279 = vmatprep.subr.mxu1 %v19791_v36  ;;  %vm20580_vm7 = vmmov %vm20500_vm0 }
 0x784   : > { %20571 = vst [vmem:[#allocation97_spill] sm:$0xff] %v17571_v1  ;;  %12280 = vmatpush3.msra.mxu1 %v7236_v30  ;;  %12114 = vmatprep.mubr.msk.f32.mxu0 %vm20066_vm14, %v19791_v36 }
 0x785   : > { %v17576_v19 = vpop.f32.mrf.mxu1  ;;  %12168 = vmatprep.subr.mxu0 %v19791_v36  ;;  %12281 = vmatprep.subr.mxu1 %v19791_v36 }
 0x786   : > { %20572 = vst [vmem:[#allocation110_spill] sm:$0xff] %v17576_v19  ;;  %12115 = vmatmul.mubr.msk.f32.gmra.mxu0 %vm20573_vm1, %v17068_v15  ;;  %12282 = vmatpush3.msra.mxu1 %v7234_v46  ;;  %vm20581_vm1 = vmmov %vm20500_vm0 }
 0x787   : > { %12169 = vmatpush3.xpose.msk.msra.mxu0 %vm20500_vm0, %v17099_v50  ;;  %v17584_v20 = vpop.f32.mrf.mxu1  ;;  %12117 = vmatprep.mubr.msk.f32.mxu0 %vm20066_vm14, %v19791_v36 }
 0x788   : > { %20574 = vst [vmem:[#allocation153_spill] sm:$0xff] %v17584_v20  ;;  %12170 = vmatprep.subr.mxu0 %v19791_v36  ;;  %12339 = vmatprep.subr.mxu1 %v19791_v36 }
 0x789   : > { %v17590_v61 = vpop.f32.mrf.mxu1 }
 0x78a   : > { %20575 = vst [vmem:[#allocation183_spill] sm:$0xff] %v17590_v61  ;;  %12118 = vmatmul.mubr.msk.f32.gmra.mxu0 %vm20576_vm6, %v17115_v42  ;;  %vm20584_vm6 = vmmov %vm20500_vm0 }
 0x78b   : > { %12171 = vmatpush3.xpose.msk.msra.mxu0 %vm20577_vm12, %v17136_v41  ;;  %v17596_v15 = vpop.f32.mrf.mxu1  ;;  %12120 = vmatprep.mubr.msk.f32.mxu0 %vm20066_vm14, %v19791_v36  ;;  %vm20586_vm12 = vmmov %vm20500_vm0 }
 0x78c   : > { %20578 = vst [vmem:[#allocation101_spill] sm:$0xff] %v17596_v15  ;;  %12172 = vmatprep.subr.mxu0 %v19791_v36 }
 0x78d   : > { %v17601_v50 = vpop.f32.mrf.mxu1 }
 0x78e   : > { %20579 = vst [vmem:[#allocation93_spill] sm:$0xff] %v17601_v50  ;;  %12121 = vmatmul.mubr.msk.f32.gmra.mxu0 %vm20580_vm7, %v17156_v39  ;;  %vm20587_vm7 = vmmov %vm20500_vm0 }
 0x78f   : > { %12173 = vmatpush3.xpose.msk.msra.mxu0 %vm20581_vm1, %v17178_v18  ;;  %v17607_v26 = vpop.f32.mrf.mxu1  ;;  %12123 = vmatprep.mubr.msk.f32.mxu0 %vm20066_vm14, %v19791_v36  ;;  %vm20588_vm1 = vcmask 457728  }
 0x790   : > { %20582 = vst [vmem:[#allocation185_spill] sm:$0xff] %v17607_v26  ;;  %12174 = vmatprep.subr.mxu0 %v19791_v36 }
 0x791   : > { %v17612_v42 = vpop.f32.mrf.mxu1 }
 0x792   : > { %20583 = vst [vmem:[#allocation160_spill] sm:$0xff] %v17612_v42  ;;  %12124 = vmatmul.mubr.msk.f32.gmra.mxu0 %vm20500_vm0, %v17199_v38  ;;  %v20610_v42 = vld [vmem:[#allocation79_spill] sm:$0xff] }
 0x793   : > { %12175 = vmatpush3.xpose.msk.msra.mxu0 %vm20584_vm6, %v17219_v32  ;;  %v6409_v41 = vpop.f32.mrf.mxu1  ;;  %12126 = vmatprep.mubr.msk.f32.mxu0 %vm20066_vm14, %v19791_v36  ;;  %vm20590_vm6 = vmmov %vm20588_vm1 }
 0x794   : > { %v6762_v39 = vmul.f32 0.35355338, %v6409_v41  ;;  %12176 = vmatprep.subr.mxu0 %v19791_v36 }
 0x795   : > { %v12145_v18 = vpop.f32.mrf.mxu1 }
 0x796   : > { %v17623_v43 = vsel %vm15733_vm5, -1e+09, %v6762_v39  ;;  %12127 = vmatmul.mubr.msk.f32.gmra.mxu0 %vm20586_vm12, %v17236_v63  ;;  %vm20592_vm12 = vmmov %vm20500_vm0  ;;  %v20654_v39 = vld [vmem:[#allocation118_spill] sm:$0xff] }
 0x797   : > { %12177 = vmatpush3.xpose.msk.msra.mxu0 %vm20587_vm7, %v17253_v16  ;;  %v6414_v38 = vpop.f32.mrf.mxu1  ;;  %v6832_v32 = vsel %vm20588_vm1, %v17623_v43, -inf  ;;  %12178 = vmatprep.mubr.msk.f32.mxu0 %vm20066_vm14, %v19791_v36  ;;  %vm20593_vm7 = vmmov %vm20588_vm1 }
 0x798   : > { %v6763_v27 = vmul.f32 0.35355338, %v6414_v38  ;;  %6833 = vmax.xlane.f32.xlu1 %v6832_v32  ;;  %12234 = vmatprep.subr.mxu0 %v19791_v36  ;;  %vm20595_vm1 = vmmov %vm20500_vm0 }
 0x799   : > { %v12148_v10 = vpop.f32.mrf.mxu1 }
 0x79a   : > { %v17636_v59 = vsel %vm20260_vm10, -1e+09, %v6763_v27  ;;  %12179 = vmatmul.mubr.msk.f32.vlgmr.msra.gmra.mxu0 %vm20500_vm0, %v17268_v57  ;;  %vm20596_vm0 = vmmov %vm20590_vm6 }
 0x79b   : > { %12235 = vmatpush3.msra.mxu0 %v17472_v4  ;;  %v6419_v63 = vpop.f32.mrf.mxu1  ;;  %v6835_v16 = vsel %vm20590_vm6, %v17636_v59, -inf  ;;  %12181 = vmatprep.mubr.msk.f32.mxu0 %vm20066_vm14, %v19791_v36  ;;  %vm20598_vm6 = vmmov %vm20595_vm1 }
 0x79c   : > { %v6764_v46 = vmul.f32 0.35355338, %v6419_v63  ;;  %12236 = vmatprep.subr.mxu0 %v19791_v36  ;;  %6836 = vmax.xlane.f32.xlu1 %v6835_v16 }
 0x79d   : > { %12237 = vmatpush3.msra.mxu0 %v17520_v12  ;;  %v12151_v41 = vpop.f32.mrf.mxu1 }
 0x79e   : > { %v17649_v18 = vsel %vm15767_vm3, -1e+09, %v6764_v46  ;;  %12238 = vmatprep.subr.mxu0 %v19791_v36  ;;  %12182 = vmatmul.mubr.msk.f32.gmra.mxu0 %vm20592_vm12, %v17276_v21  ;;  %vm20599_vm12 = vmmov %vm20596_vm0 }
 0x79f   : > { %12239 = vmatpush3.msra.mxu0 %v17486_v60  ;;  %v6424_v57 = vpop.f32.mrf.mxu1  ;;  %v6838_v4 = vsel %vm20593_vm7, %v17649_v18, -inf  ;;  %12184 = vmatprep.mubr.msk.f32.mxu0 %vm20066_vm14, %v19791_v36  ;;  %vm20601_vm7 = vmmov %vm20595_vm1 }
 0x7a0   : > { %v6765_v12 = vmul.f32 0.35355338, %v6424_v57  ;;  %12240 = vmatprep.subr.mxu0 %v19791_v36  ;;  %6839 = vmax.xlane.f32.xlu0 %v6838_v4 }
 0x7a1   : > { %12241 = vmatpush3.msra.mxu0 %v17529_v24  ;;  %v12154_v38 = vpop.f32.mrf.mxu1 }
 0x7a2   : > { %v17663_v27 = vsel %vm20268_vm2, -1e+09, %v6765_v12  ;;  %12242 = vmatprep.subr.mxu0 %v19791_v36  ;;  %12185 = vmatmul.mubr.msk.f32.gmra.mxu0 %vm20595_vm1, %v17312_v37  ;;  %vm20602_vm1 = vmmov %vm20596_vm0 }
 0x7a3   : > { %12243 = vmatpush3.msra.mxu0 %v17500_v58  ;;  %v6429_v21 = vpop.f32.mrf.mxu1  ;;  %v6841_v60 = vsel %vm20596_vm0, %v17663_v27, -inf  ;;  %12187 = vmatprep.mubr.msk.f32.mxu0 %vm20066_vm14, %v19791_v36  ;;  %vm20604_vm0 = vmmov %vm20598_vm6 }
 0x7a4   : > { %v6766_v24 = vmul.f32 0.35355338, %v6429_v21  ;;  %12244 = vmatprep.subr.mxu0 %v19791_v36  ;;  %6842 = vmax.xlane.f32.xlu0 %v6841_v60 }
 0x7a5   : > { %12245 = vmatpush3.msra.mxu0 %v17537_v6  ;;  %v12157_v10 = vpop.f32.mrf.mxu1 }
 0x7a6   : > { %v17677_v16 = vsel %vm20275_vm4, -1e+09, %v6766_v24  ;;  %12246 = vmatprep.subr.mxu0 %v19791_v36  ;;  %12188 = vmatmul.mubr.msk.f32.gmra.mxu0 %vm20598_vm6, %v17321_v3  ;;  %vm20605_vm6 = vmmov %vm20602_vm1 }
 0x7a7   : > { %12247 = vmatpush3.msra.mxu0 %v17514_v25  ;;  %v6434_v37 = vpop.f32.mrf.mxu1  ;;  %v6844_v58 = vsel %vm20599_vm12, %v17677_v16, -inf  ;;  %12190 = vmatprep.mubr.msk.f32.mxu0 %vm20066_vm14, %v19791_v36  ;;  %vm20607_vm12 = vmmov %vm20604_vm0 }
 0x7a8   : > { %v6767_v6 = vmul.f32 0.35355338, %v6434_v37  ;;  %6845 = vmax.xlane.f32.xlu0 %v6844_v58  ;;  %12304 = vmatprep.subr.mxu0 %v19791_v36 }
 0x7a9   : > { %v12160_v46 = vpop.f32.mrf.mxu1 }
 0x7aa   : > { %v17690_v57 = vsel %vm20281_vm15, -1e+09, %v6767_v6  ;;  %12191 = vmatmul.mubr.msk.f32.gmra.mxu0 %vm20601_vm7, %v17339_v48  ;;  %vm20608_vm7 = vmmov %vm20602_vm1 }
 0x7ab   : > { %v6439_v3 = vpop.f32.mrf.mxu1  ;;  %v6847_v25 = vsel %vm20602_vm1, %v17690_v57, -inf  ;;  %12193 = vmatprep.mubr.msk.f32.mxu0 %vm20066_vm14, %v19791_v36 }
 0x7ac   : > { %v6768_v4 = vmul.f32 0.35355338, %v6439_v3  ;;  %6848 = vmax.xlane.f32.xlu0 %v6847_v25 }
 0x7ad   : > { %v12163_v12 = vpop.f32.mrf.mxu1 }
 0x7ae   : > { %v17700_v21 = vsel %vm20285_vm9, -1e+09, %v6768_v4  ;;  %12194 = vmatmul.mubr.msk.f32.gmra.mxu0 %vm20604_vm0, %v17355_v17  ;;  %vm20614_vm0 = vmmov %vm20602_vm1  ;;  %vm20655_vm9 = vnez %v20654_v39 }
 0x7af   : > { %v6721_v60 = vpop.f32.mrf.mxu1  ;;  %v6850_v48 = vsel %vm20605_vm6, %v17700_v21, -inf  ;;  %12196 = vmatprep.mubr.msk.f32.mxu0 %vm20066_vm14, %v19791_v36  ;;  %vm20632_vm6 = vmmov %vm20614_vm0 }
 0x7b0   : > { %v6776_v24 = vmul.f32 0.35355338, %v6721_v60  ;;  %6851 = vmax.xlane.f32.xlu1 %v6850_v48 }
 0x7b1   : > { %v12215_v10 = vpop.f32.mrf.mxu1 }
 0x7b2   : > { %v17710_v58 = vsel %vm20288_vm11, -1e+09, %v6776_v24  ;;  %12197 = vmatmul.mubr.msk.f32.gmra.mxu0 %vm20607_vm12, %v17369_v14  ;;  %vm20634_vm12 = vmmov %vm20614_vm0 }
 0x7b3   : > { %v6726_v6 = vpop.f32.mrf.mxu1  ;;  %v6874_v17 = vsel %vm20608_vm7, %v17710_v58, -inf  ;;  %12248 = vmatprep.mubr.msk.f32.mxu0 %vm20066_vm14, %v19791_v36  ;;  %vm20637_vm7 = vmmov %vm20614_vm0 }
 0x7b4   : > { %v6777_v46 = vmul.f32 0.35355338, %v6726_v6  ;;  %6875 = vmax.xlane.f32.xlu0 %v6874_v17 }
 0x7b5   : > { %v12218_v3 = vpop.f32.mrf.mxu1 }
 0x7b6   : > { %v17720_v4 = vsel %vm20294_vm8, -1e+09, %v6777_v46  ;;  %v20611_v46 = vld [vmem:[#allocation82_spill] sm:$0xff] }
 0x7b7   : > { %v6731_v12 = vpop.f32.mrf.mxu1  ;;  %v6877_v60 = vsel %vm20602_vm1, %v17720_v4, -inf  ;;  %vm20638_vm1 = vmmov %vm20614_vm0 }
 0x7b8   : > { %6878 = vmax.xlane.f32.xlu0 %v6877_v60  ;;  %v20612_v60 = vld [vmem:[#allocation76_spill] sm:$0xff]  ;;  %vm20651_vm8 = vmmov %vm20638_vm1 }
 0x7b9   : > { %v12221_v14 = vpop.f32.mrf.mxu1 }
 0x7ba   : > { %v6778_v14 = vmul.f32 0.35355338, %v6731_v12 }
 0x7bb   : > { %v17724_v48 = vpop.f32.mrf.mxu1 }
 0x7bc   : > { %v17740_v19 = vsel %vm20299_vm13, -1e+09, %v6778_v14  ;;  %vm20648_vm13 = vmmov %vm20638_vm1 }
 0x7bd   : > { %v12224_v24 = vpop.f32.mrf.mxu1 }
 0x7bf   : > { %v17726_v10 = vpop.f32.mrf.mxu1 }
 0x7c1   : > { %7387 = vrot.lane.b32.xlu1 %v20610_v42, %s13413_s17  ;;  %v12227_v6 = vpop.f32.mrf.mxu1 }
 0x7c2   : > { %v6880_v6 = vsel %vm20614_vm0, %v17740_v19, -inf }
 0x7c3   : > { %v17730_v17 = vpop.f32.mrf.mxu1 }
 0x7c5   : > { %7383 = vrot.lane.b32.xlu1 %v20611_v46, %s13413_s17  ;;  %v12230_v3 = vpop.f32.mrf.mxu1 }
 0x7c7   : > { %v17734_v50 = vpop.f32.mrf.mxu1 }
 0x7c9   : > { %v12233_v61 = vpop.f32.mrf.mxu1 }
 0x7ce   : > { %7385 = vrot.lane.b32.xlu0 %v20612_v60, %s13413_s17 }
 0x7d2   : > { %v17744_v5 = vpop.f32.mrf.mxu0 }
 0x7d4   : > { %v17746_v9 = vpop.f32.mrf.mxu0 }
 0x7d5   : > { %20615 = vst [vmem:[#allocation98_spill] sm:$0xff] %v17746_v9 }
 0x7da   : > { %v17748_v3 = vpop.f32.mrf.mxu0 }
 0x7dc   : > { %v17750_v8 = vpop.f32.mrf.mxu0 }
 0x7dd   : > { %20616 = vst [vmem:[#allocation99_spill] sm:$0xff] %v17750_v8 }
 0x7e2   : > { %v17752_v61 = vpop.f32.mrf.mxu0 }
 0x7e4   : > { %v17754_v13 = vpop.f32.mrf.mxu0 }
 0x7e5   : > { %20617 = vst [vmem:[#allocation187_spill] sm:$0xff] %v17754_v13 }
 0x7ea   : > { %v17756_v12 = vpop.f32.mrf.mxu0 }
 0x7ec   : > { %v17758_v14 = vpop.f32.mrf.mxu0 }
 0x7ed   : > { %6881 = vmax.xlane.f32.xlu0 %v6880_v6  ;;  %20618 = vst [vmem:[#allocation104_spill] sm:$0xff] %v17758_v14 }
 0x7fa   : > { %v17760_v2 = vpop.f32.mrf.mxu0 }
 0x7fc   : > { %v17762_v22 = vpop.f32.mrf.mxu0 }
 0x7fd   : > { %20619 = vst [vmem:[#allocation117_spill] sm:$0xff] %v17762_v22 }
 0x80a   : > { %v17764_v6 = vpop.f32.mrf.mxu0 }
 0x80c   : > { %v17766_v47 = vpop.f32.mrf.mxu0 }
 0x80d   : > { %20620 = vst [vmem:[#allocation103_spill] sm:$0xff] %v17766_v47 }
 0x81a   : > { %v17768_v35 = vpop.f32.mrf.mxu0 }
 0x81c   : > { %v17770_v29 = vpop.f32.mrf.mxu0 }
 0x81d   : > { %20621 = vst [vmem:[#allocation130_spill] sm:$0xff] %v17770_v29 }
 0x81e   : > { %v17772_v8 = vpop.f32.mrf.mxu0 }
 0x820   : > { %v17774_v0 = vpop.f32.mrf.mxu0 }
 0x821   : > { %20622 = vst [vmem:[#allocation162_spill] sm:$0xff] %v17774_v0  ;;  %v6834_v13 = vpop.xlane.xlu1 %6833 }
 0x822   : > { %v6902_v9 = vsub.f32 %v17623_v43, %v6834_v13  ;;  %v17777_v14 = vpop.f32.mrf.mxu0 }
 0x823   : > { %20623 = vst [vmem:[#allocation189_spill] sm:$0xff] %v17777_v14 }
 0x824   : > { %v6937_v46 = vmul.f32 1.442695, %v6902_v9  ;;  %v17779_v42 = vpop.f32.mrf.mxu0 }
 0x825   : > { %20624 = vst [vmem:[#allocation165_spill] sm:$0xff] %v17779_v42  ;;  %v6837_v22 = vpop.xlane.xlu1 %6836 }
 0x826   : > { %13158 = vpow2.f32 %v6937_v46  ;;  %v6903_v47 = vsub.f32 %v17636_v59, %v6837_v22  ;;  %v17782_v24 = vpop.f32.mrf.mxu0 }
 0x827   : > { %20625 = vst [vmem:[#allocation190_spill] sm:$0xff] %v17782_v24 }
 0x828   : > { %v6939_v60 = vmul.f32 1.442695, %v6903_v47  ;;  %v17784_v29 = vpop.f32.mrf.mxu0 }
 0x829   : > { %20626 = vst [vmem:[#allocation182_spill] sm:$0xff] %v17784_v29  ;;  %v6840_v53 = vpop.xlane.xlu0 %6839 }
 0x82a   : > { %13160 = vpow2.f32 %v6939_v60  ;;  %v6904_v0 = vsub.f32 %v17649_v18, %v6840_v53  ;;  %v17787_v25 = vpop.f32.mrf.mxu0 }
 0x82b   : > { %20627 = vst [vmem:[#allocation191_spill] sm:$0xff] %v17787_v25 }
 0x82c   : > { %v6941_v13 = vmul.f32 1.442695, %v6904_v0  ;;  %v17789_v43 = vpop.f32.mrf.mxu0 }
 0x82d   : > { %20628 = vst [vmem:[#allocation192_spill] sm:$0xff] %v17789_v43  ;;  %v6843_v9 = vpop.xlane.xlu0 %6842 }
 0x82e   : > { %13162 = vpow2.f32 %v6941_v13  ;;  %v6905_v46 = vsub.f32 %v17663_v27, %v6843_v9  ;;  %v17792_v42 = vpop.f32.mrf.mxu0 }
 0x82f   : > { %20629 = vst [vmem:[#allocation193_spill] sm:$0xff] %v17792_v42 }
 0x830   : > { %v6943_v22 = vmul.f32 1.442695, %v6905_v46  ;;  %v17794_v59 = vpop.f32.mrf.mxu0 }
 0x831   : > { %20630 = vst [vmem:[#allocation194_spill] sm:$0xff] %v17794_v59  ;;  %v6846_v47 = vpop.xlane.xlu0 %6845 }
 0x832   : > { %13164 = vpow2.f32 %v6943_v22  ;;  %v6906_v60 = vsub.f32 %v17677_v16, %v6846_v47  ;;  %v17799_v18 = vpop.f32.mrf.mxu0 }
 0x833   : > { %v17797_v29 = vpop.eup %13158  ;;  %20631 = vst [vmem:[#allocation184_spill] sm:$0xff] %v17799_v18 }
 0x834   : > { %v6945_v53 = vmul.f32 1.442695, %v6906_v60  ;;  %12284 = vmatmul.mubr.msk.f32.vlgmr.msra.gmra.mxu1 %vm20632_vm6, %v17797_v29  ;;  %v17808_v9 = vpop.f32.mrf.mxu0  ;;  %vm20641_vm6 = vmmov %vm20638_vm1 }
 0x835   : > { %v6849_v0 = vpop.xlane.xlu0 %6848  ;;  %12286 = vmatprep.mubr.msk.f32.mxu1 %vm20066_vm14, %v19791_v36  ;;  %20633 = vst [vmem:[#allocation186_spill] sm:$0xff] %v17808_v9 }
 0x836   : > { %13166 = vpow2.f32 %v6945_v53  ;;  %v6907_v27 = vsub.f32 %v17690_v57, %v6849_v0 }
 0x837   : > { %v17806_v13 = vpop.eup %13160 }
 0x838   : > { %v6947_v16 = vmul.f32 1.442695, %v6907_v27  ;;  %12287 = vmatmul.mubr.msk.f32.gmra.mxu1 %vm20634_vm12, %v17806_v13  ;;  %vm20642_vm12 = vmmov %vm20638_vm1 }
 0x839   : > { %v6852_v46 = vpop.xlane.xlu1 %6851  ;;  %12289 = vmatprep.mubr.msk.f32.mxu1 %vm20066_vm14, %v19791_v36 }
 0x83a   : > { %13168 = vpow2.f32 %v6947_v16  ;;  %v6908_v22 = vsub.f32 %v17700_v21, %v6852_v46  ;;  %v17815_v47 = vpop.f32.mrf.mxu0  ;;  %v20639_v21 = vld [vmem:[#allocation145_spill] sm:$0xff] }
 0x83b   : > { %20635 = vst [vmem:[#allocation195_spill] sm:$0xff] %v17815_v47  ;;  %v17817_v60 = vpop.eup %13162  ;;  %vm20640_vm0 = vnez %v20639_v21  ;;  %v6781_v21 = vmul.f32 0.35355338, %v17730_v17 }
 0x83c   : > { %v6949_v57 = vmul.f32 1.442695, %v6908_v22  ;;  %v17819_v53 = vpop.f32.mrf.mxu0  ;;  %12290 = vmatmul.mubr.msk.f32.gmra.mxu1 %vm20637_vm7, %v17817_v60 }
 0x83d   : > { %20636 = vst [vmem:[#allocation196_spill] sm:$0xff] %v17819_v53  ;;  %12292 = vmatprep.mubr.msk.f32.mxu1 %vm20066_vm14, %v19791_v36 }
 0x83e   : > { %13170 = vpow2.f32 %v6949_v57  ;;  %v6253_v0 = vpop.f32.mrf.mxu0 }
 0x83f   : > { %v17825_v27 = vpop.eup %13164  ;;  %v6755_v16 = vmul.f32 0.35355338, %v6253_v0 }
 0x840   : > { %v12110_v9 = vpop.f32.mrf.mxu0  ;;  %12293 = vmatmul.mubr.msk.f32.gmra.mxu1 %vm20638_vm1, %v17825_v27 }
 0x841   : > { %v17831_v46 = vsel %vm20640_vm0, -1e+09, %v6755_v16  ;;  %12295 = vmatprep.mubr.msk.f32.mxu1 %vm20066_vm14, %v19791_v36  ;;  %v20643_v9 = vld [vmem:[#allocation109_spill] sm:$0xff] }
 0x842   : > { %v6258_v22 = vpop.f32.mrf.mxu0  ;;  %v6811_v53 = vsel %vm20641_vm6, %v17831_v46, -inf  ;;  %vm20644_vm7 = vnez %v20643_v9  ;;  %vm20645_vm6 = vmmov %vm20638_vm1 }
 0x843   : > { %v17837_v57 = vpop.eup %13166  ;;  %v6756_v59 = vmul.f32 0.35355338, %v6258_v22  ;;  %6812 = vmax.xlane.f32.xlu0 %v6811_v53  ;;  %v20646_v22 = vld [vmem:[#allocation149_spill] sm:$0xff] }
 0x844   : > { %v12113_v0 = vpop.f32.mrf.mxu0  ;;  %12296 = vmatmul.mubr.msk.f32.gmra.mxu1 %vm20642_vm12, %v17837_v57  ;;  %vm20647_vm12 = vnez %v20646_v22 }
 0x845   : > { %v17843_v43 = vsel %vm20644_vm7, -1e+09, %v6756_v59  ;;  %12298 = vmatprep.mubr.msk.f32.mxu1 %vm20066_vm14, %v19791_v36 }
 0x846   : > { %v6263_v16 = vpop.f32.mrf.mxu0  ;;  %v6814_v38 = vsel %vm20638_vm1, %v17843_v43, -inf }
 0x847   : > { %v17849_v33 = vpop.eup %13168  ;;  %v6757_v49 = vmul.f32 0.35355338, %v6263_v16  ;;  %6815 = vmax.xlane.f32.xlu1 %v6814_v38  ;;  %v20649_v16 = vld [vmem:[#allocation111_spill] sm:$0xff] }
 0x848   : > { %v12116_v53 = vpop.f32.mrf.mxu0  ;;  %12299 = vmatmul.mubr.msk.f32.gmra.mxu1 %vm20645_vm6, %v17849_v33  ;;  %vm20650_vm6 = vnez %v20649_v16 }
 0x849   : > { %v17855_v0 = vsel %vm20647_vm12, -1e+09, %v6757_v49  ;;  %12301 = vmatprep.mubr.msk.f32.mxu1 %vm20066_vm14, %v19791_v36 }
 0x84a   : > { %v6268_v59 = vpop.f32.mrf.mxu0  ;;  %v6817_v37 = vsel %vm20648_vm13, %v17855_v0, -inf }
 0x84b   : > { %v17861_v54 = vpop.eup %13170  ;;  %v6758_v41 = vmul.f32 0.35355338, %v6268_v59  ;;  %6818 = vmax.xlane.f32.xlu0 %v6817_v37  ;;  %v20652_v59 = vld [vmem:[#allocation115_spill] sm:$0xff] }
 0x84c   : > { %v12119_v38 = vpop.f32.mrf.mxu0  ;;  %12302 = vmatmul.mubr.msk.f32.gmra.mxu1 %vm20638_vm1, %v17861_v54  ;;  %vm20653_vm13 = vnez %v20652_v59 }
 0x84d   : > { %v17867_v53 = vsel %vm20650_vm6, -1e+09, %v6758_v41  ;;  %12353 = vmatprep.mubr.msk.f32.mxu1 %vm20066_vm14, %v19791_v36 }
 0x84e   : > { %v6273_v49 = vpop.f32.mrf.mxu0  ;;  %v6820_v45 = vsel %vm20651_vm8, %v17867_v53, -inf  ;;  %vm20656_vm8 = vmmov %vm20638_vm1 }
 0x84f   : > { %v6759_v63 = vmul.f32 0.35355338, %v6273_v49  ;;  %6821 = vmax.xlane.f32.xlu0 %v6820_v45 }
 0x850   : > { %v12122_v62 = vpop.f32.mrf.mxu0 }
 0x851   : > { %v17875_v37 = vsel %vm20653_vm13, -1e+09, %v6759_v63  ;;  %v20657_v63 = vld [vmem:[#allocation121_spill] sm:$0xff] }
 0x852   : > { %v6278_v38 = vpop.f32.mrf.mxu0  ;;  %v6823_v32 = vsel %vm20638_vm1, %v17875_v37, -inf  ;;  %vm20658_vm11 = vnez %v20657_v63 }
 0x853   : > { %v6760_v41 = vmul.f32 0.35355338, %v6278_v38  ;;  %6824 = vmax.xlane.f32.xlu0 %v6823_v32 }
 0x854   : > { %v12125_v51 = vpop.f32.mrf.mxu0 }
 0x855   : > { %v17881_v30 = vsel %vm20655_vm9, -1e+09, %v6760_v41  ;;  %v20659_v41 = vld [vmem:[#allocation123_spill] sm:$0xff] }
 0x856   : > { %v6283_v56 = vpop.f32.mrf.mxu0  ;;  %v6826_v45 = vsel %vm20656_vm8, %v17881_v30, -inf  ;;  %vm20660_vm15 = vnez %v20659_v41  ;;  %vm20661_vm8 = vmmov %vm20638_vm1 }
 0x857   : > { %v6761_v62 = vmul.f32 0.35355338, %v6283_v56  ;;  %6827 = vmax.xlane.f32.xlu1 %v6826_v45 }
 0x858   : > { %v12128_v49 = vpop.f32.mrf.mxu0 }
 0x859   : > { %v17887_v26 = vsel %vm20658_vm11, -1e+09, %v6761_v62  ;;  %v20662_v62 = vld [vmem:[#allocation127_spill] sm:$0xff] }
 0x85a   : > { %v6565_v47 = vpop.f32.mrf.mxu0  ;;  %v6829_v32 = vsel %vm20638_vm1, %v17887_v26, -inf  ;;  %vm20663_vm4 = vnez %v20662_v62 }
 0x85b   : > { %v6769_v51 = vmul.f32 0.35355338, %v6565_v47  ;;  %6830 = vmax.xlane.f32.xlu1 %v6829_v32 }
 0x85c   : > { %v12180_v38 = vpop.f32.mrf.mxu0 }
 0x85d   : > { %v17893_v39 = vsel %vm20660_vm15, -1e+09, %v6769_v51  ;;  %v20664_v51 = vld [vmem:[#allocation128_spill] sm:$0xff] }
 0x85e   : > { %v6570_v59 = vpop.f32.mrf.mxu0  ;;  %v6853_v56 = vsel %vm20661_vm8, %v17893_v39, -inf  ;;  %vm20665_vm15 = vnez %v20664_v51  ;;  %vm20666_vm8 = vmmov %vm20638_vm1 }
 0x85f   : > { %v6770_v45 = vmul.f32 0.35355338, %v6570_v59  ;;  %6854 = vmax.xlane.f32.xlu1 %v6853_v56 }
 0x860   : > { %v12183_v49 = vpop.f32.mrf.mxu0 }
 0x861   : > { %v17899_v63 = vsel %vm20663_vm4, -1e+09, %v6770_v45  ;;  %v20667_v45 = vld [vmem:[#allocation131_spill] sm:$0xff] }
 0x862   : > { %v6575_v16 = vpop.f32.mrf.mxu0  ;;  %v6856_v47 = vsel %vm20638_vm1, %v17899_v63, -inf  ;;  %vm20668_vm4 = vnez %v20667_v45 }
 0x863   : > { %v6771_v32 = vmul.f32 0.35355338, %v6575_v16  ;;  %6857 = vmax.xlane.f32.xlu1 %v6856_v47 }
 0x864   : > { %v12186_v38 = vpop.f32.mrf.mxu0 }
 0x865   : > { %v17905_v41 = vsel %vm20665_vm15, -1e+09, %v6771_v32  ;;  %v20669_v32 = vld [vmem:[#allocation134_spill] sm:$0xff] }
 0x866   : > { %v6580_v15 = vpop.f32.mrf.mxu0  ;;  %v6859_v59 = vsel %vm20666_vm8, %v17905_v41, -inf  ;;  %vm20670_vm15 = vnez %v20669_v32  ;;  %vm20671_vm8 = vmmov %vm20638_vm1 }
 0x867   : > { %v6772_v56 = vmul.f32 0.35355338, %v6580_v15  ;;  %6860 = vmax.xlane.f32.xlu0 %v6859_v59 }
 0x868   : > { %v12189_v49 = vpop.f32.mrf.mxu0 }
 0x869   : > { %v17911_v62 = vsel %vm20668_vm4, -1e+09, %v6772_v56  ;;  %v20672_v56 = vld [vmem:[#allocation136_spill] sm:$0xff] }
 0x86a   : > { %v6585_v18 = vpop.f32.mrf.mxu0  ;;  %v6862_v16 = vsel %vm20638_vm1, %v17911_v62, -inf  ;;  %vm20673_vm4 = vnez %v20672_v56  ;;  %v20679_v56 = vld [vmem:[#allocation175_spill] sm:$0xff] }
 0x86b   : > { %v6773_v47 = vmul.f32 0.35355338, %v6585_v18  ;;  %6863 = vmax.xlane.f32.xlu0 %v6862_v16 }
 0x86c   : > { %v12192_v38 = vpop.f32.mrf.mxu0 }
 0x86d   : > { %v17917_v51 = vsel %vm20670_vm15, -1e+09, %v6773_v47  ;;  %v20674_v47 = vld [vmem:[#allocation139_spill] sm:$0xff] }
 0x86e   : > { %v6590_v22 = vpop.f32.mrf.mxu0  ;;  %v6865_v15 = vsel %vm20671_vm8, %v17917_v51, -inf  ;;  %vm20675_vm15 = vnez %v20674_v47  ;;  %vm20676_vm8 = vmmov %vm20638_vm1 }
 0x86f   : > { %v6774_v59 = vmul.f32 0.35355338, %v6590_v22  ;;  %6866 = vmax.xlane.f32.xlu1 %v6865_v15  ;;  %v20677_v15 = vld [vmem:[#allocation73_spill] sm:$0xff] }
 0x870   : > { %v12195_v49 = vpop.f32.mrf.mxu0 }
 0x871   : > { %v17923_v45 = vsel %vm20673_vm4, -1e+09, %v6774_v59  ;;  %v20678_v59 = vld [vmem:[#allocation90_spill] sm:$0xff]  ;;  %v6779_v49 = vmul.f32 0.35355338, %v17724_v48  ;;  %vm20681_vm4 = vmmov %vm20676_vm8 }
 0x872   : > { %v6595_v20 = vpop.f32.mrf.mxu0  ;;  %v6868_v18 = vsel %vm20638_vm1, %v17923_v45, -inf  ;;  %vm20680_vm1 = vnez %v20679_v56  ;;  %v20685_v48 = vld [vmem:[#allocation70_spill] sm:$0xff]  ;;  %v7388_v56 = vpop.permute.xlu1 %7387 }
 0x873   : > { %v6775_v16 = vmul.f32 0.35355338, %v6595_v20  ;;  %6869 = vmax.xlane.f32.xlu1 %v6868_v18  ;;  %v17940_v20 = vsel %vm20680_vm1, -1e+09, %v6779_v49  ;;  %v20686_v49 = vld [vmem:[#allocation112_spill] sm:$0xff]  ;;  %vm20698_vm1 = vmmov %vm20681_vm4 }
 0x874   : > { %v12198_v38 = vpop.f32.mrf.mxu0  ;;  %v6883_v18 = vsel %vm20681_vm4, %v17940_v20, -inf  ;;  %vm20701_vm11 = vmmov %vm20698_vm1 }
 0x875   : > { %v17929_v32 = vsel %vm20675_vm15, -1e+09, %v6775_v16  ;;  %v6780_v16 = vmul.f32 0.35355338, %v17726_v10  ;;  %v20682_v38 = vld [vmem:[#allocation141_spill] sm:$0xff]  ;;  %vm20684_vm15 = vmmov %vm20681_vm4 }
 0x876   : > { %v6871_v22 = vsel %vm20676_vm8, %v17929_v32, -inf  ;;  %vm20683_vm8 = vnez %v20682_v38  ;;  %v20689_v38 = vld [vmem:[#allocation95_spill] sm:$0xff]  ;;  %v7384_v42 = vpop.permute.xlu1 %7383 }
 0x877   : > { %6872 = vmax.xlane.f32.xlu1 %v6871_v22  ;;  %v17947_v22 = vsel %vm20683_vm8, -1e+09, %v6780_v16  ;;  %v20688_v16 = vld [vmem:[#allocation84_spill] sm:$0xff]  ;;  %vm20693_vm8 = vmmov %vm20681_vm4 }
 0x878   : > { %v6886_v47 = vsel %vm20684_vm15, %v17947_v22, -inf }
 0x881   : > { %7381 = vrot.lane.b32.xlu0 %v20677_v15, %s13413_s17 }
 0x888   : > { %7379 = vrot.lane.b32.xlu1 %v20678_v59, %s13413_s17  ;;  %v17953_v59 = vpop.xlane.xlu0 %6875 }
 0x88c   : > { %v17959_v10 = vpop.xlane.xlu0 %6878 }
 0x8a0   : > { %6884 = vmax.xlane.f32.xlu0 %v6883_v18  ;;  %v20687_v18 = vld [vmem:[#allocation92_spill] sm:$0xff] }
 0x8ac   : > { %6887 = vmax.xlane.f32.xlu1 %v6886_v47  ;;  %v20690_v47 = vld [vmem:[#allocation119_spill] sm:$0xff] }
 0x8b6   : > { %7377 = vrot.lane.b32.xlu0 %v20685_v48, %s13413_s17  ;;  %v7386_v48 = vpop.permute.xlu0 %7385 }
 0x8ba   : > { %7375 = vrot.lane.b32.xlu0 %v20686_v49, %s13413_s17  ;;  %v17967_v15 = vpop.xlane.xlu0 %6881 }
 0x8bd   : > { %7525 = vrot.lane.b32.xlu1 %v20687_v18, %s13413_s17 }
 0x8be   : > { %7529 = vrot.lane.b32.xlu0 %v20688_v16, %s13413_s17 }
 0x8c1   : > { %7523 = vrot.lane.b32.xlu1 %v20689_v38, %s13413_s17 }
 0x8c2   : > { %7527 = vrot.lane.b32.xlu0 %v20690_v47, %s13413_s17 }
 0x8cc   : > { %v6813_v49 = vpop.xlane.xlu0 %6812 }
 0x8cd   : > { %v6895_v9 = vsub.f32 %v17831_v46, %v6813_v49  ;;  %v20691_v46 = vld [vmem:[#allocation143_spill] sm:$0xff] }
 0x8ce   : > { %vm20692_vm15 = vnez %v20691_v46 }
 0x8cf   : > { %v6923_v18 = vmul.f32 1.442695, %v6895_v9  ;;  %v17976_v9 = vsel %vm20692_vm15, -1e+09, %v6781_v21 }
 0x8d0   : > { %v6816_v1 = vpop.xlane.xlu1 %6815 }
 0x8d1   : > { %13172 = vpow2.f32 %v6923_v18  ;;  %v6896_v25 = vsub.f32 %v17843_v43, %v6816_v1  ;;  %v6782_v1 = vmul.f32 0.35355338, %v17734_v50 }
 0x8d3   : > { %v6925_v16 = vmul.f32 1.442695, %v6896_v25 }
 0x8d4   : > { %v6819_v23 = vpop.xlane.xlu0 %6818 }
 0x8d5   : > { %13174 = vpow2.f32 %v6925_v16  ;;  %v6897_v38 = vsub.f32 %v17855_v0, %v6819_v23 }
 0x8d7   : > { %v6927_v24 = vmul.f32 1.442695, %v6897_v38 }
 0x8d8   : > { %v6822_v47 = vpop.xlane.xlu0 %6821 }
 0x8d9   : > { %13176 = vpow2.f32 %v6927_v24  ;;  %v6898_v40 = vsub.f32 %v17867_v53, %v6822_v47  ;;  %v20694_v24 = vld [vmem:[#allocation146_spill] sm:$0xff] }
 0x8da   : > { %vm20695_vm15 = vnez %v20694_v24 }
 0x8db   : > { %v6929_v14 = vmul.f32 1.442695, %v6898_v40  ;;  %v6889_v40 = vsel %vm20693_vm8, %v17976_v9, -inf  ;;  %v17990_v50 = vsel %vm20695_vm15, -1e+09, %v6782_v1  ;;  %vm20696_vm8 = vmmov %vm20681_vm4 }
 0x8dc   : > { %v6825_v52 = vpop.xlane.xlu0 %6824  ;;  %v6892_v53 = vsel %vm20696_vm8, %v17990_v50, -inf  ;;  %vm20697_vm15 = vmmov %vm20681_vm4 }
 0x8dd   : > { %13178 = vpow2.f32 %v6929_v14  ;;  %v6899_v25 = vsub.f32 %v17875_v37, %v6825_v52  ;;  %vm20700_vm8 = vmmov %vm20698_vm1 }
 0x8de   : > { %v17980_v43 = vpop.eup %13172 }
 0x8df   : > { %v6931_v23 = vmul.f32 1.442695, %v6899_v25  ;;  %12249 = vmatmul.mubr.msk.f32.vlgmr.msra.gmra.mxu0 %vm20681_vm4, %v17980_v43 }
 0x8e0   : > { %12305 = vmatpush3.msra.mxu0 %v7388_v56  ;;  %v6828_v17 = vpop.xlane.xlu1 %6827  ;;  %12251 = vmatprep.mubr.msk.f32.mxu0 %vm20066_vm14, %v19791_v36 }
 0x8e1   : > { %13180 = vpow2.f32 %v6931_v23  ;;  %v6900_v52 = vsub.f32 %v17881_v30, %v6828_v17  ;;  %12306 = vmatprep.subr.mxu0 %v19791_v36  ;;  %6890 = vmax.xlane.f32.xlu0 %v6889_v40 }
 0x8e2   : > { %v13175_v14 = vpop.eup %13174  ;;  %12307 = vmatpush3.msra.mxu0 %v7386_v48 }
 0x8e3   : > { %v6933_v21 = vmul.f32 1.442695, %v6900_v52  ;;  %12308 = vmatprep.subr.mxu0 %v19791_v36  ;;  %12252 = vmatmul.mubr.msk.f32.gmra.mxu0 %vm20681_vm4, %v13175_v14  ;;  %v6982_v38 = vsel %vm20698_vm1, %v13175_v14, 0.0  ;;  %vm20699_vm4 = vmmov %vm20698_vm1  ;;  %v20704_v14 = vld [vmem:[#allocation81_spill] sm:$0xff] }
 0x8e4   : > { %12309 = vmatpush3.msra.mxu0 %v7384_v42  ;;  %v6831_v0 = vpop.xlane.xlu1 %6830  ;;  %12254 = vmatprep.mubr.msk.f32.mxu0 %vm20066_vm14, %v19791_v36 }
 0x8e5   : > { %13182 = vpow2.f32 %v6933_v21  ;;  %v6901_v30 = vsub.f32 %v17887_v26, %v6831_v0  ;;  %6893 = vmax.xlane.f32.xlu1 %v6892_v53  ;;  %12310 = vmatprep.subr.mxu0 %v19791_v36 }
 0x8e6   : > { %v13177_v37 = vpop.eup %13176 }
 0x8e7   : > { %v6935_v56 = vmul.f32 1.442695, %v6901_v30  ;;  %12255 = vmatmul.mubr.msk.f32.gmra.mxu0 %vm20697_vm15, %v13177_v37  ;;  %v6985_v48 = vsel %vm20700_vm8, %v13177_v37, 0.0  ;;  %vm20702_vm15 = vmmov %vm20698_vm1 }
 0x8e8   : > { %12257 = vmatprep.mubr.msk.f32.mxu0 %vm20066_vm14, %v19791_v36  ;;  %v6855_v26 = vpop.xlane.xlu1 %6854  ;;  %vm20706_vm8 = vmmov %vm20698_vm1 }
 0x8e9   : > { %13184 = vpow2.f32 %v6935_v56  ;;  %6983 = vadd.xlane.f32.xlu1 %v6982_v38  ;;  %v20707_v56 = vld [vmem:[#allocation124_spill] sm:$0xff] }
 0x8ea   : > { %v13179_v42 = vpop.eup %13178 }
 0x8eb   : > { %12258 = vmatmul.mubr.msk.f32.gmra.mxu0 %vm20699_vm4, %v13179_v42  ;;  %v6988_v16 = vsel %vm20698_vm1, %v13179_v42, 0.0  ;;  %vm20703_vm4 = vmmov %vm20698_vm1 }
 0x8ec   : > { %12260 = vmatprep.mubr.msk.f32.mxu0 %vm20066_vm14, %v19791_v36  ;;  %v6858_v1 = vpop.xlane.xlu1 %6857 }
 0x8ed   : > { %6986 = vadd.xlane.f32.xlu1 %v6985_v48 }
 0x8ee   : > { %v13181_v49 = vpop.eup %13180 }
 0x8ef   : > { %12261 = vmatmul.mubr.msk.f32.gmra.mxu0 %vm20701_vm11, %v13181_v49  ;;  %v6991_v17 = vsel %vm20703_vm4, %v13181_v49, 0.0  ;;  %vm20705_vm11 = vmmov %vm20698_vm1 }
 0x8f0   : > { %v6861_v18 = vpop.xlane.xlu0 %6860  ;;  %12263 = vmatprep.mubr.msk.f32.mxu0 %vm20066_vm14, %v19791_v36  ;;  %vm20711_vm4 = vmmov %vm20698_vm1 }
 0x8f1   : > { %6989 = vadd.xlane.f32.xlu1 %v6988_v16  ;;  %v20708_v16 = vld [vmem:[#allocation78_spill] sm:$0xff] }
 0x8f2   : > { %v13183_v47 = vpop.eup %13182 }
 0x8f3   : > { %12264 = vmatmul.mubr.msk.f32.gmra.mxu0 %vm20702_vm15, %v13183_v47  ;;  %v6994_v53 = vsel %vm20706_vm8, %v13183_v47, 0.0  ;;  %vm20709_vm15 = vmmov %vm20698_vm1 }
 0x8f4   : > { %v18015_v25 = vpop.f32.mrf.mxu1  ;;  %v6864_v23 = vpop.xlane.xlu0 %6863  ;;  %12266 = vmatprep.mubr.msk.f32.mxu0 %vm20066_vm14, %v19791_v36  ;;  %vm20713_vm8 = vmmov %vm20698_vm1 }
 0x8f5   : > { %6992 = vadd.xlane.f32.xlu1 %v6991_v17 }
 0x8f6   : > { %v13185_v40 = vpop.eup %13184  ;;  %v12285_v52 = vpop.f32.mrf.mxu1 }
 0x8f7   : > { %7521 = vrot.lane.b32.xlu0 %v20704_v14, %s13413_s17  ;;  %12267 = vmatmul.mubr.msk.f32.gmra.mxu0 %vm20705_vm11, %v13185_v40  ;;  %v6997_v48 = vsel %vm20698_vm1, %v13185_v40, 0.0  ;;  %v7000_v52 = vsel %vm20709_vm15, %v17797_v29, 0.0  ;;  %v6909_v29 = vsub.f32 %v17893_v39, %v6855_v26  ;;  %vm20712_vm11 = vmmov %vm20698_vm1 }
 0x8f8   : > { %v6867_v21 = vpop.xlane.xlu1 %6866  ;;  %v18023_v0 = vpop.f32.mrf.mxu1  ;;  %12318 = vmatprep.mubr.msk.f32.mxu0 %vm20066_vm14, %v19791_v36  ;;  %vm20714_vm15 = vmmov %vm20698_vm1 }
 0x8f9   : > { %v7382_v30 = vpop.permute.xlu0 %7381  ;;  %6995 = vadd.xlane.f32.xlu1 %v6994_v53 }
 0x8fa   : > { %12311 = vmatpush3.msra.mxu0 %v7382_v30  ;;  %v12288_v37 = vpop.f32.mrf.mxu1 }
 0x8fb   : > { %7519 = vrot.lane.b32.xlu0 %v20707_v56, %s13413_s17  ;;  %12312 = vmatprep.subr.mxu0 %v19791_v36  ;;  %v20710_v56 = vld [vmem:[#allocation15_spill] sm:$0xff] }
 0x8fc   : > { %v6870_v38 = vpop.xlane.xlu1 %6869  ;;  %v18031_v42 = vpop.f32.mrf.mxu1 }
 0x8fd   : > { %6998 = vadd.xlane.f32.xlu1 %v6997_v48 }
 0x8fe   : > { %v12291_v49 = vpop.f32.mrf.mxu1 }
 0x8ff   : > { %7517 = vrot.lane.b32.xlu0 %v20708_v16, %s13413_s17 }
 0x900   : > { %v6873_v47 = vpop.xlane.xlu1 %6872  ;;  %v18036_v17 = vpop.f32.mrf.mxu1 }
 0x901   : > { %7001 = vadd.xlane.f32.xlu1 %v7000_v52  ;;  %v6979_v52 = vsel %vm20711_vm4, %v17980_v43, 0.0  ;;  %v6912_v43 = vsub.f32 %v17911_v62, %v6864_v23  ;;  %vm20715_vm4 = vmmov %vm20698_vm1 }
 0x902   : > { %v12294_v53 = vpop.f32.mrf.mxu1 }
 0x903   : > { %v6951_v53 = vmul.f32 1.442695, %v6909_v29 }
 0x904   : > { %v7380_v30 = vpop.permute.xlu1 %7379  ;;  %v18040_v37 = vpop.f32.mrf.mxu1 }
 0x905   : > { %12313 = vmatpush3.msra.mxu0 %v7380_v30  ;;  %v7003_v30 = vsel %vm20712_vm11, %v17806_v13, 0.0  ;;  %13186 = vpow2.f32 %v6951_v53  ;;  %vm20716_vm11 = vmmov %vm20698_vm1 }
 0x906   : > { %v12297_v24 = vpop.f32.mrf.mxu1  ;;  %12314 = vmatprep.subr.mxu0 %v19791_v36 }
 0x907   : > { %v6910_v24 = vsub.f32 %v17899_v63, %v6858_v1  ;;  %v6957_v63 = vmul.f32 1.442695, %v6912_v43  ;;  %v6913_v1 = vsub.f32 %v17917_v51, %v6867_v21  ;;  %v6915_v51 = vsub.f32 %v17929_v32, %v6873_v47 }
 0x908   : > { %v18043_v40 = vpop.f32.mrf.mxu1 }
 0x909   : > { %v6963_v32 = vmul.f32 1.442695, %v6915_v51 }
 0x90a   : > { %v12300_v48 = vpop.f32.mrf.mxu1 }
 0x90b   : > { %v6953_v48 = vmul.f32 1.442695, %v6910_v24  ;;  %v20717_v24 = vld [vmem:[#allocation16_spill] sm:$0xff] }
 0x90c   : > { %v18045_v49 = vpop.f32.mrf.mxu1 }
 0x90d   : > { %13188 = vpow2.f32 %v6953_v48 }
 0x90e   : > { %v12303_v16 = vpop.f32.mrf.mxu1 }
 0x90f   : > { %v6911_v16 = vsub.f32 %v17905_v41, %v6861_v18  ;;  %v6959_v41 = vmul.f32 1.442695, %v6913_v1  ;;  %v6914_v18 = vsub.f32 %v17923_v45, %v6870_v38  ;;  %v351_v45 = vld [vmem:[%s19405_s4 + $0x70] sm:$0xff] }
 0x911   : > { %v6955_v39 = vmul.f32 1.442695, %v6911_v16  ;;  %v6961_v62 = vmul.f32 1.442695, %v6914_v18  ;;  %v7018_v18 = vsel %vm20698_vm1, %v17861_v54, 0.0 }
 0x912   : > { %8030 = vrot.lane.b32.xlu1 %v20710_v56, %s13415_s29  ;;  %v7006_v56 = vsel %vm20713_vm8, %v17817_v60, 0.0  ;;  %v13187_v29 = vpop.eup %13186  ;;  %vm20718_vm8 = vmmov %vm20698_vm1 }
 0x913   : > { %13190 = vpow2.f32 %v6955_v39  ;;  %v20719_v39 = vld [vmem:[#allocation12_spill] sm:$0xff] }
 0x914   : > { %13192 = vpow2.f32 %v6957_v63  ;;  %v20721_v63 = vld [vmem:[#allocation17_spill] sm:$0xff] }
 0x915   : > { %13194 = vpow2.f32 %v6959_v41  ;;  %v6916_v41 = vsub.f32 %v17710_v58, %v17953_v59 }
 0x916   : > { %13196 = vpow2.f32 %v6961_v62  ;;  %v6917_v62 = vsub.f32 %v17720_v4, %v17959_v10 }
 0x917   : > { %13198 = vpow2.f32 %v6963_v32 }
 0x91a   : > { %v13189_v53 = vpop.eup %13188 }
 0x91e   : > { %6980 = vadd.xlane.f32.xlu0 %v6979_v52  ;;  %v7009_v52 = vsel %vm20714_vm15, %v17825_v27, 0.0  ;;  %vm20720_vm15 = vmmov %vm20698_vm1 }
 0x920   : > { %v18079_v27 = vpop.eup %13190 }
 0x921   : > { %v13193_v48 = vpop.eup %13192 }
 0x922   : > { %7004 = vadd.xlane.f32.xlu0 %v7003_v30  ;;  %v18094_v16 = vpop.eup %13194 }
 0x926   : > { %7007 = vadd.xlane.f32.xlu0 %v7006_v56  ;;  %v18100_v56 = vpop.eup %13196 }
 0x927   : > { %v18108_v43 = vpop.eup %13198 }
 0x929   : > { %v18059_v26 = vpop.xlane.xlu0 %6884 }
 0x92a   : > { %v6919_v58 = vsub.f32 %v17940_v20, %v18059_v26 }
 0x92c   : > { %v6971_v4 = vmul.f32 1.442695, %v6919_v58 }
 0x92d   : > { %v7378_v13 = vpop.permute.xlu0 %7377 }
 0x92e   : > { %12315 = vmatpush3.msra.mxu0 %v7378_v13 }
 0x92f   : > { %12316 = vmatprep.subr.mxu0 %v19791_v36 }
 0x931   : > { %v7376_v60 = vpop.permute.xlu0 %7375 }
 0x932   : > { %12317 = vmatpush3.msra.mxu0 %v7376_v60  ;;  %v6965_v60 = vmul.f32 1.442695, %v6916_v41 }
 0x933   : > { %12319 = vmatmul.mubr.msk.f32.vlgmr.msra.gmra.mxu0 %vm20698_vm1, %v13187_v29  ;;  %12374 = vmatprep.subr.mxu0 %v351_v45 }
 0x934   : > { %12321 = vmatprep.mubr.msk.f32.mxu0 %vm20066_vm14, %v19791_v36  ;;  %12375 = vmatpush3.msra.mxu0 %v351_v45  ;;  %13200 = vpow2.f32 %v6965_v60 }
 0x935   : > { %v18068_v23 = vpop.xlane.xlu1 %6887  ;;  %v7530_v21 = vpop.permute.xlu0 %7529  ;;  %12488 = vmatprep.subr.mxu0 %v19791_v36 }
 0x936   : > { %7010 = vadd.xlane.f32.xlu1 %v7009_v52  ;;  %12340 = vmatpush3.msra.mxu1 %v7530_v21  ;;  %v6920_v10 = vsub.f32 %v17947_v22, %v18068_v23 }
 0x937   : > { %12322 = vmatmul.mubr.msk.f32.gmra.mxu0 %vm20715_vm4, %v13189_v53  ;;  %12341 = vmatprep.subr.mxu1 %v19791_v36  ;;  %vm20722_vm4 = vmmov %vm20698_vm1 }
 0x938   : > { %12324 = vmatprep.mubr.msk.f32.mxu0 %vm20066_vm14, %v19791_v36  ;;  %v6973_v20 = vmul.f32 1.442695, %v6920_v10 }
 0x939   : > { %v7526_v38 = vpop.permute.xlu1 %7525  ;;  %v7528_v47 = vpop.permute.xlu0 %7527 }
 0x93a   : > { %12342 = vmatpush3.msra.mxu1 %v7528_v47 }
 0x93b   : > { %12325 = vmatmul.mubr.msk.f32.gmra.mxu0 %vm20716_vm11, %v18079_v27  ;;  %12343 = vmatprep.subr.mxu1 %v19791_v36  ;;  %vm20723_vm11 = vmmov %vm20698_vm1 }
 0x93c   : > { %8028 = vrot.lane.b32.xlu0 %v20717_v24, %s13415_s29  ;;  %12344 = vmatpush3.msra.mxu1 %v7526_v38  ;;  %v7012_v1 = vsel %vm20723_vm11, %v17837_v57, 0.0  ;;  %v6967_v57 = vmul.f32 1.442695, %v6917_v62  ;;  %vm20727_vm11 = vmmov %vm20698_vm1 }
 0x93d   : > { %v7524_v30 = vpop.permute.xlu1 %7523  ;;  %12345 = vmatprep.subr.mxu1 %v19791_v36  ;;  %12327 = vmatprep.mubr.msk.f32.mxu0 %vm20066_vm14, %v19791_v36 }
 0x93e   : > { %12346 = vmatpush3.msra.mxu1 %v7524_v30  ;;  %13202 = vpow2.f32 %v6967_v57 }
 0x93f   : > { %12328 = vmatmul.mubr.msk.f32.gmra.mxu0 %vm20718_vm8, %v13193_v48  ;;  %12347 = vmatprep.subr.mxu1 %v19791_v36  ;;  %vm20724_vm8 = vmmov %vm20698_vm1 }
 0x940   : > { %12330 = vmatprep.mubr.msk.f32.mxu0 %vm20066_vm14, %v19791_v36  ;;  %v7015_v13 = vsel %vm20724_vm8, %v17849_v33, 0.0  ;;  %v6918_v33 = vsub.f32 %v17740_v19, %v17967_v15  ;;  %vm20728_vm8 = vmmov %vm20698_vm1 }
 0x941   : > { %v13201_v38 = vpop.eup %13200 }
 0x942   : > { %v6969_v52 = vmul.f32 1.442695, %v6918_v33 }
 0x943   : > { %12331 = vmatmul.mubr.msk.f32.gmra.mxu0 %vm20698_vm1, %v18094_v16 }
 0x944   : > { %12333 = vmatprep.mubr.msk.f32.mxu0 %vm20066_vm14, %v19791_v36  ;;  %13204 = vpow2.f32 %v6969_v52 }
 0x945   : > { %13206 = vpow2.f32 %v6971_v4 }
 0x946   : > { %13208 = vpow2.f32 %v6973_v20 }
 0x947   : > { %8026 = vrot.lane.b32.xlu1 %v20719_v39, %s13415_s29  ;;  %12334 = vmatmul.mubr.msk.f32.gmra.mxu0 %vm20720_vm15, %v18100_v56  ;;  %vm20725_vm15 = vmmov %vm20698_vm1 }
 0x948   : > { %12336 = vmatprep.mubr.msk.f32.mxu0 %vm20066_vm14, %v19791_v36  ;;  %v7021_v51 = vsel %vm20725_vm15, %v13187_v29, 0.0  ;;  %v7030_v29 = vsel %vm20727_vm11, %v13193_v48, 0.0  ;;  %vm20730_vm15 = vmmov %vm20698_vm1 }
 0x949   : > { %vm20733_vm11 = vmmov %vm20698_vm1 }
 0x94b   : > { %8024 = vrot.lane.b32.xlu1 %v20721_v63, %s13415_s29  ;;  %12337 = vmatmul.mubr.msk.f32.gmra.mxu0 %vm20722_vm4, %v18108_v43  ;;  %vm20726_vm4 = vmmov %vm20698_vm1  ;;  %v18141_v24 = vpop.eup %13202 }
 0x94c   : > { %v7024_v45 = vsel %vm20726_vm4, %v13189_v53, 0.0  ;;  %vm20732_vm4 = vmmov %vm20698_vm1 }
 0x94d   : > { %v7027_v57 = vsel %vm20732_vm4, %v18079_v27, 0.0 }
 0x951   : > { %v18149_v39 = vpop.eup %13204 }
 0x952   : > { %v18155_v63 = vpop.eup %13206 }
 0x953   : > { %v18163_v41 = vpop.eup %13208 }
 0x95b   : > { %7013 = vadd.xlane.f32.xlu0 %v7012_v1  ;;  %v20731_v1 = vld [vmem:[#allocation20_spill] sm:$0xff] }
 0x95f   : > { %7016 = vadd.xlane.f32.xlu0 %v7015_v13 }
 0x963   : > { %7019 = vadd.xlane.f32.xlu0 %v7018_v18 }
 0x967   : > { %7022 = vadd.xlane.f32.xlu0 %v7021_v51 }
 0x96a   : > { %v6891_v21 = vpop.xlane.xlu0 %6890 }
 0x96b   : > { %v6921_v26 = vsub.f32 %v17976_v9, %v6891_v21  ;;  %v20729_v9 = vld [vmem:[#allocation4_spill] sm:$0xff] }
 0x96d   : > { %v6975_v22 = vmul.f32 1.442695, %v6921_v26 }
 0x96e   : > { %v6894_v54 = vpop.xlane.xlu1 %6893  ;;  %v7522_v59 = vpop.permute.xlu0 %7521 }
 0x96f   : > { %7025 = vadd.xlane.f32.xlu1 %v7024_v45  ;;  %12348 = vmatpush3.msra.mxu1 %v7522_v59  ;;  %v6922_v23 = vsub.f32 %v17990_v50, %v6894_v54  ;;  %13210 = vpow2.f32 %v6975_v22 }
 0x970   : > { %12349 = vmatprep.subr.mxu1 %v19791_v36 }
 0x971   : > { %v6977_v30 = vmul.f32 1.442695, %v6922_v23  ;;  %v20741_v23 = vld [vmem:[#allocation6_spill] sm:$0xff] }
 0x972   : > { %v6984_v19 = vpop.xlane.xlu1 %6983  ;;  %v7520_v15 = vpop.permute.xlu0 %7519 }
 0x973   : > { %7031 = vadd.xlane.f32.xlu1 %v7030_v29  ;;  %12350 = vmatpush3.msra.mxu1 %v7520_v15  ;;  %13212 = vpow2.f32 %v6977_v30 }
 0x974   : > { %12351 = vmatprep.subr.mxu1 %v19791_v36 }
 0x976   : > { %v6987_v53 = vpop.xlane.xlu1 %6986  ;;  %v7518_v32 = vpop.permute.xlu0 %7517 }
 0x977   : > { %12352 = vmatpush3.msra.mxu1 %v7518_v32 }
 0x978   : > { %12354 = vmatmul.mubr.msk.f32.vlgmr.msra.gmra.mxu1 %vm20728_vm8, %v13201_v38  ;;  %12418 = vmatprep.subr.mxu1 %v19791_v36  ;;  %vm20734_vm8 = vmmov %vm20698_vm1 }
 0x979   : > { %12356 = vmatprep.mubr.msk.f32.mxu1 %vm20066_vm14, %v19791_v36 }
 0x97a   : > { %v6990_v47 = vpop.xlane.xlu1 %6989 }
 0x97c   : > { %12357 = vmatmul.mubr.msk.f32.gmra.mxu1 %vm20698_vm1, %v18141_v24  ;;  %v18169_v60 = vpop.eup %13210  ;;  %vm20735_vm1 = vcmask 64512  }
 0x97d   : > { %8022 = vrot.lane.b32.xlu0 %v20729_v9, %s13415_s29  ;;  %12359 = vmatprep.mubr.msk.f32.mxu1 %vm20066_vm14, %v19791_v36 }
 0x97e   : > { %v6993_v48 = vpop.xlane.xlu1 %6992 }
 0x980   : > { %12360 = vmatmul.mubr.msk.f32.gmra.mxu1 %vm20730_vm15, %v18149_v39  ;;  %v18175_v51 = vpop.eup %13212  ;;  %vm20736_vm15 = vmmov %vm20732_vm4 }
 0x981   : > { %12362 = vmatprep.mubr.msk.f32.mxu1 %vm20066_vm14, %v19791_v36 }
 0x982   : > { %v6996_v50 = vpop.xlane.xlu1 %6995 }
 0x984   : > { %8020 = vrot.lane.b32.xlu1 %v20731_v1, %s13415_s29  ;;  %12363 = vmatmul.mubr.msk.f32.gmra.mxu1 %vm20732_vm4, %v18155_v63 }
 0x985   : > { %12365 = vmatprep.mubr.msk.f32.mxu1 %vm20066_vm14, %v19791_v36 }
 0x986   : > { %v6999_v13 = vpop.xlane.xlu1 %6998 }
 0x988   : > { %12366 = vmatmul.mubr.msk.f32.gmra.mxu1 %vm20733_vm11, %v18163_v41  ;;  %vm20737_vm11 = vmmov %vm20732_vm4 }
 0x989   : > { %12368 = vmatprep.mubr.msk.f32.mxu1 %vm20066_vm14, %v19791_v36  ;;  %v7033_v21 = vsel %vm20737_vm11, %v18094_v16, 0.0 }
 0x98a   : > { %v7002_v18 = vpop.xlane.xlu1 %7001 }
 0x98c   : > { %12369 = vmatmul.mubr.msk.f32.gmra.mxu1 %vm20734_vm8, %v18169_v60  ;;  %vm20738_vm8 = vmmov %vm20732_vm4 }
 0x98d   : > { %12371 = vmatprep.mubr.msk.f32.mxu1 %vm20066_vm14, %v19791_v36  ;;  %v7036_v4 = vsel %vm20738_vm8, %v18100_v56, 0.0 }
 0x98e   : > { %v8031_v62 = vpop.permute.xlu1 %8030 }
 0x98f   : > { %12419 = vmatpush3.xpose.msk.msra.mxu1 %vm20735_vm1, %v8031_v62  ;;  %vm20739_vm1 = vmmov %vm20732_vm4 }
 0x990   : > { %12372 = vmatmul.mubr.msk.f32.gmra.mxu1 %vm20736_vm15, %v18175_v51  ;;  %12420 = vmatprep.subr.mxu1 %v19791_v36  ;;  %v7042_v29 = vsel %vm20739_vm1, %v13201_v38, 0.0  ;;  %vm20740_vm15 = vcmask 64512  }
 0x991   : > { %12432 = vmatprep.mubr.msk.f32.mxu1 %vm20066_vm14, %v19791_v36  ;;  %vm20742_vm4 = vmmov %vm20740_vm15 }
 0x992   : > { %vm20743_vm11 = vmmov %vm20742_vm4 }
 0x993   : > { %vm20744_vm8 = vmmov %vm20742_vm4 }
 0x994   : > { %vm20746_vm1 = vmmov %vm20742_vm4 }
 0x99c   : > { %7028 = vadd.xlane.f32.xlu0 %v7027_v57 }
 0x99f   : > { %v7199_v33 = vpop.f32.mrf.mxu0 }
 0x9a0   : > { %7034 = vadd.xlane.f32.xlu0 %v7033_v21  ;;  %v20745_v21 = vld [vmem:[#allocation18_spill] sm:$0xff] }
 0x9a1   : > { %v12250_v52 = vpop.f32.mrf.mxu0 }
 0x9a3   : > { %v7204_v58 = vpop.f32.mrf.mxu0 }
 0x9a5   : > { %v12253_v54 = vpop.f32.mrf.mxu0 }
 0x9a7   : > { %v7209_v59 = vpop.f32.mrf.mxu0  ;;  %v6981_v45 = vpop.xlane.xlu0 %6980 }
 0x9a8   : > { %13214 = vrcp.f32 %v6981_v45  ;;  %7037 = vadd.xlane.f32.xlu1 %v7036_v4 }
 0x9a9   : > { %13216 = vrcp.f32 %v6984_v19  ;;  %v12256_v10 = vpop.f32.mrf.mxu0 }
 0x9aa   : > { %13218 = vrcp.f32 %v6987_v53 }
 0x9ab   : > { %v7214_v27 = vpop.f32.mrf.mxu0  ;;  %v7005_v15 = vpop.xlane.xlu0 %7004  ;;  %13220 = vrcp.f32 %v6990_v47 }
 0x9ac   : > { %7043 = vadd.xlane.f32.xlu1 %v7042_v29  ;;  %13222 = vrcp.f32 %v6993_v48 }
 0x9ad   : > { %v12259_v16 = vpop.f32.mrf.mxu0  ;;  %13224 = vrcp.f32 %v6996_v50 }
 0x9ae   : > { %13226 = vrcp.f32 %v6999_v13 }
 0x9af   : > { %v7219_v20 = vpop.f32.mrf.mxu0  ;;  %v7008_v26 = vpop.xlane.xlu0 %7007  ;;  %13228 = vrcp.f32 %v7002_v18 }
 0x9b0   : > { %13230 = vrcp.f32 %v7005_v15 }
 0x9b1   : > { %v12262_v32 = vpop.f32.mrf.mxu0  ;;  %13232 = vrcp.f32 %v7008_v26 }
 0x9b3   : > { %v7224_v56 = vpop.f32.mrf.mxu0  ;;  %v8029_v22 = vpop.permute.xlu0 %8028 }
 0x9b4   : > { %12421 = vmatpush3.xpose.msk.msra.mxu1 %vm20740_vm15, %v8029_v22  ;;  %vm20747_vm15 = vmmov %vm20746_vm1  ;;  %v20757_v22 = vld [vmem:[#allocation13_spill] sm:$0xff] }
 0x9b5   : > { %v13215_v19 = vpop.eup %13214  ;;  %v12265_v53 = vpop.f32.mrf.mxu0  ;;  %12422 = vmatprep.subr.mxu1 %v19791_v36 }
 0x9b6   : > { %v13217_v38 = vpop.eup %13216  ;;  %8018 = vrot.lane.b32.xlu0 %v20741_v23, %s13415_s29  ;;  %v7659_v47 = vmul.f32 %v13215_v19, %v7199_v33 }
 0x9b7   : > { %v13219_v9 = vpop.eup %13218  ;;  %v7660_v30 = vmul.f32 %v13217_v38, %v7204_v58  ;;  %v7229_v48 = vpop.f32.mrf.mxu0  ;;  %v20758_v38 = vld [vmem:[#allocation2_spill] sm:$0xff] }
 0x9b8   : > { %v7661_v50 = vmul.f32 %v13219_v9, %v7209_v59  ;;  %12376 = vmatprep.mubr.msk.f32.mxu0 %vm20742_vm4, %v7659_v47  ;;  %v13221_v13 = vpop.eup %13220  ;;  %vm20748_vm4 = vmmov %vm20746_vm1 }
 0x9b9   : > { %v12268_v1 = vpop.f32.mrf.mxu0  ;;  %12377 = vmatmul.mubr.msk.f32.vlgmr.msra.gmra.mxu0 %vm20743_vm11, %v7660_v30  ;;  %v13223_v18 = vpop.eup %13222  ;;  %v7662_v62 = vmul.f32 %v13221_v13, %v7214_v27  ;;  %vm20749_vm11 = vmmov %vm20746_vm1 }
 0x9ba   : > { %12379 = vmatprep.mubr.msk.f32.mxu0 %vm20744_vm8, %v7661_v50  ;;  %v7663_v57 = vmul.f32 %v13223_v18, %v7219_v20  ;;  %v13225_v33 = vpop.eup %13224  ;;  %vm20750_vm8 = vmmov %vm20746_vm1 }
 0x9bb   : > { %v13227_v52 = vpop.eup %13226  ;;  %v7664_v58 = vmul.f32 %v13225_v33, %v7224_v56 }
 0x9bc   : > { %v13229_v59 = vpop.eup %13228  ;;  %v7665_v45 = vmul.f32 %v13227_v52, %v7229_v48 }
 0x9bd   : > { %8004 = vrot.lane.b32.xlu1 %v20745_v21, %s13415_s29  ;;  %12380 = vmatmul.mubr.msk.f32.gmra.mxu0 %vm20746_vm1, %v7662_v62  ;;  %v13231_v4 = vpop.eup %13230  ;;  %v7666_v27 = vmul.f32 %v13229_v59, %v18015_v25 }
 0x9be   : > { %12382 = vmatprep.mubr.msk.f32.mxu0 %vm20747_vm15, %v7663_v57  ;;  %v13233_v15 = vpop.eup %13232  ;;  %v7667_v29 = vmul.f32 %v13231_v4, %v18023_v0  ;;  %vm20751_vm15 = vmmov %vm20746_vm1 }
 0x9bf   : > { %v7011_v54 = vpop.xlane.xlu1 %7010  ;;  %v7668_v20 = vmul.f32 %v13233_v15, %v18031_v42 }
 0x9c0   : > { %13234 = vrcp.f32 %v7011_v54 }
 0x9c1   : > { %12383 = vmatmul.mubr.msk.f32.gmra.mxu0 %vm20748_vm4, %v7664_v58  ;;  %vm20752_vm4 = vmmov %vm20746_vm1 }
 0x9c2   : > { %12385 = vmatprep.mubr.msk.f32.mxu0 %vm20749_vm11, %v7665_v45  ;;  %vm20753_vm11 = vmmov %vm20746_vm1 }
 0x9c3   : > { %v8027_v10 = vpop.permute.xlu1 %8026 }
 0x9c4   : > { %12423 = vmatpush3.xpose.msk.msra.mxu1 %vm20750_vm8, %v8027_v10  ;;  %vm20754_vm8 = vmmov %vm20746_vm1 }
 0x9c5   : > { %12386 = vmatmul.mubr.msk.f32.gmra.mxu0 %vm20746_vm1, %v7666_v27  ;;  %12424 = vmatprep.subr.mxu1 %v19791_v36  ;;  %vm20755_vm1 = vcmask 457728  }
 0x9c6   : > { %12388 = vmatprep.mubr.msk.f32.mxu0 %vm20751_vm15, %v7667_v29  ;;  %v7039_v0 = vsel %vm20755_vm1, %v18108_v43, 0.0  ;;  %vm20756_vm15 = vmmov %vm20755_vm1 }
 0x9c7   : > { %v8025_v16 = vpop.permute.xlu1 %8024  ;;  %v7045_v32 = vsel %vm20756_vm15, %v18141_v24, 0.0  ;;  %vm20761_vm1 = vmmov %vm20752_vm4 }
 0x9c8   : > { %12425 = vmatpush3.xpose.msk.msra.mxu1 %vm20752_vm4, %v8025_v16  ;;  %vm20762_vm15 = vmmov %vm20761_vm1 }
 0x9c9   : > { %12389 = vmatmul.mubr.msk.f32.gmra.mxu0 %vm20753_vm11, %v7668_v20  ;;  %12426 = vmatprep.subr.mxu1 %v19791_v36  ;;  %vm20759_vm11 = vmmov %vm20752_vm4  ;;  %v20767_v20 = vld [vmem:[#allocation24_spill] sm:$0xff] }
 0x9cd   : > { %v13235_v25 = vpop.eup %13234 }
 0x9ce   : > { %v7669_v26 = vmul.f32 %v13235_v25, %v18036_v17 }
 0x9d0   : > { %12391 = vmatprep.mubr.msk.f32.mxu0 %vm20754_vm8, %v7669_v26  ;;  %vm20760_vm8 = vmmov %vm20752_vm4  ;;  %v20768_v26 = vld [vmem:[#allocation21_spill] sm:$0xff] }
 0x9d5   : > { %7040 = vadd.xlane.f32.xlu0 %v7039_v0 }
 0x9e1   : > { %7046 = vadd.xlane.f32.xlu1 %v7045_v32 }
 0x9e4   : > { %v7014_v42 = vpop.xlane.xlu0 %7013 }
 0x9e5   : > { %13236 = vrcp.f32 %v7014_v42 }
 0x9e8   : > { %v7017_v56 = vpop.xlane.xlu0 %7016 }
 0x9e9   : > { %13238 = vrcp.f32 %v7017_v56 }
 0x9eb   : > { %8186 = vrot.lane.b32.xlu0 %v20757_v22, %s13415_s29 }
 0x9ec   : > { %v7020_v19 = vpop.xlane.xlu0 %7019 }
 0x9ed   : > { %13240 = vrcp.f32 %v7020_v19 }
 0x9f0   : > { %v7023_v17 = vpop.xlane.xlu0 %7022 }
 0x9f1   : > { %13242 = vrcp.f32 %v7023_v17 }
 0x9f2   : > { %v13237_v53 = vpop.eup %13236  ;;  %8006 = vrot.lane.b32.xlu1 %v20758_v38, %s13415_s29 }
 0x9f3   : > { %v7483_v43 = vpop.f32.mrf.mxu0  ;;  %v7670_v23 = vmul.f32 %v13237_v53, %v18040_v37 }
 0x9f4   : > { %v8023_v24 = vpop.permute.xlu0 %8022 }
 0x9f5   : > { %v12320_v47 = vpop.f32.mrf.mxu0  ;;  %12392 = vmatmul.mubr.msk.f32.gmra.mxu0 %vm20752_vm4, %v7670_v23  ;;  %12427 = vmatpush3.xpose.msk.msra.mxu1 %vm20759_vm11, %v8023_v24  ;;  %vm20763_vm4 = vmmov %vm20761_vm1 }
 0x9f6   : > { %v13239_v9 = vpop.eup %13238  ;;  %12428 = vmatprep.subr.mxu1 %v19791_v36  ;;  %vm20764_vm11 = vmmov %vm20761_vm1 }
 0x9f7   : > { %v7488_v30 = vpop.f32.mrf.mxu0  ;;  %v7671_v48 = vmul.f32 %v13239_v9, %v18043_v40 }
 0x9f8   : > { %v7026_v50 = vpop.xlane.xlu1 %7025 }
 0x9f9   : > { %13244 = vrcp.f32 %v7026_v50  ;;  %v12323_v1 = vpop.f32.mrf.mxu0  ;;  %12394 = vmatprep.mubr.msk.f32.mxu0 %vm20760_vm8, %v7671_v48  ;;  %vm20765_vm8 = vcmask 457728  }
 0x9fa   : > { %v13241_v13 = vpop.eup %13240  ;;  %v7048_v27 = vsel %vm20765_vm8, %v18149_v39, 0.0 }
 0x9fb   : > { %v7493_v18 = vpop.f32.mrf.mxu0  ;;  %v7672_v37 = vmul.f32 %v13241_v13, %v18045_v49 }
 0x9fc   : > { %v7032_v62 = vpop.xlane.xlu1 %7031 }
 0x9fd   : > { %v12326_v57 = vpop.f32.mrf.mxu0  ;;  %12395 = vmatmul.mubr.msk.f32.gmra.mxu0 %vm20761_vm1, %v7672_v37  ;;  %vm20766_vm1 = vmmov %vm20765_vm8  ;;  %13246 = vrcp.f32 %v7032_v62 }
 0x9fe   : > { %v13243_v21 = vpop.eup %13242  ;;  %v7051_v16 = vsel %vm20766_vm1, %v18155_v63, 0.0  ;;  %vm20771_vm8 = vmmov %vm20763_vm4 }
 0x9ff   : > { %v7673_v33 = vmul.f32 %v13243_v21, %v7483_v43  ;;  %v7498_v52 = vpop.f32.mrf.mxu0  ;;  %vm20772_vm1 = vmmov %vm20763_vm4 }
 0xa00   : > { %v8021_v58 = vpop.permute.xlu1 %8020 }
 0xa01   : > { %v12329_v54 = vpop.f32.mrf.mxu0  ;;  %12397 = vmatprep.mubr.msk.f32.mxu0 %vm20762_vm15, %v7673_v33  ;;  %12429 = vmatpush3.xpose.msk.msra.mxu1 %vm20763_vm4, %v8021_v58  ;;  %vm20769_vm15 = vmmov %vm20763_vm4  ;;  %v20776_v58 = vld [vmem:[#allocation27_spill] sm:$0xff] }
 0xa02   : > { %12430 = vmatprep.subr.mxu1 %v19791_v36  ;;  %v20777_v54 = vld [vmem:[#allocation5_spill] sm:$0xff] }
 0xa03   : > { %v7503_v40 = vpop.f32.mrf.mxu0 }
 0xa05   : > { %v12332_v59 = vpop.f32.mrf.mxu0 }
 0xa06   : > { %v13245_v45 = vpop.eup %13244  ;;  %v20778_v59 = vld [vmem:[#allocation28_spill] sm:$0xff] }
 0xa07   : > { %v7508_v4 = vpop.f32.mrf.mxu0  ;;  %v7674_v49 = vmul.f32 %v13245_v45, %v7488_v30  ;;  %v20780_v45 = vld [vmem:[#allocation30_spill] sm:$0xff] }
 0xa09   : > { %v12335_v10 = vpop.f32.mrf.mxu0  ;;  %12398 = vmatmul.mubr.msk.f32.gmra.mxu0 %vm20764_vm11, %v7674_v49  ;;  %vm20770_vm11 = vmmov %vm20763_vm4 }
 0xa0a   : > { %7049 = vadd.xlane.f32.xlu0 %v7048_v27  ;;  %v13247_v42 = vpop.eup %13246 }
 0xa0b   : > { %v18237_v15 = vpop.f32.mrf.mxu0  ;;  %v7676_v22 = vmul.f32 %v13247_v42, %v7498_v52  ;;  %v20787_v42 = vld [vmem:[#allocation40_spill] sm:$0xff] }
 0xa0d   : > { %v12338_v29 = vpop.f32.mrf.mxu0 }
 0xa0e   : > { %v20782_v29 = vld [vmem:[#allocation26_spill] sm:$0xff] }
 0xa16   : > { %7052 = vadd.xlane.f32.xlu1 %v7051_v16 }
 0xa20   : > { %8184 = vrot.lane.b32.xlu0 %v20767_v20, %s13415_s29 }
 0xa25   : > { %v7029_v25 = vpop.xlane.xlu0 %7028 }
 0xa26   : > { %13248 = vrcp.f32 %v7029_v25 }
 0xa27   : > { %8008 = vrot.lane.b32.xlu1 %v20768_v26, %s13415_s29  ;;  %v20784_v26 = vld [vmem:[#allocation33_spill] sm:$0xff] }
 0xa29   : > { %v7035_v0 = vpop.xlane.xlu0 %7034 }
 0xa2a   : > { %13250 = vrcp.f32 %v7035_v0 }
 0xa2d   : > { %v8019_v39 = vpop.permute.xlu0 %8018 }
 0xa2e   : > { %12431 = vmatpush3.xpose.msk.msra.mxu1 %vm20769_vm15, %v8019_v39  ;;  %vm20773_vm15 = vcmask 457728  }
 0xa2f   : > { %12453 = vmatprep.subr.mxu1 %v19791_v36  ;;  %v7054_v9 = vsel %vm20773_vm15, %v18163_v41, 0.0 }
 0xa31   : > { %v7038_v32 = vpop.xlane.xlu1 %7037 }
 0xa32   : > { %13252 = vrcp.f32 %v7038_v32  ;;  %v5998_v32 = vadd.f32 %v17476_v34, %v17744_v5  ;;  %v6018_v5 = vadd.f32 %v17494_v11, %v17752_v61  ;;  %v6038_v11 = vadd.f32 %v17512_v31, %v17760_v2  ;;  %v20792_v61 = vld [vmem:[#allocation49_spill] sm:$0xff]  ;;  %v20797_v31 = vld [vmem:[#allocation38_spill] sm:$0xff] }
 0xa33   : > { %v13249_v63 = vpop.eup %13248 }
 0xa34   : > { %v7675_v56 = vmul.f32 %v13249_v63, %v7493_v18 }
 0xa35   : > { %v7044_v19 = vpop.xlane.xlu1 %7043 }
 0xa36   : > { %12400 = vmatprep.mubr.msk.f32.mxu0 %vm20763_vm4, %v7675_v56  ;;  %vm20774_vm4 = vmmov %vm20772_vm1  ;;  %13254 = vrcp.f32 %v7044_v19 }
 0xa37   : > { %v13251_v17 = vpop.eup %13250  ;;  %12401 = vmatmul.mubr.msk.f32.gmra.mxu0 %vm20770_vm11, %v7676_v22  ;;  %vm20775_vm11 = vmmov %vm20773_vm15 }
 0xa38   : > { %v7625_v53 = vpop.f32.mrf.mxu1  ;;  %v7677_v38 = vmul.f32 %v13251_v17, %v7503_v40  ;;  %v7057_v57 = vsel %vm20775_vm11, %v18169_v60, 0.0  ;;  %vm20783_vm15 = vmmov %vm20772_vm1  ;;  %v7060_v0 = vsel %vm20775_vm11, %v18175_v51, 0.0  ;;  %v6008_v51 = vadd.f32 %v17484_v55, %v17748_v3  ;;  %v20789_v17 = vld [vmem:[#allocation41_spill] sm:$0xff]  ;;  %v20791_v3 = vld [vmem:[#allocation48_spill] sm:$0xff] }
 0xa39   : > { %v8005_v43 = vpop.permute.xlu1 %8004  ;;  %v6028_v55 = vadd.f32 %v17504_v7, %v17756_v12  ;;  %v20794_v7 = vld [vmem:[#allocation54_spill] sm:$0xff]  ;;  %v20795_v12 = vld [vmem:[#allocation36_spill] sm:$0xff]  ;;  %vm20815_vm11 = vmmov %vm20772_vm1 }
 0xa3a   : > { %v12355_v23 = vpop.f32.mrf.mxu1  ;;  %12403 = vmatprep.mubr.msk.f32.mxu0 %vm20771_vm8, %v7677_v38  ;;  %12433 = vmatmul.mubr.msk.f32.vlgmr.msra.gmra.mxu1 %vm20772_vm1, %v8005_v43  ;;  %vm20779_vm8 = vmmov %vm20772_vm1  ;;  %v20790_v43 = vld [vmem:[#allocation46_spill] sm:$0xff] }
 0xa3b   : > { %12435 = vmatprep.mubr.msk.f32.mxu1 %vm20066_vm14, %v19791_v36 }
 0xa3c   : > { %v7630_v24 = vpop.f32.mrf.mxu1 }
 0xa3e   : > { %v12358_v47 = vpop.f32.mrf.mxu1 }
 0xa3f   : > { %v13253_v30 = vpop.eup %13252  ;;  %7055 = vadd.xlane.f32.xlu0 %v7054_v9 }
 0xa40   : > { %v18255_v48 = vpop.f32.mrf.mxu1  ;;  %v7678_v50 = vmul.f32 %v13253_v30, %v7508_v4  ;;  %v20781_v4 = vld [vmem:[#allocation32_spill] sm:$0xff] }
 0xa42   : > { %v12361_v1 = vpop.f32.mrf.mxu1  ;;  %12404 = vmatmul.mubr.msk.f32.gmra.mxu0 %vm20774_vm4, %v7678_v50  ;;  %vm20785_vm4 = vmmov %vm20772_vm1 }
 0xa43   : > { %v13255_v10 = vpop.eup %13254 }
 0xa44   : > { %v18258_v13 = vpop.f32.mrf.mxu1  ;;  %v7680_v20 = vmul.f32 %v13255_v10, %v7625_v53  ;;  %v20805_v10 = vld [vmem:[#allocation44_spill] sm:$0xff] }
 0xa46   : > { %v12364_v18 = vpop.f32.mrf.mxu1 }
 0xa48   : > { %v18260_v37 = vpop.f32.mrf.mxu1 }
 0xa4a   : > { %v12367_v62 = vpop.f32.mrf.mxu1 }
 0xa4b   : > { %7058 = vadd.xlane.f32.xlu1 %v7057_v57  ;;  %v20793_v62 = vld [vmem:[#allocation29_spill] sm:$0xff]  ;;  %v20796_v57 = vld [vmem:[#allocation55_spill] sm:$0xff] }
 0xa4c   : > { %v18264_v21 = vpop.f32.mrf.mxu1 }
 0xa4e   : > { %v12370_v41 = vpop.f32.mrf.mxu1 }
 0xa4f   : > { %v20798_v41 = vld [vmem:[#allocation52_spill] sm:$0xff] }
 0xa50   : > { %v18266_v33 = vpop.f32.mrf.mxu1 }
 0xa52   : > { %v12373_v52 = vpop.f32.mrf.mxu1 }
 0xa53   : > { %v20799_v52 = vld [vmem:[#allocation34_spill] sm:$0xff] }
 0xa55   : > { %8182 = vrot.lane.b32.xlu0 %v20776_v58, %s13415_s29 }
 0xa5c   : > { %8010 = vrot.lane.b32.xlu1 %v20777_v54, %s13415_s29  ;;  %v20800_v54 = vld [vmem:[#allocation14_spill] sm:$0xff] }
 0xa5e   : > { %v7041_v40 = vpop.xlane.xlu0 %7040 }
 0xa5f   : > { %13256 = vrcp.f32 %v7041_v40  ;;  %v20801_v40 = vld [vmem:[#allocation43_spill] sm:$0xff] }
 0xa60   : > { %8012 = vrot.lane.b32.xlu1 %v20778_v59, %s13415_s29  ;;  %v20802_v59 = vld [vmem:[#allocation57_spill] sm:$0xff] }
 0xa62   : > { %v8187_v60 = vpop.permute.xlu0 %8186 }
 0xa63   : > { %12454 = vmatpush3.xpose.msk.msra.mxu1 %vm20779_vm8, %v8187_v60  ;;  %vm20788_vm8 = vmmov %vm20772_vm1  ;;  %v20803_v60 = vld [vmem:[#allocation45_spill] sm:$0xff] }
 0xa64   : > { %8342 = vrot.lane.b32.xlu1 %v20780_v45, %s13415_s29  ;;  %12455 = vmatprep.subr.mxu1 %v19791_v36 }
 0xa68   : > { %8178 = vrot.lane.b32.xlu1 %v20781_v4, %s13415_s29  ;;  %v20804_v4 = vld [vmem:[#allocation58_spill] sm:$0xff] }
 0xa6a   : > { %v7047_v49 = vpop.xlane.xlu1 %7046 }
 0xa6b   : > { %13258 = vrcp.f32 %v7047_v49 }
 0xa6c   : > { %v13257_v27 = vpop.eup %13256  ;;  %8014 = vrot.lane.b32.xlu1 %v20782_v29, %s13415_s29 }
 0xa6d   : > { %v7679_v16 = vmul.f32 %v13257_v27, %v18237_v15  ;;  %v20786_v15 = vld [vmem:[#allocation35_spill] sm:$0xff] }
 0xa6e   : > { %v8007_v25 = vpop.permute.xlu1 %8006 }
 0xa6f   : > { %12406 = vmatprep.mubr.msk.f32.mxu0 %vm20772_vm1, %v7679_v16  ;;  %12436 = vmatmul.mubr.msk.f32.gmra.mxu1 %vm20783_vm15, %v8007_v25  ;;  %v20806_v16 = vld [vmem:[#allocation19_spill] sm:$0xff]  ;;  %vm20807_vm15 = vmmov %vm20772_vm1  ;;  %v20810_v25 = vld [vmem:[#allocation25_spill] sm:$0xff] }
 0xa70   : > { %8340 = vrot.lane.b32.xlu1 %v20784_v26, %s13415_s29  ;;  %12407 = vmatmul.mubr.msk.f32.gmra.mxu0 %vm20785_vm4, %v7680_v20  ;;  %vm20808_vm4 = vmmov %vm20772_vm1  ;;  %v20809_v20 = vld [vmem:[#allocation51_spill] sm:$0xff]  ;;  %v20811_v26 = vld [vmem:[#allocation50_spill] sm:$0xff] }
 0xa71   : > { %12438 = vmatprep.mubr.msk.f32.mxu1 %vm20066_vm14, %v19791_v36 }
 0xa74   : > { %7061 = vadd.xlane.f32.xlu0 %v7060_v0  ;;  %8016 = vrot.lane.b32.xlu1 %v20786_v15, %s13415_s29  ;;  %v20813_v15 = vld [vmem:[#allocation3_spill] sm:$0xff] }
 0xa78   : > { %v13259_v39 = vpop.eup %13258  ;;  %8174 = vrot.lane.b32.xlu1 %v20787_v42, %s13415_s29  ;;  %v20816_v42 = vld [vmem:[#allocation11_spill] sm:$0xff] }
 0xa79   : > { %v12378_v63 = vpop.f32.mrf.mxu0  ;;  %v7681_v56 = vmul.f32 %v13259_v39, %v7630_v24 }
 0xa7a   : > { %v18298_v22 = vadd.f32 %v12378_v63, %v5998_v32  ;;  %v20814_v32 = vld [vmem:[#allocation37_spill] sm:$0xff] }
 0xa7b   : > { %v18300_v19 = vpop.f32.mrf.mxu0  ;;  %12409 = vmatprep.mubr.msk.f32.mxu0 %vm20788_vm8, %v7681_v56  ;;  %v6048_v56 = vadd.f32 %v17524_v28, %v17764_v6  ;;  %v6058_v28 = vadd.f32 %v17532_v44, %v17768_v35  ;;  %vm20830_vm8 = vmmov %vm20772_vm1 }
 0xa7c   : > { %8336 = vrot.lane.b32.xlu1 %v20789_v17, %s13415_s29 }
 0xa7d   : > { %v12381_v53 = vpop.f32.mrf.mxu0 }
 0xa7e   : > { %v18307_v38 = vadd.f32 %v12381_v53, %v6008_v51  ;;  %v20817_v51 = vld [vmem:[#allocation56_spill] sm:$0xff] }
 0xa7f   : > { %v18309_v34 = vpop.f32.mrf.mxu0 }
 0xa80   : > { %8162 = vrot.lane.b32.xlu1 %v20790_v43, %s13415_s29  ;;  %v20821_v43 = vld [vmem:[#allocation22_spill] sm:$0xff] }
 0xa81   : > { %v12384_v23 = vpop.f32.mrf.mxu0 }
 0xa82   : > { %v18315_v24 = vadd.f32 %v12384_v23, %v6018_v5  ;;  %v20820_v5 = vld [vmem:[#allocation10_spill] sm:$0xff] }
 0xa83   : > { %v18317_v47 = vpop.f32.mrf.mxu0 }
 0xa84   : > { %8496 = vrot.lane.b32.xlu1 %v20791_v3, %s13415_s29  ;;  %v20823_v3 = vld [vmem:[#allocation59_spill] sm:$0xff] }
 0xa85   : > { %v12387_v9 = vpop.f32.mrf.mxu0 }
 0xa86   : > { %v18323_v30 = vadd.f32 %v12387_v9, %v6028_v55  ;;  %v20824_v9 = vld [vmem:[#allocation31_spill] sm:$0xff] }
 0xa87   : > { %v18325_v50 = vpop.f32.mrf.mxu0 }
 0xa88   : > { %8332 = vrot.lane.b32.xlu1 %v20792_v61, %s13415_s29 }
 0xa89   : > { %v12390_v1 = vpop.f32.mrf.mxu0 }
 0xa8a   : > { %v18331_v18 = vadd.f32 %v12390_v1, %v6038_v11  ;;  %8180 = vrot.lane.b32.xlu0 %v20793_v62, %s13415_s29  ;;  %v20825_v11 = vld [vmem:[#allocation42_spill] sm:$0xff]  ;;  %v20827_v1 = vld [vmem:[#allocation87_spill] sm:$0xff] }
 0xa8b   : > { %v18384_v63 = vpop.f32.mrf.mxu0  ;;  %v6068_v62 = vadd.f32 %v20827_v1, %v17772_v8 }
 0xa8c   : > { %8166 = vrot.lane.b32.xlu1 %v20794_v7, %s13415_s29 }
 0xa8e   : > { %8176 = vrot.lane.b32.xlu0 %v20795_v12, %s13415_s29  ;;  %v20829_v12 = vld [vmem:[#allocation39_spill] sm:$0xff] }
 0xa90   : > { %8492 = vrot.lane.b32.xlu1 %v20796_v57, %s13415_s29 }
 0xa92   : > { %8338 = vrot.lane.b32.xlu0 %v20797_v31, %s13415_s29  ;;  %v20831_v31 = vld [vmem:[#allocation47_spill] sm:$0xff] }
 0xa93   : > { %v7050_v2 = vpop.xlane.xlu0 %7049 }
 0xa94   : > { %13260 = vrcp.f32 %v7050_v2  ;;  %8168 = vrot.lane.b32.xlu1 %v20798_v41, %s13415_s29  ;;  %v20832_v2 = vld [vmem:[#allocation7_spill] sm:$0xff] }
 0xa96   : > { %8160 = vrot.lane.b32.xlu0 %v20799_v52, %s13415_s29 }
 0xa97   : > { %v8185_v58 = vpop.permute.xlu0 %8184 }
 0xa98   : > { %8318 = vrot.lane.b32.xlu1 %v20800_v54, %s13415_s29  ;;  %12456 = vmatpush3.xpose.msk.msra.mxu1 %vm20772_vm1, %v8185_v58 }
 0xa99   : > { %12457 = vmatprep.subr.mxu1 %v19791_v36 }
 0xa9a   : > { %8498 = vrot.lane.b32.xlu0 %v20801_v40, %s13415_s29 }
 0xa9c   : > { %8488 = vrot.lane.b32.xlu1 %v20802_v59, %s13415_s29 }
 0xa9e   : > { %8334 = vrot.lane.b32.xlu0 %v20803_v60, %s13415_s29 }
 0xa9f   : > { %v7053_v45 = vpop.xlane.xlu1 %7052 }
 0xaa0   : > { %13262 = vrcp.f32 %v7053_v45  ;;  %8172 = vrot.lane.b32.xlu1 %v20804_v4, %s13415_s29 }
 0xaa1   : > { %v13261_v49 = vpop.eup %13260 }
 0xaa2   : > { %8164 = vrot.lane.b32.xlu0 %v20805_v10, %s13415_s29  ;;  %v7682_v27 = vmul.f32 %v13261_v49, %v18255_v48  ;;  %v20812_v48 = vld [vmem:[#allocation23_spill] sm:$0xff] }
 0xaa3   : > { %v8009_v29 = vpop.permute.xlu1 %8008 }
 0xaa4   : > { %8322 = vrot.lane.b32.xlu1 %v20806_v16, %s13415_s29  ;;  %12410 = vmatmul.mubr.msk.f32.gmra.mxu0 %vm20807_vm15, %v7682_v27  ;;  %vm20833_vm15 = vmmov %vm20772_vm1  ;;  %v20840_v27 = vld [vmem:[#allocation189_spill] sm:$0xff] }
 0xaa5   : > { %12439 = vmatmul.mubr.msk.f32.gmra.mxu1 %vm20808_vm4, %v8009_v29  ;;  %vm20834_vm4 = vmmov %vm20772_vm1  ;;  %v20841_v29 = vld [vmem:[#allocation156_spill] sm:$0xff] }
 0xaa6   : > { %8494 = vrot.lane.b32.xlu0 %v20809_v20, %s13415_s29  ;;  %12441 = vmatprep.mubr.msk.f32.mxu1 %vm20066_vm14, %v19791_v36  ;;  %v6078_v16 = vadd.f32 %v20841_v29, %v20840_v27 }
 0xaa8   : > { %8324 = vrot.lane.b32.xlu1 %v20810_v25, %s13415_s29 }
 0xaaa   : > { %8330 = vrot.lane.b32.xlu0 %v20811_v26, %s13415_s29 }
 0xaac   : > { %8326 = vrot.lane.b32.xlu1 %v20812_v48, %s13415_s29 }
 0xaad   : > { %v13263_v0 = vpop.eup %13262 }
 0xaae   : > { %8316 = vrot.lane.b32.xlu0 %v20813_v15, %s13415_s29  ;;  %v7683_v39 = vmul.f32 %v13263_v0, %v18258_v13  ;;  %v20819_v13 = vld [vmem:[#allocation53_spill] sm:$0xff] }
 0xab0   : > { %8328 = vrot.lane.b32.xlu1 %v20814_v32, %s13415_s29  ;;  %12412 = vmatprep.mubr.msk.f32.mxu0 %vm20815_vm11, %v7683_v39  ;;  %vm20835_vm11 = vmmov %vm20772_vm1 }
 0xab2   : > { %8490 = vrot.lane.b32.xlu0 %v20816_v42, %s13415_s29 }
 0xab4   : > { %8480 = vrot.lane.b32.xlu1 %v20817_v51, %s13415_s29 }
 0xab5   : > { %v12393_v17 = vpop.f32.mrf.mxu0 }
 0xab6   : > { %v18390_v53 = vadd.f32 %v12393_v17, %v6048_v56  ;;  %8170 = vrot.lane.b32.xlu0 %v20819_v13, %s13415_s29 }
 0xab7   : > { %v18398_v23 = vpop.f32.mrf.mxu0 }
 0xab8   : > { %20818 = vst [vmem:[#allocation197_spill] sm:$0xff] %v18390_v53  ;;  %8484 = vrot.lane.b32.xlu1 %v20820_v5, %s13415_s29  ;;  %v20846_v5 = vld [vmem:[#allocation190_spill] sm:$0xff] }
 0xaba   : > { %8320 = vrot.lane.b32.xlu0 %v20821_v43, %s13415_s29  ;;  %v20847_v43 = vld [vmem:[#allocation152_spill] sm:$0xff] }
 0xabd   : > { %v12396_v6 = vpop.f32.mrf.mxu0 }
 0xabe   : > { %v18402_v55 = vadd.f32 %v12396_v6, %v6058_v28  ;;  %8486 = vrot.lane.b32.xlu0 %v20823_v3, %s13415_s29  ;;  %v6088_v28 = vadd.f32 %v20847_v43, %v20846_v5 }
 0xabf   : > { %v18410_v61 = vpop.f32.mrf.mxu0 }
 0xac0   : > { %20822 = vst [vmem:[#allocation108_spill] sm:$0xff] %v18402_v55  ;;  %20826 = vst [vmem:[#allocation142_spill] sm:$0xff] %v18410_v61  ;;  %v20998_v61 = vld [vmem:[#allocation141_spill] sm:$0xff] }
 0xac2   : > { %8472 = vrot.lane.b32.xlu0 %v20824_v9, %s13415_s29 }
 0xac6   : > { %8474 = vrot.lane.b32.xlu0 %v20825_v11, %s13415_s29 }
 0xac8   : > { %v7056_v7 = vpop.xlane.xlu0 %7055 }
 0xac9   : > { %13264 = vrcp.f32 %v7056_v7  ;;  %v12399_v35 = vpop.f32.mrf.mxu0 }
 0xaca   : > { %v18414_v44 = vadd.f32 %v12399_v35, %v6068_v62  ;;  %8476 = vrot.lane.b32.xlu0 %v20829_v12, %s13415_s29 }
 0xacb   : > { %v18444_v10 = vpop.f32.mrf.mxu0 }
 0xacc   : > { %20828 = vst [vmem:[#allocation163_spill] sm:$0xff] %v18414_v44  ;;  %v8183_v57 = vpop.permute.xlu0 %8182  ;;  %20839 = vst [vmem:[#allocation150_spill] sm:$0xff] %v18444_v10  ;;  %v20945_v44 = vld [vmem:[#allocation131_spill] sm:$0xff] }
 0xacd   : > { %12458 = vmatpush3.xpose.msk.msra.mxu1 %vm20830_vm8, %v8183_v57  ;;  %vm20836_vm8 = vmmov %vm20772_vm1 }
 0xace   : > { %8478 = vrot.lane.b32.xlu0 %v20831_v31, %s13415_s29  ;;  %12459 = vmatprep.subr.mxu1 %v19791_v36 }
 0xad2   : > { %8482 = vrot.lane.b32.xlu0 %v20832_v2, %s13415_s29 }
 0xad4   : > { %v7059_v8 = vpop.xlane.xlu1 %7058 }
 0xad5   : > { %13266 = vrcp.f32 %v7059_v8 }
 0xad6   : > { %v13265_v41 = vpop.eup %13264 }
 0xad7   : > { %v7684_v52 = vmul.f32 %v13265_v41, %v18260_v37 }
 0xad8   : > { %v8011_v58 = vpop.permute.xlu1 %8010 }
 0xad9   : > { %12413 = vmatmul.mubr.msk.f32.gmra.mxu0 %vm20772_vm1, %v7684_v52  ;;  %12442 = vmatmul.mubr.msk.f32.gmra.mxu1 %vm20833_vm15, %v8011_v58  ;;  %vm20837_vm15 = vmmov %vm20772_vm1 }
 0xada   : > { %12444 = vmatprep.mubr.msk.f32.mxu1 %vm20066_vm14, %v19791_v36 }
 0xadc   : > { %v8013_v54 = vpop.permute.xlu1 %8012 }
 0xadd   : > { %12445 = vmatmul.mubr.msk.f32.gmra.mxu1 %vm20834_vm4, %v8013_v54  ;;  %vm20838_vm4 = vmmov %vm20772_vm1 }
 0xade   : > { %12447 = vmatprep.mubr.msk.f32.mxu1 %vm20066_vm14, %v19791_v36 }
 0xae0   : > { %v8343_v40 = vpop.permute.xlu1 %8342 }
 0xae1   : > { %12489 = vmatpush3.xpose.msk.msra.mxu0 %vm20835_vm11, %v8343_v40  ;;  %vm20844_vm11 = vcmask 457728  }
 0xae2   : > { %v13267_v59 = vpop.eup %13266  ;;  %12490 = vmatprep.subr.mxu0 %v19791_v36 }
 0xae3   : > { %v7685_v37 = vmul.f32 %v13267_v59, %v18264_v21 }
 0xae4   : > { %v8179_v60 = vpop.permute.xlu1 %8178 }
 0xae5   : > { %12415 = vmatprep.mubr.msk.f32.mxu0 %vm20836_vm8, %v7685_v37  ;;  %vm20848_vm8 = vmmov %vm20772_vm1 }
 0xae8   : > { %v8015_v45 = vpop.permute.xlu1 %8014 }
 0xae9   : > { %12448 = vmatmul.mubr.msk.f32.gmra.mxu1 %vm20772_vm1, %v8015_v45 }
 0xaea   : > { %12450 = vmatprep.mubr.msk.f32.mxu1 %vm20066_vm14, %v19791_v36 }
 0xaec   : > { %v8341_v4 = vpop.permute.xlu1 %8340 }
 0xaed   : > { %12491 = vmatpush3.xpose.msk.msra.mxu0 %vm20837_vm15, %v8341_v4 }
 0xaee   : > { %12492 = vmatprep.subr.mxu0 %v19791_v36 }
 0xaf0   : > { %v8017_v49 = vpop.permute.xlu1 %8016 }
 0xaf1   : > { %12451 = vmatmul.mubr.msk.f32.gmra.mxu1 %vm20838_vm4, %v8017_v49  ;;  %v20870_v49 = vld [vmem:[#allocation191_spill] sm:$0xff] }
 0xaf2   : > { %12467 = vmatprep.mubr.msk.f32.mxu1 %vm20066_vm14, %v19791_v36 }
 0xaf4   : > { %v8175_v21 = vpop.permute.xlu1 %8174 }
 0xaf7   : > { %v12402_v20 = vpop.f32.mrf.mxu0 }
 0xaf8   : > { %v18448_v25 = vadd.f32 %v12402_v20, %v6078_v16  ;;  %v8337_v26 = vpop.permute.xlu1 %8336 }
 0xaf9   : > { %v18456_v17 = vpop.f32.mrf.mxu0 }
 0xafa   : > { %20842 = vst [vmem:[#allocation180_spill] sm:$0xff] %v18448_v25  ;;  %v8126_v48 = vpop.f32.mrf.mxu1  ;;  %20845 = vst [vmem:[#allocation113_spill] sm:$0xff] %v18456_v17 }
 0xafb   : > { %v8628_v0 = vmul.f32 0.35355338, %v8126_v48 }
 0xafc   : > { %v8163_v15 = vpop.permute.xlu1 %8162  ;;  %v12434_v39 = vpop.f32.mrf.mxu1 }
 0xafd   : > { %v18452_v42 = vsel %vm20640_vm0, -1e+09, %v8628_v0  ;;  %v7062_v56 = vpop.xlane.xlu0 %7061  ;;  %vm20850_vm0 = vmmov %vm20772_vm1 }
 0xafe   : > { %13268 = vrcp.f32 %v7062_v56  ;;  %v8684_v51 = vsel %vm20844_vm11, %v18452_v42, -inf  ;;  %vm20851_vm1 = vmmov %vm20850_vm0 }
 0xaff   : > { %8685 = vmax.xlane.f32.xlu0 %v8684_v51  ;;  %vm20852_vm15 = vmmov %vm20850_vm0 }
 0xb00   : > { %v8497_v13 = vpop.permute.xlu1 %8496  ;;  %vm20853_vm4 = vmmov %vm20850_vm0 }
 0xb01   : > { %v8181_v6 = vpop.permute.xlu0 %8180  ;;  %vm20854_vm11 = vmmov %vm20850_vm0 }
 0xb02   : > { %v12405_v3 = vpop.f32.mrf.mxu0  ;;  %12460 = vmatpush3.xpose.msk.msra.mxu1 %vm20848_vm8, %v8181_v6  ;;  %vm20855_vm8 = vmmov %vm20850_vm0 }
 0xb03   : > { %v18461_v9 = vadd.f32 %v12405_v3, %v6088_v28  ;;  %12461 = vmatprep.subr.mxu1 %v19791_v36 }
 0xb04   : > { %v8333_v11 = vpop.permute.xlu1 %8332  ;;  %v18515_v4 = vpop.f32.mrf.mxu0 }
 0xb05   : > { %20849 = vst [vmem:[#allocation86_spill] sm:$0xff] %v18461_v9  ;;  %v8177_v1 = vpop.permute.xlu0 %8176  ;;  %20868 = vst [vmem:[#allocation106_spill] sm:$0xff] %v18515_v4  ;;  %v20931_v9 = vld [vmem:[#allocation123_spill] sm:$0xff] }
 0xb06   : > { %12462 = vmatpush3.xpose.msk.msra.mxu1 %vm20850_vm0, %v8179_v60 }
 0xb07   : > { %12463 = vmatprep.subr.mxu1 %v19791_v36 }
 0xb08   : > { %v8167_v35 = vpop.permute.xlu1 %8166 }
 0xb09   : > { %v8339_v62 = vpop.permute.xlu0 %8338 }
 0xb0a   : > { %12464 = vmatpush3.xpose.msk.msra.mxu1 %vm20851_vm1, %v8177_v1  ;;  %12493 = vmatpush3.xpose.msk.msra.mxu0 %vm20852_vm15, %v8339_v62  ;;  %vm20856_vm1 = vmmov %vm20850_vm0 }
 0xb0b   : > { %v13269_v7 = vpop.eup %13268  ;;  %12465 = vmatprep.subr.mxu1 %v19791_v36  ;;  %12494 = vmatprep.subr.mxu0 %v19791_v36  ;;  %vm20857_vm15 = vmmov %vm20850_vm0 }
 0xb0c   : > { %v7686_v12 = vmul.f32 %v13269_v7, %v18266_v33  ;;  %v8493_v31 = vpop.permute.xlu1 %8492 }
 0xb0d   : > { %v8161_v57 = vpop.permute.xlu0 %8160 }
 0xb0e   : > { %12416 = vmatmul.mubr.msk.f32.gmra.mxu0 %vm20853_vm4, %v7686_v12  ;;  %12466 = vmatpush3.xpose.msk.msra.mxu1 %vm20854_vm11, %v8175_v21  ;;  %vm20858_vm4 = vmmov %vm20850_vm0  ;;  %v20871_v21 = vld [vmem:[#allocation97_spill] sm:$0xff] }
 0xb0f   : > { %12495 = vmatpush3.xpose.msk.msra.mxu0 %vm20855_vm8, %v8337_v26  ;;  %12523 = vmatprep.subr.mxu1 %v19791_v36  ;;  %vm20859_vm11 = vmmov %vm20850_vm0  ;;  %v6098_v27 = vadd.f32 %v20871_v21, %v20870_v49  ;;  %v20889_v12 = vld [vmem:[#allocation193_spill] sm:$0xff] }
 0xb10   : > { %12496 = vmatprep.subr.mxu0 %v19791_v36  ;;  %12502 = vmatprep.mubr.msk.f32.mxu0 %vm20066_vm14, %v19791_v36  ;;  %v8169_v8 = vpop.permute.xlu1 %8168  ;;  %vm20860_vm8 = vmmov %vm20850_vm0 }
 0xb11   : > { %12468 = vmatmul.mubr.msk.f32.vlgmr.msra.gmra.mxu1 %vm20850_vm0, %v8161_v57  ;;  %v8499_v2 = vpop.permute.xlu0 %8498  ;;  %v20890_v57 = vld [vmem:[#allocation153_spill] sm:$0xff] }
 0xb12   : > { %12524 = vmatpush3.xpose.msk.msra.mxu1 %vm20856_vm1, %v8499_v2  ;;  %12470 = vmatprep.mubr.msk.f32.mxu1 %vm20066_vm14, %v19791_v36  ;;  %vm20861_vm1 = vmmov %vm20850_vm0 }
 0xb13   : > { %12525 = vmatprep.subr.mxu1 %v19791_v36 }
 0xb14   : > { %v8319_v52 = vpop.permute.xlu1 %8318 }
 0xb15   : > { %12471 = vmatmul.mubr.msk.f32.gmra.mxu1 %vm20857_vm15, %v8163_v15  ;;  %v8335_v33 = vpop.permute.xlu0 %8334  ;;  %vm20862_vm15 = vmmov %vm20850_vm0 }
 0xb16   : > { %12497 = vmatpush3.xpose.msk.msra.mxu0 %vm20858_vm4, %v8335_v33  ;;  %12526 = vmatpush3.xpose.msk.msra.mxu1 %vm20859_vm11, %v8497_v13  ;;  %vm20863_vm4 = vmmov %vm20850_vm0 }
 0xb17   : > { %12473 = vmatprep.mubr.msk.f32.mxu1 %vm20066_vm14, %v19791_v36  ;;  %12498 = vmatprep.subr.mxu0 %v19791_v36  ;;  %vm20864_vm11 = vmmov %vm20850_vm0 }
 0xb18   : > { %12527 = vmatprep.subr.mxu1 %v19791_v36  ;;  %v8489_v40 = vpop.permute.xlu1 %8488 }
 0xb19   : > { %v8165_v41 = vpop.permute.xlu0 %8164 }
 0xb1a   : > { %12474 = vmatmul.mubr.msk.f32.gmra.mxu1 %vm20860_vm8, %v8165_v41  ;;  %12499 = vmatpush3.xpose.msk.msra.mxu0 %vm20850_vm0, %v8333_v11  ;;  %vm20865_vm8 = vmmov %vm20850_vm0 }
 0xb1b   : > { %12476 = vmatprep.mubr.msk.f32.mxu1 %vm20066_vm14, %v19791_v36  ;;  %12500 = vmatprep.subr.mxu0 %v19791_v36 }
 0xb1c   : > { %v8173_v37 = vpop.permute.xlu1 %8172 }
 0xb1d   : > { %v8495_v58 = vpop.permute.xlu0 %8494 }
 0xb1e   : > { %12477 = vmatmul.mubr.msk.f32.gmra.mxu1 %vm20861_vm1, %v8167_v35  ;;  %vm20866_vm1 = vmmov %vm20850_vm0 }
 0xb1f   : > { %12528 = vmatpush3.xpose.msk.msra.mxu1 %vm20862_vm15, %v8495_v58  ;;  %12479 = vmatprep.mubr.msk.f32.mxu1 %vm20066_vm14, %v19791_v36  ;;  %vm20867_vm15 = vmmov %vm20850_vm0 }
 0xb20   : > { %12529 = vmatprep.subr.mxu1 %v19791_v36  ;;  %v8323_v29 = vpop.permute.xlu1 %8322 }
 0xb21   : > { %v8331_v54 = vpop.permute.xlu0 %8330 }
 0xb22   : > { %12480 = vmatmul.mubr.msk.f32.gmra.mxu1 %vm20863_vm4, %v8169_v8  ;;  %12501 = vmatpush3.xpose.msk.msra.mxu0 %vm20864_vm11, %v8331_v54  ;;  %vm20869_vm4 = vmmov %vm20850_vm0 }
 0xb23   : > { %12530 = vmatpush3.xpose.msk.msra.mxu1 %vm20865_vm8, %v8493_v31  ;;  %12482 = vmatprep.mubr.msk.f32.mxu1 %vm20066_vm14, %v19791_v36  ;;  %vm20872_vm11 = vmmov %vm20850_vm0  ;;  %v6108_v31 = vadd.f32 %v20890_v57, %v20889_v12 }
 0xb24   : > { %12531 = vmatprep.subr.mxu1 %v19791_v36  ;;  %12558 = vmatprep.subr.mxu0 %v19791_v36  ;;  %vm20875_vm8 = vmmov %vm20850_vm0  ;;  %v8325_v51 = vpop.permute.xlu1 %8324 }
 0xb25   : > { %v8317_v59 = vpop.permute.xlu0 %8316 }
 0xb26   : > { %12503 = vmatmul.mubr.msk.f32.vlgmr.msra.gmra.mxu0 %vm20850_vm0, %v8317_v59 }
 0xb27   : > { %12505 = vmatprep.mubr.msk.f32.mxu0 %vm20066_vm14, %v19791_v36 }
 0xb28   : > { %v8327_v43 = vpop.permute.xlu1 %8326 }
 0xb29   : > { %v8491_v60 = vpop.permute.xlu0 %8490 }
 0xb2a   : > { %12506 = vmatmul.mubr.msk.f32.gmra.mxu0 %vm20866_vm1, %v8319_v52  ;;  %12532 = vmatpush3.xpose.msk.msra.mxu1 %vm20867_vm15, %v8491_v60  ;;  %vm20876_vm1 = vcmask 457728   ;;  %vm20877_vm15 = vmmov %vm20850_vm0  ;;  %v20896_v60 = vld [vmem:[#allocation101_spill] sm:$0xff] }
 0xb2b   : > { %12533 = vmatprep.subr.mxu1 %v19791_v36  ;;  %12508 = vmatprep.mubr.msk.f32.mxu0 %vm20066_vm14, %v19791_v36 }
 0xb2c   : > { %v8329_v6 = vpop.permute.xlu1 %8328 }
 0xb2d   : > { %v8171_v45 = vpop.permute.xlu0 %8170 }
 0xb2e   : > { %12483 = vmatmul.mubr.msk.f32.gmra.mxu1 %vm20869_vm4, %v8171_v45  ;;  %vm20879_vm4 = vmmov %vm20850_vm0 }
 0xb2f   : > { %12534 = vmatpush3.xpose.msk.msra.mxu1 %vm20872_vm11, %v8489_v40  ;;  %v8131_v16 = vpop.f32.mrf.mxu1  ;;  %12485 = vmatprep.mubr.msk.f32.mxu1 %vm20066_vm14, %v19791_v36  ;;  %vm20880_vm11 = vmmov %vm20850_vm0 }
 0xb30   : > { %v8629_v20 = vmul.f32 0.35355338, %v8131_v16  ;;  %v12408_v26 = vpop.f32.mrf.mxu0  ;;  %12535 = vmatprep.subr.mxu1 %v19791_v36  ;;  %v8481_v1 = vpop.permute.xlu1 %8480 }
 0xb31   : > { %v18524_v48 = vadd.f32 %v12408_v26, %v6098_v27  ;;  %v12437_v0 = vpop.f32.mrf.mxu1  ;;  %v8321_v15 = vpop.permute.xlu0 %8320 }
 0xb32   : > { %v18528_v32 = vsel %vm20644_vm7, -1e+09, %v8629_v20  ;;  %12486 = vmatmul.mubr.msk.f32.gmra.mxu1 %vm20875_vm8, %v8173_v37  ;;  %12509 = vmatmul.mubr.msk.f32.gmra.mxu0 %vm20850_vm0, %v8321_v15  ;;  %vm20878_vm7 = vmmov %vm20850_vm0  ;;  %v18573_v35 = vpop.f32.mrf.mxu0  ;;  %v20895_v37 = vld [vmem:[#allocation184_spill] sm:$0xff] }
 0xb33   : > { %20873 = vst [vmem:[#allocation147_spill] sm:$0xff] %v18524_v48  ;;  %v8687_v56 = vsel %vm20876_vm1, %v18528_v32, -inf  ;;  %12511 = vmatprep.mubr.msk.f32.mxu0 %vm20066_vm14, %v19791_v36  ;;  %12537 = vmatprep.mubr.msk.f32.mxu1 %vm20066_vm14, %v19791_v36  ;;  %vm20881_vm8 = vmmov %vm20850_vm0  ;;  %v6118_v45 = vadd.f32 %v20896_v60, %v20895_v37  ;;  %v20925_v48 = vld [vmem:[#allocation161_spill] sm:$0xff] }
 0xb34   : > { %8688 = vmax.xlane.f32.xlu1 %v8687_v56  ;;  %vm20882_vm1 = vmmov %vm20850_vm0  ;;  %v8485_v7 = vpop.permute.xlu1 %8484  ;;  %20888 = vst [vmem:[#allocation116_spill] sm:$0xff] %v18573_v35  ;;  %v20928_v35 = vld [vmem:[#allocation9_spill] sm:$0xff] }
 0xb35   : > { %v8487_v13 = vpop.permute.xlu0 %8486 }
 0xb36   : > { %12512 = vmatmul.mubr.msk.f32.gmra.mxu0 %vm20877_vm15, %v8323_v29  ;;  %12536 = vmatpush3.xpose.msk.msra.mxu1 %vm20878_vm7, %v8487_v13  ;;  %vm20883_vm15 = vmmov %vm20850_vm0 }
 0xb37   : > { %12514 = vmatprep.mubr.msk.f32.mxu0 %vm20066_vm14, %v19791_v36  ;;  %12593 = vmatprep.subr.mxu1 %v19791_v36  ;;  %vm20884_vm7 = vmmov %vm20850_vm0 }
 0xb39   : > { %v8473_v5 = vpop.permute.xlu0 %8472 }
 0xb3a   : > { %12515 = vmatmul.mubr.msk.f32.gmra.mxu0 %vm20879_vm4, %v8325_v51  ;;  %12538 = vmatmul.mubr.msk.f32.vlgmr.msra.gmra.mxu1 %vm20880_vm11, %v8473_v5  ;;  %vm20885_vm4 = vmmov %vm20850_vm0 }
 0xb3b   : > { %12517 = vmatprep.mubr.msk.f32.mxu0 %vm20066_vm14, %v19791_v36  ;;  %12540 = vmatprep.mubr.msk.f32.mxu1 %vm20066_vm14, %v19791_v36  ;;  %vm20886_vm11 = vmmov %vm20850_vm0 }
 0xb3d   : > { %v8475_v28 = vpop.permute.xlu0 %8474 }
 0xb3e   : > { %12518 = vmatmul.mubr.msk.f32.gmra.mxu0 %vm20881_vm8, %v8327_v43  ;;  %12541 = vmatmul.mubr.msk.f32.gmra.mxu1 %vm20850_vm0, %v8475_v28  ;;  %vm20887_vm8 = vmmov %vm20850_vm0  ;;  %vm20893_vm0 = vcmask 457728  }
 0xb3f   : > { %12520 = vmatprep.mubr.msk.f32.mxu0 %vm20066_vm14, %v19791_v36  ;;  %12543 = vmatprep.mubr.msk.f32.mxu1 %vm20066_vm14, %v19791_v36 }
 0xb41   : > { %v8477_v3 = vpop.permute.xlu0 %8476 }
 0xb42   : > { %12521 = vmatmul.mubr.msk.f32.gmra.mxu0 %vm20882_vm1, %v8329_v6  ;;  %12544 = vmatmul.mubr.msk.f32.gmra.mxu1 %vm20883_vm15, %v8477_v3  ;;  %vm20901_vm1 = vmmov %vm20893_vm0  ;;  %vm20926_vm15 = vnez %v20925_v48 }
 0xb43   : > { %12546 = vmatprep.mubr.msk.f32.mxu1 %vm20066_vm14, %v19791_v36  ;;  %12572 = vmatprep.mubr.msk.f32.mxu0 %vm20066_vm14, %v19791_v36 }
 0xb45   : > { %v8479_v11 = vpop.permute.xlu0 %8478 }
 0xb46   : > { %12547 = vmatmul.mubr.msk.f32.gmra.mxu1 %vm20884_vm7, %v8479_v11  ;;  %v20902_v11 = vld [vmem:[#allocation64_spill] sm:$0xff]  ;;  %vm20927_vm7 = vmmov %vm20893_vm0 }
 0xb47   : > { %12549 = vmatprep.mubr.msk.f32.mxu1 %vm20066_vm14, %v19791_v36 }
 0xb49   : > { %v8483_v62 = vpop.permute.xlu0 %8482 }
 0xb4a   : > { %12550 = vmatmul.mubr.msk.f32.gmra.mxu1 %vm20885_vm4, %v8481_v1  ;;  %vm20932_vm4 = vnez %v20931_v9 }
 0xb4b   : > { %12552 = vmatprep.mubr.msk.f32.mxu1 %vm20066_vm14, %v19791_v36 }
 0xb4e   : > { %12553 = vmatmul.mubr.msk.f32.gmra.mxu1 %vm20886_vm11, %v8483_v62  ;;  %v20904_v62 = vld [vmem:[#allocation195_spill] sm:$0xff]  ;;  %vm20933_vm11 = vmmov %vm20893_vm0 }
 0xb4f   : > { %12555 = vmatprep.mubr.msk.f32.mxu1 %vm20066_vm14, %v19791_v36 }
 0xb52   : > { %12556 = vmatmul.mubr.msk.f32.gmra.mxu1 %vm20887_vm8, %v8485_v7  ;;  %v20905_v7 = vld [vmem:[#allocation185_spill] sm:$0xff] }
 0xb53   : > { %12607 = vmatprep.mubr.msk.f32.mxu1 %vm20066_vm14, %v19791_v36  ;;  %v6128_v12 = vadd.f32 %v20905_v7, %v20904_v62 }
 0xb64   : > { %v12411_v2 = vpop.f32.mrf.mxu0 }
 0xb65   : > { %v18577_v33 = vadd.f32 %v12411_v2, %v6108_v31  ;;  %v8136_v8 = vpop.f32.mrf.mxu1 }
 0xb66   : > { %v8630_v41 = vmul.f32 0.35355338, %v8136_v8  ;;  %v18585_v59 = vpop.f32.mrf.mxu0 }
 0xb67   : > { %20891 = vst [vmem:[#allocation167_spill] sm:$0xff] %v18577_v33  ;;  %v12440_v52 = vpop.f32.mrf.mxu1  ;;  %20894 = vst [vmem:[#allocation105_spill] sm:$0xff] %v18585_v59 }
 0xb68   : > { %v18581_v54 = vsel %vm20647_vm12, -1e+09, %v8630_v41  ;;  %vm20899_vm12 = vmmov %vm20893_vm0 }
 0xb69   : > { %v8690_v40 = vsel %vm20893_vm0, %v18581_v54, -inf }
 0xb6a   : > { %8691 = vmax.xlane.f32.xlu0 %v8690_v40 }
 0xb99   : > { %v12414_v49 = vpop.f32.mrf.mxu0  ;;  %v8141_v21 = vpop.f32.mrf.mxu1 }
 0xb9a   : > { %v18589_v27 = vadd.f32 %v12414_v49, %v6118_v45  ;;  %v8631_v29 = vmul.f32 0.35355338, %v8141_v21 }
 0xb9b   : > { %v12443_v16 = vpop.f32.mrf.mxu1  ;;  %v18607_v1 = vpop.f32.mrf.mxu0 }
 0xb9c   : > { %20897 = vst [vmem:[#allocation172_spill] sm:$0xff] %v18589_v27  ;;  %v18593_v26 = vsel %vm20650_vm6, -1e+09, %v8631_v29  ;;  %20903 = vst [vmem:[#allocation85_spill] sm:$0xff] %v18607_v1 }
 0xb9d   : > { %v8146_v0 = vpop.f32.mrf.mxu1  ;;  %v8693_v15 = vsel %vm20899_vm12, %v18593_v26, -inf  ;;  %vm20908_vm6 = vmmov %vm20893_vm0 }
 0xb9e   : > { %v8632_v39 = vmul.f32 0.35355338, %v8146_v0  ;;  %8694 = vmax.xlane.f32.xlu0 %v8693_v15 }
 0xb9f   : > { %v12446_v56 = vpop.f32.mrf.mxu1 }
 0xba0   : > { %v18599_v13 = vsel %vm20653_vm13, -1e+09, %v8632_v39  ;;  %vm20910_vm13 = vmmov %vm20893_vm0 }
 0xba1   : > { %v8696_v5 = vsel %vm20901_vm1, %v18599_v13, -inf  ;;  %vm20938_vm1 = vmmov %vm20893_vm0 }
 0xba2   : > { %8697 = vmax.xlane.f32.xlu0 %v8696_v5 }
 0xba9   : > { %v8151_v43 = vpop.f32.mrf.mxu1 }
 0xbab   : > { %v12449_v28 = vpop.f32.mrf.mxu1 }
 0xbb1   : > { %v18603_v6 = vpop.f32.mrf.mxu1 }
 0xbb3   : > { %v12452_v3 = vpop.f32.mrf.mxu1 }
 0xbb8   : > { %8976 = vrot.lane.b32.xlu0 %v20902_v11, %s13415_s29 }
 0xbce   : > { %v12417_v57 = vpop.f32.mrf.mxu0 }
 0xbcf   : > { %v18611_v31 = vadd.f32 %v12417_v57, %v6128_v12  ;;  %v20914_v57 = vld [vmem:[#allocation62_spill] sm:$0xff] }
 0xbd0   : > { %v18631_v3 = vpop.f32.mrf.mxu0 }
 0xbd1   : > { %20906 = vst [vmem:[#allocation107_spill] sm:$0xff] %v18611_v31  ;;  %v8282_v2 = vpop.f32.mrf.mxu1  ;;  %20913 = vst [vmem:[#allocation138_spill] sm:$0xff] %v18631_v3 }
 0xbd2   : > { %v8635_v8 = vmul.f32 0.35355338, %v8282_v2 }
 0xbd3   : > { %v12469_v41 = vpop.f32.mrf.mxu1 }
 0xbd4   : > { %v18615_v58 = vsel %vm15733_vm5, -1e+09, %v8635_v8  ;;  %vm20912_vm5 = vmmov %vm20893_vm0 }
 0xbd5   : > { %v8287_v40 = vpop.f32.mrf.mxu1  ;;  %v8705_v37 = vsel %vm20908_vm6, %v18615_v58, -inf }
 0xbd6   : > { %v8636_v60 = vmul.f32 0.35355338, %v8287_v40  ;;  %8706 = vmax.xlane.f32.xlu1 %v8705_v37 }
 0xbd7   : > { %v12472_v45 = vpop.f32.mrf.mxu1 }
 0xbd8   : > { %v18621_v21 = vsel %vm20260_vm10, -1e+09, %v8636_v60  ;;  %v20915_v45 = vld [vmem:[#allocation65_spill] sm:$0xff]  ;;  %vm20919_vm10 = vmmov %vm20893_vm0 }
 0xbd9   : > { %v8708_v29 = vsel %vm20910_vm13, %v18621_v21, -inf  ;;  %vm20944_vm13 = vmmov %vm20893_vm0 }
 0xbda   : > { %8709 = vmax.xlane.f32.xlu1 %v8708_v29  ;;  %v8292_v16 = vpop.f32.mrf.mxu1 }
 0xbdb   : > { %v8637_v20 = vmul.f32 0.35355338, %v8292_v16 }
 0xbdc   : > { %v12475_v0 = vpop.f32.mrf.mxu1 }
 0xbdd   : > { %v18627_v39 = vsel %vm15767_vm3, -1e+09, %v8637_v20  ;;  %vm20917_vm3 = vmmov %vm20893_vm0 }
 0xbde   : > { %v8297_v56 = vpop.f32.mrf.mxu1  ;;  %v8711_v51 = vsel %vm20912_vm5, %v18627_v39, -inf  ;;  %vm20946_vm5 = vnez %v20945_v44 }
 0xbdf   : > { %8712 = vmax.xlane.f32.xlu0 %v8711_v51  ;;  %v8638_v3 = vmul.f32 0.35355338, %v8297_v56  ;;  %v18681_v56 = vpop.xlane.xlu0 %8685 }
 0xbe0   : > { %v12478_v5 = vpop.f32.mrf.mxu1 }
 0xbe2   : > { %v8302_v28 = vpop.f32.mrf.mxu1 }
 0xbe4   : > { %v12481_v11 = vpop.f32.mrf.mxu1 }
 0xbe6   : > { %v18633_v62 = vpop.f32.mrf.mxu0 }
 0xbe8   : > { %v12504_v7 = vpop.f32.mrf.mxu0 }
 0xbea   : > { %v18635_v12 = vpop.f32.mrf.mxu0 }
 0xbeb   : > { %8974 = vrot.lane.b32.xlu1 %v20914_v57, %s13415_s29 }
 0xbec   : > { %v12507_v2 = vpop.f32.mrf.mxu0 }
 0xbee   : > { %v18639_v8 = vpop.f32.mrf.mxu1 }
 0xbf0   : > { %v12484_v41 = vpop.f32.mrf.mxu1 }
 0xbf2   : > { %v18641_v52 = vpop.f32.mrf.mxu1  ;;  %v18643_v40 = vpop.f32.mrf.mxu0 }
 0xbf3   : > { %v18685_v1 = vpop.xlane.xlu0 %8691 }
 0xbf4   : > { %v12487_v37 = vpop.f32.mrf.mxu1  ;;  %v12510_v60 = vpop.f32.mrf.mxu0 }
 0xbf5   : > { %8972 = vrot.lane.b32.xlu0 %v20915_v45, %s13415_s29  ;;  %v8633_v45 = vmul.f32 0.35355338, %v8151_v43 }
 0xbf6   : > { %v18647_v49 = vpop.f32.mrf.mxu0 }
 0xbf8   : > { %v12513_v29 = vpop.f32.mrf.mxu0 }
 0xbfa   : > { %v18649_v16 = vpop.f32.mrf.mxu0  ;;  %v18651_v20 = vpop.f32.mrf.mxu1 }
 0xbfc   : > { %v12516_v0 = vpop.f32.mrf.mxu0  ;;  %v12539_v15 = vpop.f32.mrf.mxu1 }
 0xbfd   : > { %v18667_v15 = vsel %vm20655_vm9, -1e+09, %v8633_v45  ;;  %vm20924_vm9 = vmmov %vm20893_vm0 }
 0xbfe   : > { %v18653_v51 = vpop.f32.mrf.mxu0  ;;  %v18655_v5 = vpop.f32.mrf.mxu1 }
 0xc00   : > { %v12519_v11 = vpop.f32.mrf.mxu0  ;;  %v12542_v7 = vpop.f32.mrf.mxu1 }
 0xc01   : > { %v8699_v7 = vsel %vm20917_vm3, %v18667_v15, -inf  ;;  %vm20947_vm3 = vmmov %vm20893_vm0 }
 0xc02   : > { %v18657_v57 = vpop.f32.mrf.mxu0  ;;  %v18659_v2 = vpop.f32.mrf.mxu1 }
 0xc04   : > { %v12522_v41 = vpop.f32.mrf.mxu0  ;;  %v12545_v37 = vpop.f32.mrf.mxu1 }
 0xc05   : > { %v18675_v37 = vsel %vm20268_vm2, -1e+09, %v8638_v3  ;;  %v20921_v3 = vld [vmem:[#allocation63_spill] sm:$0xff] }
 0xc06   : > { %v18661_v60 = vpop.f32.mrf.mxu1  ;;  %v8714_v0 = vsel %vm20919_vm10, %v18675_v37, -inf }
 0xc08   : > { %v12548_v29 = vpop.f32.mrf.mxu1 }
 0xc0a   : > { %v18663_v31 = vpop.f32.mrf.mxu1 }
 0xc0c   : > { %v12551_v27 = vpop.f32.mrf.mxu1 }
 0xc0d   : > { %v20920_v27 = vld [vmem:[#allocation61_spill] sm:$0xff] }
 0xc0e   : > { %v18669_v11 = vpop.f32.mrf.mxu1 }
 0xc0f   : > { %8700 = vmax.xlane.f32.xlu1 %v8699_v7 }
 0xc10   : > { %v12554_v43 = vpop.f32.mrf.mxu1 }
 0xc12   : > { %v18677_v29 = vpop.f32.mrf.mxu1 }
 0xc14   : > { %8715 = vmax.xlane.f32.xlu0 %v8714_v0  ;;  %v12557_v45 = vpop.f32.mrf.mxu1  ;;  %v8634_v0 = vmul.f32 0.35355338, %v18603_v6  ;;  %v8689_v6 = vpop.xlane.xlu1 %8688 }
 0xc15   : > { %v20922_v45 = vld [vmem:[#allocation121_spill] sm:$0xff] }
 0xc16   : > { %vm20923_vm2 = vnez %v20922_v45 }
 0xc17   : > { %v18697_v33 = vsel %vm20923_vm2, -1e+09, %v8634_v0  ;;  %vm20951_vm2 = vmmov %vm20893_vm0 }
 0xc18   : > { %v8702_v59 = vsel %vm20924_vm9, %v18697_v33, -inf  ;;  %vm20952_vm9 = vmmov %vm20893_vm0 }
 0xc20   : > { %8970 = vrot.lane.b32.xlu1 %v20920_v27, %s13415_s29  ;;  %v8639_v27 = vmul.f32 0.35355338, %v8302_v28  ;;  %v20929_v28 = vld [vmem:[#allocation60_spill] sm:$0xff] }
 0xc27   : > { %v18687_v7 = vpop.xlane.xlu0 %8694 }
 0xc2a   : > { %8968 = vrot.lane.b32.xlu0 %v20921_v3, %s13415_s29  ;;  %v18703_v3 = vsel %vm20926_vm15, -1e+09, %v8639_v27  ;;  %vm20954_vm15 = vmmov %vm20893_vm0 }
 0xc2b   : > { %v18691_v41 = vpop.xlane.xlu0 %8697 }
 0xc2f   : > { %v8977_v43 = vpop.permute.xlu0 %8976 }
 0xc30   : > { %12559 = vmatpush3.msra.mxu0 %v8977_v43  ;;  %v8717_v43 = vsel %vm20927_vm7, %v18703_v3, -inf }
 0xc31   : > { %12560 = vmatprep.subr.mxu0 %v19791_v36 }
 0xc44   : > { %8703 = vmax.xlane.f32.xlu1 %v8702_v59  ;;  %v20930_v59 = vld [vmem:[#allocation68_spill] sm:$0xff] }
 0xc49   : > { %8718 = vmax.xlane.f32.xlu0 %v8717_v43 }
 0xc55   : > { %8966 = vrot.lane.b32.xlu1 %v20928_v35, %s13415_s29  ;;  %v8642_v35 = vmul.f32 0.35355338, %v18633_v62  ;;  %v20936_v62 = vld [vmem:[#allocation128_spill] sm:$0xff] }
 0xc56   : > { %vm20937_vm12 = vnez %v20936_v62  ;;  %v8643_v62 = vmul.f32 0.35355338, %v18635_v12  ;;  %v20948_v12 = vld [vmem:[#allocation168_spill] sm:$0xff] }
 0xc57   : > { %vm20949_vm10 = vnez %v20948_v12 }
 0xc5f   : > { %v18709_v45 = vpop.xlane.xlu1 %8706  ;;  %8964 = vrot.lane.b32.xlu0 %v20929_v28, %s13415_s29  ;;  %v18724_v28 = vsel %vm20932_vm4, -1e+09, %v8642_v35  ;;  %vm20957_vm4 = vmmov %vm20893_vm0 }
 0xc60   : > { %v8726_v4 = vsel %vm20933_vm11, %v18724_v28, -inf  ;;  %vm20958_vm11 = vmmov %vm20893_vm0 }
 0xc63   : > { %v18713_v0 = vpop.xlane.xlu1 %8709  ;;  %9116 = vrot.lane.b32.xlu0 %v20930_v59, %s13415_s29  ;;  %v8640_v59 = vmul.f32 0.35355338, %v18639_v8 }
 0xc67   : > { %v8975_v48 = vpop.permute.xlu1 %8974 }
 0xc68   : > { %12561 = vmatpush3.msra.mxu0 %v8975_v48  ;;  %v18717_v27 = vpop.xlane.xlu0 %8712  ;;  %v20934_v48 = vld [vmem:[#allocation164_spill] sm:$0xff] }
 0xc69   : > { %12562 = vmatprep.subr.mxu0 %v19791_v36  ;;  %vm20935_vm8 = vnez %v20934_v48  ;;  %v20940_v48 = vld [vmem:[#allocation71_spill] sm:$0xff] }
 0xc6a   : > { %v18731_v25 = vsel %vm20935_vm8, -1e+09, %v8640_v59  ;;  %vm20959_vm8 = vmmov %vm20893_vm0 }
 0xc6b   : > { %v8720_v17 = vsel %vm20893_vm0, %v18731_v25, -inf }
 0xc6c   : > { %v8973_v43 = vpop.permute.xlu0 %8972 }
 0xc6d   : > { %12563 = vmatpush3.msra.mxu0 %v8973_v43  ;;  %v8644_v43 = vmul.f32 0.35355338, %v18643_v40 }
 0xc6e   : > { %12564 = vmatprep.subr.mxu0 %v19791_v36 }
 0xc6f   : > { %v18738_v9 = vsel %vm20937_vm12, -1e+09, %v8644_v43  ;;  %v20941_v43 = vld [vmem:[#allocation72_spill] sm:$0xff]  ;;  %vm20960_vm12 = vmmov %vm20893_vm0 }
 0xc70   : > { %v8732_v35 = vsel %vm20938_vm1, %v18738_v9, -inf  ;;  %vm20961_vm1 = vmmov %vm20893_vm0 }
 0xc79   : > { %8727 = vmax.xlane.f32.xlu1 %v8726_v4  ;;  %v20939_v4 = vld [vmem:[#allocation67_spill] sm:$0xff] }
 0xc82   : > { %8721 = vmax.xlane.f32.xlu0 %v8720_v17 }
 0xc86   : > { %8733 = vmax.xlane.f32.xlu0 %v8732_v35  ;;  %v20942_v35 = vld [vmem:[#allocation127_spill] sm:$0xff] }
 0xc87   : > { %vm20943_vm6 = vnez %v20942_v35 }
 0xc8a   : > { %9118 = vrot.lane.b32.xlu1 %v20939_v4, %s13415_s29  ;;  %v18755_v4 = vsel %vm20943_vm6, -1e+09, %v8643_v62  ;;  %v20950_v62 = vld [vmem:[#allocation66_spill] sm:$0xff] }
 0xc98   : > { %v8701_v8 = vpop.xlane.xlu1 %8700 }
 0xc9c   : > { %v8971_v59 = vpop.permute.xlu1 %8970  ;;  %9112 = vrot.lane.b32.xlu0 %v20940_v48, %s13415_s29  ;;  %v8645_v48 = vmul.f32 0.35355338, %v18647_v49  ;;  %v8768_v49 = vsub.f32 %v18452_v42, %v18681_v56  ;;  %v8772_v56 = vsub.f32 %v18599_v13, %v18691_v41 }
 0xc9d   : > { %12565 = vmatpush3.msra.mxu0 %v8971_v59  ;;  %v18746_v40 = vpop.xlane.xlu0 %8715  ;;  %v8729_v59 = vsel %vm20944_vm13, %v18755_v4, -inf  ;;  %vm20965_vm13 = vmmov %vm20893_vm0 }
 0xc9e   : > { %12566 = vmatprep.subr.mxu0 %v19791_v36  ;;  %v18762_v10 = vsel %vm20946_vm5, -1e+09, %v8645_v48 }
 0xca0   : > { %9110 = vrot.lane.b32.xlu0 %v20941_v43, %s13415_s29  ;;  %v8649_v43 = vmul.f32 0.35355338, %v18651_v20  ;;  %v8769_v20 = vsub.f32 %v18528_v32, %v8689_v6  ;;  %v8804_v32 = vmul.f32 1.442695, %v8772_v56 }
 0xca1   : > { %v8969_v17 = vpop.permute.xlu0 %8968 }
 0xca2   : > { %12567 = vmatpush3.msra.mxu0 %v8969_v17  ;;  %v8735_v17 = vsel %vm20947_vm3, %v18762_v10, -inf  ;;  %v18769_v35 = vsel %vm20949_vm10, -1e+09, %v8649_v43  ;;  %v8798_v48 = vmul.f32 1.442695, %v8769_v20  ;;  %v8770_v43 = vsub.f32 %v18581_v54, %v18685_v1  ;;  %vm20969_vm3 = vmmov %vm20893_vm0 }
 0xca3   : > { %12568 = vmatprep.subr.mxu0 %v19791_v36  ;;  %v8747_v44 = vsel %vm20951_vm2, %v18769_v35, -inf  ;;  %v8773_v54 = vsub.f32 %v18667_v15, %v8701_v8  ;;  %vm20973_vm2 = vmmov %vm20893_vm0 }
 0xca4   : > { %v8800_v55 = vmul.f32 1.442695, %v8770_v43 }
 0xcae   : > { %8730 = vmax.xlane.f32.xlu1 %v8729_v59  ;;  %v8796_v59 = vmul.f32 1.442695, %v8768_v49 }
 0xcb0   : > { %13270 = vpow2.f32 %v8796_v59 }
 0xcb1   : > { %13272 = vpow2.f32 %v8798_v48 }
 0xcb2   : > { %13274 = vpow2.f32 %v8800_v55  ;;  %v20953_v55 = vld [vmem:[#allocation75_spill] sm:$0xff] }
 0xcbd   : > { %v18788_v6 = vpop.eup %13270 }
 0xcbe   : > { %v18798_v15 = vpop.eup %13272 }
 0xcbf   : > { %9114 = vrot.lane.b32.xlu1 %v20950_v62, %s13415_s29  ;;  %8736 = vmax.xlane.f32.xlu0 %v8735_v17  ;;  %v8771_v17 = vsub.f32 %v18593_v26, %v18687_v7  ;;  %v8806_v26 = vmul.f32 1.442695, %v8773_v54  ;;  %v8641_v7 = vmul.f32 0.35355338, %v18641_v52  ;;  %v18805_v8 = vpop.eup %13274 }
 0xcc1   : > { %v8802_v42 = vmul.f32 1.442695, %v8771_v17  ;;  %v20962_v17 = vld [vmem:[#allocation171_spill] sm:$0xff] }
 0xcc2   : > { %vm20963_vm6 = vnez %v20962_v17 }
 0xcc3   : > { %8748 = vmax.xlane.f32.xlu0 %v8747_v44  ;;  %13276 = vpow2.f32 %v8802_v42  ;;  %v20955_v44 = vld [vmem:[#allocation166_spill] sm:$0xff]  ;;  %v20964_v42 = vld [vmem:[#allocation69_spill] sm:$0xff] }
 0xcc4   : > { %13278 = vpow2.f32 %v8804_v32  ;;  %vm20956_vm7 = vnez %v20955_v44  ;;  %v20970_v44 = vld [vmem:[#allocation173_spill] sm:$0xff] }
 0xcc5   : > { %13280 = vpow2.f32 %v8806_v26  ;;  %v18809_v59 = vsel %vm20956_vm7, -1e+09, %v8641_v7  ;;  %v20967_v26 = vld [vmem:[#allocation134_spill] sm:$0xff]  ;;  %vm20971_vm10 = vnez %v20970_v44  ;;  %v8652_v44 = vmul.f32 0.35355338, %v18661_v60 }
 0xcc6   : > { %vm20968_vm5 = vnez %v20967_v26  ;;  %v20975_v26 = vld [vmem:[#allocation136_spill] sm:$0xff] }
 0xccd   : > { %v8704_v12 = vpop.xlane.xlu1 %8703 }
 0xcce   : > { %v8774_v13 = vsub.f32 %v18697_v33, %v8704_v12  ;;  %v8723_v33 = vsel %vm20958_vm11, %v18809_v59, -inf  ;;  %v8650_v12 = vmul.f32 0.35355338, %v18655_v5  ;;  %vm20982_vm11 = vmmov %vm20893_vm0 }
 0xcd0   : > { %v8808_v41 = vmul.f32 1.442695, %v8774_v13  ;;  %v18817_v52 = vpop.eup %13276 }
 0xcd1   : > { %v8967_v62 = vpop.permute.xlu1 %8966  ;;  %v18823_v20 = vpop.eup %13278 }
 0xcd2   : > { %12569 = vmatpush3.msra.mxu0 %v8967_v62  ;;  %v18784_v49 = vpop.xlane.xlu0 %8718  ;;  %13282 = vpow2.f32 %v8808_v41  ;;  %v18829_v48 = vpop.eup %13280  ;;  %v18844_v62 = vsel %vm20963_vm6, -1e+09, %v8650_v12  ;;  %v8651_v41 = vmul.f32 0.35355338, %v18659_v2  ;;  %v20972_v12 = vld [vmem:[#allocation79_spill] sm:$0xff]  ;;  %vm20990_vm6 = vmmov %vm20893_vm0 }
 0xcd3   : > { %12570 = vmatprep.subr.mxu0 %v19791_v36  ;;  %v8750_v56 = vsel %vm20965_vm13, %v18844_v62, -inf  ;;  %vm20992_vm13 = vmmov %vm20893_vm0 }
 0xcd6   : > { %v8965_v1 = vpop.permute.xlu0 %8964 }
 0xcd7   : > { %12571 = vmatpush3.msra.mxu0 %v8965_v1  ;;  %v20966_v1 = vld [vmem:[#allocation76_spill] sm:$0xff] }
 0xcd8   : > { %12573 = vmatmul.mubr.msk.f32.vlgmr.msra.gmra.mxu0 %vm20952_vm9, %v18788_v6  ;;  %12628 = vmatprep.subr.mxu0 %v19791_v36  ;;  %vm20976_vm9 = vnez %v20975_v26 }
 0xcd9   : > { %9106 = vrot.lane.b32.xlu0 %v20953_v55, %s13415_s29  ;;  %12575 = vmatprep.mubr.msk.f32.mxu0 %vm20066_vm14, %v19791_v36  ;;  %v8646_v55 = vmul.f32 0.35355338, %v18649_v16 }
 0xcda   : > { %v9117_v54 = vpop.permute.xlu0 %9116 }
 0xcdb   : > { %v18859_v13 = vsel %vm20968_vm5, -1e+09, %v8646_v55  ;;  %v8647_v55 = vmul.f32 0.35355338, %v18653_v51  ;;  %vm20993_vm5 = vmmov %vm20893_vm0 }
 0xcdc   : > { %12576 = vmatmul.mubr.msk.f32.gmra.mxu0 %vm20954_vm15, %v18798_v15  ;;  %v8738_v7 = vsel %vm20969_vm3, %v18859_v13, -inf  ;;  %vm20977_vm15 = vmmov %vm20893_vm0 }
 0xcdd   : > { %12578 = vmatprep.mubr.msk.f32.mxu0 %vm20066_vm14, %v19791_v36  ;;  %vm20994_vm3 = vmmov %vm20893_vm0 }
 0xcdf   : > { %v18835_v43 = vpop.eup %13282 }
 0xce0   : > { %12579 = vmatmul.mubr.msk.f32.gmra.mxu0 %vm20957_vm4, %v18805_v8  ;;  %vm20981_vm4 = vmmov %vm20893_vm0 }
 0xce1   : > { %12581 = vmatprep.mubr.msk.f32.mxu0 %vm20066_vm14, %v19791_v36 }
 0xce3   : > { %8724 = vmax.xlane.f32.xlu1 %v8723_v33  ;;  %v18866_v33 = vsel %vm20971_vm10, -1e+09, %v8651_v41  ;;  %vm20996_vm10 = vnez %v20691_v46 }
 0xce4   : > { %12582 = vmatmul.mubr.msk.f32.gmra.mxu0 %vm20959_vm8, %v18817_v52  ;;  %v8753_v16 = vsel %vm20973_vm2, %v18866_v33, -inf  ;;  %vm20984_vm8 = vmmov %vm20893_vm0 }
 0xce5   : > { %12584 = vmatprep.mubr.msk.f32.mxu0 %vm20066_vm14, %v19791_v36  ;;  %vm20997_vm2 = vmmov %vm20893_vm0 }
 0xce8   : > { %12585 = vmatmul.mubr.msk.f32.gmra.mxu0 %vm20893_vm0, %v18823_v20 }
 0xce9   : > { %12587 = vmatprep.mubr.msk.f32.mxu0 %vm20066_vm14, %v19791_v36 }
 0xcec   : > { %12588 = vmatmul.mubr.msk.f32.gmra.mxu0 %vm20960_vm12, %v18829_v48 }
 0xced   : > { %12590 = vmatprep.mubr.msk.f32.mxu0 %vm20066_vm14, %v19791_v36 }
 0xcf0   : > { %12591 = vmatmul.mubr.msk.f32.gmra.mxu0 %vm20961_vm1, %v18835_v43  ;;  %vm20989_vm1 = vmmov %vm20893_vm0 }
 0xcf1   : > { %12642 = vmatprep.mubr.msk.f32.mxu0 %vm20066_vm14, %v19791_v36 }
 0xcf4   : > { %9108 = vrot.lane.b32.xlu1 %v20964_v42, %s13415_s29 }
 0xcf8   : > { %8751 = vmax.xlane.f32.xlu0 %v8750_v56 }
 0xd02   : > { %v18850_v32 = vpop.xlane.xlu1 %8727 }
 0xd06   : > { %v9119_v5 = vpop.permute.xlu1 %9118 }
 0xd07   : > { %12594 = vmatpush3.msra.mxu1 %v9119_v5 }
 0xd08   : > { %12595 = vmatprep.subr.mxu1 %v19791_v36 }
 0xd09   : > { %12596 = vmatpush3.msra.mxu1 %v9117_v54 }
 0xd0a   : > { %12597 = vmatprep.subr.mxu1 %v19791_v36 }
 0xd0b   : > { %v8722_v17 = vpop.xlane.xlu0 %8721 }
 0xd0e   : > { %9258 = vrot.lane.b32.xlu0 %v20966_v1, %s13415_s29  ;;  %v20974_v1 = vld [vmem:[#allocation73_spill] sm:$0xff] }
 0xd0f   : > { %v18872_v42 = vpop.xlane.xlu0 %8733 }
 0xd13   : > { %v9113_v5 = vpop.permute.xlu0 %9112 }
 0xd17   : > { %v9111_v2 = vpop.permute.xlu0 %9110 }
 0xd18   : > { %8739 = vmax.xlane.f32.xlu1 %v8738_v7  ;;  %v18884_v7 = vsel %vm20976_vm9, -1e+09, %v8647_v55  ;;  %v8777_v55 = vsub.f32 %v18627_v39, %v18717_v27  ;;  %v8780_v39 = vsub.f32 %v18731_v25, %v8722_v17  ;;  %v20983_v25 = vld [vmem:[#allocation70_spill] sm:$0xff]  ;;  %vm20999_vm9 = vnez %v20998_v61  ;;  %v21004_v61 = vld [vmem:[#allocation95_spill] sm:$0xff] }
 0xd19   : > { %v8741_v41 = vsel %vm20977_vm15, %v18884_v7, -inf  ;;  %vm21000_vm15 = vmmov %vm20893_vm0 }
 0xd29   : > { %9260 = vrot.lane.b32.xlu1 %v20972_v12, %s13415_s29  ;;  %v20978_v12 = vld [vmem:[#allocation175_spill] sm:$0xff] }
 0xd2a   : > { %vm20979_vm7 = vnez %v20978_v12 }
 0xd2d   : > { %8754 = vmax.xlane.f32.xlu0 %v8753_v16  ;;  %v18891_v16 = vsel %vm20979_vm7, -1e+09, %v8652_v44  ;;  %vm21005_vm7 = vmmov %vm20893_vm0 }
 0xd2e   : > { %v8756_v51 = vsel %vm20981_vm4, %v18891_v16, -inf  ;;  %vm21006_vm4 = vmmov %vm20893_vm0 }
 0xd37   : > { %v18874_v56 = vpop.xlane.xlu1 %8730 }
 0xd3b   : > { %v9115_v54 = vpop.permute.xlu1 %9114 }
 0xd3c   : > { %12598 = vmatpush3.msra.mxu1 %v9115_v54  ;;  %v20980_v54 = vld [vmem:[#allocation82_spill] sm:$0xff] }
 0xd3d   : > { %12599 = vmatprep.subr.mxu1 %v19791_v36 }
 0xd3e   : > { %12600 = vmatpush3.msra.mxu1 %v9113_v5  ;;  %v8775_v5 = vsub.f32 %v18615_v58, %v18709_v45  ;;  %v8814_v58 = vmul.f32 1.442695, %v8777_v55  ;;  %v8778_v45 = vsub.f32 %v18675_v37, %v18746_v40  ;;  %v8820_v37 = vmul.f32 1.442695, %v8780_v39 }
 0xd3f   : > { %12601 = vmatprep.subr.mxu1 %v19791_v36  ;;  %v8654_v39 = vmul.f32 0.35355338, %v18669_v11 }
 0xd40   : > { %12602 = vmatpush3.msra.mxu1 %v9111_v2  ;;  %v8810_v2 = vmul.f32 1.442695, %v8775_v5  ;;  %v8816_v12 = vmul.f32 1.442695, %v8778_v45  ;;  %v20991_v45 = vld [vmem:[#allocation119_spill] sm:$0xff] }
 0xd41   : > { %12603 = vmatprep.subr.mxu1 %v19791_v36 }
 0xd42   : > { %13284 = vpow2.f32 %v8810_v2  ;;  %v20985_v2 = vld [vmem:[#allocation112_spill] sm:$0xff] }
 0xd43   : > { %9254 = vrot.lane.b32.xlu0 %v20974_v1, %s13415_s29  ;;  %v8776_v1 = vsub.f32 %v18621_v21, %v18713_v0  ;;  %v8779_v21 = vsub.f32 %v18703_v3, %v18784_v49  ;;  %v8648_v49 = vmul.f32 0.35355338, %v18657_v57  ;;  %v20988_v57 = vld [vmem:[#allocation84_spill] sm:$0xff] }
 0xd45   : > { %v8812_v60 = vmul.f32 1.442695, %v8776_v1  ;;  %v8818_v5 = vmul.f32 1.442695, %v8779_v21  ;;  %v20995_v21 = vld [vmem:[#allocation90_spill] sm:$0xff] }
 0xd47   : > { %13286 = vpow2.f32 %v8812_v60 }
 0xd48   : > { %v18903_v26 = vpop.xlane.xlu0 %8736  ;;  %13288 = vpow2.f32 %v8814_v58 }
 0xd49   : > { %13290 = vpow2.f32 %v8816_v12 }
 0xd4a   : > { %13292 = vpow2.f32 %v8818_v5 }
 0xd4b   : > { %13294 = vpow2.f32 %v8820_v37 }
 0xd4d   : > { %8742 = vmax.xlane.f32.xlu1 %v8741_v41  ;;  %v18907_v41 = vpop.xlane.xlu0 %8748 }
 0xd51   : > { %v9107_v27 = vpop.permute.xlu0 %9106 }
 0xd5e   : > { %9256 = vrot.lane.b32.xlu1 %v20980_v54, %s13415_s29  ;;  %v18913_v54 = vpop.eup %13284 }
 0xd5f   : > { %v18921_v40 = vpop.eup %13286 }
 0xd62   : > { %8757 = vmax.xlane.f32.xlu0 %v8756_v51  ;;  %v18930_v51 = vpop.eup %13288 }
 0xd63   : > { %v18942_v60 = vpop.eup %13290 }
 0xd64   : > { %v18952_v58 = vpop.eup %13292 }
 0xd6c   : > { %v8725_v44 = vpop.xlane.xlu1 %8724 }
 0xd6d   : > { %v8781_v3 = vsub.f32 %v18809_v59, %v8725_v44  ;;  %v20986_v59 = vld [vmem:[#allocation139_spill] sm:$0xff]  ;;  %v18960_v44 = vpop.eup %13294 }
 0xd6e   : > { %vm20987_vm12 = vnez %v20986_v59 }
 0xd6f   : > { %v8822_v17 = vmul.f32 1.442695, %v8781_v3  ;;  %v18940_v1 = vsel %vm20987_vm12, -1e+09, %v8648_v49  ;;  %v18981_v3 = vsel %vm20996_vm10, -1e+09, %v8654_v39  ;;  %vm21011_vm12 = vmmov %vm20989_vm1 }
 0xd70   : > { %v9109_v0 = vpop.permute.xlu1 %9108  ;;  %v8744_v55 = vsel %vm20990_vm6, %v18940_v1, -inf  ;;  %v8762_v59 = vsel %vm20997_vm2, %v18981_v3, -inf  ;;  %vm21012_vm6 = vmmov %vm20989_vm1 }
 0xd71   : > { %12604 = vmatpush3.msra.mxu1 %v9109_v0  ;;  %13296 = vpow2.f32 %v8822_v17  ;;  %vm21016_vm10 = vmmov %vm20989_vm1 }
 0xd72   : > { %12605 = vmatprep.subr.mxu1 %v19791_v36  ;;  %vm21017_vm2 = vmmov %vm20989_vm1 }
 0xd73   : > { %12606 = vmatpush3.msra.mxu1 %v9107_v27 }
 0xd74   : > { %12608 = vmatmul.mubr.msk.f32.vlgmr.msra.gmra.mxu1 %vm20982_vm11, %v18913_v54  ;;  %12663 = vmatprep.subr.mxu1 %v19791_v36  ;;  %vm21007_vm11 = vmmov %vm20893_vm0 }
 0xd75   : > { %12610 = vmatprep.mubr.msk.f32.mxu1 %vm20066_vm14, %v19791_v36 }
 0xd78   : > { %9250 = vrot.lane.b32.xlu0 %v20983_v25, %s13415_s29  ;;  %12611 = vmatmul.mubr.msk.f32.gmra.mxu1 %vm20984_vm8, %v18921_v40  ;;  %vm21008_vm8 = vmmov %vm20893_vm0 }
 0xd79   : > { %12613 = vmatprep.mubr.msk.f32.mxu1 %vm20066_vm14, %v19791_v36 }
 0xd7c   : > { %9248 = vrot.lane.b32.xlu0 %v20985_v2, %s13415_s29  ;;  %12614 = vmatmul.mubr.msk.f32.gmra.mxu1 %vm20893_vm0, %v18930_v51 }
 0xd7d   : > { %12616 = vmatprep.mubr.msk.f32.mxu1 %vm20066_vm14, %v19791_v36 }
 0xd7e   : > { %v18966_v12 = vpop.eup %13296 }
 0xd80   : > { %9402 = vrot.lane.b32.xlu0 %v20988_v57, %s13415_s29  ;;  %12617 = vmatmul.mubr.msk.f32.gmra.mxu1 %vm20989_vm1, %v18942_v60 }
 0xd81   : > { %12619 = vmatprep.mubr.msk.f32.mxu1 %vm20066_vm14, %v19791_v36  ;;  %v18985_v49 = vpop.xlane.xlu0 %8751 }
 0xd82   : > { %8745 = vmax.xlane.f32.xlu1 %v8744_v55 }
 0xd84   : > { %9400 = vrot.lane.b32.xlu0 %v20991_v45, %s13415_s29  ;;  %12620 = vmatmul.mubr.msk.f32.gmra.mxu1 %vm20992_vm13, %v18952_v58  ;;  %vm21013_vm13 = vmmov %vm20989_vm1 }
 0xd85   : > { %12622 = vmatprep.mubr.msk.f32.mxu1 %vm20066_vm14, %v19791_v36  ;;  %v9259_v45 = vpop.permute.xlu0 %9258 }
 0xd88   : > { %12623 = vmatmul.mubr.msk.f32.gmra.mxu1 %vm20993_vm5, %v18960_v44  ;;  %vm21014_vm5 = vmmov %vm20989_vm1 }
 0xd89   : > { %12625 = vmatprep.mubr.msk.f32.mxu1 %vm20066_vm14, %v19791_v36 }
 0xd8c   : > { %12626 = vmatmul.mubr.msk.f32.gmra.mxu1 %vm20994_vm3, %v18966_v12  ;;  %vm21015_vm3 = vmmov %vm20989_vm1 }
 0xd8d   : > { %12677 = vmatprep.mubr.msk.f32.mxu1 %vm20066_vm14, %v19791_v36 }
 0xd93   : > { %9252 = vrot.lane.b32.xlu1 %v20995_v21, %s13415_s29 }
 0xd98   : > { %v18974_v0 = vpop.f32.mrf.mxu0 }
 0xd9a   : > { %v12574_v5 = vpop.f32.mrf.mxu0 }
 0xd9c   : > { %v18977_v27 = vpop.f32.mrf.mxu0 }
 0xd9e   : > { %v12577_v37 = vpop.f32.mrf.mxu0 }
 0xd9f   : > { %v8653_v37 = vmul.f32 0.35355338, %v18663_v31  ;;  %v21003_v31 = vld [vmem:[#allocation92_spill] sm:$0xff] }
 0xda0   : > { %v18983_v25 = vpop.f32.mrf.mxu0 }
 0xda1   : > { %v18987_v17 = vpop.xlane.xlu1 %8739 }
 0xda2   : > { %v12580_v2 = vpop.f32.mrf.mxu0 }
 0xda3   : > { %8763 = vmax.xlane.f32.xlu0 %v8762_v59 }
 0xda4   : > { %v18991_v57 = vpop.f32.mrf.mxu0 }
 0xda5   : > { %v9261_v11 = vpop.permute.xlu1 %9260 }
 0xda6   : > { %v12583_v55 = vpop.f32.mrf.mxu0  ;;  %12629 = vmatpush3.msra.mxu0 %v9261_v11  ;;  %v19004_v11 = vsel %vm20999_vm9, -1e+09, %v8653_v37  ;;  %vm21018_vm9 = vmmov %vm20989_vm1 }
 0xda7   : > { %12630 = vmatprep.subr.mxu0 %v19791_v36  ;;  %v8759_v55 = vsel %vm21000_vm15, %v19004_v11, -inf  ;;  %vm21019_vm15 = vmmov %vm20989_vm1 }
 0xda8   : > { %v18994_v46 = vpop.f32.mrf.mxu0  ;;  %12631 = vmatpush3.msra.mxu0 %v9259_v45  ;;  %v21001_v45 = vld [vmem:[#allocation124_spill] sm:$0xff] }
 0xda9   : > { %12632 = vmatprep.subr.mxu0 %v19791_v36 }
 0xdaa   : > { %v12586_v21 = vpop.f32.mrf.mxu0 }
 0xdab   : > { %v21002_v21 = vld [vmem:[#allocation78_spill] sm:$0xff] }
 0xdac   : > { %v18997_v5 = vpop.f32.mrf.mxu0 }
 0xdae   : > { %v12589_v39 = vpop.f32.mrf.mxu0 }
 0xdb0   : > { %v19000_v2 = vpop.f32.mrf.mxu0 }
 0xdb2   : > { %v12592_v59 = vpop.f32.mrf.mxu0 }
 0xdb3   : > { %v8783_v59 = vsub.f32 %v18755_v4, %v18874_v56  ;;  %v8789_v4 = vsub.f32 %v18769_v35, %v18907_v41  ;;  %v8879_v56 = vsel %vm21006_vm4, %v18930_v51, 0.0  ;;  %v8891_v35 = vsel %vm21008_vm8, %v18966_v12, 0.0  ;;  %v21009_v51 = vld [vmem:[#allocation146_spill] sm:$0xff]  ;;  %vm21021_vm4 = vmmov %vm20989_vm1 }
 0xdb4   : > { %vm21010_vm0 = vnez %v21009_v51  ;;  %vm21023_vm8 = vmmov %vm20989_vm1 }
 0xdb5   : > { %v8826_v53 = vmul.f32 1.442695, %v8783_v59 }
 0xdb6   : > { %v8755_v39 = vpop.xlane.xlu0 %8754 }
 0xdb7   : > { %8760 = vmax.xlane.f32.xlu1 %v8759_v55  ;;  %13298 = vpow2.f32 %v8826_v53  ;;  %v8791_v59 = vsub.f32 %v18866_v33, %v8755_v39  ;;  %v8885_v53 = vsel %vm21007_vm11, %v18952_v58, 0.0  ;;  %vm21022_vm11 = vmmov %vm20989_vm1 }
 0xdb9   : > { %9394 = vrot.lane.b32.xlu0 %v20704_v14, %s13415_s29  ;;  %v8785_v14 = vsub.f32 %v18762_v10, %v18903_v26  ;;  %v8838_v26 = vmul.f32 1.442695, %v8789_v4 }
 0xdbd   : > { %9392 = vrot.lane.b32.xlu0 %v21001_v45, %s13415_s29  ;;  %v9255_v45 = vpop.permute.xlu0 %9254 }
 0xdc1   : > { %9390 = vrot.lane.b32.xlu0 %v21002_v21, %s13415_s29  ;;  %v8830_v21 = vmul.f32 1.442695, %v8785_v14  ;;  %v8855_v14 = vsel %vm21012_vm6, %v18798_v15, 0.0 }
 0xdc3   : > { %13300 = vpow2.f32 %v8830_v21 }
 0xdc4   : > { %v19039_v41 = vpop.eup %13298 }
 0xdc5   : > { %v8897_v58 = vsel %vm20989_vm1, %v19039_v41, 0.0 }
 0xdc8   : > { %9398 = vrot.lane.b32.xlu1 %v21003_v31, %s13415_s29 }
 0xdcc   : > { %9396 = vrot.lane.b32.xlu1 %v21004_v61, %s13415_s29  ;;  %v8852_v61 = vsel %vm21005_vm7, %v18788_v6, 0.0  ;;  %v8842_v6 = vmul.f32 1.442695, %v8791_v59  ;;  %vm21020_vm7 = vmmov %vm20989_vm1 }
 0xdd0   : > { %v19049_v39 = vpop.eup %13300 }
 0xdd6   : > { %v8743_v37 = vpop.xlane.xlu1 %8742 }
 0xdd7   : > { %v8787_v31 = vsub.f32 %v18884_v7, %v8743_v37  ;;  %v8655_v7 = vmul.f32 0.35355338, %v18677_v29 }
 0xdd9   : > { %v8834_v10 = vmul.f32 1.442695, %v8787_v31 }
 0xdda   : > { %v9257_v55 = vpop.permute.xlu1 %9256 }
 0xddb   : > { %12633 = vmatpush3.msra.mxu0 %v9257_v55  ;;  %13302 = vpow2.f32 %v8834_v10  ;;  %v19043_v55 = vsel %vm21010_vm0, -1e+09, %v8655_v7  ;;  %vm21024_vm0 = vmmov %vm20989_vm1 }
 0xddc   : > { %12634 = vmatprep.subr.mxu0 %v19791_v36  ;;  %13304 = vpow2.f32 %v8838_v26  ;;  %v8765_v29 = vsel %vm21011_vm12, %v19043_v55, -inf  ;;  %vm21025_vm12 = vmmov %vm21024_vm0 }
 0xddd   : > { %12635 = vmatpush3.msra.mxu0 %v9255_v45  ;;  %13306 = vpow2.f32 %v8842_v6  ;;  %v8903_v45 = vsel %vm21013_vm13, %v19049_v39, 0.0  ;;  %v8867_v6 = vsel %vm21020_vm7, %v18829_v48, 0.0  ;;  %vm21026_vm1 = vmmov %vm21024_vm0 }
 0xdde   : > { %12636 = vmatprep.subr.mxu0 %v19791_v36  ;;  %vm21027_vm6 = vmmov %vm21024_vm0 }
 0xddf   : > { %vm21028_vm13 = vmmov %vm21024_vm0 }
 0xde0   : > { %8853 = vadd.xlane.f32.xlu0 %v8852_v61  ;;  %v8858_v61 = vsel %vm21014_vm5, %v18805_v8, 0.0  ;;  %v8782_v8 = vsub.f32 %v18724_v28, %v18850_v32  ;;  %v8870_v28 = vsel %vm21021_vm4, %v18835_v43, 0.0  ;;  %v352_v43 = vld [vmem:[%s19405_s4 + $0x78] sm:$0xff]  ;;  %vm21029_vm5 = vmmov %vm21024_vm0 }
 0xde1   : > { %vm21035_vm7 = vmmov %vm21024_vm0 }
 0xde2   : > { %vm21036_vm4 = vmmov %vm21024_vm0 }
 0xde4   : > { %8880 = vadd.xlane.f32.xlu0 %v8879_v56  ;;  %v8861_v56 = vsel %vm21016_vm10, %v18817_v52, 0.0  ;;  %v8824_v52 = vmul.f32 1.442695, %v8782_v8  ;;  %vm21031_vm10 = vmmov %vm21024_vm0 }
 0xde6   : > { %13308 = vpow2.f32 %v8824_v52 }
 0xde8   : > { %8886 = vadd.xlane.f32.xlu0 %v8885_v53  ;;  %v19055_v21 = vpop.eup %13302  ;;  %v8864_v53 = vsel %vm21018_vm9, %v18823_v20, 0.0  ;;  %v8786_v20 = vsub.f32 %v18859_v13, %v18987_v17  ;;  %v8790_v13 = vsub.f32 %v18844_v62, %v18985_v49  ;;  %v8888_v49 = vsel %vm21026_vm1, %v18960_v44, 0.0  ;;  %vm21033_vm9 = vmmov %vm21024_vm0 }
 0xde9   : > { %v8909_v4 = vsel %vm21015_vm3, %v19055_v21, 0.0  ;;  %v19061_v10 = vpop.eup %13304  ;;  %vm21030_vm3 = vmmov %vm21024_vm0 }
 0xdea   : > { %v8915_v26 = vsel %vm21017_vm2, %v19061_v10, 0.0  ;;  %v19068_v59 = vpop.eup %13306  ;;  %v8832_v48 = vmul.f32 1.442695, %v8786_v20  ;;  %vm21032_vm2 = vmmov %vm21024_vm0 }
 0xdeb   : > { %v19035_v37 = vpop.xlane.xlu0 %8757  ;;  %v8921_v7 = vsel %vm21019_vm15, %v19068_v59, 0.0  ;;  %vm21034_vm15 = vmmov %vm21024_vm0 }
 0xdec   : > { %8892 = vadd.xlane.f32.xlu0 %v8891_v35  ;;  %v8784_v35 = vsub.f32 %v18738_v9, %v18872_v42  ;;  %v8876_v9 = vsel %vm21023_vm8, %v18921_v40, 0.0  ;;  %v8792_v62 = vsub.f32 %v18891_v16, %v19035_v37  ;;  %vm21038_vm8 = vmmov %vm21024_vm0 }
 0xded   : > { %vm21040_vm1 = vmmov %vm21024_vm0 }
 0xdee   : > { %v8828_v32 = vmul.f32 1.442695, %v8784_v35 }
 0xdef   : > { %v9251_v33 = vpop.permute.xlu0 %9250 }
 0xdf0   : > { %8766 = vmax.xlane.f32.xlu1 %v8765_v29  ;;  %8898 = vadd.xlane.f32.xlu0 %v8897_v58  ;;  %v8873_v29 = vsel %vm21022_vm11, %v18913_v54, 0.0  ;;  %13310 = vpow2.f32 %v8828_v32  ;;  %v8882_v54 = vsel %vm21024_vm0, %v18942_v60, 0.0  ;;  %v8844_v60 = vmul.f32 1.442695, %v8792_v62  ;;  %vm21037_vm11 = vmmov %vm21024_vm0 }
 0xdf1   : > { %13312 = vpow2.f32 %v8832_v48 }
 0xdf3   : > { %v9249_v12 = vpop.permute.xlu0 %9248  ;;  %v13309_v40 = vpop.eup %13308 }
 0xdf4   : > { %8856 = vadd.xlane.f32.xlu1 %v8855_v14  ;;  %8904 = vadd.xlane.f32.xlu0 %v8903_v45  ;;  %v8894_v17 = vsel %vm21028_vm13, %v13309_v40, 0.0  ;;  %vm21042_vm13 = vmmov %vm21024_vm0 }
 0xdf7   : > { %v9403_v31 = vpop.permute.xlu0 %9402 }
 0xdf8   : > { %8859 = vadd.xlane.f32.xlu1 %v8858_v61  ;;  %8910 = vadd.xlane.f32.xlu0 %v8909_v4 }
 0xdf9   : > { %12664 = vmatpush3.msra.mxu1 %v9403_v31 }
 0xdfa   : > { %12665 = vmatprep.subr.mxu1 %v19791_v36 }
 0xdfb   : > { %v9401_v15 = vpop.permute.xlu0 %9400 }
 0xdfc   : > { %8862 = vadd.xlane.f32.xlu1 %v8861_v56  ;;  %8916 = vadd.xlane.f32.xlu0 %v8915_v26 }
 0xdfd   : > { %12666 = vmatpush3.msra.mxu1 %v9401_v15 }
 0xdfe   : > { %12667 = vmatprep.subr.mxu1 %v19791_v36 }
 0xe00   : > { %8865 = vadd.xlane.f32.xlu1 %v8864_v53  ;;  %8922 = vadd.xlane.f32.xlu0 %v8921_v7 }
 0xe04   : > { %8868 = vadd.xlane.f32.xlu1 %v8867_v6 }
 0xe08   : > { %8871 = vadd.xlane.f32.xlu1 %v8870_v28 }
 0xe0b   : > { %v8746_v51 = vpop.xlane.xlu1 %8745 }
 0xe0c   : > { %8874 = vadd.xlane.f32.xlu1 %v8873_v29  ;;  %v8788_v58 = vsub.f32 %v18940_v1, %v8746_v51  ;;  %v8840_v1 = vmul.f32 1.442695, %v8790_v13 }
 0xe0e   : > { %v8836_v42 = vmul.f32 1.442695, %v8788_v58 }
 0xe0f   : > { %v9253_v14 = vpop.permute.xlu1 %9252 }
 0xe10   : > { %8877 = vadd.xlane.f32.xlu1 %v8876_v9  ;;  %12637 = vmatpush3.msra.mxu0 %v9253_v14  ;;  %13314 = vpow2.f32 %v8836_v42 }
 0xe11   : > { %12638 = vmatprep.subr.mxu0 %v19791_v36  ;;  %13316 = vpow2.f32 %v8840_v1 }
 0xe12   : > { %12639 = vmatpush3.msra.mxu0 %v9251_v33  ;;  %v13311_v33 = vpop.eup %13310  ;;  %13318 = vpow2.f32 %v8844_v60 }
 0xe13   : > { %12640 = vmatprep.subr.mxu0 %v19791_v36  ;;  %v8900_v16 = vsel %vm21030_vm3, %v13311_v33, 0.0  ;;  %v13313_v44 = vpop.eup %13312  ;;  %vm21044_vm3 = vmmov %vm21024_vm0 }
 0xe14   : > { %8883 = vadd.xlane.f32.xlu1 %v8882_v54  ;;  %12641 = vmatpush3.msra.mxu0 %v9249_v12  ;;  %v8906_v37 = vsel %vm21032_vm2, %v13313_v44, 0.0  ;;  %vm21046_vm2 = vcmask 64512  }
 0xe15   : > { %12643 = vmatmul.mubr.msk.f32.vlgmr.msra.gmra.mxu0 %vm21025_vm12, %v13309_v40  ;;  %12698 = vmatprep.subr.mxu0 %v352_v43  ;;  %vm21039_vm12 = vmmov %vm21024_vm0 }
 0xe16   : > { %12645 = vmatprep.mubr.msk.f32.mxu0 %vm20066_vm14, %v19791_v36  ;;  %12699 = vmatpush3.msra.mxu0 %v352_v43 }
 0xe18   : > { %8889 = vadd.xlane.f32.xlu1 %v8888_v49 }
 0xe19   : > { %12646 = vmatmul.mubr.msk.f32.gmra.mxu0 %vm21027_vm6, %v19039_v41  ;;  %vm21041_vm6 = vmmov %vm21024_vm0 }
 0xe1a   : > { %12648 = vmatprep.mubr.msk.f32.mxu0 %vm20066_vm14, %v19791_v36 }
 0xe1c   : > { %8895 = vadd.xlane.f32.xlu1 %v8894_v17 }
 0xe1d   : > { %12649 = vmatmul.mubr.msk.f32.gmra.mxu0 %vm21029_vm5, %v13311_v33  ;;  %v13315_v41 = vpop.eup %13314  ;;  %vm21043_vm5 = vmmov %vm21024_vm0 }
 0xe1e   : > { %12651 = vmatprep.mubr.msk.f32.mxu0 %vm20066_vm14, %v19791_v36  ;;  %v8912_v12 = vsel %vm21034_vm15, %v13315_v41, 0.0  ;;  %v13317_v45 = vpop.eup %13316  ;;  %vm21049_vm15 = vmmov %vm21046_vm2 }
 0xe1f   : > { %v13319_v31 = vpop.eup %13318 }
 0xe20   : > { %8901 = vadd.xlane.f32.xlu1 %v8900_v16  ;;  %v8924_v56 = vsel %vm21038_vm8, %v13319_v31, 0.0  ;;  %vm21053_vm8 = vmmov %vm21046_vm2 }
 0xe21   : > { %12652 = vmatmul.mubr.msk.f32.gmra.mxu0 %vm21031_vm10, %v19049_v39  ;;  %v8918_v39 = vsel %vm21036_vm4, %v13317_v45, 0.0  ;;  %vm21045_vm10 = vmmov %vm21024_vm0 }
 0xe22   : > { %12654 = vmatprep.mubr.msk.f32.mxu0 %vm20066_vm14, %v19791_v36  ;;  %vm21051_vm4 = vmmov %vm21046_vm2 }
 0xe24   : > { %8907 = vadd.xlane.f32.xlu1 %v8906_v37 }
 0xe25   : > { %12655 = vmatmul.mubr.msk.f32.gmra.mxu0 %vm21033_vm9, %v13313_v44  ;;  %vm21048_vm9 = vmmov %vm21024_vm0 }
 0xe26   : > { %12657 = vmatprep.mubr.msk.f32.mxu0 %vm20066_vm14, %v19791_v36 }
 0xe28   : > { %8913 = vadd.xlane.f32.xlu1 %v8912_v12 }
 0xe29   : > { %12658 = vmatmul.mubr.msk.f32.gmra.mxu0 %vm21035_vm7, %v19055_v21  ;;  %vm21050_vm7 = vmmov %vm21046_vm2 }
 0xe2a   : > { %12660 = vmatprep.mubr.msk.f32.mxu0 %vm20066_vm14, %v19791_v36 }
 0xe2c   : > { %8919 = vadd.xlane.f32.xlu1 %v8918_v39  ;;  %v8764_v61 = vpop.xlane.xlu0 %8763 }
 0xe2d   : > { %v8794_v4 = vsub.f32 %v18981_v3, %v8764_v61  ;;  %12661 = vmatmul.mubr.msk.f32.gmra.mxu0 %vm21037_vm11, %v13315_v41  ;;  %vm21052_vm11 = vmmov %vm21046_vm2 }
 0xe2f   : > { %v8848_v15 = vmul.f32 1.442695, %v8794_v4 }
 0xe30   : > { %8925 = vadd.xlane.f32.xlu1 %v8924_v56  ;;  %v9395_v32 = vpop.permute.xlu0 %9394 }
 0xe31   : > { %13320 = vpow2.f32 %v8848_v15 }
 0xe34   : > { %v19132_v26 = vpop.f32.mrf.mxu1  ;;  %v9393_v9 = vpop.permute.xlu0 %9392 }
 0xe36   : > { %v12609_v21 = vpop.f32.mrf.mxu1 }
 0xe38   : > { %v19134_v8 = vpop.f32.mrf.mxu1  ;;  %v9391_v54 = vpop.permute.xlu0 %9390 }
 0xe3a   : > { %v12612_v53 = vpop.f32.mrf.mxu1 }
 0xe3c   : > { %v19136_v7 = vpop.f32.mrf.mxu1 }
 0xe3e   : > { %v13321_v52 = vpop.eup %13320  ;;  %v12615_v6 = vpop.f32.mrf.mxu1 }
 0xe3f   : > { %v8930_v35 = vsel %vm21024_vm0, %v13321_v52, 0.0 }
 0xe40   : > { %v8761_v3 = vpop.xlane.xlu1 %8760  ;;  %v19139_v28 = vpop.f32.mrf.mxu1  ;;  %8931 = vadd.xlane.f32.xlu1 %v8930_v35 }
 0xe41   : > { %v8793_v20 = vsub.f32 %v19004_v11, %v8761_v3 }
 0xe42   : > { %v12618_v51 = vpop.f32.mrf.mxu1 }
 0xe43   : > { %v8846_v29 = vmul.f32 1.442695, %v8793_v20 }
 0xe44   : > { %v9399_v48 = vpop.permute.xlu1 %9398  ;;  %v19142_v58 = vpop.f32.mrf.mxu1 }
 0xe45   : > { %13322 = vpow2.f32 %v8846_v29  ;;  %12668 = vmatpush3.msra.mxu1 %v9399_v48 }
 0xe46   : > { %v12621_v14 = vpop.f32.mrf.mxu1  ;;  %12669 = vmatprep.subr.mxu1 %v19791_v36 }
 0xe48   : > { %v9397_v43 = vpop.permute.xlu1 %9396  ;;  %v19145_v13 = vpop.f32.mrf.mxu1 }
 0xe49   : > { %12670 = vmatpush3.msra.mxu1 %v9397_v43 }
 0xe4a   : > { %v12624_v42 = vpop.f32.mrf.mxu1  ;;  %12671 = vmatprep.subr.mxu1 %v19791_v36 }
 0xe4b   : > { %12672 = vmatpush3.msra.mxu1 %v9395_v32 }
 0xe4c   : > { %v19148_v11 = vpop.f32.mrf.mxu1  ;;  %12673 = vmatprep.subr.mxu1 %v19791_v36 }
 0xe4d   : > { %12674 = vmatpush3.msra.mxu1 %v9393_v9 }
 0xe4e   : > { %v12627_v40 = vpop.f32.mrf.mxu1  ;;  %12675 = vmatprep.subr.mxu1 %v19791_v36 }
 0xe4f   : > { %12676 = vmatpush3.msra.mxu1 %v9391_v54 }
 0xe50   : > { %12678 = vmatmul.mubr.msk.f32.vlgmr.msra.gmra.mxu1 %vm21039_vm12, %v19061_v10 }
 0xe51   : > { %12680 = vmatprep.mubr.msk.f32.mxu1 %vm20066_vm14, %v19791_v36 }
 0xe52   : > { %v13323_v1 = vpop.eup %13322 }
 0xe53   : > { %v8927_v62 = vsel %vm21040_vm1, %v13323_v1, 0.0 }
 0xe54   : > { %8928 = vadd.xlane.f32.xlu0 %v8927_v62  ;;  %12681 = vmatmul.mubr.msk.f32.gmra.mxu1 %vm21041_vm6, %v13317_v45 }
 0xe55   : > { %12683 = vmatprep.mubr.msk.f32.mxu1 %vm20066_vm14, %v19791_v36 }
 0xe58   : > { %12684 = vmatmul.mubr.msk.f32.gmra.mxu1 %vm21042_vm13, %v19068_v59 }
 0xe59   : > { %12686 = vmatprep.mubr.msk.f32.mxu1 %vm20066_vm14, %v19791_v36 }
 0xe5c   : > { %12687 = vmatmul.mubr.msk.f32.gmra.mxu1 %vm21043_vm5, %v13319_v31 }
 0xe5d   : > { %12689 = vmatprep.mubr.msk.f32.mxu1 %vm20066_vm14, %v19791_v36 }
 0xe60   : > { %12690 = vmatmul.mubr.msk.f32.gmra.mxu1 %vm21044_vm3, %v13323_v1 }
 0xe61   : > { %12692 = vmatprep.mubr.msk.f32.mxu1 %vm20066_vm14, %v19791_v36 }
 0xe64   : > { %12693 = vmatmul.mubr.msk.f32.gmra.mxu1 %vm21045_vm10, %v13321_v52 }
 0xe65   : > { %12695 = vmatprep.mubr.msk.f32.mxu1 %vm20066_vm14, %v19791_v36  ;;  %vm21047_vm14 = vmmov %vm21024_vm0 }
 0xe66   : > { %vm21054_vm0 = vmmov %vm21046_vm2 }
 0xe67   : > { %vm21055_vm12 = vmmov %vm21054_vm0 }
 0xe68   : > { %vm21056_vm1 = vmmov %vm21054_vm0 }
 0xe69   : > { %v8854_v10 = vpop.xlane.xlu0 %8853  ;;  %vm21057_vm6 = vmmov %vm21054_vm0 }
 0xe6a   : > { %13324 = vrcp.f32 %v8854_v10  ;;  %vm21058_vm13 = vmmov %vm21054_vm0 }
 0xe6b   : > { %vm21059_vm5 = vmmov %vm21054_vm0 }
 0xe6c   : > { %vm21060_vm3 = vmmov %vm21054_vm0 }
 0xe6d   : > { %v8881_v4 = vpop.xlane.xlu0 %8880  ;;  %vm21061_vm10 = vmmov %vm21054_vm0 }
 0xe71   : > { %v8887_v53 = vpop.xlane.xlu0 %8886 }
 0xe75   : > { %v8893_v32 = vpop.xlane.xlu0 %8892 }
 0xe77   : > { %v13325_v59 = vpop.eup %13324 }
 0xe78   : > { %v9532_v49 = vmul.f32 %v13325_v59, %v18974_v0 }
 0xe79   : > { %v8767_v60 = vpop.xlane.xlu1 %8766  ;;  %v8899_v62 = vpop.xlane.xlu0 %8898 }
 0xe7a   : > { %v8795_v17 = vsub.f32 %v19043_v55, %v8767_v60  ;;  %12700 = vmatprep.mubr.msk.f32.mxu0 %vm21046_vm2, %v9532_v49  ;;  %vm21062_vm2 = vmmov %vm21054_vm0 }
 0xe7c   : > { %v8850_v33 = vmul.f32 1.442695, %v8795_v17 }
 0xe7d   : > { %v8857_v16 = vpop.xlane.xlu1 %8856 }
 0xe7e   : > { %13326 = vpow2.f32 %v8850_v33 }
 0xe7f   : > { %13328 = vrcp.f32 %v8857_v16 }
 0xe81   : > { %v8860_v44 = vpop.xlane.xlu1 %8859 }
 0xe82   : > { %13330 = vrcp.f32 %v8860_v44 }
 0xe85   : > { %v8863_v37 = vpop.xlane.xlu1 %8862 }
 0xe86   : > { %13332 = vrcp.f32 %v8863_v37 }
 0xe89   : > { %v8866_v41 = vpop.xlane.xlu1 %8865 }
 0xe8a   : > { %13334 = vrcp.f32 %v8866_v41 }
 0xe8b   : > { %v13327_v36 = vpop.eup %13326 }
 0xe8c   : > { %v13329_v12 = vpop.eup %13328  ;;  %12696 = vmatmul.mubr.msk.f32.gmra.mxu1 %vm21047_vm14, %v13327_v36  ;;  %v8933_v0 = vsel %vm21048_vm9, %v13327_v36, 0.0  ;;  %vm21063_vm14 = vmmov %vm21054_vm0 }
 0xe8d   : > { %v9533_v55 = vmul.f32 %v13329_v12, %v18977_v27  ;;  %v8869_v45 = vpop.xlane.xlu1 %8868  ;;  %8934 = vadd.xlane.f32.xlu0 %v8933_v0  ;;  %vm21064_vm9 = vmmov %vm21054_vm0 }
 0xe8e   : > { %13336 = vrcp.f32 %v8869_v45 }
 0xe8f   : > { %v13331_v39 = vpop.eup %13330  ;;  %12701 = vmatmul.mubr.msk.f32.vlgmr.msra.gmra.mxu0 %vm21049_vm15, %v9533_v55  ;;  %vm21065_vm15 = vmmov %vm21054_vm0 }
 0xe90   : > { %v9534_v31 = vmul.f32 %v13331_v39, %v18983_v25 }
 0xe91   : > { %v8872_v61 = vpop.xlane.xlu1 %8871 }
 0xe92   : > { %13338 = vrcp.f32 %v8872_v61  ;;  %12703 = vmatprep.mubr.msk.f32.mxu0 %vm21050_vm7, %v9534_v31  ;;  %vm21066_vm7 = vmmov %vm21054_vm0 }
 0xe93   : > { %v13333_v15 = vpop.eup %13332 }
 0xe94   : > { %v9535_v56 = vmul.f32 %v13333_v15, %v18991_v57 }
 0xe95   : > { %v8875_v21 = vpop.xlane.xlu1 %8874 }
 0xe96   : > { %13340 = vrcp.f32 %v8875_v21  ;;  %12704 = vmatmul.mubr.msk.f32.gmra.mxu0 %vm21051_vm4, %v9535_v56  ;;  %vm21067_vm4 = vmmov %vm21054_vm0 }
 0xe97   : > { %v13335_v27 = vpop.eup %13334  ;;  %13342 = vrcp.f32 %v8881_v4 }
 0xe98   : > { %v9536_v52 = vmul.f32 %v13335_v27, %v18994_v46 }
 0xe99   : > { %v8878_v6 = vpop.xlane.xlu1 %8877 }
 0xe9a   : > { %13344 = vrcp.f32 %v8878_v6  ;;  %12706 = vmatprep.mubr.msk.f32.mxu0 %vm21052_vm11, %v9536_v52  ;;  %vm21068_vm11 = vmmov %vm21054_vm0 }
 0xe9b   : > { %v13337_v25 = vpop.eup %13336  ;;  %13346 = vrcp.f32 %v8887_v53 }
 0xe9c   : > { %v9537_v35 = vmul.f32 %v13337_v25, %v18997_v5 }
 0xe9d   : > { %v8884_v3 = vpop.xlane.xlu1 %8883 }
 0xe9e   : > { %13348 = vrcp.f32 %v8884_v3  ;;  %12707 = vmatmul.mubr.msk.f32.gmra.mxu0 %vm21053_vm8, %v9537_v35  ;;  %vm21069_vm8 = vmmov %vm21054_vm0 }
 0xe9f   : > { %v13339_v57 = vpop.eup %13338  ;;  %13350 = vrcp.f32 %v8893_v32 }
 0xea0   : > { %v9538_v20 = vmul.f32 %v13339_v57, %v19000_v2 }
 0xea1   : > { %v8890_v51 = vpop.xlane.xlu1 %8889 }
 0xea2   : > { %13352 = vrcp.f32 %v8890_v51  ;;  %12709 = vmatprep.mubr.msk.f32.mxu0 %vm21054_vm0, %v9538_v20 }
 0xea3   : > { %v13341_v46 = vpop.eup %13340 }
 0xea4   : > { %v9539_v29 = vmul.f32 %v13341_v46, %v19132_v26  ;;  %v13343_v48 = vpop.eup %13342 }
 0xea5   : > { %v9541_v9 = vmul.f32 %v13343_v48, %v19136_v7  ;;  %v8896_v1 = vpop.xlane.xlu1 %8895 }
 0xea6   : > { %12710 = vmatmul.mubr.msk.f32.gmra.mxu0 %vm21055_vm12, %v9539_v29  ;;  %13354 = vrcp.f32 %v8896_v1  ;;  %vm21070_vm12 = vmmov %vm21054_vm0 }
 0xea7   : > { %v13345_v5 = vpop.eup %13344  ;;  %13356 = vrcp.f32 %v8899_v62 }
 0xea8   : > { %v9540_v14 = vmul.f32 %v13345_v5, %v19134_v8  ;;  %v13347_v43 = vpop.eup %13346 }
 0xea9   : > { %v9543_v54 = vmul.f32 %v13347_v43, %v19142_v58  ;;  %v8905_v58 = vpop.xlane.xlu0 %8904 }
 0xeaa   : > { %12712 = vmatprep.mubr.msk.f32.mxu0 %vm21056_vm1, %v9540_v14  ;;  %vm21071_vm1 = vmmov %vm21054_vm0 }
 0xeab   : > { %v13349_v2 = vpop.eup %13348  ;;  %12713 = vmatmul.mubr.msk.f32.gmra.mxu0 %vm21057_vm6, %v9541_v9  ;;  %vm21072_vm6 = vmmov %vm21054_vm0 }
 0xeac   : > { %v9542_v42 = vmul.f32 %v13349_v2, %v19139_v28  ;;  %v13351_v40 = vpop.eup %13350  ;;  %v8902_v28 = vpop.xlane.xlu1 %8901 }
 0xead   : > { %v9545_v7 = vmul.f32 %v13351_v40, %v19148_v11  ;;  %13358 = vrcp.f32 %v8902_v28  ;;  %v8911_v11 = vpop.xlane.xlu0 %8910 }
 0xeae   : > { %12715 = vmatprep.mubr.msk.f32.mxu0 %vm21058_vm13, %v9542_v42  ;;  %13360 = vrcp.f32 %v8905_v58  ;;  %vm21073_vm13 = vmmov %vm21054_vm0 }
 0xeaf   : > { %v13353_v26 = vpop.eup %13352  ;;  %12716 = vmatmul.mubr.msk.f32.gmra.mxu0 %vm21059_vm5, %v9543_v54  ;;  %vm21077_vm5 = vmmov %vm21054_vm0 }
 0xeb0   : > { %v9544_v8 = vmul.f32 %v13353_v26, %v19145_v13  ;;  %v8908_v59 = vpop.xlane.xlu1 %8907 }
 0xeb1   : > { %13362 = vrcp.f32 %v8908_v59  ;;  %v8917_v32 = vpop.xlane.xlu0 %8916 }
 0xeb2   : > { %12718 = vmatprep.mubr.msk.f32.mxu0 %vm21060_vm3, %v9544_v8  ;;  %13364 = vrcp.f32 %v8911_v11  ;;  %vm21080_vm3 = vcmask 261120  }
 0xeb3   : > { %12719 = vmatmul.mubr.msk.f32.gmra.mxu0 %vm21061_vm10, %v9545_v7  ;;  %v13355_v10 = vpop.eup %13354  ;;  %vm21081_vm10 = vmmov %vm21080_vm3 }
 0xeb4   : > { %v13357_v13 = vpop.eup %13356  ;;  %v8914_v41 = vpop.xlane.xlu1 %8913 }
 0xeb5   : > { %13366 = vrcp.f32 %v8914_v41  ;;  %v8923_v20 = vpop.xlane.xlu0 %8922  ;;  %v21074_v41 = vld [vmem:[#allocation8_spill] sm:$0xff] }
 0xeb6   : > { %13368 = vrcp.f32 %v8917_v32 }
 0xeb8   : > { %v8920_v57 = vpop.xlane.xlu1 %8919 }
 0xeb9   : > { %13370 = vrcp.f32 %v8920_v57 }
 0xeba   : > { %v13359_v37 = vpop.eup %13358  ;;  %13372 = vrcp.f32 %v8923_v20  ;;  %v9880_v20 = vld [vmem:[%s13468_s27 + $0x18] sm:$0xff] }
 0xebb   : > { %v13361_v55 = vpop.eup %13360 }
 0xebc   : > { %v8926_v51 = vpop.xlane.xlu1 %8925 }
 0xebd   : > { %13374 = vrcp.f32 %v8926_v51 }
 0xebe   : > { %v13363_v61 = vpop.eup %13362 }
 0xebf   : > { %v13365_v21 = vpop.eup %13364 }
 0xec2   : > { %v13367_v6 = vpop.eup %13366 }
 0xec3   : > { %v13369_v46 = vpop.eup %13368 }
 0xec6   : > { %v13371_v9 = vpop.eup %13370 }
 0xec7   : > { %v13373_v40 = vpop.eup %13372 }
 0xec9   : > { %v8932_v43 = vpop.xlane.xlu1 %8931 }
 0xeca   : > { %v13375_v1 = vpop.eup %13374 }
 0xed5   : > { %v9356_v49 = vpop.f32.mrf.mxu0 }
 0xed6   : > { %v9546_v60 = vmul.f32 %v13355_v10, %v9356_v49 }
 0xed7   : > { %v12644_v17 = vpop.f32.mrf.mxu0 }
 0xed8   : > { %12721 = vmatprep.mubr.msk.f32.mxu0 %vm21062_vm2, %v9546_v60  ;;  %vm21084_vm2 = vmmov %vm21080_vm3 }
 0xed9   : > { %v9361_v33 = vpop.f32.mrf.mxu0 }
 0xeda   : > { %v9547_v16 = vmul.f32 %v13357_v13, %v9361_v33 }
 0xedb   : > { %v12647_v44 = vpop.f32.mrf.mxu0 }
 0xedc   : > { %12722 = vmatmul.mubr.msk.f32.gmra.mxu0 %vm21063_vm14, %v9547_v16  ;;  %vm21085_vm14 = vmmov %vm21084_vm2 }
 0xedd   : > { %v9366_v36 = vpop.f32.mrf.mxu0  ;;  %v8929_v29 = vpop.xlane.xlu0 %8928 }
 0xede   : > { %v9548_v12 = vmul.f32 %v13359_v37, %v9366_v36  ;;  %13376 = vrcp.f32 %v8929_v29  ;;  %v9935_v36 = vsub.s32 3, %v21074_v41  ;;  %v21090_v41 = vld [vmem:[#allocation117_spill] sm:$0xff] }
 0xedf   : > { %v12650_v0 = vpop.f32.mrf.mxu0  ;;  %13378 = vrcp.f32 %v8932_v43 }
 0xee0   : > { %12724 = vmatprep.mubr.msk.f32.mxu0 %vm21064_vm9, %v9548_v12  ;;  %v21075_v0 = vld [vmem:[#allocation98_spill] sm:$0xff]  ;;  %vm21088_vm9 = vmmov %vm21084_vm2 }
 0xee1   : > { %v9371_v45 = vpop.f32.mrf.mxu0 }
 0xee2   : > { %v9549_v39 = vmul.f32 %v13361_v55, %v9371_v45  ;;  %v21076_v55 = vld [vmem:[#allocation144_spill] sm:$0xff] }
 0xee3   : > { %v12653_v31 = vpop.f32.mrf.mxu0  ;;  %v5993_v45 = vadd.f32 %v21076_v55, %v21075_v0 }
 0xee4   : > { %12725 = vmatmul.mubr.msk.f32.gmra.mxu0 %vm21065_vm15, %v9549_v39  ;;  %vm21089_vm15 = vmmov %vm21084_vm2 }
 0xee5   : > { %v9376_v4 = vpop.f32.mrf.mxu0 }
 0xee6   : > { %v9550_v15 = vmul.f32 %v13363_v61, %v9376_v4  ;;  %v9878_v61 = vld [vmem:[%s13468_s27 + $0x8] sm:$0xff]  ;;  %v7976_v4 = vadd.f32 %v18300_v19, %v5993_v45 }
 0xee7   : > { %v12656_v56 = vpop.f32.mrf.mxu0 }
 0xee8   : > { %12727 = vmatprep.mubr.msk.f32.mxu0 %vm21066_vm7, %v9550_v15  ;;  %v13401_v56 = vld [vmem:[%s19406_s5] sm:$0xf]  ;;  %vm21092_vm7 = vmmov %vm21084_vm2 }
 0xee9   : > { %v9381_v27 = vpop.f32.mrf.mxu0 }
 0xeea   : > { %v9551_v53 = vmul.f32 %v13365_v21, %v9381_v27  ;;  %v19227_v21 = vrot.slane %v13401_v56, %v9935_v36  ;;  %v21091_v36 = vld [vmem:[#allocation125_spill] sm:$0xff] }
 0xeeb   : > { %v12659_v52 = vpop.f32.mrf.mxu0  ;;  %v13377_v10 = vpop.eup %13376  ;;  %v21094_v56 = vld [vmem:[#allocation137_spill] sm:$0xff] }
 0xeec   : > { %12728 = vmatmul.mubr.msk.f32.gmra.mxu0 %vm21067_vm4, %v9551_v53  ;;  %v13379_v17 = vpop.eup %13378  ;;  %v9877_v53 = vld [vmem:[%s13468_s27] sm:$0xff]  ;;  %vm21095_vm4 = vmmov %vm21084_vm2 }
 0xeed   : > { %v9386_v25 = vpop.f32.mrf.mxu0 }
 0xeee   : > { %v9552_v35 = vmul.f32 %v13367_v6, %v9386_v25  ;;  %v21078_v25 = vld [vmem:[#allocation99_spill] sm:$0xff] }
 0xeef   : > { %v12662_v3 = vpop.f32.mrf.mxu0 }
 0xef0   : > { %12730 = vmatprep.mubr.msk.f32.mxu0 %vm21068_vm11, %v9552_v35  ;;  %v21079_v35 = vld [vmem:[#allocation126_spill] sm:$0xff]  ;;  %vm21099_vm11 = vmmov %vm21084_vm2 }
 0xef1   : > { %v6003_v3 = vadd.f32 %v21079_v35, %v21078_v25  ;;  %v21096_v25 = vld [vmem:[#allocation197_spill] sm:$0xff] }
 0xef3   : > { %v7978_v51 = vadd.f32 %v18309_v34, %v6003_v3 }
 0xf10   : > { %v9498_v48 = vpop.f32.mrf.mxu1 }
 0xf11   : > { %v9553_v5 = vmul.f32 %v13369_v46, %v9498_v48  ;;  %v9879_v48 = vld [vmem:[%s13468_s27 + $0x10] sm:$0xff] }
 0xf12   : > { %v12679_v14 = vpop.f32.mrf.mxu1 }
 0xf13   : > { %12731 = vmatmul.mubr.msk.f32.gmra.mxu0 %vm21069_vm8, %v9553_v5  ;;  %vm21101_vm8 = vmmov %vm21084_vm2 }
 0xf14   : > { %v9503_v2 = vpop.f32.mrf.mxu1 }
 0xf15   : > { %v9554_v42 = vmul.f32 %v13371_v9, %v9503_v2  ;;  %v21082_v2 = vld [vmem:[#allocation187_spill] sm:$0xff] }
 0xf16   : > { %v12682_v54 = vpop.f32.mrf.mxu1  ;;  %v8935_v16 = vpop.xlane.xlu0 %8934 }
 0xf17   : > { %12733 = vmatprep.mubr.msk.f32.mxu0 %vm21054_vm0, %v9554_v42  ;;  %13380 = vrcp.f32 %v8935_v16  ;;  %v21083_v42 = vld [vmem:[#allocation88_spill] sm:$0xff]  ;;  %vm21103_vm0 = vmmov %vm21084_vm2 }
 0xf18   : > { %v9508_v26 = vpop.f32.mrf.mxu1  ;;  %v6013_v54 = vadd.f32 %v21083_v42, %v21082_v2  ;;  %v9883_v16 = vld [vmem:[%s13468_s27 + $0x30] sm:$0xff] }
 0xf19   : > { %v9555_v8 = vmul.f32 %v13373_v40, %v9508_v26  ;;  %v9882_v40 = vld [vmem:[%s13468_s27 + $0x28] sm:$0xff]  ;;  %v21102_v42 = vld [vmem:[#allocation108_spill] sm:$0xff] }
 0xf1a   : > { %v12685_v7 = vpop.f32.mrf.mxu1  ;;  %v7980_v26 = vadd.f32 %v18317_v47, %v6013_v54 }
 0xf1b   : > { %12734 = vmatmul.mubr.msk.f32.gmra.mxu0 %vm21070_vm12, %v9555_v8  ;;  %vm21104_vm12 = vmmov %vm21103_vm0 }
 0xf1c   : > { %v9513_v62 = vpop.f32.mrf.mxu1 }
 0xf1d   : > { %v9556_v28 = vmul.f32 %v13375_v1, %v9513_v62  ;;  %v9881_v1 = vld [vmem:[%s13468_s27 + $0x20] sm:$0xff] }
 0xf1e   : > { %v12688_v58 = vpop.f32.mrf.mxu1 }
 0xf1f   : > { %12736 = vmatprep.mubr.msk.f32.mxu0 %vm21071_vm1, %v9556_v28  ;;  %vm21105_vm1 = vmmov %vm21103_vm0 }
 0xf20   : > { %v9518_v59 = vpop.f32.mrf.mxu1 }
 0xf21   : > { %v9557_v49 = vmul.f32 %v13377_v10, %v9518_v59  ;;  %v21086_v59 = vld [vmem:[#allocation104_spill] sm:$0xff] }
 0xf22   : > { %v12691_v60 = vpop.f32.mrf.mxu1 }
 0xf23   : > { %12737 = vmatmul.mubr.msk.f32.gmra.mxu0 %vm21072_vm6, %v9557_v49  ;;  %v21087_v49 = vld [vmem:[#allocation177_spill] sm:$0xff]  ;;  %vm21106_vm6 = vmmov %vm21103_vm0 }
 0xf24   : > { %v9523_v13 = vpop.f32.mrf.mxu1  ;;  %v13381_v44 = vpop.eup %13380  ;;  %v6023_v60 = vadd.f32 %v21087_v49, %v21086_v59  ;;  %v9892_v49 = vld [vmem:[%s13468_s27 + $0x78] sm:$0xff] }
 0xf25   : > { %v9558_v11 = vmul.f32 %v13379_v17, %v9523_v13  ;;  %v9884_v13 = vld [vmem:[%s13468_s27 + $0x38] sm:$0xff] }
 0xf26   : > { %v12694_v33 = vpop.f32.mrf.mxu1 }
 0xf27   : > { %12739 = vmatprep.mubr.msk.f32.mxu0 %vm21073_vm13, %v9558_v11  ;;  %vm21113_vm13 = vmmov %vm21103_vm0 }
 0xf4c   : > { %v9528_v37 = vpop.f32.mrf.mxu1 }
 0xf4d   : > { %v9559_v12 = vmul.f32 %v13381_v44, %v9528_v37 }
 0xf4e   : > { %v12697_v39 = vpop.f32.mrf.mxu1 }
 0xf4f   : > { %v12702_v31 = vpop.f32.mrf.mxu0  ;;  %12740 = vmatmul.mubr.msk.f32.gmra.mxu0 %vm21077_vm5, %v9559_v12  ;;  %v6033_v12 = vadd.f32 %v21091_v36, %v21090_v41  ;;  %v9886_v39 = vld [vmem:[%s13468_s27 + $0x48] sm:$0xff]  ;;  %v21111_v41 = vld [vmem:[#allocation165_spill] sm:$0xff]  ;;  %vm21115_vm5 = vmmov %vm21103_vm0 }
 0xf50   : > { %v9850_v15 = vadd.f32 %v12702_v31, %v18298_v22  ;;  %v21112_v36 = vld [vmem:[#allocation133_spill] sm:$0xff] }
 0xf51   : > { %v9710_v27 = vpop.f32.mrf.mxu0 }
 0xf52   : > { %v9906_v52 = vadd.f32 %v9878_v61, %v9850_v15  ;;  %v9849_v6 = vadd.f32 %v9710_v27, %v7976_v4  ;;  %v9885_v4 = vld [vmem:[%s13468_s27 + $0x40] sm:$0xff]  ;;  %v21093_v15 = vld [vmem:[#allocation103_spill] sm:$0xff] }
 0xf53   : > { %v6043_v27 = vadd.f32 %v21094_v56, %v21093_v15 }
 0xf54   : > { %v9938_v22 = vadd.f32 %v19227_v21, %v9906_v52  ;;  %v9905_v19 = vadd.f32 %v9877_v53, %v9849_v6 }
 0xf56   : > { %9966 = vst.msk [vmem:[%s19234_s14 + $0x8] sm:$0xff] %vm21080_vm3, %v9938_v22  ;;  %v9937_v32 = vadd.f32 %v19227_v21, %v9905_v19  ;;  %v12705_v57 = vpop.f32.mrf.mxu0  ;;  %vm21119_vm3 = vmmov %vm21103_vm0 }
 0xf57   : > { %v9852_v46 = vadd.f32 %v12705_v57, %v18307_v38  ;;  %v21097_v57 = vld [vmem:[#allocation130_spill] sm:$0xff] }
 0xf58   : > { %9965 = vst.msk [vmem:[%s19234_s14] sm:$0xff] %vm21081_vm10, %v9937_v32  ;;  %v9720_v29 = vpop.f32.mrf.mxu0  ;;  %v9887_v32 = vld [vmem:[%s13468_s27 + $0x50] sm:$0xff]  ;;  %vm21121_vm10 = vmmov %vm21103_vm0 }
 0xf59   : > { %v9908_v5 = vadd.f32 %v9880_v20, %v9852_v46  ;;  %v9851_v14 = vadd.f32 %v9720_v29, %v7978_v51  ;;  %v21098_v20 = vld [vmem:[#allocation83_spill] sm:$0xff] }
 0xf5a   : > { %v6053_v51 = vadd.f32 %v21098_v20, %v21097_v57  ;;  %v9895_v20 = vld [vmem:[%s13468_s27 + $0x90] sm:$0xff] }
 0xf5b   : > { %v9940_v9 = vadd.f32 %v19227_v21, %v9908_v5  ;;  %v9907_v43 = vadd.f32 %v9879_v48, %v9851_v14  ;;  %v9890_v5 = vld [vmem:[%s13468_s27 + $0x68] sm:$0xff]  ;;  %v21100_v14 = vld [vmem:[#allocation142_spill] sm:$0xff] }
 0xf5d   : > { %9968 = vst.msk [vmem:[%s19234_s14 + $0x18] sm:$0xff] %vm21084_vm2, %v9940_v9  ;;  %v9939_v34 = vadd.f32 %v19227_v21, %v9907_v43  ;;  %v7988_v9 = vadd.f32 %v21100_v14, %v6053_v51  ;;  %vm21123_vm2 = vmmov %vm21103_vm0  ;;  %v21126_v14 = vld [vmem:[#allocation110_spill] sm:$0xff] }
 0xf5e   : > { %v12708_v38 = vpop.f32.mrf.mxu0 }
 0xf5f   : > { %9967 = vst.msk [vmem:[%s19234_s14 + $0x10] sm:$0xff] %vm21085_vm14, %v9939_v34  ;;  %v9854_v8 = vadd.f32 %v12708_v38, %v18315_v24  ;;  %v7982_v24 = vadd.f32 %v18325_v50, %v6023_v60  ;;  %v7984_v50 = vadd.f32 %v18384_v63, %v6033_v12  ;;  %v9888_v63 = vld [vmem:[%s13468_s27 + $0x58] sm:$0xff]  ;;  %v9889_v38 = vld [vmem:[%s13468_s27 + $0x60] sm:$0xff]  ;;  %v6073_v12 = vadd.f32 %v21112_v36, %v21111_v41  ;;  %vm21124_vm14 = vmmov %vm21103_vm0 }
 0xf60   : > { %v9730_v7 = vpop.f32.mrf.mxu0  ;;  %v21109_v60 = vld [vmem:[#allocation150_spill] sm:$0xff] }
 0xf61   : > { %v9910_v62 = vadd.f32 %v9882_v40, %v9854_v8  ;;  %v9853_v28 = vadd.f32 %v9730_v7, %v7980_v26  ;;  %v21135_v36 = vld [vmem:[#allocation186_spill] sm:$0xff] }
 0xf63   : > { %v9942_v58 = vadd.f32 %v19227_v21, %v9910_v62  ;;  %v9909_v10 = vadd.f32 %v9881_v1, %v9853_v28  ;;  %v21107_v28 = vld [vmem:[#allocation162_spill] sm:$0xff] }
 0xf65   : > { %9970 = vst.msk [vmem:[%s19234_s14 + $0x28] sm:$0xff] %vm21088_vm9, %v9942_v58  ;;  %v9941_v47 = vadd.f32 %v19227_v21, %v9909_v10  ;;  %v21108_v58 = vld [vmem:[#allocation120_spill] sm:$0xff]  ;;  %vm21131_vm9 = vmmov %vm21103_vm0 }
 0xf66   : > { %v12711_v17 = vpop.f32.mrf.mxu0  ;;  %v6063_v10 = vadd.f32 %v21108_v58, %v21107_v28  ;;  %v21129_v28 = vld [vmem:[#allocation194_spill] sm:$0xff]  ;;  %v21130_v58 = vld [vmem:[#allocation183_spill] sm:$0xff] }
 0xf67   : > { %9969 = vst.msk [vmem:[%s19234_s14 + $0x20] sm:$0xff] %vm21089_vm15, %v9941_v47  ;;  %v9856_v11 = vadd.f32 %v12711_v17, %v18323_v30  ;;  %v21110_v17 = vld [vmem:[#allocation163_spill] sm:$0xff]  ;;  %vm21133_vm15 = vmmov %vm21103_vm0 }
 0xf68   : > { %v9740_v33 = vpop.f32.mrf.mxu0  ;;  %v7990_v47 = vadd.f32 %v21109_v60, %v6063_v10  ;;  %v6103_v10 = vadd.f32 %v21130_v58, %v21129_v28  ;;  %v9900_v60 = vld [vmem:[%s13468_s27 + $0xb8] sm:$0xff] }
 0xf69   : > { %v9912_v44 = vadd.f32 %v9884_v13, %v9856_v11  ;;  %v9855_v37 = vadd.f32 %v9740_v33, %v7982_v24  ;;  %v9891_v11 = vld [vmem:[%s13468_s27 + $0x70] sm:$0xff] }
 0xf6b   : > { %v9944_v0 = vadd.f32 %v19227_v21, %v9912_v44  ;;  %v9911_v55 = vadd.f32 %v9883_v16, %v9855_v37  ;;  %v12714_v45 = vpop.f32.mrf.mxu0 }
 0xf6c   : > { %v9858_v31 = vadd.f32 %v12714_v45, %v18331_v18  ;;  %v7986_v18 = vadd.f32 %v18398_v23, %v6043_v27  ;;  %v9894_v45 = vld [vmem:[%s13468_s27 + $0x88] sm:$0xff] }
 0xf6d   : > { %9972 = vst.msk [vmem:[%s19234_s14 + $0x38] sm:$0xff] %vm21092_vm7, %v9944_v0  ;;  %v9943_v30 = vadd.f32 %v19227_v21, %v9911_v55  ;;  %v9750_v61 = vpop.f32.mrf.mxu0  ;;  %vm21137_vm7 = vmmov %vm21103_vm0 }
 0xf6e   : > { %v9914_v53 = vadd.f32 %v9886_v39, %v9858_v31  ;;  %v9857_v52 = vadd.f32 %v9750_v61, %v7984_v50  ;;  %v21114_v39 = vld [vmem:[#allocation113_spill] sm:$0xff]  ;;  %v21116_v31 = vld [vmem:[#allocation180_spill] sm:$0xff] }
 0xf6f   : > { %9971 = vst.msk [vmem:[%s19234_s14 + $0x30] sm:$0xff] %vm21095_vm4, %v9943_v30  ;;  %v12717_v6 = vpop.f32.mrf.mxu0  ;;  %v7992_v50 = vadd.f32 %v21114_v39, %v6073_v12  ;;  %v21136_v12 = vld [vmem:[#allocation93_spill] sm:$0xff]  ;;  %v9902_v39 = vld [vmem:[%s13468_s27 + $0xc8] sm:$0xff]  ;;  %vm21139_vm4 = vmmov %vm21103_vm0 }
 0xf70   : > { %v9946_v22 = vadd.f32 %v19227_v21, %v9914_v53  ;;  %v9913_v19 = vadd.f32 %v9885_v4, %v9857_v52  ;;  %v9860_v35 = vadd.f32 %v12717_v6, %v21096_v25  ;;  %v9893_v4 = vld [vmem:[%s13468_s27 + $0x80] sm:$0xff] }
 0xf71   : > { %v9760_v3 = vpop.f32.mrf.mxu0  ;;  %v21117_v52 = vld [vmem:[#allocation182_spill] sm:$0xff] }
 0xf72   : > { %9974 = vst.msk [vmem:[%s19234_s14 + $0x48] sm:$0xff] %vm21099_vm11, %v9946_v22  ;;  %v9945_v46 = vadd.f32 %v19227_v21, %v9913_v19  ;;  %v9916_v29 = vadd.f32 %v9888_v63, %v9860_v35  ;;  %v9859_v48 = vadd.f32 %v9760_v3, %v7986_v18  ;;  %v21118_v6 = vld [vmem:[#allocation94_spill] sm:$0xff]  ;;  %v9896_v19 = vld [vmem:[%s13468_s27 + $0x98] sm:$0xff]  ;;  %vm21141_vm11 = vmmov %vm21103_vm0 }
 0xf73   : > { %v12720_v23 = vpop.f32.mrf.mxu0  ;;  %v6083_v63 = vadd.f32 %v21118_v6, %v21117_v52  ;;  %v21120_v25 = vld [vmem:[#allocation106_spill] sm:$0xff] }
 0xf74   : > { %9973 = vst.msk [vmem:[%s19234_s14 + $0x40] sm:$0xff] %vm21101_vm8, %v9945_v46  ;;  %v9948_v43 = vadd.f32 %v19227_v21, %v9916_v29  ;;  %v9915_v2 = vadd.f32 %v9887_v32, %v9859_v48  ;;  %v9862_v54 = vadd.f32 %v12720_v23, %v21102_v42  ;;  %v21122_v3 = vld [vmem:[#allocation86_spill] sm:$0xff]  ;;  %v21127_v42 = vld [vmem:[#allocation116_spill] sm:$0xff]  ;;  %vm21142_vm8 = vmmov %vm21103_vm0 }
 0xf75   : > { %v9770_v34 = vpop.f32.mrf.mxu0  ;;  %v7994_v35 = vadd.f32 %v21120_v25, %v6083_v63  ;;  %v21143_v63 = vld [vmem:[#allocation196_spill] sm:$0xff]  ;;  %v9904_v25 = vld [vmem:[%s13468_s27 + $0xd8] sm:$0xff] }
 0xf76   : > { %9976 = vst.msk [vmem:[%s19234_s14 + $0x58] sm:$0xff] %vm21103_vm0, %v9948_v43  ;;  %v9947_v40 = vadd.f32 %v19227_v21, %v9915_v2  ;;  %v9918_v26 = vadd.f32 %v9890_v5, %v9862_v54  ;;  %v9861_v8 = vadd.f32 %v9770_v34, %v7988_v9  ;;  %v21125_v5 = vld [vmem:[#allocation192_spill] sm:$0xff]  ;;  %v9898_v2 = vld [vmem:[%s13468_s27 + $0xa8] sm:$0xff] }
 0xf77   : > { %v6093_v9 = vadd.f32 %v21126_v14, %v21125_v5  ;;  %v21128_v34 = vld [vmem:[#allocation147_spill] sm:$0xff] }
 0xf78   : > { %9975 = vst.msk [vmem:[%s19234_s14 + $0x50] sm:$0xff] %vm21104_vm12, %v9947_v40  ;;  %v9950_v7 = vadd.f32 %v19227_v21, %v9918_v26  ;;  %v9917_v1 = vadd.f32 %v9889_v38, %v9861_v8  ;;  %v9897_v26 = vld [vmem:[%s13468_s27 + $0xa0] sm:$0xff]  ;;  %vm21147_vm12 = vmmov %vm21103_vm0 }
 0xf79   : > { %v7996_v54 = vadd.f32 %v21127_v42, %v6093_v9 }
 0xf7a   : > { %9978 = vst.msk [vmem:[%s19234_s14 + $0x68] sm:$0xff] %vm21105_vm1, %v9950_v7  ;;  %v9949_v62 = vadd.f32 %v19227_v21, %v9917_v1 }
 0xf7c   : > { %9977 = vst.msk [vmem:[%s19234_s14 + $0x60] sm:$0xff] %vm21106_vm6, %v9949_v62 }
 0xf9c   : > { %v12723_v59 = vpop.f32.mrf.mxu0 }
 0xf9d   : > { %v9864_v13 = vadd.f32 %v12723_v59, %v21110_v17 }
 0xf9e   : > { %v9780_v24 = vpop.f32.mrf.mxu0 }
 0xf9f   : > { %v9920_v33 = vadd.f32 %v9892_v49, %v9864_v13  ;;  %v9863_v16 = vadd.f32 %v9780_v24, %v7990_v47  ;;  %v21132_v47 = vld [vmem:[#allocation105_spill] sm:$0xff]  ;;  %v21134_v13 = vld [vmem:[#allocation167_spill] sm:$0xff] }
 0xfa0   : > { %v7998_v17 = vadd.f32 %v21132_v47, %v6103_v10 }
 0xfa1   : > { %v9952_v44 = vadd.f32 %v19227_v21, %v9920_v33  ;;  %v9919_v37 = vadd.f32 %v9891_v11, %v9863_v16  ;;  %v9899_v33 = vld [vmem:[%s13468_s27 + $0xb0] sm:$0xff] }
 0xfa3   : > { %9980 = vst.msk [vmem:[%s19234_s14 + $0x78] sm:$0xff] %vm21113_vm13, %v9952_v44  ;;  %v9951_v0 = vadd.f32 %v19227_v21, %v9919_v37 }
 0xfa4   : > { %v12726_v55 = vpop.f32.mrf.mxu0 }
 0xfa5   : > { %9979 = vst.msk [vmem:[%s19234_s14 + $0x70] sm:$0xff] %vm21115_vm5, %v9951_v0  ;;  %v9866_v30 = vadd.f32 %v12726_v55, %v21116_v31  ;;  %v6113_v0 = vadd.f32 %v21136_v12, %v21135_v36 }
 0xfa6   : > { %v9790_v61 = vpop.f32.mrf.mxu0 }
 0xfa7   : > { %v9922_v15 = vadd.f32 %v9894_v45, %v9866_v30  ;;  %v9865_v56 = vadd.f32 %v9790_v61, %v7992_v50  ;;  %v21138_v50 = vld [vmem:[#allocation85_spill] sm:$0xff]  ;;  %v21140_v30 = vld [vmem:[#allocation172_spill] sm:$0xff] }
 0xfa8   : > { %v8000_v31 = vadd.f32 %v21138_v50, %v6113_v0 }
 0xfa9   : > { %v9954_v27 = vadd.f32 %v19227_v21, %v9922_v15  ;;  %v9921_v53 = vadd.f32 %v9893_v4, %v9865_v56  ;;  %v9901_v15 = vld [vmem:[%s13468_s27 + $0xc0] sm:$0xff] }
 0xfab   : > { %9982 = vst.msk [vmem:[%s19234_s14 + $0x88] sm:$0xff] %vm21119_vm3, %v9954_v27  ;;  %v9953_v18 = vadd.f32 %v19227_v21, %v9921_v53 }
 0xfac   : > { %v12729_v22 = vpop.f32.mrf.mxu0 }
 0xfad   : > { %9981 = vst.msk [vmem:[%s19234_s14 + $0x80] sm:$0xff] %vm21121_vm10, %v9953_v18  ;;  %v9868_v32 = vadd.f32 %v12729_v22, %v21122_v3  ;;  %v21144_v18 = vld [vmem:[#allocation160_spill] sm:$0xff] }
 0xfae   : > { %v9800_v57 = vpop.f32.mrf.mxu0  ;;  %v6123_v22 = vadd.f32 %v21144_v18, %v21143_v63 }
 0xfaf   : > { %v9924_v51 = vadd.f32 %v9896_v19, %v9868_v32  ;;  %v9867_v46 = vadd.f32 %v9800_v57, %v7994_v35  ;;  %v21145_v35 = vld [vmem:[#allocation138_spill] sm:$0xff]  ;;  %v21146_v32 = vld [vmem:[#allocation107_spill] sm:$0xff] }
 0xfb0   : > { %v8002_v3 = vadd.f32 %v21145_v35, %v6123_v22 }
 0xfb1   : > { %v9956_v29 = vadd.f32 %v19227_v21, %v9924_v51  ;;  %v9923_v48 = vadd.f32 %v9895_v20, %v9867_v46  ;;  %v9903_v51 = vld [vmem:[%s13468_s27 + $0xd0] sm:$0xff] }
 0xfb3   : > { %9984 = vst.msk [vmem:[%s19234_s14 + $0x98] sm:$0xff] %vm21123_vm2, %v9956_v29  ;;  %v9955_v23 = vadd.f32 %v19227_v21, %v9923_v48 }
 0xfb5   : > { %9983 = vst.msk [vmem:[%s19234_s14 + $0x90] sm:$0xff] %vm21124_vm14, %v9955_v23 }
 0xfd3   : > { %v12732_v43 = vpop.f32.mrf.mxu0 }
 0xfd4   : > { %v9870_v38 = vadd.f32 %v12732_v43, %v21128_v34 }
 0xfd5   : > { %v9810_v40 = vpop.f32.mrf.mxu0 }
 0xfd6   : > { %v9926_v8 = vadd.f32 %v9898_v2, %v9870_v38  ;;  %v9869_v7 = vadd.f32 %v9810_v40, %v7996_v54 }
 0xfd8   : > { %v9958_v1 = vadd.f32 %v19227_v21, %v9926_v8  ;;  %v9925_v62 = vadd.f32 %v9897_v26, %v9869_v7 }
 0xfda   : > { %9986 = vst.msk [vmem:[%s19234_s14 + $0xa8] sm:$0xff] %vm21131_vm9, %v9958_v1  ;;  %v9957_v59 = vadd.f32 %v19227_v21, %v9925_v62 }
 0xfdb   : > { %v12735_v49 = vpop.f32.mrf.mxu0 }
 0xfdc   : > { %9985 = vst.msk [vmem:[%s19234_s14 + $0xa0] sm:$0xff] %vm21133_vm15, %v9957_v59  ;;  %v9872_v24 = vadd.f32 %v12735_v49, %v21134_v13 }
 0xfdd   : > { %v9820_v11 = vpop.f32.mrf.mxu0 }
 0xfde   : > { %v9928_v16 = vadd.f32 %v9900_v60, %v9872_v24  ;;  %v9871_v44 = vadd.f32 %v9820_v11, %v7998_v17 }
 0xfe0   : > { %v9960_v37 = vadd.f32 %v19227_v21, %v9928_v16  ;;  %v9927_v41 = vadd.f32 %v9899_v33, %v9871_v44 }
 0xfe2   : > { %9988 = vst.msk [vmem:[%s19234_s14 + $0xb8] sm:$0xff] %vm21137_vm7, %v9960_v37  ;;  %v9959_v55 = vadd.f32 %v19227_v21, %v9927_v41 }
 0xfe3   : > { %v12738_v45 = vpop.f32.mrf.mxu0 }
 0xfe4   : > { %9987 = vst.msk [vmem:[%s19234_s14 + $0xb0] sm:$0xff] %vm21139_vm4, %v9959_v55  ;;  %v9874_v61 = vadd.f32 %v12738_v45, %v21140_v30 }
 0xfe5   : > { %v9830_v4 = vpop.f32.mrf.mxu0 }
 0xfe6   : > { %v9930_v56 = vadd.f32 %v9902_v39, %v9874_v61  ;;  %v9873_v27 = vadd.f32 %v9830_v4, %v8000_v31 }
 0xfe8   : > { %v9962_v53 = vadd.f32 %v19227_v21, %v9930_v56  ;;  %v9929_v52 = vadd.f32 %v9901_v15, %v9873_v27 }
 0xfea   : > { %9990 = vst.msk [vmem:[%s19234_s14 + $0xc8] sm:$0xff] %vm21141_vm11, %v9962_v53  ;;  %v9961_v6 = vadd.f32 %v19227_v21, %v9929_v52 }
 0xfec   : > { %9989 = vst.msk [vmem:[%s19234_s14 + $0xc0] sm:$0xff] %vm21142_vm8, %v9961_v6 }
0x100f   : > { %v12741_v19 = vpop.f32.mrf.mxu0 }
0x1010   : > { %v9876_v57 = vadd.f32 %v12741_v19, %v21146_v32 }
0x1011   : > { %v9840_v20 = vpop.f32.mrf.mxu0 }
0x1012   : > { %v9932_v46 = vadd.f32 %v9904_v25, %v9876_v57  ;;  %v9875_v29 = vadd.f32 %v9840_v20, %v8002_v3 }
0x1014   : > { %v9964_v48 = vadd.f32 %v19227_v21, %v9932_v46  ;;  %v9931_v23 = vadd.f32 %v9903_v51, %v9875_v29 }
0x1016   : > { %9992 = vst.msk [vmem:[%s19234_s14 + $0xd8] sm:$0xff] %vm21103_vm0, %v9964_v48  ;;  %v9963_v5 = vadd.f32 %v19227_v21, %v9931_v23 }
0x1018   : > { %9991 = vst.msk [vmem:[%s19234_s14 + $0xd0] sm:$0xff] %vm21147_vm12, %v9963_v5 }
0x1019 PF: > { %s16_s21 = sadd.s32 1, %s13408_s21  }
0x101a   : > { %p13_p4 = scmp.ge.s32.totalorder %s16_s21, 4  }
0x101c   :  { %15 = sbr.rel (!%p13_p4) target bundleno = 1 (0x1), region = 83 }

</bundles_post_ra>
